<compile_context>
chip_gen: v7x
topology: tpu7x:2x2x1
jax: 0.10.0
libtpu: 0.0.40
codegen_flags: <defaults>
</compile_context>

<pallas_src>
import jax
import jax.numpy as jnp
import numpy as np
from jax.experimental import pallas as pl
from jax.experimental.pallas import tpu as pltpu

BN_EPS = 1e-5
ADMP_OUT = 25   # AdaptiveMaxPool1d(25)


# ----------------------------- kernel helpers -------------------------------
def _shift_rows(h, off):
    """Whole-array row shift: out[i] = h[i + off], zero rows at the array edge.

    Single slice + 2-piece concat on the sublane axis: O(1) code in batch,
    no per-batch slicing."""
    if off == 0:
        return h
    c = h.shape[1]
    z = jnp.zeros((abs(off), c), h.dtype)
    if off > 0:
        return jnp.concatenate([h[off:, :], z], axis=0)
    return jnp.concatenate([z, h[:off, :]], axis=0)


def _conv3(h, w_ref, offsets):
    """k=3 / stride=1 Conv1d as three accumulating K=Cin matmuls.

    h:       flat (M, Cin) f32 activations (pad rows zero where it matters).
    w_ref:   (3, Cin, Cout) bf16 per-tap weight matrices.
    offsets: tap row offsets, (0, 1, 2) for pad=0 or (-1, 0, 1) for pad=1.
    Operands are cast to bf16 right before the MXU; accumulation stays f32.
    """
    out = None
    for k, off in enumerate(offsets):
        t = _shift_rows(h, off).astype(jnp.bfloat16)
        p = jnp.dot(t, w_ref[k], preferred_element_type=jnp.float32)
        out = p if out is None else out + p
    return out


def _bn_relu(h, gamma, beta, mask, n_valid):
    """Training-mode BatchNorm1d (biased variance) + ReLU on flat (M, C) f32.

    `mask` is (M, 1) with 1.0 on valid rows: pad rows are excluded from the
    statistics (two-pass masked deviations) and re-zeroed on the output.
    The conv bias is dropped upstream - it cancels exactly under training-mode
    BatchNorm."""
    inv_n = jnp.float32(1.0 / n_valid)
    mean = jnp.sum(h * mask, axis=0, keepdims=True) * inv_n      # (1, C)
    d = (h - mean) * mask
    var = jnp.sum(d * d, axis=0, keepdims=True) * inv_n
    scale = gamma * jax.lax.rsqrt(var + BN_EPS)
    shift = beta - mean * scale
    return jnp.maximum(h * scale + shift, 0.0) * mask


def _maxpool2(h, scr):
    """MaxPool1d(2), floor mode, over the whole flat (rows, C) array.

    One store into the shared VMEM scratch + even/odd strided sublane loads.
    Per-batch segment lengths are even, so row pairs never straddle a batch
    boundary; garbage landing in pooled pad rows is masked downstream."""
    rows = h.shape[0]
    half = rows // 2
    scr[0:rows, :] = h
    return jnp.maximum(scr[pl.ds(0, half, stride=2), :],
                       scr[pl.ds(1, half, stride=2), :])


def _adaptive_maxpool_store(h, o_ref, batch, seg, valid, out_size):
    """AdaptiveMaxPool1d(out_size) on flat (batch*seg, C), written into o_ref.

    PyTorch bucket i covers [floor(i*valid/out), ceil((i+1)*valid/out)).
    Running 1..max_width window maxima are precomputed from whole-array
    shifted views; runs of buckets with equal width and consecutive starts
    are stored as one contiguous o_ref row slice."""
    bounds = [((i * valid) // out_size, -((-(i + 1) * valid) // out_size))
              for i in range(out_size)]
    max_w = max(e - s for s, e in bounds)
    wins = [h]                                  # wins[w-1][r] = max(h[r:r+w])
    acc = h
    for k in range(1, max_w):
        acc = jnp.maximum(acc, _shift_rows(h, k))
        wins.append(acc)
    for b in range(batch):
        src, dst = b * seg, b * out_size
        i = 0
        while i < out_size:
            s, e = bounds[i]
            w = e - s
            j = i
            while (j + 1 < out_size
                   and bounds[j + 1][1] - bounds[j + 1][0] == w
                   and bounds[j + 1][0] == bounds[j][0] + 1):
                j += 1
            n = j - i + 1
            o_ref[dst + i: dst + i + n, :] = (
                wins[w - 1][src + s: src + s + n, :].astype(o_ref.dtype))
            i = j + 1


# --------------------------------- kernel -----------------------------------
def _make_kernel(batch, l1, l2, lp2, lp2_seg):
    n1, n2, n34 = batch * l1, batch * l2, batch * lp2

    def kernel(xcol_ref,
               w1_ref, g1_ref, be1_ref,
               w2_ref, g2_ref, be2_ref,
               w3_ref, g3_ref, be3_ref,
               w4_ref, g4_ref, be4_ref,
               m1_ref, m2_ref, m3_ref,
               o_ref, scr):
        m1, m2, m3 = m1_ref[...], m2_ref[...], m3_ref[...]

        # layer1: Conv1d(1, 64, k=10, stride=3) as ONE (B*L1p, 10)@(10, 64)
        # matmul over the wrapper-built, zero-padded im2col matrix.
        h = jnp.dot(xcol_ref[...], w1_ref[...],
                    preferred_element_type=jnp.float32)           # (B*L1p, 64)
        h = _bn_relu(h, g1_ref[...], be1_ref[...], m1, n1)
        h = _maxpool2(h, scr)                                      # (B*Lp1p, 64)

        # layer2: Conv1d(64, 64, k=3, pad=0) + BN + ReLU + MaxPool1d(2)
        h = _conv3(h, w2_ref, (0, 1, 2))
        h = _bn_relu(h, g2_ref[...], be2_ref[...], m2, n2)
        h = _maxpool2(h, scr)                                      # (B*Lp2p, 64)
        h = h * m3    # zero pooled pad rows: the pad=1 convs below rely on a
                      # zero row right after each valid segment.

        # layer3: Conv1d(64, 64, k=3, pad=1) + BN + ReLU
        h = _conv3(h, w3_ref, (-1, 0, 1))
        h = _bn_relu(h, g3_ref[...], be3_ref[...], m3, n34)

        # layer4: Conv1d(64, feature_dim, k=3, pad=1) + BN + ReLU
        h = _conv3(h, w4_ref, (-1, 0, 1))
        h = _bn_relu(h, g4_ref[...], be4_ref[...], m3, n34)

        # AdaptiveMaxPool1d(25) written straight into o_ref row slices.
        _adaptive_maxpool_store(h, o_ref, batch, lp2_seg, lp2, ADMP_OUT)

    return kernel


# -------------------------------- wrapper ------------------------------------
def _round_up(x, m):
    return ((x + m - 1) // m) * m


def _seg_mask(batch, seg, valid):
    m = (jnp.arange(seg) < valid).astype(jnp.float32)
    return jnp.tile(m, batch).reshape(batch * seg, 1)


@jax.jit
def cnn1d_forward(x, params):
    # x: (B, 1, L) float32 (PyTorch NCL layout)
    B, _, L = x.shape
    feature_dim = params['w4'].shape[0]

    # PyTorch layer output lengths
    l1 = (L - 10) // 3 + 1      # conv1 (k=10, stride=3)
    lp1 = l1 // 2               # MaxPool1d(2)
    l2 = lp1 - 2                # conv2 (k=3, pad=0)
    lp2 = l2 // 2               # MaxPool1d(2); layers 3/4 keep this length

    # Padded per-batch segment lengths: both pools halve them exactly, every
    # segment base stays 8-row aligned, and each segment keeps >= 1 trailing
    # zero row for the pad=1 convolutions.
    L1p = _round_up(max(l1, 4 * (lp2 + 1)), 32)
    Lp1p = L1p // 2
    Lp2p = L1p // 4

    # im2col for the k=10 / stride=3 first conv, zero-padded to L1p windows
    # per batch element (batch folded into the matmul M dimension).
    # TODO(synk): build these windows in-kernel from the raw (B, L) signal to
    # avoid the 10-lane-wide (128-lane padded) operand at large B.
    idx = 3 * jnp.arange(l1)[:, None] + jnp.arange(10)[None, :]
    xw = x[:, 0, :][:, idx]                                       # (B, l1, 10)
    xcol = jnp.pad(xw, ((0, 0), (0, L1p - l1), (0, 0)))
    xcol = xcol.reshape(B * L1p, 10).astype(jnp.bfloat16)

    def w_taps(w):      # (Cout, Cin, 3) -> (3, Cin, Cout) per-tap matrices
        return jnp.transpose(w, (2, 1, 0)).astype(jnp.bfloat16)

    def row(v):
        return v.reshape(1, -1).astype(jnp.float32)

    w1 = jnp.transpose(params['w1'][:, 0, :], (1, 0)).astype(jnp.bfloat16)

    # Row-validity masks (pad rows excluded from BN stats / zeroed on output).
    m1 = _seg_mask(B, L1p, l1)       # conv1 output segments
    m2 = _seg_mask(B, Lp1p, l2)      # conv2 output segments
    m3 = _seg_mask(B, Lp2p, lp2)     # pool2 / conv3 / conv4 output segments

    # NOTE: conv biases are intentionally NOT passed: a per-channel bias is a
    # mathematical no-op under training-mode BatchNorm (it cancels in x-mean).
    args = (xcol,
            w1, row(params['g1']), row(params['be1']),
            w_taps(params['w2']), row(params['g2']), row(params['be2']),
            w_taps(params['w3']), row(params['g3']), row(params['be3']),
            w_taps(params['w4']), row(params['g4']), row(params['be4']),
            m1, m2, m3)

    # Scoped-VMEM budget from the actual resident footprint (+ margin).
    act_bytes = B * L1p * 64 * 4
    est = (sum(int(np.prod(a.shape)) * a.dtype.itemsize for a in args)
           + B * ADMP_OUT * feature_dim * 4 + 12 * act_bytes)
    vmem_limit = int(min(max(16 * 1024 * 1024, 2 * est), 64 * 1024 * 1024))

    vmem = pl.BlockSpec(memory_space=pltpu.MemorySpace.VMEM)
    # TODO(synk): for large B, tile the batch with a "parallel" grid axis and a
    # two-phase (accumulate/normalize) BatchNorm so VMEM stays bounded and
    # v7x's second TensorCore can split the work.
    out = pl.pallas_call(
        _make_kernel(B, l1, l2, lp2, Lp2p),
        out_shape=jax.ShapeDtypeStruct((B * ADMP_OUT, feature_dim), jnp.float32),
        in_specs=[vmem] * len(args),
        out_specs=vmem,
        scratch_shapes=[pltpu.VMEM((B * L1p, 64), jnp.float32)],  # shared pool scratch
        compiler_params=pltpu.CompilerParams(vmem_limit_bytes=vmem_limit),
    )(*args)

    # match PyTorch `out.view(B, -1)` on an NCL tensor (channel-major flatten)
    return (out.reshape(B, ADMP_OUT, feature_dim)
               .transpose(0, 2, 1)
               .reshape(B, feature_dim * ADMP_OUT))


# -------------------- pure-JAX reference (PyTorch semantics) -----------------
def torch_style_reference(x, params, matmul_dtype=jnp.float32):
    """PyTorch-semantics reference.  matmul_dtype=bfloat16 mirrors the kernel's
    MXU operand precision (accumulation stays f32); float32 is the exact path."""
    def conv1d(h, w, b, stride, pad):
        out = jax.lax.conv_general_dilated(
            h.astype(matmul_dtype), w.astype(matmul_dtype),
            window_strides=(stride,), padding=[(pad, pad)],
            dimension_numbers=('NCH', 'OIH', 'NCH'),
            preferred_element_type=jnp.float32,
            precision=jax.lax.Precision.HIGHEST)
        return out + b[None, :, None]

    def bn_relu(h, g, be):
        mean = h.mean(axis=(0, 2), keepdims=True)
        var = ((h - mean) ** 2).mean(axis=(0, 2), keepdims=True)
        y = (h - mean) / jnp.sqrt(var + BN_EPS) * g[None, :, None] + be[None, :, None]
        return jnp.maximum(y, 0.0)

    def maxpool2(h):
        Lc = (h.shape[2] // 2) * 2
        return jnp.maximum(h[:, :, 0:Lc:2], h[:, :, 1:Lc:2])

    def admp(h, n):
        Lc = h.shape[2]
        cols = []
        for i in range(n):
            s = (i * Lc) // n
            e = -((-(i + 1) * Lc) // n)
            cols.append(h[:, :, s:e].max(axis=2))
        return jnp.stack(cols, axis=2)

    h = bn_relu(conv1d(x, params['w1'], params['b1'], 3, 0), params['g1'], params['be1'])
    h = maxpool2(h)
    h = bn_relu(conv1d(h, params['w2'], params['b2'], 1, 0), params['g2'], params['be2'])
    h = maxpool2(h)
    h = bn_relu(conv1d(h, params['w3'], params['b3'], 1, 1), params['g3'], params['be3'])
    h = bn_relu(conv1d(h, params['w4'], params['b4'], 1, 1), params['g4'], params['be4'])
    h = admp(h, ADMP_OUT)
    return h.reshape(h.shape[0], -1)


# ---------------------------------- main -------------------------------------
if __name__ == "__main__":
    feature_dim = 32
    B, L = 2, 400                       # small, but long enough for all layers

    key = jax.random.PRNGKey(0)
    ks = jax.random.split(key, 17)
    f32 = jnp.float32
    params = {
        'w1': 0.2 * jax.random.normal(ks[0], (64, 1, 10), f32),
        'b1': 0.1 * jax.random.normal(ks[1], (64,), f32),
        'g1': 1.0 + 0.1 * jax.random.normal(ks[2], (64,), f32),
        'be1': 0.1 * jax.random.normal(ks[3], (64,), f32),
        'w2': 0.1 * jax.random.normal(ks[4], (64, 64, 3), f32),
        'b2': 0.1 * jax.random.normal(ks[5], (64,), f32),
        'g2': 1.0 + 0.1 * jax.random.normal(ks[6], (64,), f32),
        'be2': 0.1 * jax.random.normal(ks[7], (64,), f32),
        'w3': 0.1 * jax.random.normal(ks[8], (64, 64, 3), f32),
        'b3': 0.1 * jax.random.normal(ks[9], (64,), f32),
        'g3': 1.0 + 0.1 * jax.random.normal(ks[10], (64,), f32),
        'be3': 0.1 * jax.random.normal(ks[11], (64,), f32),
        'w4': 0.1 * jax.random.normal(ks[12], (feature_dim, 64, 3), f32),
        'b4': 0.1 * jax.random.normal(ks[13], (feature_dim,), f32),
        'g4': 1.0 + 0.1 * jax.random.normal(ks[14], (feature_dim,), f32),
        'be4': 0.1 * jax.random.normal(ks[15], (feature_dim,), f32),
    }
    x = jax.random.normal(ks[16], (B, 1, L), f32)

    out = jax.block_until_ready(cnn1d_forward(x, params))
    assert out.shape == (B, feature_dim * ADMP_OUT), out.shape

    # (1) tight check against a reference with the same bf16 MXU operand
    #     precision as the kernel -> verifies the kernel math exactly.
    ref_bf16 = jax.block_until_ready(
        torch_style_reference(x, params, matmul_dtype=jnp.bfloat16))
    np.testing.assert_allclose(np.asarray(out), np.asarray(ref_bf16),
                               rtol=2e-2, atol=2e-2)

    # (2) looser check against the pure-f32 PyTorch-semantics reference ->
    #     bounds the bf16 matmul approximation error.
    ref_f32 = jax.block_until_ready(
        torch_style_reference(x, params, matmul_dtype=jnp.float32))
    np.testing.assert_allclose(np.asarray(out), np.asarray(ref_f32),
                               rtol=1e-1, atol=1e-1)

    print("KERNEL_OK")
</pallas_src>

<mosaic_0001>
module attributes {stable_mosaic.version = 11 : i64} {
  func.func @kernel(%arg0: memref<320x10xbf16, #tpu.memory_space<vmem>>, %arg1: memref<10x64xbf16, #tpu.memory_space<vmem>>, %arg2: memref<1x64xf32, #tpu.memory_space<vmem>>, %arg3: memref<1x64xf32, #tpu.memory_space<vmem>>, %arg4: memref<3x64x64xbf16, #tpu.memory_space<vmem>>, %arg5: memref<1x64xf32, #tpu.memory_space<vmem>>, %arg6: memref<1x64xf32, #tpu.memory_space<vmem>>, %arg7: memref<3x64x64xbf16, #tpu.memory_space<vmem>>, %arg8: memref<1x64xf32, #tpu.memory_space<vmem>>, %arg9: memref<1x64xf32, #tpu.memory_space<vmem>>, %arg10: memref<3x64x32xbf16, #tpu.memory_space<vmem>>, %arg11: memref<1x32xf32, #tpu.memory_space<vmem>>, %arg12: memref<1x32xf32, #tpu.memory_space<vmem>>, %arg13: memref<320x1xf32, #tpu.memory_space<vmem>>, %arg14: memref<160x1xf32, #tpu.memory_space<vmem>>, %arg15: memref<80x1xf32, #tpu.memory_space<vmem>>, %arg16: memref<50x32xf32, #tpu.memory_space<vmem>>, %arg17: memref<320x64xf32, #tpu.memory_space<vmem>>) attributes {dimension_semantics = [], scalar_prefetch = 0 : i64, scratch_operands = 1 : i64, tpu.core_type = #tpu.core_type<tc>} {
    %c0 = arith.constant 0 : index
    %c0_0 = arith.constant 0 : index
    %0 = vector.load %arg13[%c0, %c0_0] : memref<320x1xf32, #tpu.memory_space<vmem>>, vector<320x1xf32>
    %c0_1 = arith.constant 0 : index
    %c0_2 = arith.constant 0 : index
    %1 = vector.load %arg14[%c0_1, %c0_2] : memref<160x1xf32, #tpu.memory_space<vmem>>, vector<160x1xf32>
    %c0_3 = arith.constant 0 : index
    %c0_4 = arith.constant 0 : index
    %2 = vector.load %arg15[%c0_3, %c0_4] : memref<80x1xf32, #tpu.memory_space<vmem>>, vector<80x1xf32>
    %c0_5 = arith.constant 0 : index
    %c0_6 = arith.constant 0 : index
    %3 = vector.load %arg0[%c0_5, %c0_6] : memref<320x10xbf16, #tpu.memory_space<vmem>>, vector<320x10xbf16>
    %c0_7 = arith.constant 0 : index
    %c0_8 = arith.constant 0 : index
    %4 = vector.load %arg1[%c0_7, %c0_8] : memref<10x64xbf16, #tpu.memory_space<vmem>>, vector<10x64xbf16>
    %cst = arith.constant dense<0.000000e+00> : vector<320x64xf32>
    %5 = tpu.matmul %3, %4, %cst {dimension_numbers = #tpu.dot_dimension_numbers<[1], [0], [0], [1], [0, 0, 1, 1], [], []>} : vector<320x10xbf16>, vector<10x64xbf16>, vector<320x64xf32> -> vector<320x64xf32>
    %c0_9 = arith.constant 0 : index
    %c0_10 = arith.constant 0 : index
    %6 = vector.load %arg2[%c0_9, %c0_10] : memref<1x64xf32, #tpu.memory_space<vmem>>, vector<1x64xf32>
    %c0_11 = arith.constant 0 : index
    %c0_12 = arith.constant 0 : index
    %7 = vector.load %arg3[%c0_11, %c0_12] : memref<1x64xf32, #tpu.memory_space<vmem>>, vector<1x64xf32>
    %8 = vector.broadcast %0 : vector<320x1xf32> to vector<320x64xf32>
    %9 = arith.mulf %5, %8 : vector<320x64xf32>
    %cst_13 = arith.constant dense<0.000000e+00> : vector<64xf32>
    %10 = vector.multi_reduction <add>, %9, %cst_13 [0] : vector<320x64xf32> to vector<64xf32>
    %11 = vector.shape_cast %10 : vector<64xf32> to vector<1x64xf32>
    %cst_14 = arith.constant 0.00381679391 : f32
    %12 = vector.broadcast %cst_14 : f32 to vector<1x64xf32>
    %13 = arith.mulf %11, %12 : vector<1x64xf32>
    %14 = vector.broadcast %13 : vector<1x64xf32> to vector<320x64xf32>
    %15 = arith.subf %5, %14 : vector<320x64xf32>
    %16 = vector.broadcast %0 : vector<320x1xf32> to vector<320x64xf32>
    %17 = arith.mulf %15, %16 : vector<320x64xf32>
    %18 = arith.mulf %17, %17 : vector<320x64xf32>
    %cst_15 = arith.constant dense<0.000000e+00> : vector<64xf32>
    %19 = vector.multi_reduction <add>, %18, %cst_15 [0] : vector<320x64xf32> to vector<64xf32>
    %20 = vector.shape_cast %19 : vector<64xf32> to vector<1x64xf32>
    %cst_16 = arith.constant 0.00381679391 : f32
    %21 = vector.broadcast %cst_16 : f32 to vector<1x64xf32>
    %22 = arith.mulf %20, %21 : vector<1x64xf32>
    %cst_17 = arith.constant 9.99999974E-6 : f32
    %23 = vector.broadcast %cst_17 : f32 to vector<1x64xf32>
    %24 = arith.addf %22, %23 : vector<1x64xf32>
    %25 = math.rsqrt %24 : vector<1x64xf32>
    %26 = arith.mulf %6, %25 : vector<1x64xf32>
    %27 = arith.mulf %13, %26 : vector<1x64xf32>
    %28 = arith.subf %7, %27 : vector<1x64xf32>
    %29 = vector.broadcast %26 : vector<1x64xf32> to vector<320x64xf32>
    %30 = arith.mulf %5, %29 : vector<320x64xf32>
    %31 = vector.broadcast %28 : vector<1x64xf32> to vector<320x64xf32>
    %32 = arith.addf %30, %31 : vector<320x64xf32>
    %cst_18 = arith.constant 0.000000e+00 : f32
    %33 = vector.broadcast %cst_18 : f32 to vector<320x64xf32>
    %34 = arith.maximumf %32, %33 : vector<320x64xf32>
    %35 = vector.broadcast %0 : vector<320x1xf32> to vector<320x64xf32>
    %36 = arith.mulf %34, %35 : vector<320x64xf32>
    %c0_19 = arith.constant 0 : index
    %c0_20 = arith.constant 0 : index
    %37 = vector.load %arg17[%c0_19, %c0_20] : memref<320x64xf32, #tpu.memory_space<vmem>>, vector<320x64xf32>
    tpu.vector_store %arg17[%c0_19, %c0_20], %36 {strides = array<i32>} : memref<320x64xf32, #tpu.memory_space<vmem>>, vector<320x64xf32>,
    %c0_21 = arith.constant 0 : index
    %c0_22 = arith.constant 0 : index
    %38 = tpu.strided_load %arg17[%c0_21, %c0_22] {strides = array<i32: 2, 1>} : memref<320x64xf32, #tpu.memory_space<vmem>>, vector<160x64xf32>
    %c1 = arith.constant 1 : index
    %c0_23 = arith.constant 0 : index
    %39 = tpu.strided_load %arg17[%c1, %c0_23] {strides = array<i32: 2, 1>} : memref<320x64xf32, #tpu.memory_space<vmem>>, vector<160x64xf32>
    %40 = arith.maximumf %38, %39 : vector<160x64xf32>
    %41 = arith.truncf %40 : vector<160x64xf32> to vector<160x64xbf16>
    %c0_24 = arith.constant 0 : index
    %c0_25 = arith.constant 0 : index
    %c0_26 = arith.constant 0 : index
    %42 = vector.load %arg4[%c0_24, %c0_25, %c0_26] : memref<3x64x64xbf16, #tpu.memory_space<vmem>>, vector<1x64x64xbf16>
    %43 = vector.shape_cast %42 : vector<1x64x64xbf16> to vector<64x64xbf16>
    %cst_27 = arith.constant dense<0.000000e+00> : vector<160x64xf32>
    %44 = tpu.matmul %41, %43, %cst_27 {dimension_numbers = #tpu.dot_dimension_numbers<[1], [0], [0], [1], [0, 0, 1, 1], [], []>} : vector<160x64xbf16>, vector<64x64xbf16>, vector<160x64xf32> -> vector<160x64xf32>
    %cst_28 = arith.constant 0.000000e+00 : f32
    %45 = vector.broadcast %cst_28 : f32 to vector<1x64xf32>
    %46 = vector.extract_strided_slice %40 {offsets = [1, 0], sizes = [159, 64], strides = [1, 1]} : vector<160x64xf32> to vector<159x64xf32>
    %47 = tpu.concatenate %46, %45 in 0 : vector<159x64xf32>, vector<1x64xf32> -> vector<160x64xf32>
    %48 = arith.truncf %47 : vector<160x64xf32> to vector<160x64xbf16>
    %c1_29 = arith.constant 1 : index
    %c0_30 = arith.constant 0 : index
    %c0_31 = arith.constant 0 : index
    %49 = vector.load %arg4[%c1_29, %c0_30, %c0_31] : memref<3x64x64xbf16, #tpu.memory_space<vmem>>, vector<1x64x64xbf16>
    %50 = vector.shape_cast %49 : vector<1x64x64xbf16> to vector<64x64xbf16>
    %cst_32 = arith.constant dense<0.000000e+00> : vector<160x64xf32>
    %51 = tpu.matmul %48, %50, %cst_32 {dimension_numbers = #tpu.dot_dimension_numbers<[1], [0], [0], [1], [0, 0, 1, 1], [], []>} : vector<160x64xbf16>, vector<64x64xbf16>, vector<160x64xf32> -> vector<160x64xf32>
    %52 = arith.addf %44, %51 : vector<160x64xf32>
    %cst_33 = arith.constant 0.000000e+00 : f32
    %53 = vector.broadcast %cst_33 : f32 to vector<2x64xf32>
    %54 = vector.extract_strided_slice %40 {offsets = [2, 0], sizes = [158, 64], strides = [1, 1]} : vector<160x64xf32> to vector<158x64xf32>
    %55 = tpu.concatenate %54, %53 in 0 : vector<158x64xf32>, vector<2x64xf32> -> vector<160x64xf32>
    %56 = arith.truncf %55 : vector<160x64xf32> to vector<160x64xbf16>
    %c2 = arith.constant 2 : index
    %c0_34 = arith.constant 0 : index
    %c0_35 = arith.constant 0 : index
    %57 = vector.load %arg4[%c2, %c0_34, %c0_35] : memref<3x64x64xbf16, #tpu.memory_space<vmem>>, vector<1x64x64xbf16>
    %58 = vector.shape_cast %57 : vector<1x64x64xbf16> to vector<64x64xbf16>
    %cst_36 = arith.constant dense<0.000000e+00> : vector<160x64xf32>
    %59 = tpu.matmul %56, %58, %cst_36 {dimension_numbers = #tpu.dot_dimension_numbers<[1], [0], [0], [1], [0, 0, 1, 1], [], []>} : vector<160x64xbf16>, vector<64x64xbf16>, vector<160x64xf32> -> vector<160x64xf32>
    %60 = arith.addf %52, %59 : vector<160x64xf32>
    %c0_37 = arith.constant 0 : index
    %c0_38 = arith.constant 0 : index
    %61 = vector.load %arg5[%c0_37, %c0_38] : memref<1x64xf32, #tpu.memory_space<vmem>>, vector<1x64xf32>
    %c0_39 = arith.constant 0 : index
    %c0_40 = arith.constant 0 : index
    %62 = vector.load %arg6[%c0_39, %c0_40] : memref<1x64xf32, #tpu.memory_space<vmem>>, vector<1x64xf32>
    %63 = vector.broadcast %1 : vector<160x1xf32> to vector<160x64xf32>
    %64 = arith.mulf %60, %63 : vector<160x64xf32>
    %cst_41 = arith.constant dense<0.000000e+00> : vector<64xf32>
    %65 = vector.multi_reduction <add>, %64, %cst_41 [0] : vector<160x64xf32> to vector<64xf32>
    %66 = vector.shape_cast %65 : vector<64xf32> to vector<1x64xf32>
    %cst_42 = arith.constant 0.00793650839 : f32
    %67 = vector.broadcast %cst_42 : f32 to vector<1x64xf32>
    %68 = arith.mulf %66, %67 : vector<1x64xf32>
    %69 = vector.broadcast %68 : vector<1x64xf32> to vector<160x64xf32>
    %70 = arith.subf %60, %69 : vector<160x64xf32>
    %71 = vector.broadcast %1 : vector<160x1xf32> to vector<160x64xf32>
    %72 = arith.mulf %70, %71 : vector<160x64xf32>
    %73 = arith.mulf %72, %72 : vector<160x64xf32>
    %cst_43 = arith.constant dense<0.000000e+00> : vector<64xf32>
    %74 = vector.multi_reduction <add>, %73, %cst_43 [0] : vector<160x64xf32> to vector<64xf32>
    %75 = vector.shape_cast %74 : vector<64xf32> to vector<1x64xf32>
    %cst_44 = arith.constant 0.00793650839 : f32
    %76 = vector.broadcast %cst_44 : f32 to vector<1x64xf32>
    %77 = arith.mulf %75, %76 : vector<1x64xf32>
    %cst_45 = arith.constant 9.99999974E-6 : f32
    %78 = vector.broadcast %cst_45 : f32 to vector<1x64xf32>
    %79 = arith.addf %77, %78 : vector<1x64xf32>
    %80 = math.rsqrt %79 : vector<1x64xf32>
    %81 = arith.mulf %61, %80 : vector<1x64xf32>
    %82 = arith.mulf %68, %81 : vector<1x64xf32>
    %83 = arith.subf %62, %82 : vector<1x64xf32>
    %84 = vector.broadcast %81 : vector<1x64xf32> to vector<160x64xf32>
    %85 = arith.mulf %60, %84 : vector<160x64xf32>
    %86 = vector.broadcast %83 : vector<1x64xf32> to vector<160x64xf32>
    %87 = arith.addf %85, %86 : vector<160x64xf32>
    %cst_46 = arith.constant 0.000000e+00 : f32
    %88 = vector.broadcast %cst_46 : f32 to vector<160x64xf32>
    %89 = arith.maximumf %87, %88 : vector<160x64xf32>
    %90 = vector.broadcast %1 : vector<160x1xf32> to vector<160x64xf32>
    %91 = arith.mulf %89, %90 : vector<160x64xf32>
    %c0_47 = arith.constant 0 : index
    %c0_48 = arith.constant 0 : index
    %92 = vector.load %arg17[%c0_47, %c0_48] : memref<320x64xf32, #tpu.memory_space<vmem>>, vector<160x64xf32>
    tpu.vector_store %arg17[%c0_47, %c0_48], %91 {strides = array<i32>} : memref<320x64xf32, #tpu.memory_space<vmem>>, vector<160x64xf32>,
    %c0_49 = arith.constant 0 : index
    %c0_50 = arith.constant 0 : index
    %93 = tpu.strided_load %arg17[%c0_49, %c0_50] {strides = array<i32: 2, 1>} : memref<320x64xf32, #tpu.memory_space<vmem>>, vector<80x64xf32>
    %c1_51 = arith.constant 1 : index
    %c0_52 = arith.constant 0 : index
    %94 = tpu.strided_load %arg17[%c1_51, %c0_52] {strides = array<i32: 2, 1>} : memref<320x64xf32, #tpu.memory_space<vmem>>, vector<80x64xf32>
    %95 = arith.maximumf %93, %94 : vector<80x64xf32>
    %96 = vector.broadcast %2 : vector<80x1xf32> to vector<80x64xf32>
    %97 = arith.mulf %95, %96 : vector<80x64xf32>
    %cst_53 = arith.constant 0.000000e+00 : f32
    %98 = vector.broadcast %cst_53 : f32 to vector<1x64xf32>
    %99 = vector.extract_strided_slice %97 {offsets = [0, 0], sizes = [79, 64], strides = [1, 1]} : vector<80x64xf32> to vector<79x64xf32>
    %100 = tpu.concatenate %98, %99 in 0 : vector<1x64xf32>, vector<79x64xf32> -> vector<80x64xf32>
    %101 = arith.truncf %100 : vector<80x64xf32> to vector<80x64xbf16>
    %c0_54 = arith.constant 0 : index
    %c0_55 = arith.constant 0 : index
    %c0_56 = arith.constant 0 : index
    %102 = vector.load %arg7[%c0_54, %c0_55, %c0_56] : memref<3x64x64xbf16, #tpu.memory_space<vmem>>, vector<1x64x64xbf16>
    %103 = vector.shape_cast %102 : vector<1x64x64xbf16> to vector<64x64xbf16>
    %cst_57 = arith.constant dense<0.000000e+00> : vector<80x64xf32>
    %104 = tpu.matmul %101, %103, %cst_57 {dimension_numbers = #tpu.dot_dimension_numbers<[1], [0], [0], [1], [0, 0, 1, 1], [], []>} : vector<80x64xbf16>, vector<64x64xbf16>, vector<80x64xf32> -> vector<80x64xf32>
    %105 = arith.truncf %97 : vector<80x64xf32> to vector<80x64xbf16>
    %c1_58 = arith.constant 1 : index
    %c0_59 = arith.constant 0 : index
    %c0_60 = arith.constant 0 : index
    %106 = vector.load %arg7[%c1_58, %c0_59, %c0_60] : memref<3x64x64xbf16, #tpu.memory_space<vmem>>, vector<1x64x64xbf16>
    %107 = vector.shape_cast %106 : vector<1x64x64xbf16> to vector<64x64xbf16>
    %cst_61 = arith.constant dense<0.000000e+00> : vector<80x64xf32>
    %108 = tpu.matmul %105, %107, %cst_61 {dimension_numbers = #tpu.dot_dimension_numbers<[1], [0], [0], [1], [0, 0, 1, 1], [], []>} : vector<80x64xbf16>, vector<64x64xbf16>, vector<80x64xf32> -> vector<80x64xf32>
    %109 = arith.addf %104, %108 : vector<80x64xf32>
    %cst_62 = arith.constant 0.000000e+00 : f32
    %110 = vector.broadcast %cst_62 : f32 to vector<1x64xf32>
    %111 = vector.extract_strided_slice %97 {offsets = [1, 0], sizes = [79, 64], strides = [1, 1]} : vector<80x64xf32> to vector<79x64xf32>
    %112 = tpu.concatenate %111, %110 in 0 : vector<79x64xf32>, vector<1x64xf32> -> vector<80x64xf32>
    %113 = arith.truncf %112 : vector<80x64xf32> to vector<80x64xbf16>
    %c2_63 = arith.constant 2 : index
    %c0_64 = arith.constant 0 : index
    %c0_65 = arith.constant 0 : index
    %114 = vector.load %arg7[%c2_63, %c0_64, %c0_65] : memref<3x64x64xbf16, #tpu.memory_space<vmem>>, vector<1x64x64xbf16>
    %115 = vector.shape_cast %114 : vector<1x64x64xbf16> to vector<64x64xbf16>
    %cst_66 = arith.constant dense<0.000000e+00> : vector<80x64xf32>
    %116 = tpu.matmul %113, %115, %cst_66 {dimension_numbers = #tpu.dot_dimension_numbers<[1], [0], [0], [1], [0, 0, 1, 1], [], []>} : vector<80x64xbf16>, vector<64x64xbf16>, vector<80x64xf32> -> vector<80x64xf32>
    %117 = arith.addf %109, %116 : vector<80x64xf32>
    %c0_67 = arith.constant 0 : index
    %c0_68 = arith.constant 0 : index
    %118 = vector.load %arg8[%c0_67, %c0_68] : memref<1x64xf32, #tpu.memory_space<vmem>>, vector<1x64xf32>
    %c0_69 = arith.constant 0 : index
    %c0_70 = arith.constant 0 : index
    %119 = vector.load %arg9[%c0_69, %c0_70] : memref<1x64xf32, #tpu.memory_space<vmem>>, vector<1x64xf32>
    %120 = vector.broadcast %2 : vector<80x1xf32> to vector<80x64xf32>
    %121 = arith.mulf %117, %120 : vector<80x64xf32>
    %cst_71 = arith.constant dense<0.000000e+00> : vector<64xf32>
    %122 = vector.multi_reduction <add>, %121, %cst_71 [0] : vector<80x64xf32> to vector<64xf32>
    %123 = vector.shape_cast %122 : vector<64xf32> to vector<1x64xf32>
    %cst_72 = arith.constant 0.0161290318 : f32
    %124 = vector.broadcast %cst_72 : f32 to vector<1x64xf32>
    %125 = arith.mulf %123, %124 : vector<1x64xf32>
    %126 = vector.broadcast %125 : vector<1x64xf32> to vector<80x64xf32>
    %127 = arith.subf %117, %126 : vector<80x64xf32>
    %128 = vector.broadcast %2 : vector<80x1xf32> to vector<80x64xf32>
    %129 = arith.mulf %127, %128 : vector<80x64xf32>
    %130 = arith.mulf %129, %129 : vector<80x64xf32>
    %cst_73 = arith.constant dense<0.000000e+00> : vector<64xf32>
    %131 = vector.multi_reduction <add>, %130, %cst_73 [0] : vector<80x64xf32> to vector<64xf32>
    %132 = vector.shape_cast %131 : vector<64xf32> to vector<1x64xf32>
    %cst_74 = arith.constant 0.0161290318 : f32
    %133 = vector.broadcast %cst_74 : f32 to vector<1x64xf32>
    %134 = arith.mulf %132, %133 : vector<1x64xf32>
    %cst_75 = arith.constant 9.99999974E-6 : f32
    %135 = vector.broadcast %cst_75 : f32 to vector<1x64xf32>
    %136 = arith.addf %134, %135 : vector<1x64xf32>
    %137 = math.rsqrt %136 : vector<1x64xf32>
    %138 = arith.mulf %118, %137 : vector<1x64xf32>
    %139 = arith.mulf %125, %138 : vector<1x64xf32>
    %140 = arith.subf %119, %139 : vector<1x64xf32>
    %141 = vector.broadcast %138 : vector<1x64xf32> to vector<80x64xf32>
    %142 = arith.mulf %117, %141 : vector<80x64xf32>
    %143 = vector.broadcast %140 : vector<1x64xf32> to vector<80x64xf32>
    %144 = arith.addf %142, %143 : vector<80x64xf32>
    %cst_76 = arith.constant 0.000000e+00 : f32
    %145 = vector.broadcast %cst_76 : f32 to vector<80x64xf32>
    %146 = arith.maximumf %144, %145 : vector<80x64xf32>
    %147 = vector.broadcast %2 : vector<80x1xf32> to vector<80x64xf32>
    %148 = arith.mulf %146, %147 : vector<80x64xf32>
    %cst_77 = arith.constant 0.000000e+00 : f32
    %149 = vector.broadcast %cst_77 : f32 to vector<1x64xf32>
    %150 = vector.extract_strided_slice %148 {offsets = [0, 0], sizes = [79, 64], strides = [1, 1]} : vector<80x64xf32> to vector<79x64xf32>
    %151 = tpu.concatenate %149, %150 in 0 : vector<1x64xf32>, vector<79x64xf32> -> vector<80x64xf32>
    %152 = arith.truncf %151 : vector<80x64xf32> to vector<80x64xbf16>
    %c0_78 = arith.constant 0 : index
    %c0_79 = arith.constant 0 : index
    %c0_80 = arith.constant 0 : index
    %153 = vector.load %arg10[%c0_78, %c0_79, %c0_80] : memref<3x64x32xbf16, #tpu.memory_space<vmem>>, vector<1x64x32xbf16>
    %154 = vector.shape_cast %153 : vector<1x64x32xbf16> to vector<64x32xbf16>
    %cst_81 = arith.constant dense<0.000000e+00> : vector<80x32xf32>
    %155 = tpu.matmul %152, %154, %cst_81 {dimension_numbers = #tpu.dot_dimension_numbers<[1], [0], [0], [1], [0, 0, 1, 1], [], []>} : vector<80x64xbf16>, vector<64x32xbf16>, vector<80x32xf32> -> vector<80x32xf32>
    %156 = arith.truncf %148 : vector<80x64xf32> to vector<80x64xbf16>
    %c1_82 = arith.constant 1 : index
    %c0_83 = arith.constant 0 : index
    %c0_84 = arith.constant 0 : index
    %157 = vector.load %arg10[%c1_82, %c0_83, %c0_84] : memref<3x64x32xbf16, #tpu.memory_space<vmem>>, vector<1x64x32xbf16>
    %158 = vector.shape_cast %157 : vector<1x64x32xbf16> to vector<64x32xbf16>
    %cst_85 = arith.constant dense<0.000000e+00> : vector<80x32xf32>
    %159 = tpu.matmul %156, %158, %cst_85 {dimension_numbers = #tpu.dot_dimension_numbers<[1], [0], [0], [1], [0, 0, 1, 1], [], []>} : vector<80x64xbf16>, vector<64x32xbf16>, vector<80x32xf32> -> vector<80x32xf32>
    %160 = arith.addf %155, %159 : vector<80x32xf32>
    %cst_86 = arith.constant 0.000000e+00 : f32
    %161 = vector.broadcast %cst_86 : f32 to vector<1x64xf32>
    %162 = vector.extract_strided_slice %148 {offsets = [1, 0], sizes = [79, 64], strides = [1, 1]} : vector<80x64xf32> to vector<79x64xf32>
    %163 = tpu.concatenate %162, %161 in 0 : vector<79x64xf32>, vector<1x64xf32> -> vector<80x64xf32>
    %164 = arith.truncf %163 : vector<80x64xf32> to vector<80x64xbf16>
    %c2_87 = arith.constant 2 : index
    %c0_88 = arith.constant 0 : index
    %c0_89 = arith.constant 0 : index
    %165 = vector.load %arg10[%c2_87, %c0_88, %c0_89] : memref<3x64x32xbf16, #tpu.memory_space<vmem>>, vector<1x64x32xbf16>
    %166 = vector.shape_cast %165 : vector<1x64x32xbf16> to vector<64x32xbf16>
    %cst_90 = arith.constant dense<0.000000e+00> : vector<80x32xf32>
    %167 = tpu.matmul %164, %166, %cst_90 {dimension_numbers = #tpu.dot_dimension_numbers<[1], [0], [0], [1], [0, 0, 1, 1], [], []>} : vector<80x64xbf16>, vector<64x32xbf16>, vector<80x32xf32> -> vector<80x32xf32>
    %168 = arith.addf %160, %167 : vector<80x32xf32>
    %c0_91 = arith.constant 0 : index
    %c0_92 = arith.constant 0 : index
    %169 = vector.load %arg11[%c0_91, %c0_92] : memref<1x32xf32, #tpu.memory_space<vmem>>, vector<1x32xf32>
    %c0_93 = arith.constant 0 : index
    %c0_94 = arith.constant 0 : index
    %170 = vector.load %arg12[%c0_93, %c0_94] : memref<1x32xf32, #tpu.memory_space<vmem>>, vector<1x32xf32>
    %171 = vector.broadcast %2 : vector<80x1xf32> to vector<80x32xf32>
    %172 = arith.mulf %168, %171 : vector<80x32xf32>
    %cst_95 = arith.constant dense<0.000000e+00> : vector<32xf32>
    %173 = vector.multi_reduction <add>, %172, %cst_95 [0] : vector<80x32xf32> to vector<32xf32>
    %174 = vector.shape_cast %173 : vector<32xf32> to vector<1x32xf32>
    %cst_96 = arith.constant 0.0161290318 : f32
    %175 = vector.broadcast %cst_96 : f32 to vector<1x32xf32>
    %176 = arith.mulf %174, %175 : vector<1x32xf32>
    %177 = vector.broadcast %176 : vector<1x32xf32> to vector<80x32xf32>
    %178 = arith.subf %168, %177 : vector<80x32xf32>
    %179 = vector.broadcast %2 : vector<80x1xf32> to vector<80x32xf32>
    %180 = arith.mulf %178, %179 : vector<80x32xf32>
    %181 = arith.mulf %180, %180 : vector<80x32xf32>
    %cst_97 = arith.constant dense<0.000000e+00> : vector<32xf32>
    %182 = vector.multi_reduction <add>, %181, %cst_97 [0] : vector<80x32xf32> to vector<32xf32>
    %183 = vector.shape_cast %182 : vector<32xf32> to vector<1x32xf32>
    %cst_98 = arith.constant 0.0161290318 : f32
    %184 = vector.broadcast %cst_98 : f32 to vector<1x32xf32>
    %185 = arith.mulf %183, %184 : vector<1x32xf32>
    %cst_99 = arith.constant 9.99999974E-6 : f32
    %186 = vector.broadcast %cst_99 : f32 to vector<1x32xf32>
    %187 = arith.addf %185, %186 : vector<1x32xf32>
    %188 = math.rsqrt %187 : vector<1x32xf32>
    %189 = arith.mulf %169, %188 : vector<1x32xf32>
    %190 = arith.mulf %176, %189 : vector<1x32xf32>
    %191 = arith.subf %170, %190 : vector<1x32xf32>
    %192 = vector.broadcast %189 : vector<1x32xf32> to vector<80x32xf32>
    %193 = arith.mulf %168, %192 : vector<80x32xf32>
    %194 = vector.broadcast %191 : vector<1x32xf32> to vector<80x32xf32>
    %195 = arith.addf %193, %194 : vector<80x32xf32>
    %cst_100 = arith.constant 0.000000e+00 : f32
    %196 = vector.broadcast %cst_100 : f32 to vector<80x32xf32>
    %197 = arith.maximumf %195, %196 : vector<80x32xf32>
    %198 = vector.broadcast %2 : vector<80x1xf32> to vector<80x32xf32>
    %199 = arith.mulf %197, %198 : vector<80x32xf32>
    %cst_101 = arith.constant 0.000000e+00 : f32
    %200 = vector.broadcast %cst_101 : f32 to vector<1x32xf32>
    %201 = vector.extract_strided_slice %199 {offsets = [1, 0], sizes = [79, 32], strides = [1, 1]} : vector<80x32xf32> to vector<79x32xf32>
    %202 = tpu.concatenate %201, %200 in 0 : vector<79x32xf32>, vector<1x32xf32> -> vector<80x32xf32>
    %203 = arith.maximumf %199, %202 : vector<80x32xf32>
    %cst_102 = arith.constant 0.000000e+00 : f32
    %204 = vector.broadcast %cst_102 : f32 to vector<2x32xf32>
    %205 = vector.extract_strided_slice %199 {offsets = [2, 0], sizes = [78, 32], strides = [1, 1]} : vector<80x32xf32> to vector<78x32xf32>
    %206 = tpu.concatenate %205, %204 in 0 : vector<78x32xf32>, vector<2x32xf32> -> vector<80x32xf32>
    %207 = arith.maximumf %203, %206 : vector<80x32xf32>
    %208 = vector.extract_strided_slice %203 {offsets = [0, 0], sizes = [4, 32], strides = [1, 1]} : vector<80x32xf32> to vector<4x32xf32>
    %c0_103 = arith.constant 0 : index
    %c0_104 = arith.constant 0 : index
    %209 = vector.load %arg16[%c0_103, %c0_104] : memref<50x32xf32, #tpu.memory_space<vmem>>, vector<4x32xf32>
    tpu.vector_store %arg16[%c0_103, %c0_104], %208 {strides = array<i32>} : memref<50x32xf32, #tpu.memory_space<vmem>>, vector<4x32xf32>,
    %210 = vector.extract_strided_slice %207 {offsets = [4, 0], sizes = [1, 32], strides = [1, 1]} : vector<80x32xf32> to vector<1x32xf32>
    %c4 = arith.constant 4 : index
    %c0_105 = arith.constant 0 : index
    %211 = vector.load %arg16[%c4, %c0_105] : memref<50x32xf32, #tpu.memory_space<vmem>>, vector<1x32xf32>
    tpu.vector_store %arg16[%c4, %c0_105], %210 {strides = array<i32>} : memref<50x32xf32, #tpu.memory_space<vmem>>, vector<1x32xf32>,
    %212 = vector.extract_strided_slice %203 {offsets = [6, 0], sizes = [3, 32], strides = [1, 1]} : vector<80x32xf32> to vector<3x32xf32>
    %c5 = arith.constant 5 : index
    %c0_106 = arith.constant 0 : index
    %213 = vector.load %arg16[%c5, %c0_106] : memref<50x32xf32, #tpu.memory_space<vmem>>, vector<3x32xf32>
    tpu.vector_store %arg16[%c5, %c0_106], %212 {strides = array<i32>} : memref<50x32xf32, #tpu.memory_space<vmem>>, vector<3x32xf32>,
    %214 = vector.extract_strided_slice %207 {offsets = [9, 0], sizes = [1, 32], strides = [1, 1]} : vector<80x32xf32> to vector<1x32xf32>
    %c8 = arith.constant 8 : index
    %c0_107 = arith.constant 0 : index
    %215 = vector.load %arg16[%c8, %c0_107] : memref<50x32xf32, #tpu.memory_space<vmem>>, vector<1x32xf32>
    tpu.vector_store %arg16[%c8, %c0_107], %214 {strides = array<i32>} : memref<50x32xf32, #tpu.memory_space<vmem>>, vector<1x32xf32>,
    %216 = vector.extract_strided_slice %203 {offsets = [11, 0], sizes = [3, 32], strides = [1, 1]} : vector<80x32xf32> to vector<3x32xf32>
    %c9 = arith.constant 9 : index
    %c0_108 = arith.constant 0 : index
    %217 = vector.load %arg16[%c9, %c0_108] : memref<50x32xf32, #tpu.memory_space<vmem>>, vector<3x32xf32>
    tpu.vector_store %arg16[%c9, %c0_108], %216 {strides = array<i32>} : memref<50x32xf32, #tpu.memory_space<vmem>>, vector<3x32xf32>,
    %218 = vector.extract_strided_slice %207 {offsets = [14, 0], sizes = [1, 32], strides = [1, 1]} : vector<80x32xf32> to vector<1x32xf32>
    %c12 = arith.constant 12 : index
    %c0_109 = arith.constant 0 : index
    %219 = vector.load %arg16[%c12, %c0_109] : memref<50x32xf32, #tpu.memory_space<vmem>>, vector<1x32xf32>
    tpu.vector_store %arg16[%c12, %c0_109], %218 {strides = array<i32>} : memref<50x32xf32, #tpu.memory_space<vmem>>, vector<1x32xf32>,
    %220 = vector.extract_strided_slice %203 {offsets = [16, 0], sizes = [3, 32], strides = [1, 1]} : vector<80x32xf32> to vector<3x32xf32>
    %c13 = arith.constant 13 : index
    %c0_110 = arith.constant 0 : index
    %221 = vector.load %arg16[%c13, %c0_110] : memref<50x32xf32, #tpu.memory_space<vmem>>, vector<3x32xf32>
    tpu.vector_store %arg16[%c13, %c0_110], %220 {strides = array<i32>} : memref<50x32xf32, #tpu.memory_space<vmem>>, vector<3x32xf32>,
    %222 = vector.extract_strided_slice %207 {offsets = [19, 0], sizes = [1, 32], strides = [1, 1]} : vector<80x32xf32> to vector<1x32xf32>
    %c16 = arith.constant 16 : index
    %c0_111 = arith.constant 0 : index
    %223 = vector.load %arg16[%c16, %c0_111] : memref<50x32xf32, #tpu.memory_space<vmem>>, vector<1x32xf32>
    tpu.vector_store %arg16[%c16, %c0_111], %222 {strides = array<i32>} : memref<50x32xf32, #tpu.memory_space<vmem>>, vector<1x32xf32>,
    %224 = vector.extract_strided_slice %203 {offsets = [21, 0], sizes = [3, 32], strides = [1, 1]} : vector<80x32xf32> to vector<3x32xf32>
    %c17 = arith.constant 17 : index
    %c0_112 = arith.constant 0 : index
    %225 = vector.load %arg16[%c17, %c0_112] : memref<50x32xf32, #tpu.memory_space<vmem>>, vector<3x32xf32>
    tpu.vector_store %arg16[%c17, %c0_112], %224 {strides = array<i32>} : memref<50x32xf32, #tpu.memory_space<vmem>>, vector<3x32xf32>,
    %226 = vector.extract_strided_slice %207 {offsets = [24, 0], sizes = [1, 32], strides = [1, 1]} : vector<80x32xf32> to vector<1x32xf32>
    %c20 = arith.constant 20 : index
    %c0_113 = arith.constant 0 : index
    %227 = vector.load %arg16[%c20, %c0_113] : memref<50x32xf32, #tpu.memory_space<vmem>>, vector<1x32xf32>
    tpu.vector_store %arg16[%c20, %c0_113], %226 {strides = array<i32>} : memref<50x32xf32, #tpu.memory_space<vmem>>, vector<1x32xf32>,
    %228 = vector.extract_strided_slice %203 {offsets = [26, 0], sizes = [4, 32], strides = [1, 1]} : vector<80x32xf32> to vector<4x32xf32>
    %c21 = arith.constant 21 : index
    %c0_114 = arith.constant 0 : index
    %229 = vector.load %arg16[%c21, %c0_114] : memref<50x32xf32, #tpu.memory_space<vmem>>, vector<4x32xf32>
    tpu.vector_store %arg16[%c21, %c0_114], %228 {strides = array<i32>} : memref<50x32xf32, #tpu.memory_space<vmem>>, vector<4x32xf32>,
    %230 = vector.extract_strided_slice %203 {offsets = [40, 0], sizes = [4, 32], strides = [1, 1]} : vector<80x32xf32> to vector<4x32xf32>
    %c25 = arith.constant 25 : index
    %c0_115 = arith.constant 0 : index
    %231 = vector.load %arg16[%c25, %c0_115] : memref<50x32xf32, #tpu.memory_space<vmem>>, vector<4x32xf32>
    tpu.vector_store %arg16[%c25, %c0_115], %230 {strides = array<i32>} : memref<50x32xf32, #tpu.memory_space<vmem>>, vector<4x32xf32>,
    %232 = vector.extract_strided_slice %207 {offsets = [44, 0], sizes = [1, 32], strides = [1, 1]} : vector<80x32xf32> to vector<1x32xf32>
    %c29 = arith.constant 29 : index
    %c0_116 = arith.constant 0 : index
    %233 = vector.load %arg16[%c29, %c0_116] : memref<50x32xf32, #tpu.memory_space<vmem>>, vector<1x32xf32>
    tpu.vector_store %arg16[%c29, %c0_116], %232 {strides = array<i32>} : memref<50x32xf32, #tpu.memory_space<vmem>>, vector<1x32xf32>,
    %234 = vector.extract_strided_slice %203 {offsets = [46, 0], sizes = [3, 32], strides = [1, 1]} : vector<80x32xf32> to vector<3x32xf32>
    %c30 = arith.constant 30 : index
    %c0_117 = arith.constant 0 : index
    %235 = vector.load %arg16[%c30, %c0_117] : memref<50x32xf32, #tpu.memory_space<vmem>>, vector<3x32xf32>
    tpu.vector_store %arg16[%c30, %c0_117], %234 {strides = array<i32>} : memref<50x32xf32, #tpu.memory_space<vmem>>, vector<3x32xf32>,
    %236 = vector.extract_strided_slice %207 {offsets = [49, 0], sizes = [1, 32], strides = [1, 1]} : vector<80x32xf32> to vector<1x32xf32>
    %c33 = arith.constant 33 : index
    %c0_118 = arith.constant 0 : index
    %237 = vector.load %arg16[%c33, %c0_118] : memref<50x32xf32, #tpu.memory_space<vmem>>, vector<1x32xf32>
    tpu.vector_store %arg16[%c33, %c0_118], %236 {strides = array<i32>} : memref<50x32xf32, #tpu.memory_space<vmem>>, vector<1x32xf32>,
    %238 = vector.extract_strided_slice %203 {offsets = [51, 0], sizes = [3, 32], strides = [1, 1]} : vector<80x32xf32> to vector<3x32xf32>
    %c34 = arith.constant 34 : index
    %c0_119 = arith.constant 0 : index
    %239 = vector.load %arg16[%c34, %c0_119] : memref<50x32xf32, #tpu.memory_space<vmem>>, vector<3x32xf32>
    tpu.vector_store %arg16[%c34, %c0_119], %238 {strides = array<i32>} : memref<50x32xf32, #tpu.memory_space<vmem>>, vector<3x32xf32>,
    %240 = vector.extract_strided_slice %207 {offsets = [54, 0], sizes = [1, 32], strides = [1, 1]} : vector<80x32xf32> to vector<1x32xf32>
    %c37 = arith.constant 37 : index
    %c0_120 = arith.constant 0 : index
    %241 = vector.load %arg16[%c37, %c0_120] : memref<50x32xf32, #tpu.memory_space<vmem>>, vector<1x32xf32>
    tpu.vector_store %arg16[%c37, %c0_120], %240 {strides = array<i32>} : memref<50x32xf32, #tpu.memory_space<vmem>>, vector<1x32xf32>,
    %242 = vector.extract_strided_slice %203 {offsets = [56, 0], sizes = [3, 32], strides = [1, 1]} : vector<80x32xf32> to vector<3x32xf32>
    %c38 = arith.constant 38 : index
    %c0_121 = arith.constant 0 : index
    %243 = vector.load %arg16[%c38, %c0_121] : memref<50x32xf32, #tpu.memory_space<vmem>>, vector<3x32xf32>
    tpu.vector_store %arg16[%c38, %c0_121], %242 {strides = array<i32>} : memref<50x32xf32, #tpu.memory_space<vmem>>, vector<3x32xf32>,
    %244 = vector.extract_strided_slice %207 {offsets = [59, 0], sizes = [1, 32], strides = [1, 1]} : vector<80x32xf32> to vector<1x32xf32>
    %c41 = arith.constant 41 : index
    %c0_122 = arith.constant 0 : index
    %245 = vector.load %arg16[%c41, %c0_122] : memref<50x32xf32, #tpu.memory_space<vmem>>, vector<1x32xf32>
    tpu.vector_store %arg16[%c41, %c0_122], %244 {strides = array<i32>} : memref<50x32xf32, #tpu.memory_space<vmem>>, vector<1x32xf32>,
    %246 = vector.extract_strided_slice %203 {offsets = [61, 0], sizes = [3, 32], strides = [1, 1]} : vector<80x32xf32> to vector<3x32xf32>
    %c42 = arith.constant 42 : index
    %c0_123 = arith.constant 0 : index
    %247 = vector.load %arg16[%c42, %c0_123] : memref<50x32xf32, #tpu.memory_space<vmem>>, vector<3x32xf32>
    tpu.vector_store %arg16[%c42, %c0_123], %246 {strides = array<i32>} : memref<50x32xf32, #tpu.memory_space<vmem>>, vector<3x32xf32>,
    %248 = vector.extract_strided_slice %207 {offsets = [64, 0], sizes = [1, 32], strides = [1, 1]} : vector<80x32xf32> to vector<1x32xf32>
    %c45 = arith.constant 45 : index
    %c0_124 = arith.constant 0 : index
    %249 = vector.load %arg16[%c45, %c0_124] : memref<50x32xf32, #tpu.memory_space<vmem>>, vector<1x32xf32>
    tpu.vector_store %arg16[%c45, %c0_124], %248 {strides = array<i32>} : memref<50x32xf32, #tpu.memory_space<vmem>>, vector<1x32xf32>,
    %250 = vector.extract_strided_slice %203 {offsets = [66, 0], sizes = [4, 32], strides = [1, 1]} : vector<80x32xf32> to vector<4x32xf32>
    %c46 = arith.constant 46 : index
    %c0_125 = arith.constant 0 : index
    %251 = vector.load %arg16[%c46, %c0_125] : memref<50x32xf32, #tpu.memory_space<vmem>>, vector<4x32xf32>
    tpu.vector_store %arg16[%c46, %c0_125], %250 {strides = array<i32>} : memref<50x32xf32, #tpu.memory_space<vmem>>, vector<4x32xf32>,
    return
  }
}

</mosaic_0001>

<bundles_post_ra>
// kernel: tile.18
= control target key start
LH: loop header
LB: loop body
LE: loop exit
PB: predicated region body
PF: predicated region fallthrough
CT: control target
= control target key end

     0   :  { %s34_s0 = inlined_call_operand.vmem [shape: f32[160], index: 0, kind: input, shape index: {}]   ;;  %s35_s1 = inlined_call_operand.vmem [shape: f32[2,160], index: 1, kind: output, shape index: {}]  }
   0x1   :  { %v4_v0 = vld [vmem:[%s34_s0] ss:$0 sm:$0xff]  ;;  %v10_v1 = vld [vmem:[%s34_s0 + $0x1] ss:$0 sm:$0xff] }
   0x2   :  { %5 = vst [vmem:[%s35_s1] sm:$0x3] %v4_v0  ;;  %11 = vst [vmem:[%s35_s1 + $0x2] sm:$0x3] %v10_v1 }

// kernel: tile.0
= control target key start
LH: loop header
LB: loop body
LE: loop exit
PB: predicated region body
PF: predicated region fallthrough
CT: control target
= control target key end

     0   :  { %s1610_s10 = smov 125   ;;  %s1611_s11 = smov 126   ;;  %vm11_vm0 = vcmask 7168   ;;  %s3032_s0 = inlined_call_operand.vmem [shape: f32[2,160], index: 0, kind: input, shape index: {}]   ;;  %s3033_s1 = inlined_call_operand.vmem [shape: f32[320,1], index: 1, kind: output, shape index: {}]  }
   0x1   :  { %v1162_v0 = vld [vmem:[%s3032_s0 + $0x2] sm:$0x3]  ;;  %v8_v1 = vld [vmem:[%s3032_s0] sm:$0x3]  ;;  %s1609_s0 = smov 127   ;;  %s1612_s12 = smov 124  }
   0x2   :  { %7 = vst [vmem:[#allocation0 + $0x8] sm:$0x3] %v1162_v0  ;;  %9 = vst [vmem:[#allocation0] sm:$0x3] %v8_v1  ;;  %s1613_s13 = smov 123   ;;  %s1614_s14 = smov 122  }
   0x3   :  { %s1615_s15 = smov 121   ;;  %s1616_s16 = smov 120  }
   0x4   :  { %s1617_s17 = smov 119   ;;  %s1618_s18 = smov 118  }
   0x5   :  { %s1619_s19 = smov 117   ;;  %s1620_s20 = smov 116  }
   0x6   :  { %s1621_s21 = smov 115   ;;  %s1622_s22 = smov 114  }
   0x7   :  { %s1623_s23 = smov 113   ;;  %s1624_s24 = smov 112  }
   0x8   :  { %s1625_s25 = smov 111   ;;  %s1626_s26 = smov 110  }
   0x9   :  { %v22_v2 = vld.sshfl [vmem:[#allocation0] sm:$0xff pattern:$0x99999810]   ;;  %s1627_s27 = smov 109   ;;  %s1628_s28 = smov 108  }
   0xa   :  { %23 = vrot.lane.b32.xlu0 %v22_v2, %s1609_s0  ;;  %47 = vrot.lane.b32.xlu1 %v22_v2, %s1610_s10  ;;  %s1629_s29 = smov 107   ;;  %s1630_s30 = smov 106   ;;  %v394_v3 = vld [vmem:[#allocation0] sm:$0x3]  }
   0xb   :  { %s1631_s2 = smov 105   ;;  %s1632_s3 = smov 104   ;;  %v402_v4 = vld [vmem:[#allocation0] sm:$0x3]  }
   0xc   :  { %s1633_s4 = smov 103   ;;  %s1634_s5 = smov 102   ;;  %v410_v5 = vld [vmem:[#allocation0] sm:$0x3]  }
   0xd   :  { %s1635_s6 = smov 101   ;;  %s1636_s7 = smov 100   ;;  %v418_v6 = vld [vmem:[#allocation0] sm:$0x3]  }
   0xe   :  { %35 = vrot.lane.b32.xlu0 %v22_v2, %s1611_s11  ;;  %59 = vrot.lane.b32.xlu1 %v22_v2, %s1612_s12  ;;  %s1637_s8 = smov 99   ;;  %s1638_s9 = smov 98   ;;  %v426_v7 = vld [vmem:[#allocation0] sm:$0x3]  }
   0xf   :  { %s1639_s0 = smov 97   ;;  %s1640_s10 = smov 96   ;;  %v434_v8 = vld [vmem:[#allocation0] sm:$0x3]  }
  0x10   :  { %s1641_s11 = smov 95   ;;  %s1642_s12 = smov 94   ;;  %v442_v9 = vld [vmem:[#allocation0] sm:$0x3]  }
  0x11   :  { %v450_v10 = vld [vmem:[#allocation0] sm:$0x3]  }
  0x12   :  { %71 = vrot.lane.b32.xlu0 %v22_v2, %s1613_s13  ;;  %83 = vrot.lane.b32.xlu1 %v22_v2, %s1614_s14  ;;  %s1643_s13 = smov 93   ;;  %s1644_s14 = smov 92   ;;  %v458_v11 = vld [vmem:[#allocation0] sm:$0x3]  }
  0x13   :  { %v466_v12 = vld [vmem:[#allocation0] sm:$0x3]  }
  0x14   :  { %v474_v13 = vld [vmem:[#allocation0] sm:$0x3]  }
  0x15   :  { %v482_v14 = vld [vmem:[#allocation0] sm:$0x3]  }
  0x16   :  { %95 = vrot.lane.b32.xlu0 %v22_v2, %s1615_s15  ;;  %107 = vrot.lane.b32.xlu1 %v22_v2, %s1616_s16  ;;  %s1645_s15 = smov 91   ;;  %s1646_s16 = smov 90   ;;  %v490_v15 = vld [vmem:[#allocation0] sm:$0x3]  }
  0x17   :  { %v498_v16 = vld [vmem:[#allocation0] sm:$0x3]  }
  0x18   :  { %v506_v17 = vld [vmem:[#allocation0] sm:$0x3]  }
  0x19   :  { %v514_v18 = vld [vmem:[#allocation0] sm:$0x3]  }
  0x1a   :  { %119 = vrot.lane.b32.xlu0 %v22_v2, %s1617_s17  ;;  %131 = vrot.lane.b32.xlu1 %v22_v2, %s1618_s18  ;;  %s1647_s17 = smov 89   ;;  %s1648_s18 = smov 88   ;;  %v522_v19 = vld [vmem:[#allocation0] sm:$0x3]  }
  0x1b   :  { %v530_v20 = vld [vmem:[#allocation0] sm:$0x3]  }
  0x1c   :  { %v538_v21 = vld [vmem:[#allocation0] sm:$0x3]  }
  0x1d   :  { %v546_v22 = vld [vmem:[#allocation0] sm:$0x3]  }
  0x1e   :  { %143 = vrot.lane.b32.xlu0 %v22_v2, %s1619_s19  ;;  %155 = vrot.lane.b32.xlu1 %v22_v2, %s1620_s20  ;;  %s1649_s19 = smov 87   ;;  %s1650_s20 = smov 86   ;;  %v554_v23 = vld [vmem:[#allocation0] sm:$0x3]  }
  0x1f   :  { %v562_v24 = vld [vmem:[#allocation0] sm:$0x3]  }
  0x20   :  { %v570_v25 = vld [vmem:[#allocation0] sm:$0x3]  }
  0x21   :  { %v578_v26 = vld [vmem:[#allocation0] sm:$0x3]  }
  0x22   :  { %167 = vrot.lane.b32.xlu0 %v22_v2, %s1621_s21  ;;  %179 = vrot.lane.b32.xlu1 %v22_v2, %s1622_s22  ;;  %s1651_s21 = smov 85   ;;  %s1652_s22 = smov 84   ;;  %v586_v27 = vld [vmem:[#allocation0] sm:$0x3]  }
  0x23   :  { %v594_v28 = vld [vmem:[#allocation0] sm:$0x3]  }
  0x24   :  { %v602_v29 = vld [vmem:[#allocation0] sm:$0x3]  }
  0x25   :  { %v610_v30 = vld [vmem:[#allocation0] sm:$0x3]  }
  0x26   :  { %191 = vrot.lane.b32.xlu0 %v22_v2, %s1623_s23  ;;  %203 = vrot.lane.b32.xlu1 %v22_v2, %s1624_s24  ;;  %s1653_s23 = smov 83   ;;  %s1654_s24 = smov 82   ;;  %v618_v31 = vld [vmem:[#allocation0] sm:$0x3]  }
  0x27   :  { %v626_v34 = vld [vmem:[#allocation0] sm:$0x3]  }
  0x28   :  { %v634_v35 = vld [vmem:[#allocation0] sm:$0x3]  }
  0x29   :  { %v642_v38 = vld [vmem:[#allocation0] sm:$0x3]  }
  0x2a   :  { %215 = vrot.lane.b32.xlu0 %v22_v2, %s1625_s25  ;;  %227 = vrot.lane.b32.xlu1 %v22_v2, %s1626_s26  ;;  %s1655_s25 = smov 81   ;;  %s1656_s26 = smov 80   ;;  %v650_v39 = vld [vmem:[#allocation0] sm:$0x3]  }
  0x2b   :  { %v658_v42 = vld [vmem:[#allocation0] sm:$0x3]  }
  0x2c   :  { %v666_v43 = vld [vmem:[#allocation0] sm:$0x3]  }
  0x2d   :  { %v674_v46 = vld [vmem:[#allocation0] sm:$0x3]  }
  0x2e   :  { %239 = vrot.lane.b32.xlu0 %v22_v2, %s1627_s27  ;;  %251 = vrot.lane.b32.xlu1 %v22_v2, %s1628_s28  ;;  %s1657_s27 = smov 79   ;;  %s1658_s28 = smov 78   ;;  %v682_v47 = vld [vmem:[#allocation0] sm:$0x3]  }
  0x2f   :  { %v690_v50 = vld [vmem:[#allocation0] sm:$0x3]  }
  0x30   :  { %v698_v51 = vld [vmem:[#allocation0] sm:$0x3]  }
  0x31   :  { %v706_v54 = vld [vmem:[#allocation0] sm:$0x3]  }
  0x32   :  { %263 = vrot.lane.b32.xlu0 %v22_v2, %s1629_s29  ;;  %275 = vrot.lane.b32.xlu1 %v22_v2, %s1630_s30  ;;  %s1659_s29 = smov 77   ;;  %s1660_s30 = smov 76   ;;  %v714_v55 = vld [vmem:[#allocation0] sm:$0x3]  }
  0x33   :  { %v722_v58 = vld [vmem:[#allocation0] sm:$0x3]  }
  0x34   :  { %v730_v59 = vld [vmem:[#allocation0] sm:$0x3]  }
  0x35   :  { %v738_v62 = vld [vmem:[#allocation0] sm:$0x3]  }
  0x36   :  { %287 = vrot.lane.b32.xlu0 %v22_v2, %s1631_s2  ;;  %299 = vrot.lane.b32.xlu1 %v22_v2, %s1632_s3  ;;  %s1661_s2 = smov 75   ;;  %s1662_s3 = smov 74   ;;  %v746_v63 = vld [vmem:[#allocation0] sm:$0x3]  }
  0x3a   :  { %311 = vrot.lane.b32.xlu0 %v22_v2, %s1633_s4  ;;  %323 = vrot.lane.b32.xlu1 %v22_v2, %s1634_s5  ;;  %s1663_s4 = smov 73   ;;  %s1664_s5 = smov 72  }
  0x3e   :  { %335 = vrot.lane.b32.xlu0 %v22_v2, %s1635_s6  ;;  %347 = vrot.lane.b32.xlu1 %v22_v2, %s1636_s7  ;;  %s1665_s6 = smov 71   ;;  %s1666_s7 = smov 70  }
  0x42   :  { %359 = vrot.lane.b32.xlu0 %v22_v2, %s1637_s8  ;;  %371 = vrot.lane.b32.xlu1 %v22_v2, %s1638_s9  ;;  %s1729_s8 = smov 7   ;;  %s1730_s9 = smov 6  }
  0x46   :  { %383 = vrot.lane.b32.xlu0 %v22_v2, %s1639_s0  ;;  %395 = vrot.lane.b32.xlu1 %v394_v3, %s1640_s10  ;;  %v754_v2 = vld [vmem:[#allocation0] sm:$0x3]   ;;  %s1701_s0 = smov 35   ;;  %s1702_s10 = smov 34  }
  0x47   :  { %v762_v3 = vld [vmem:[#allocation0] sm:$0x3]  }
  0x4a   :  { %403 = vrot.lane.b32.xlu0 %v402_v4, %s1641_s11  ;;  %411 = vrot.lane.b32.xlu1 %v410_v5, %s1642_s12  ;;  %s1669_s11 = smov 67   ;;  %s1670_s12 = smov 66  }
  0x4e   :  { %419 = vrot.lane.b32.xlu0 %v418_v6, %s1643_s13  ;;  %427 = vrot.lane.b32.xlu1 %v426_v7, %s1644_s14  ;;  %v770_v6 = vld [vmem:[#allocation0] sm:$0x3]  }
  0x4f   :  { %v778_v7 = vld [vmem:[#allocation0] sm:$0x3]  }
  0x52   :  { %435 = vrot.lane.b32.xlu0 %v434_v8, %s1645_s15  ;;  %443 = vrot.lane.b32.xlu1 %v442_v9, %s1646_s16 }
  0x56   :  { %451 = vrot.lane.b32.xlu0 %v450_v10, %s1647_s17  ;;  %459 = vrot.lane.b32.xlu1 %v458_v11, %s1648_s18  ;;  %s1673_s17 = smov 63   ;;  %s1674_s18 = smov 62   ;;  %v786_v10 = vld [vmem:[#allocation0] sm:$0x3]  }
  0x57   :  { %v794_v11 = vld [vmem:[#allocation0] sm:$0x3]  }
  0x5a   :  { %467 = vrot.lane.b32.xlu0 %v466_v12, %s1649_s19  ;;  %475 = vrot.lane.b32.xlu1 %v474_v13, %s1650_s20  ;;  %s1697_s19 = smov 39   ;;  %s1698_s20 = smov 38  }
  0x5e   :  { %483 = vrot.lane.b32.xlu0 %v482_v14, %s1651_s21  ;;  %491 = vrot.lane.b32.xlu1 %v490_v15, %s1652_s22  ;;  %v802_v14 = vld [vmem:[#allocation0] sm:$0x3]  }
  0x5f   :  { %v810_v15 = vld [vmem:[#allocation0] sm:$0x3]  }
  0x62   :  { %499 = vrot.lane.b32.xlu0 %v498_v16, %s1653_s23  ;;  %507 = vrot.lane.b32.xlu1 %v506_v17, %s1654_s24  ;;  %s1667_s23 = smov 69   ;;  %s1668_s24 = smov 68  }
  0x66   :  { %515 = vrot.lane.b32.xlu0 %v514_v18, %s1655_s25  ;;  %523 = vrot.lane.b32.xlu1 %v522_v19, %s1656_s26  ;;  %v818_v18 = vld [vmem:[#allocation0] sm:$0x3]  }
  0x67   :  { %v826_v19 = vld [vmem:[#allocation0] sm:$0x3]  }
  0x6a   :  { %531 = vrot.lane.b32.xlu0 %v530_v20, %s1657_s27  ;;  %539 = vrot.lane.b32.xlu1 %v538_v21, %s1658_s28  ;;  %s1733_s27 = smov 3   ;;  %s1734_s28 = smov 2  }
  0x6e   :  { %547 = vrot.lane.b32.xlu0 %v546_v22, %s1659_s29  ;;  %555 = vrot.lane.b32.xlu1 %v554_v23, %s1660_s30  ;;  %s1671_s29 = smov 65   ;;  %s1672_s30 = smov 64   ;;  %v834_v22 = vld [vmem:[#allocation0] sm:$0x3]  }
  0x6f   :  { %v842_v23 = vld [vmem:[#allocation0] sm:$0x3]  }
  0x72   :  { %563 = vrot.lane.b32.xlu0 %v562_v24, %s1661_s2  ;;  %571 = vrot.lane.b32.xlu1 %v570_v25, %s1662_s3 }
  0x76   :  { %579 = vrot.lane.b32.xlu0 %v578_v26, %s1663_s4  ;;  %587 = vrot.lane.b32.xlu1 %v586_v27, %s1664_s5  ;;  %v850_v26 = vld [vmem:[#allocation0] sm:$0x3]  }
  0x77   :  { %v858_v27 = vld [vmem:[#allocation0] sm:$0x3]  }
  0x7a   :  { %595 = vrot.lane.b32.xlu0 %v594_v28, %s1665_s6  ;;  %603 = vrot.lane.b32.xlu1 %v602_v29, %s1666_s7  ;;  %s1675_s6 = smov 61   ;;  %s1676_s7 = smov 60  }
  0x7c   :  { %v24_v32 = vpop.permute.xlu0 %23   ;;  %v48_v33 = vpop.permute.xlu1 %47  }
  0x7d   :  { %1166 = vst.msk [vmem:[%s3033_s1 + $0x1] sm:$0x1] %vm11_vm0, %v24_v32   ;;  %1167 = vst.msk [vmem:[%s3033_s1 + $0xa0] sm:$0x2] %vm11_vm0, %v24_v32  }
  0x7e   :  { %1168 = vst.msk [vmem:[%s3033_s1 + $0x7f] sm:$0x4] %vm11_vm0, %v24_v32   ;;  %1169 = vst.msk [vmem:[%s3033_s1 + $0x11e] sm:$0x8] %vm11_vm0, %v24_v32   ;;  %611 = vrot.lane.b32.xlu0 %v610_v30, %s1667_s23  ;;  %619 = vrot.lane.b32.xlu1 %v618_v31, %s1668_s24  ;;  %s1677_s23 = smov 59   ;;  %s1678_s24 = smov 58  }
  0x7f   :  { %1174 = vst.msk [vmem:[%s3033_s1 + $0x3] sm:$0x1] %vm11_vm0, %v48_v33   ;;  %1175 = vst.msk [vmem:[%s3033_s1 + $0xa2] sm:$0x2] %vm11_vm0, %v48_v33   ;;  %v866_v30 = vld [vmem:[#allocation0] sm:$0x3]  }
  0x80   :  { %1176 = vst.msk [vmem:[%s3033_s1 + $0x81] sm:$0x4] %vm11_vm0, %v48_v33   ;;  %1177 = vst.msk [vmem:[%s3033_s1 + $0x120] sm:$0x8] %vm11_vm0, %v48_v33   ;;  %v36_v36 = vpop.permute.xlu0 %35   ;;  %v60_v37 = vpop.permute.xlu1 %59   ;;  %v874_v31 = vld [vmem:[#allocation0] sm:$0x3]  }
  0x81   :  { %1170 = vst.msk [vmem:[%s3033_s1 + $0x2] sm:$0x1] %vm11_vm0, %v36_v36   ;;  %1171 = vst.msk [vmem:[%s3033_s1 + $0xa1] sm:$0x2] %vm11_vm0, %v36_v36  }
  0x82   :  { %1172 = vst.msk [vmem:[%s3033_s1 + $0x80] sm:$0x4] %vm11_vm0, %v36_v36   ;;  %1173 = vst.msk [vmem:[%s3033_s1 + $0x11f] sm:$0x8] %vm11_vm0, %v36_v36   ;;  %627 = vrot.lane.b32.xlu0 %v626_v34, %s1669_s11  ;;  %635 = vrot.lane.b32.xlu1 %v634_v35, %s1670_s12  ;;  %s1679_s11 = smov 57   ;;  %s1680_s12 = smov 56  }
  0x83   :  { %1178 = vst.msk [vmem:[%s3033_s1 + $0x4] sm:$0x1] %vm11_vm0, %v60_v37   ;;  %1179 = vst.msk [vmem:[%s3033_s1 + $0xa3] sm:$0x2] %vm11_vm0, %v60_v37   ;;  %v882_v34 = vld [vmem:[#allocation0] sm:$0x3]  }
  0x84   :  { %1180 = vst.msk [vmem:[%s3033_s1 + $0x82] sm:$0x4] %vm11_vm0, %v60_v37   ;;  %1181 = vst.msk [vmem:[%s3033_s1 + $0x121] sm:$0x8] %vm11_vm0, %v60_v37   ;;  %v72_v40 = vpop.permute.xlu0 %71   ;;  %v84_v41 = vpop.permute.xlu1 %83   ;;  %v890_v35 = vld [vmem:[#allocation0] sm:$0x3]  }
  0x85   :  { %1182 = vst.msk [vmem:[%s3033_s1 + $0x5] sm:$0x1] %vm11_vm0, %v72_v40   ;;  %1183 = vst.msk [vmem:[%s3033_s1 + $0xa4] sm:$0x2] %vm11_vm0, %v72_v40  }
  0x86   :  { %1184 = vst.msk [vmem:[%s3033_s1 + $0x83] sm:$0x4] %vm11_vm0, %v72_v40   ;;  %1185 = vst.msk [vmem:[%s3033_s1 + $0x122] sm:$0x8] %vm11_vm0, %v72_v40   ;;  %643 = vrot.lane.b32.xlu0 %v642_v38, %s1671_s29  ;;  %651 = vrot.lane.b32.xlu1 %v650_v39, %s1672_s30  ;;  %s1681_s29 = smov 55   ;;  %s1682_s30 = smov 54  }
  0x87   :  { %1186 = vst.msk [vmem:[%s3033_s1 + $0x6] sm:$0x1] %vm11_vm0, %v84_v41   ;;  %1187 = vst.msk [vmem:[%s3033_s1 + $0xa5] sm:$0x2] %vm11_vm0, %v84_v41   ;;  %v898_v38 = vld [vmem:[#allocation0] sm:$0x3]  }
  0x88   :  { %1188 = vst.msk [vmem:[%s3033_s1 + $0x84] sm:$0x4] %vm11_vm0, %v84_v41   ;;  %1189 = vst.msk [vmem:[%s3033_s1 + $0x123] sm:$0x8] %vm11_vm0, %v84_v41   ;;  %v96_v44 = vpop.permute.xlu0 %95   ;;  %v108_v45 = vpop.permute.xlu1 %107   ;;  %v906_v39 = vld [vmem:[#allocation0] sm:$0x3]  }
  0x89   :  { %1190 = vst.msk [vmem:[%s3033_s1 + $0x7] sm:$0x1] %vm11_vm0, %v96_v44   ;;  %1191 = vst.msk [vmem:[%s3033_s1 + $0xa6] sm:$0x2] %vm11_vm0, %v96_v44  }
  0x8a   :  { %1192 = vst.msk [vmem:[%s3033_s1 + $0x85] sm:$0x4] %vm11_vm0, %v96_v44   ;;  %1193 = vst.msk [vmem:[%s3033_s1 + $0x124] sm:$0x8] %vm11_vm0, %v96_v44   ;;  %659 = vrot.lane.b32.xlu0 %v658_v42, %s1673_s17  ;;  %667 = vrot.lane.b32.xlu1 %v666_v43, %s1674_s18  ;;  %s1683_s17 = smov 53   ;;  %s1684_s18 = smov 52  }
  0x8b   :  { %1194 = vst.msk [vmem:[%s3033_s1 + $0x8] sm:$0x1] %vm11_vm0, %v108_v45   ;;  %1195 = vst.msk [vmem:[%s3033_s1 + $0xa7] sm:$0x2] %vm11_vm0, %v108_v45   ;;  %v914_v42 = vld [vmem:[#allocation0] sm:$0x3]  }
  0x8c   :  { %1196 = vst.msk [vmem:[%s3033_s1 + $0x86] sm:$0x4] %vm11_vm0, %v108_v45   ;;  %1197 = vst.msk [vmem:[%s3033_s1 + $0x125] sm:$0x8] %vm11_vm0, %v108_v45   ;;  %v120_v48 = vpop.permute.xlu0 %119   ;;  %v132_v49 = vpop.permute.xlu1 %131   ;;  %v922_v43 = vld [vmem:[#allocation0] sm:$0x3]  }
  0x8d   :  { %1198 = vst.msk [vmem:[%s3033_s1 + $0x9] sm:$0x1] %vm11_vm0, %v120_v48   ;;  %1199 = vst.msk [vmem:[%s3033_s1 + $0xa8] sm:$0x2] %vm11_vm0, %v120_v48  }
  0x8e   :  { %1200 = vst.msk [vmem:[%s3033_s1 + $0x87] sm:$0x4] %vm11_vm0, %v120_v48   ;;  %1201 = vst.msk [vmem:[%s3033_s1 + $0x126] sm:$0x8] %vm11_vm0, %v120_v48   ;;  %675 = vrot.lane.b32.xlu0 %v674_v46, %s1675_s6  ;;  %683 = vrot.lane.b32.xlu1 %v682_v47, %s1676_s7  ;;  %s1685_s6 = smov 51   ;;  %s1686_s7 = smov 50  }
  0x8f   :  { %1202 = vst.msk [vmem:[%s3033_s1 + $0xa] sm:$0x1] %vm11_vm0, %v132_v49   ;;  %1203 = vst.msk [vmem:[%s3033_s1 + $0xa9] sm:$0x2] %vm11_vm0, %v132_v49   ;;  %v930_v46 = vld [vmem:[#allocation0] sm:$0x3]  }
  0x90   :  { %1204 = vst.msk [vmem:[%s3033_s1 + $0x88] sm:$0x4] %vm11_vm0, %v132_v49   ;;  %1205 = vst.msk [vmem:[%s3033_s1 + $0x127] sm:$0x8] %vm11_vm0, %v132_v49   ;;  %v144_v52 = vpop.permute.xlu0 %143   ;;  %v156_v53 = vpop.permute.xlu1 %155   ;;  %v938_v47 = vld [vmem:[#allocation0] sm:$0x3]  }
  0x91   :  { %1206 = vst.msk [vmem:[%s3033_s1 + $0xb] sm:$0x1] %vm11_vm0, %v144_v52   ;;  %1207 = vst.msk [vmem:[%s3033_s1 + $0xaa] sm:$0x2] %vm11_vm0, %v144_v52  }
  0x92   :  { %1208 = vst.msk [vmem:[%s3033_s1 + $0x89] sm:$0x4] %vm11_vm0, %v144_v52   ;;  %1209 = vst.msk [vmem:[%s3033_s1 + $0x128] sm:$0x8] %vm11_vm0, %v144_v52   ;;  %691 = vrot.lane.b32.xlu0 %v690_v50, %s1677_s23  ;;  %699 = vrot.lane.b32.xlu1 %v698_v51, %s1678_s24  ;;  %s1687_s23 = smov 49   ;;  %s1688_s24 = smov 48  }
  0x93   :  { %1210 = vst.msk [vmem:[%s3033_s1 + $0xc] sm:$0x1] %vm11_vm0, %v156_v53   ;;  %1211 = vst.msk [vmem:[%s3033_s1 + $0xab] sm:$0x2] %vm11_vm0, %v156_v53   ;;  %v946_v50 = vld [vmem:[#allocation0] sm:$0x3]  }
  0x94   :  { %1212 = vst.msk [vmem:[%s3033_s1 + $0x8a] sm:$0x4] %vm11_vm0, %v156_v53   ;;  %1213 = vst.msk [vmem:[%s3033_s1 + $0x129] sm:$0x8] %vm11_vm0, %v156_v53   ;;  %v168_v56 = vpop.permute.xlu0 %167   ;;  %v180_v57 = vpop.permute.xlu1 %179   ;;  %v954_v51 = vld [vmem:[#allocation0] sm:$0x3]  }
  0x95   :  { %1214 = vst.msk [vmem:[%s3033_s1 + $0xd] sm:$0x1] %vm11_vm0, %v168_v56   ;;  %1215 = vst.msk [vmem:[%s3033_s1 + $0xac] sm:$0x2] %vm11_vm0, %v168_v56  }
  0x96   :  { %1216 = vst.msk [vmem:[%s3033_s1 + $0x8b] sm:$0x4] %vm11_vm0, %v168_v56   ;;  %1217 = vst.msk [vmem:[%s3033_s1 + $0x12a] sm:$0x8] %vm11_vm0, %v168_v56   ;;  %707 = vrot.lane.b32.xlu0 %v706_v54, %s1679_s11  ;;  %715 = vrot.lane.b32.xlu1 %v714_v55, %s1680_s12  ;;  %s1689_s11 = smov 47   ;;  %s1690_s12 = smov 46  }
  0x97   :  { %1218 = vst.msk [vmem:[%s3033_s1 + $0xe] sm:$0x1] %vm11_vm0, %v180_v57   ;;  %1219 = vst.msk [vmem:[%s3033_s1 + $0xad] sm:$0x2] %vm11_vm0, %v180_v57   ;;  %v962_v54 = vld [vmem:[#allocation0] sm:$0x3]  }
  0x98   :  { %1220 = vst.msk [vmem:[%s3033_s1 + $0x8c] sm:$0x4] %vm11_vm0, %v180_v57   ;;  %1221 = vst.msk [vmem:[%s3033_s1 + $0x12b] sm:$0x8] %vm11_vm0, %v180_v57   ;;  %v192_v60 = vpop.permute.xlu0 %191   ;;  %v204_v61 = vpop.permute.xlu1 %203   ;;  %v970_v55 = vld [vmem:[#allocation0] sm:$0x3]  }
  0x99   :  { %1222 = vst.msk [vmem:[%s3033_s1 + $0xf] sm:$0x1] %vm11_vm0, %v192_v60   ;;  %1223 = vst.msk [vmem:[%s3033_s1 + $0xae] sm:$0x2] %vm11_vm0, %v192_v60  }
  0x9a   :  { %1224 = vst.msk [vmem:[%s3033_s1 + $0x8d] sm:$0x4] %vm11_vm0, %v192_v60   ;;  %1225 = vst.msk [vmem:[%s3033_s1 + $0x12c] sm:$0x8] %vm11_vm0, %v192_v60   ;;  %723 = vrot.lane.b32.xlu0 %v722_v58, %s1681_s29  ;;  %731 = vrot.lane.b32.xlu1 %v730_v59, %s1682_s30  ;;  %s1691_s29 = smov 45   ;;  %s1692_s30 = smov 44  }
  0x9b   :  { %1226 = vst.msk [vmem:[%s3033_s1 + $0x10] sm:$0x1] %vm11_vm0, %v204_v61   ;;  %1227 = vst.msk [vmem:[%s3033_s1 + $0xaf] sm:$0x2] %vm11_vm0, %v204_v61   ;;  %v978_v58 = vld [vmem:[#allocation0] sm:$0x3]  }
  0x9c   :  { %1228 = vst.msk [vmem:[%s3033_s1 + $0x8e] sm:$0x4] %vm11_vm0, %v204_v61   ;;  %1229 = vst.msk [vmem:[%s3033_s1 + $0x12d] sm:$0x8] %vm11_vm0, %v204_v61   ;;  %v216_v0 = vpop.permute.xlu0 %215   ;;  %v228_v1 = vpop.permute.xlu1 %227   ;;  %v986_v59 = vld [vmem:[#allocation0] sm:$0x3]  }
  0x9d   :  { %1230 = vst.msk [vmem:[%s3033_s1 + $0x11] sm:$0x1] %vm11_vm0, %v216_v0   ;;  %1231 = vst.msk [vmem:[%s3033_s1 + $0xb0] sm:$0x2] %vm11_vm0, %v216_v0  }
  0x9e   :  { %1232 = vst.msk [vmem:[%s3033_s1 + $0x8f] sm:$0x4] %vm11_vm0, %v216_v0   ;;  %1233 = vst.msk [vmem:[%s3033_s1 + $0x12e] sm:$0x8] %vm11_vm0, %v216_v0   ;;  %739 = vrot.lane.b32.xlu0 %v738_v62, %s1683_s17  ;;  %747 = vrot.lane.b32.xlu1 %v746_v63, %s1684_s18  ;;  %s1693_s17 = smov 43   ;;  %s1694_s18 = smov 42  }
  0x9f   :  { %1234 = vst.msk [vmem:[%s3033_s1 + $0x12] sm:$0x1] %vm11_vm0, %v228_v1   ;;  %1235 = vst.msk [vmem:[%s3033_s1 + $0xb1] sm:$0x2] %vm11_vm0, %v228_v1   ;;  %v994_v62 = vld [vmem:[#allocation0] sm:$0x3]  }
  0xa0   :  { %1236 = vst.msk [vmem:[%s3033_s1 + $0x90] sm:$0x4] %vm11_vm0, %v228_v1   ;;  %1237 = vst.msk [vmem:[%s3033_s1 + $0x12f] sm:$0x8] %vm11_vm0, %v228_v1   ;;  %v240_v4 = vpop.permute.xlu0 %239   ;;  %v252_v5 = vpop.permute.xlu1 %251   ;;  %v1002_v63 = vld [vmem:[#allocation0] sm:$0x3]  }
  0xa1   :  { %1238 = vst.msk [vmem:[%s3033_s1 + $0x13] sm:$0x1] %vm11_vm0, %v240_v4   ;;  %1239 = vst.msk [vmem:[%s3033_s1 + $0xb2] sm:$0x2] %vm11_vm0, %v240_v4  }
  0xa2   :  { %1240 = vst.msk [vmem:[%s3033_s1 + $0x91] sm:$0x4] %vm11_vm0, %v240_v4   ;;  %1241 = vst.msk [vmem:[%s3033_s1 + $0x130] sm:$0x8] %vm11_vm0, %v240_v4   ;;  %755 = vrot.lane.b32.xlu0 %v754_v2, %s1685_s6  ;;  %763 = vrot.lane.b32.xlu1 %v762_v3, %s1686_s7  ;;  %s1695_s6 = smov 41   ;;  %s1696_s7 = smov 40  }
  0xa3   :  { %1242 = vst.msk [vmem:[%s3033_s1 + $0x14] sm:$0x1] %vm11_vm0, %v252_v5   ;;  %1243 = vst.msk [vmem:[%s3033_s1 + $0xb3] sm:$0x2] %vm11_vm0, %v252_v5   ;;  %v1010_v2 = vld [vmem:[#allocation0] sm:$0x3]  }
  0xa4   :  { %1244 = vst.msk [vmem:[%s3033_s1 + $0x92] sm:$0x4] %vm11_vm0, %v252_v5   ;;  %1245 = vst.msk [vmem:[%s3033_s1 + $0x131] sm:$0x8] %vm11_vm0, %v252_v5   ;;  %v264_v8 = vpop.permute.xlu0 %263   ;;  %v276_v9 = vpop.permute.xlu1 %275   ;;  %v1018_v3 = vld [vmem:[#allocation0] sm:$0x3]  }
  0xa5   :  { %1246 = vst.msk [vmem:[%s3033_s1 + $0x15] sm:$0x1] %vm11_vm0, %v264_v8   ;;  %1247 = vst.msk [vmem:[%s3033_s1 + $0xb4] sm:$0x2] %vm11_vm0, %v264_v8  }
  0xa6   :  { %1248 = vst.msk [vmem:[%s3033_s1 + $0x93] sm:$0x4] %vm11_vm0, %v264_v8   ;;  %1249 = vst.msk [vmem:[%s3033_s1 + $0x132] sm:$0x8] %vm11_vm0, %v264_v8   ;;  %771 = vrot.lane.b32.xlu0 %v770_v6, %s1687_s23  ;;  %779 = vrot.lane.b32.xlu1 %v778_v7, %s1688_s24  ;;  %v1026_v6 = vld [vmem:[#allocation0] sm:$0x3]  }
  0xa7   :  { %1250 = vst.msk [vmem:[%s3033_s1 + $0x16] sm:$0x1] %vm11_vm0, %v276_v9   ;;  %1251 = vst.msk [vmem:[%s3033_s1 + $0xb5] sm:$0x2] %vm11_vm0, %v276_v9   ;;  %v1034_v7 = vld [vmem:[#allocation0] sm:$0x3]  }
  0xa8   :  { %1252 = vst.msk [vmem:[%s3033_s1 + $0x94] sm:$0x4] %vm11_vm0, %v276_v9   ;;  %1253 = vst.msk [vmem:[%s3033_s1 + $0x133] sm:$0x8] %vm11_vm0, %v276_v9   ;;  %v288_v12 = vpop.permute.xlu0 %287   ;;  %v300_v13 = vpop.permute.xlu1 %299  }
  0xa9   :  { %1254 = vst.msk [vmem:[%s3033_s1 + $0x17] sm:$0x1] %vm11_vm0, %v288_v12   ;;  %1255 = vst.msk [vmem:[%s3033_s1 + $0xb6] sm:$0x2] %vm11_vm0, %v288_v12  }
  0xaa   :  { %1256 = vst.msk [vmem:[%s3033_s1 + $0x95] sm:$0x4] %vm11_vm0, %v288_v12   ;;  %1257 = vst.msk [vmem:[%s3033_s1 + $0x134] sm:$0x8] %vm11_vm0, %v288_v12   ;;  %787 = vrot.lane.b32.xlu0 %v786_v10, %s1689_s11  ;;  %795 = vrot.lane.b32.xlu1 %v794_v11, %s1690_s12  ;;  %v1042_v10 = vld [vmem:[#allocation0] sm:$0x3]  }
  0xab   :  { %1258 = vst.msk [vmem:[%s3033_s1 + $0x18] sm:$0x1] %vm11_vm0, %v300_v13   ;;  %1259 = vst.msk [vmem:[%s3033_s1 + $0xb7] sm:$0x2] %vm11_vm0, %v300_v13   ;;  %v1050_v11 = vld [vmem:[#allocation0] sm:$0x3]  }
  0xac   :  { %1260 = vst.msk [vmem:[%s3033_s1 + $0x96] sm:$0x4] %vm11_vm0, %v300_v13   ;;  %1261 = vst.msk [vmem:[%s3033_s1 + $0x135] sm:$0x8] %vm11_vm0, %v300_v13   ;;  %v312_v16 = vpop.permute.xlu0 %311   ;;  %v324_v17 = vpop.permute.xlu1 %323  }
  0xad   :  { %1262 = vst.msk [vmem:[%s3033_s1 + $0x19] sm:$0x1] %vm11_vm0, %v312_v16   ;;  %1263 = vst.msk [vmem:[%s3033_s1 + $0xb8] sm:$0x2] %vm11_vm0, %v312_v16  }
  0xae   :  { %1264 = vst.msk [vmem:[%s3033_s1 + $0x97] sm:$0x4] %vm11_vm0, %v312_v16   ;;  %1265 = vst.msk [vmem:[%s3033_s1 + $0x136] sm:$0x8] %vm11_vm0, %v312_v16   ;;  %803 = vrot.lane.b32.xlu0 %v802_v14, %s1691_s29  ;;  %811 = vrot.lane.b32.xlu1 %v810_v15, %s1692_s30  ;;  %s1699_s29 = smov 37   ;;  %s1700_s30 = smov 36  }
  0xaf   :  { %1266 = vst.msk [vmem:[%s3033_s1 + $0x1a] sm:$0x1] %vm11_vm0, %v324_v17   ;;  %1267 = vst.msk [vmem:[%s3033_s1 + $0xb9] sm:$0x2] %vm11_vm0, %v324_v17   ;;  %v1058_v14 = vld [vmem:[#allocation0] sm:$0x3]  }
  0xb0   :  { %1268 = vst.msk [vmem:[%s3033_s1 + $0x98] sm:$0x4] %vm11_vm0, %v324_v17   ;;  %1269 = vst.msk [vmem:[%s3033_s1 + $0x137] sm:$0x8] %vm11_vm0, %v324_v17   ;;  %v336_v20 = vpop.permute.xlu0 %335   ;;  %v348_v21 = vpop.permute.xlu1 %347   ;;  %v1066_v15 = vld [vmem:[#allocation0] sm:$0x3]  }
  0xb1   :  { %1270 = vst.msk [vmem:[%s3033_s1 + $0x1b] sm:$0x1] %vm11_vm0, %v336_v20   ;;  %1271 = vst.msk [vmem:[%s3033_s1 + $0xba] sm:$0x2] %vm11_vm0, %v336_v20  }
  0xb2   :  { %1272 = vst.msk [vmem:[%s3033_s1 + $0x99] sm:$0x4] %vm11_vm0, %v336_v20   ;;  %1273 = vst.msk [vmem:[%s3033_s1 + $0x138] sm:$0x8] %vm11_vm0, %v336_v20   ;;  %819 = vrot.lane.b32.xlu0 %v818_v18, %s1693_s17  ;;  %827 = vrot.lane.b32.xlu1 %v826_v19, %s1694_s18  ;;  %v1074_v18 = vld [vmem:[#allocation0] sm:$0x3]  }
  0xb3   :  { %1274 = vst.msk [vmem:[%s3033_s1 + $0x1c] sm:$0x1] %vm11_vm0, %v348_v21   ;;  %1275 = vst.msk [vmem:[%s3033_s1 + $0xbb] sm:$0x2] %vm11_vm0, %v348_v21   ;;  %v1082_v19 = vld [vmem:[#allocation0] sm:$0x3]  }
  0xb4   :  { %1276 = vst.msk [vmem:[%s3033_s1 + $0x9a] sm:$0x4] %vm11_vm0, %v348_v21   ;;  %1277 = vst.msk [vmem:[%s3033_s1 + $0x139] sm:$0x8] %vm11_vm0, %v348_v21   ;;  %v360_v24 = vpop.permute.xlu0 %359   ;;  %v372_v25 = vpop.permute.xlu1 %371   ;;  %s1731_s17 = smov 5   ;;  %s1732_s18 = smov 4  }
  0xb5   :  { %1278 = vst.msk [vmem:[%s3033_s1 + $0x1d] sm:$0x1] %vm11_vm0, %v360_v24   ;;  %1279 = vst.msk [vmem:[%s3033_s1 + $0xbc] sm:$0x2] %vm11_vm0, %v360_v24  }
  0xb6   :  { %1280 = vst.msk [vmem:[%s3033_s1 + $0x9b] sm:$0x4] %vm11_vm0, %v360_v24   ;;  %1281 = vst.msk [vmem:[%s3033_s1 + $0x13a] sm:$0x8] %vm11_vm0, %v360_v24   ;;  %835 = vrot.lane.b32.xlu0 %v834_v22, %s1695_s6  ;;  %843 = vrot.lane.b32.xlu1 %v842_v23, %s1696_s7  ;;  %v1090_v22 = vld [vmem:[#allocation0] sm:$0x3]  }
  0xb7   :  { %1282 = vst.msk [vmem:[%s3033_s1 + $0x1e] sm:$0x1] %vm11_vm0, %v372_v25   ;;  %1283 = vst.msk [vmem:[%s3033_s1 + $0xbd] sm:$0x2] %vm11_vm0, %v372_v25   ;;  %v1098_v23 = vld [vmem:[#allocation0] sm:$0x3]  }
  0xb8   :  { %1284 = vst.msk [vmem:[%s3033_s1 + $0x9c] sm:$0x4] %vm11_vm0, %v372_v25   ;;  %1285 = vst.msk [vmem:[%s3033_s1 + $0x13b] sm:$0x8] %vm11_vm0, %v372_v25   ;;  %v384_v28 = vpop.permute.xlu0 %383   ;;  %v396_v29 = vpop.permute.xlu1 %395  }
  0xb9   :  { %1286 = vst.msk [vmem:[%s3033_s1 + $0x1f] sm:$0x1] %vm11_vm0, %v384_v28   ;;  %1287 = vst.msk [vmem:[%s3033_s1 + $0xbe] sm:$0x2] %vm11_vm0, %v384_v28  }
  0xba   :  { %1288 = vst.msk [vmem:[%s3033_s1 + $0x9d] sm:$0x4] %vm11_vm0, %v384_v28   ;;  %1289 = vst.msk [vmem:[%s3033_s1 + $0x13c] sm:$0x8] %vm11_vm0, %v384_v28   ;;  %851 = vrot.lane.b32.xlu0 %v850_v26, %s1697_s19  ;;  %859 = vrot.lane.b32.xlu1 %v858_v27, %s1698_s20  ;;  %s1703_s19 = smov 33   ;;  %s1704_s20 = smov 32  }
  0xbb   :  { %1290 = vst.msk [vmem:[%s3033_s1 + $0x20] sm:$0x1] %vm11_vm0, %v396_v29   ;;  %1291 = vst.msk [vmem:[%s3033_s1 + $0xbf] sm:$0x2] %vm11_vm0, %v396_v29   ;;  %v1106_v26 = vld [vmem:[#allocation0] sm:$0x3]  }
  0xbc   :  { %v404_v32 = vpop.permute.xlu0 %403   ;;  %v412_v33 = vpop.permute.xlu1 %411   ;;  %v1114_v27 = vld [vmem:[#allocation0] sm:$0x3]  }
  0xbd   :  { %1292 = vst.msk [vmem:[%s3033_s1 + $0x21] sm:$0x1] %vm11_vm0, %v404_v32   ;;  %1293 = vst.msk [vmem:[%s3033_s1 + $0xc0] sm:$0x2] %vm11_vm0, %v404_v32   ;;  %v1122_v32 = vld [vmem:[#allocation0] sm:$0x3]  }
  0xbe   :  { %1294 = vst.msk [vmem:[%s3033_s1 + $0x22] sm:$0x1] %vm11_vm0, %v412_v33   ;;  %1295 = vst.msk [vmem:[%s3033_s1 + $0xc1] sm:$0x2] %vm11_vm0, %v412_v33   ;;  %867 = vrot.lane.b32.xlu0 %v866_v30, %s1699_s29  ;;  %875 = vrot.lane.b32.xlu1 %v874_v31, %s1700_s30  ;;  %s1705_s29 = smov 31   ;;  %s1706_s30 = smov 30  }
  0xbf   :  { %v10_v30 = vld [vmem:[#allocation0] sm:$0x3]   ;;  %v16_v31 = vld [vmem:[#allocation0 + $0x8] sm:$0x3]  }
  0xc0   :  { %v420_v36 = vpop.permute.xlu0 %419   ;;  %v428_v37 = vpop.permute.xlu1 %427   ;;  %12 = vst.msk [vmem:[%s3033_s1] sm:$0x1] %vm11_vm0, %v10_v30   ;;  %1163 = vst.msk [vmem:[%s3033_s1 + $0x9f] sm:$0x2] %vm11_vm0, %v10_v30   ;;  %v1130_v33 = vld [vmem:[#allocation0] sm:$0x3]  }
  0xc1   :  { %1296 = vst.msk [vmem:[%s3033_s1 + $0x23] sm:$0x1] %vm11_vm0, %v420_v36   ;;  %1297 = vst.msk [vmem:[%s3033_s1 + $0xc2] sm:$0x2] %vm11_vm0, %v420_v36   ;;  %v1138_v36 = vld [vmem:[#allocation0] sm:$0x3]  }
  0xc2   :  { %1298 = vst.msk [vmem:[%s3033_s1 + $0x24] sm:$0x1] %vm11_vm0, %v428_v37   ;;  %1299 = vst.msk [vmem:[%s3033_s1 + $0xc3] sm:$0x2] %vm11_vm0, %v428_v37   ;;  %883 = vrot.lane.b32.xlu0 %v882_v34, %s1701_s0  ;;  %891 = vrot.lane.b32.xlu1 %v890_v35, %s1702_s10  ;;  %s1707_s0 = smov 29   ;;  %s1708_s10 = smov 28  }
  0xc3   :  { %1164 = vst.msk [vmem:[%s3033_s1 + $0x80] sm:$0x1] %vm11_vm0, %v16_v31   ;;  %1165 = vst.msk [vmem:[%s3033_s1 + $0x11f] sm:$0x2] %vm11_vm0, %v16_v31   ;;  %v1146_v37 = vld [vmem:[#allocation0] sm:$0x3]  }
  0xc4   :  { %v436_v40 = vpop.permute.xlu0 %435   ;;  %v444_v41 = vpop.permute.xlu1 %443  }
  0xc5   :  { %1300 = vst.msk [vmem:[%s3033_s1 + $0x25] sm:$0x1] %vm11_vm0, %v436_v40   ;;  %1301 = vst.msk [vmem:[%s3033_s1 + $0xc4] sm:$0x2] %vm11_vm0, %v436_v40   ;;  %v1154_v40 = vld [vmem:[#allocation0] sm:$0x3]  }
  0xc6   :  { %1302 = vst.msk [vmem:[%s3033_s1 + $0x26] sm:$0x1] %vm11_vm0, %v444_v41   ;;  %1303 = vst.msk [vmem:[%s3033_s1 + $0xc5] sm:$0x2] %vm11_vm0, %v444_v41   ;;  %899 = vrot.lane.b32.xlu0 %v898_v38, %s1703_s19  ;;  %907 = vrot.lane.b32.xlu1 %v906_v39, %s1704_s20  ;;  %s1709_s19 = smov 27   ;;  %s1710_s20 = smov 26  }
  0xc8   :  { %v452_v44 = vpop.permute.xlu0 %451   ;;  %v460_v45 = vpop.permute.xlu1 %459  }
  0xc9   :  { %1304 = vst.msk [vmem:[%s3033_s1 + $0x27] sm:$0x1] %vm11_vm0, %v452_v44   ;;  %1305 = vst.msk [vmem:[%s3033_s1 + $0xc6] sm:$0x2] %vm11_vm0, %v452_v44  }
  0xca   :  { %1306 = vst.msk [vmem:[%s3033_s1 + $0x28] sm:$0x1] %vm11_vm0, %v460_v45   ;;  %1307 = vst.msk [vmem:[%s3033_s1 + $0xc7] sm:$0x2] %vm11_vm0, %v460_v45   ;;  %915 = vrot.lane.b32.xlu0 %v914_v42, %s1705_s29  ;;  %923 = vrot.lane.b32.xlu1 %v922_v43, %s1706_s30  ;;  %s1711_s29 = smov 25   ;;  %s1712_s30 = smov 24  }
  0xcc   :  { %v468_v48 = vpop.permute.xlu0 %467   ;;  %v476_v49 = vpop.permute.xlu1 %475  }
  0xcd   :  { %1308 = vst.msk [vmem:[%s3033_s1 + $0x29] sm:$0x1] %vm11_vm0, %v468_v48   ;;  %1309 = vst.msk [vmem:[%s3033_s1 + $0xc8] sm:$0x2] %vm11_vm0, %v468_v48  }
  0xce   :  { %1310 = vst.msk [vmem:[%s3033_s1 + $0x2a] sm:$0x1] %vm11_vm0, %v476_v49   ;;  %1311 = vst.msk [vmem:[%s3033_s1 + $0xc9] sm:$0x2] %vm11_vm0, %v476_v49   ;;  %931 = vrot.lane.b32.xlu0 %v930_v46, %s1707_s0  ;;  %939 = vrot.lane.b32.xlu1 %v938_v47, %s1708_s10  ;;  %s1713_s0 = smov 23   ;;  %s1714_s10 = smov 22  }
  0xd0   :  { %v484_v52 = vpop.permute.xlu0 %483   ;;  %v492_v53 = vpop.permute.xlu1 %491  }
  0xd1   :  { %1312 = vst.msk [vmem:[%s3033_s1 + $0x2b] sm:$0x1] %vm11_vm0, %v484_v52   ;;  %1313 = vst.msk [vmem:[%s3033_s1 + $0xca] sm:$0x2] %vm11_vm0, %v484_v52  }
  0xd2   :  { %1314 = vst.msk [vmem:[%s3033_s1 + $0x2c] sm:$0x1] %vm11_vm0, %v492_v53   ;;  %1315 = vst.msk [vmem:[%s3033_s1 + $0xcb] sm:$0x2] %vm11_vm0, %v492_v53   ;;  %947 = vrot.lane.b32.xlu0 %v946_v50, %s1709_s19  ;;  %955 = vrot.lane.b32.xlu1 %v954_v51, %s1710_s20  ;;  %s1715_s19 = smov 21   ;;  %s1716_s20 = smov 20  }
  0xd4   :  { %v500_v56 = vpop.permute.xlu0 %499   ;;  %v508_v57 = vpop.permute.xlu1 %507  }
  0xd5   :  { %1316 = vst.msk [vmem:[%s3033_s1 + $0x2d] sm:$0x1] %vm11_vm0, %v500_v56   ;;  %1317 = vst.msk [vmem:[%s3033_s1 + $0xcc] sm:$0x2] %vm11_vm0, %v500_v56  }
  0xd6   :  { %1318 = vst.msk [vmem:[%s3033_s1 + $0x2e] sm:$0x1] %vm11_vm0, %v508_v57   ;;  %1319 = vst.msk [vmem:[%s3033_s1 + $0xcd] sm:$0x2] %vm11_vm0, %v508_v57   ;;  %963 = vrot.lane.b32.xlu0 %v962_v54, %s1711_s29  ;;  %971 = vrot.lane.b32.xlu1 %v970_v55, %s1712_s30  ;;  %s1717_s29 = smov 19   ;;  %s1718_s30 = smov 18  }
  0xd8   :  { %v516_v60 = vpop.permute.xlu0 %515   ;;  %v524_v61 = vpop.permute.xlu1 %523  }
  0xd9   :  { %1320 = vst.msk [vmem:[%s3033_s1 + $0x2f] sm:$0x1] %vm11_vm0, %v516_v60   ;;  %1321 = vst.msk [vmem:[%s3033_s1 + $0xce] sm:$0x2] %vm11_vm0, %v516_v60  }
  0xda   :  { %1322 = vst.msk [vmem:[%s3033_s1 + $0x30] sm:$0x1] %vm11_vm0, %v524_v61   ;;  %1323 = vst.msk [vmem:[%s3033_s1 + $0xcf] sm:$0x2] %vm11_vm0, %v524_v61   ;;  %979 = vrot.lane.b32.xlu0 %v978_v58, %s1713_s0  ;;  %987 = vrot.lane.b32.xlu1 %v986_v59, %s1714_s10  ;;  %s1719_s0 = smov 17   ;;  %s1720_s10 = smov 16  }
  0xdc   :  { %v532_v0 = vpop.permute.xlu0 %531   ;;  %v540_v1 = vpop.permute.xlu1 %539  }
  0xdd   :  { %1324 = vst.msk [vmem:[%s3033_s1 + $0x31] sm:$0x1] %vm11_vm0, %v532_v0   ;;  %1325 = vst.msk [vmem:[%s3033_s1 + $0xd0] sm:$0x2] %vm11_vm0, %v532_v0  }
  0xde   :  { %1326 = vst.msk [vmem:[%s3033_s1 + $0x32] sm:$0x1] %vm11_vm0, %v540_v1   ;;  %1327 = vst.msk [vmem:[%s3033_s1 + $0xd1] sm:$0x2] %vm11_vm0, %v540_v1   ;;  %995 = vrot.lane.b32.xlu0 %v994_v62, %s1715_s19  ;;  %1003 = vrot.lane.b32.xlu1 %v1002_v63, %s1716_s20  ;;  %s1721_s19 = smov 15   ;;  %s1722_s20 = smov 14  }
  0xe0   :  { %v548_v4 = vpop.permute.xlu0 %547   ;;  %v556_v5 = vpop.permute.xlu1 %555  }
  0xe1   :  { %1328 = vst.msk [vmem:[%s3033_s1 + $0x33] sm:$0x1] %vm11_vm0, %v548_v4   ;;  %1329 = vst.msk [vmem:[%s3033_s1 + $0xd2] sm:$0x2] %vm11_vm0, %v548_v4  }
  0xe2   :  { %1330 = vst.msk [vmem:[%s3033_s1 + $0x34] sm:$0x1] %vm11_vm0, %v556_v5   ;;  %1331 = vst.msk [vmem:[%s3033_s1 + $0xd3] sm:$0x2] %vm11_vm0, %v556_v5   ;;  %1011 = vrot.lane.b32.xlu0 %v1010_v2, %s1717_s29  ;;  %1019 = vrot.lane.b32.xlu1 %v1018_v3, %s1718_s30  ;;  %s1723_s29 = smov 13   ;;  %s1724_s30 = smov 12  }
  0xe4   :  { %v564_v8 = vpop.permute.xlu0 %563   ;;  %v572_v9 = vpop.permute.xlu1 %571  }
  0xe5   :  { %1332 = vst.msk [vmem:[%s3033_s1 + $0x35] sm:$0x1] %vm11_vm0, %v564_v8   ;;  %1333 = vst.msk [vmem:[%s3033_s1 + $0xd4] sm:$0x2] %vm11_vm0, %v564_v8  }
  0xe6   :  { %1334 = vst.msk [vmem:[%s3033_s1 + $0x36] sm:$0x1] %vm11_vm0, %v572_v9   ;;  %1335 = vst.msk [vmem:[%s3033_s1 + $0xd5] sm:$0x2] %vm11_vm0, %v572_v9   ;;  %1027 = vrot.lane.b32.xlu0 %v1026_v6, %s1719_s0  ;;  %1035 = vrot.lane.b32.xlu1 %v1034_v7, %s1720_s10  ;;  %s1725_s0 = smov 11   ;;  %s1726_s10 = smov 10  }
  0xe8   :  { %v580_v12 = vpop.permute.xlu0 %579   ;;  %v588_v13 = vpop.permute.xlu1 %587  }
  0xe9   :  { %1336 = vst.msk [vmem:[%s3033_s1 + $0x37] sm:$0x1] %vm11_vm0, %v580_v12   ;;  %1337 = vst.msk [vmem:[%s3033_s1 + $0xd6] sm:$0x2] %vm11_vm0, %v580_v12  }
  0xea   :  { %1338 = vst.msk [vmem:[%s3033_s1 + $0x38] sm:$0x1] %vm11_vm0, %v588_v13   ;;  %1339 = vst.msk [vmem:[%s3033_s1 + $0xd7] sm:$0x2] %vm11_vm0, %v588_v13   ;;  %1043 = vrot.lane.b32.xlu0 %v1042_v10, %s1721_s19  ;;  %1051 = vrot.lane.b32.xlu1 %v1050_v11, %s1722_s20  ;;  %s1727_s19 = smov 9   ;;  %s1728_s20 = smov 8  }
  0xec   :  { %v596_v16 = vpop.permute.xlu0 %595   ;;  %v604_v17 = vpop.permute.xlu1 %603  }
  0xed   :  { %1340 = vst.msk [vmem:[%s3033_s1 + $0x39] sm:$0x1] %vm11_vm0, %v596_v16   ;;  %1341 = vst.msk [vmem:[%s3033_s1 + $0xd8] sm:$0x2] %vm11_vm0, %v596_v16  }
  0xee   :  { %1342 = vst.msk [vmem:[%s3033_s1 + $0x3a] sm:$0x1] %vm11_vm0, %v604_v17   ;;  %1343 = vst.msk [vmem:[%s3033_s1 + $0xd9] sm:$0x2] %vm11_vm0, %v604_v17   ;;  %1059 = vrot.lane.b32.xlu0 %v1058_v14, %s1723_s29  ;;  %1067 = vrot.lane.b32.xlu1 %v1066_v15, %s1724_s30 }
  0xf0   :  { %v612_v20 = vpop.permute.xlu0 %611   ;;  %v620_v21 = vpop.permute.xlu1 %619  }
  0xf1   :  { %1344 = vst.msk [vmem:[%s3033_s1 + $0x3b] sm:$0x1] %vm11_vm0, %v612_v20   ;;  %1345 = vst.msk [vmem:[%s3033_s1 + $0xda] sm:$0x2] %vm11_vm0, %v612_v20  }
  0xf2   :  { %1346 = vst.msk [vmem:[%s3033_s1 + $0x3c] sm:$0x1] %vm11_vm0, %v620_v21   ;;  %1347 = vst.msk [vmem:[%s3033_s1 + $0xdb] sm:$0x2] %vm11_vm0, %v620_v21   ;;  %1075 = vrot.lane.b32.xlu0 %v1074_v18, %s1725_s0  ;;  %1083 = vrot.lane.b32.xlu1 %v1082_v19, %s1726_s10 }
  0xf4   :  { %v628_v24 = vpop.permute.xlu0 %627   ;;  %v636_v25 = vpop.permute.xlu1 %635  }
  0xf5   :  { %1348 = vst.msk [vmem:[%s3033_s1 + $0x3d] sm:$0x1] %vm11_vm0, %v628_v24   ;;  %1349 = vst.msk [vmem:[%s3033_s1 + $0xdc] sm:$0x2] %vm11_vm0, %v628_v24  }
  0xf6   :  { %1350 = vst.msk [vmem:[%s3033_s1 + $0x3e] sm:$0x1] %vm11_vm0, %v636_v25   ;;  %1351 = vst.msk [vmem:[%s3033_s1 + $0xdd] sm:$0x2] %vm11_vm0, %v636_v25   ;;  %1091 = vrot.lane.b32.xlu0 %v1090_v22, %s1727_s19  ;;  %1099 = vrot.lane.b32.xlu1 %v1098_v23, %s1728_s20 }
  0xf8   :  { %v644_v28 = vpop.permute.xlu0 %643   ;;  %v652_v29 = vpop.permute.xlu1 %651  }
  0xf9   :  { %1352 = vst.msk [vmem:[%s3033_s1 + $0x3f] sm:$0x1] %vm11_vm0, %v644_v28   ;;  %1353 = vst.msk [vmem:[%s3033_s1 + $0xde] sm:$0x2] %vm11_vm0, %v644_v28  }
  0xfa   :  { %1354 = vst.msk [vmem:[%s3033_s1 + $0x40] sm:$0x1] %vm11_vm0, %v652_v29   ;;  %1355 = vst.msk [vmem:[%s3033_s1 + $0xdf] sm:$0x2] %vm11_vm0, %v652_v29   ;;  %1107 = vrot.lane.b32.xlu0 %v1106_v26, %s1729_s8  ;;  %1115 = vrot.lane.b32.xlu1 %v1114_v27, %s1730_s9  ;;  %s1735_s8 = smov 1  }
  0xfc   :  { %v660_v34 = vpop.permute.xlu0 %659   ;;  %v668_v35 = vpop.permute.xlu1 %667  }
  0xfd   :  { %1356 = vst.msk [vmem:[%s3033_s1 + $0x41] sm:$0x1] %vm11_vm0, %v660_v34   ;;  %1357 = vst.msk [vmem:[%s3033_s1 + $0xe0] sm:$0x2] %vm11_vm0, %v660_v34  }
  0xfe   :  { %1358 = vst.msk [vmem:[%s3033_s1 + $0x42] sm:$0x1] %vm11_vm0, %v668_v35   ;;  %1359 = vst.msk [vmem:[%s3033_s1 + $0xe1] sm:$0x2] %vm11_vm0, %v668_v35   ;;  %1123 = vrot.lane.b32.xlu0 %v1122_v32, %s1731_s17  ;;  %1131 = vrot.lane.b32.xlu1 %v1130_v33, %s1732_s18 }
 0x100   :  { %v676_v38 = vpop.permute.xlu0 %675   ;;  %v684_v39 = vpop.permute.xlu1 %683  }
 0x101   :  { %1360 = vst.msk [vmem:[%s3033_s1 + $0x43] sm:$0x1] %vm11_vm0, %v676_v38   ;;  %1361 = vst.msk [vmem:[%s3033_s1 + $0xe2] sm:$0x2] %vm11_vm0, %v676_v38  }
 0x102   :  { %1362 = vst.msk [vmem:[%s3033_s1 + $0x44] sm:$0x1] %vm11_vm0, %v684_v39   ;;  %1363 = vst.msk [vmem:[%s3033_s1 + $0xe3] sm:$0x2] %vm11_vm0, %v684_v39   ;;  %1139 = vrot.lane.b32.xlu0 %v1138_v36, %s1733_s27  ;;  %1147 = vrot.lane.b32.xlu1 %v1146_v37, %s1734_s28 }
 0x104   :  { %v692_v41 = vpop.permute.xlu0 %691   ;;  %v700_v42 = vpop.permute.xlu1 %699  }
 0x105   :  { %1364 = vst.msk [vmem:[%s3033_s1 + $0x45] sm:$0x1] %vm11_vm0, %v692_v41   ;;  %1365 = vst.msk [vmem:[%s3033_s1 + $0xe4] sm:$0x2] %vm11_vm0, %v692_v41  }
 0x106   :  { %1366 = vst.msk [vmem:[%s3033_s1 + $0x46] sm:$0x1] %vm11_vm0, %v700_v42   ;;  %1367 = vst.msk [vmem:[%s3033_s1 + $0xe5] sm:$0x2] %vm11_vm0, %v700_v42   ;;  %1155 = vrot.lane.b32.xlu0 %v1154_v40, %s1735_s8 }
 0x108   :  { %v708_v43 = vpop.permute.xlu0 %707   ;;  %v716_v44 = vpop.permute.xlu1 %715  }
 0x109   :  { %1368 = vst.msk [vmem:[%s3033_s1 + $0x47] sm:$0x1] %vm11_vm0, %v708_v43   ;;  %1369 = vst.msk [vmem:[%s3033_s1 + $0xe6] sm:$0x2] %vm11_vm0, %v708_v43  }
 0x10a   :  { %1370 = vst.msk [vmem:[%s3033_s1 + $0x48] sm:$0x1] %vm11_vm0, %v716_v44   ;;  %1371 = vst.msk [vmem:[%s3033_s1 + $0xe7] sm:$0x2] %vm11_vm0, %v716_v44  }
 0x10c   :  { %v724_v45 = vpop.permute.xlu0 %723   ;;  %v732_v46 = vpop.permute.xlu1 %731  }
 0x10d   :  { %1372 = vst.msk [vmem:[%s3033_s1 + $0x49] sm:$0x1] %vm11_vm0, %v724_v45   ;;  %1373 = vst.msk [vmem:[%s3033_s1 + $0xe8] sm:$0x2] %vm11_vm0, %v724_v45  }
 0x10e   :  { %1374 = vst.msk [vmem:[%s3033_s1 + $0x4a] sm:$0x1] %vm11_vm0, %v732_v46   ;;  %1375 = vst.msk [vmem:[%s3033_s1 + $0xe9] sm:$0x2] %vm11_vm0, %v732_v46  }
 0x110   :  { %v740_v47 = vpop.permute.xlu0 %739   ;;  %v748_v48 = vpop.permute.xlu1 %747  }
 0x111   :  { %1376 = vst.msk [vmem:[%s3033_s1 + $0x4b] sm:$0x1] %vm11_vm0, %v740_v47   ;;  %1377 = vst.msk [vmem:[%s3033_s1 + $0xea] sm:$0x2] %vm11_vm0, %v740_v47  }
 0x112   :  { %1378 = vst.msk [vmem:[%s3033_s1 + $0x4c] sm:$0x1] %vm11_vm0, %v748_v48   ;;  %1379 = vst.msk [vmem:[%s3033_s1 + $0xeb] sm:$0x2] %vm11_vm0, %v748_v48  }
 0x114   :  { %v756_v49 = vpop.permute.xlu0 %755   ;;  %v764_v50 = vpop.permute.xlu1 %763  }
 0x115   :  { %1380 = vst.msk [vmem:[%s3033_s1 + $0x4d] sm:$0x1] %vm11_vm0, %v756_v49   ;;  %1381 = vst.msk [vmem:[%s3033_s1 + $0xec] sm:$0x2] %vm11_vm0, %v756_v49  }
 0x116   :  { %1382 = vst.msk [vmem:[%s3033_s1 + $0x4e] sm:$0x1] %vm11_vm0, %v764_v50   ;;  %1383 = vst.msk [vmem:[%s3033_s1 + $0xed] sm:$0x2] %vm11_vm0, %v764_v50  }
 0x118   :  { %v772_v51 = vpop.permute.xlu0 %771   ;;  %v780_v52 = vpop.permute.xlu1 %779  }
 0x119   :  { %1384 = vst.msk [vmem:[%s3033_s1 + $0x4f] sm:$0x1] %vm11_vm0, %v772_v51   ;;  %1385 = vst.msk [vmem:[%s3033_s1 + $0xee] sm:$0x2] %vm11_vm0, %v772_v51  }
 0x11a   :  { %1386 = vst.msk [vmem:[%s3033_s1 + $0x50] sm:$0x1] %vm11_vm0, %v780_v52   ;;  %1387 = vst.msk [vmem:[%s3033_s1 + $0xef] sm:$0x2] %vm11_vm0, %v780_v52  }
 0x11c   :  { %v788_v53 = vpop.permute.xlu0 %787   ;;  %v796_v54 = vpop.permute.xlu1 %795  }
 0x11d   :  { %1388 = vst.msk [vmem:[%s3033_s1 + $0x51] sm:$0x1] %vm11_vm0, %v788_v53   ;;  %1389 = vst.msk [vmem:[%s3033_s1 + $0xf0] sm:$0x2] %vm11_vm0, %v788_v53  }
 0x11e   :  { %1390 = vst.msk [vmem:[%s3033_s1 + $0x52] sm:$0x1] %vm11_vm0, %v796_v54   ;;  %1391 = vst.msk [vmem:[%s3033_s1 + $0xf1] sm:$0x2] %vm11_vm0, %v796_v54  }
 0x120   :  { %v804_v55 = vpop.permute.xlu0 %803   ;;  %v812_v56 = vpop.permute.xlu1 %811  }
 0x121   :  { %1392 = vst.msk [vmem:[%s3033_s1 + $0x53] sm:$0x1] %vm11_vm0, %v804_v55   ;;  %1393 = vst.msk [vmem:[%s3033_s1 + $0xf2] sm:$0x2] %vm11_vm0, %v804_v55  }
 0x122   :  { %1394 = vst.msk [vmem:[%s3033_s1 + $0x54] sm:$0x1] %vm11_vm0, %v812_v56   ;;  %1395 = vst.msk [vmem:[%s3033_s1 + $0xf3] sm:$0x2] %vm11_vm0, %v812_v56  }
 0x124   :  { %v820_v57 = vpop.permute.xlu0 %819   ;;  %v828_v58 = vpop.permute.xlu1 %827  }
 0x125   :  { %1396 = vst.msk [vmem:[%s3033_s1 + $0x55] sm:$0x1] %vm11_vm0, %v820_v57   ;;  %1397 = vst.msk [vmem:[%s3033_s1 + $0xf4] sm:$0x2] %vm11_vm0, %v820_v57  }
 0x126   :  { %1398 = vst.msk [vmem:[%s3033_s1 + $0x56] sm:$0x1] %vm11_vm0, %v828_v58   ;;  %1399 = vst.msk [vmem:[%s3033_s1 + $0xf5] sm:$0x2] %vm11_vm0, %v828_v58  }
 0x128   :  { %v836_v59 = vpop.permute.xlu0 %835   ;;  %v844_v60 = vpop.permute.xlu1 %843  }
 0x129   :  { %1400 = vst.msk [vmem:[%s3033_s1 + $0x57] sm:$0x1] %vm11_vm0, %v836_v59   ;;  %1401 = vst.msk [vmem:[%s3033_s1 + $0xf6] sm:$0x2] %vm11_vm0, %v836_v59  }
 0x12a   :  { %1402 = vst.msk [vmem:[%s3033_s1 + $0x58] sm:$0x1] %vm11_vm0, %v844_v60   ;;  %1403 = vst.msk [vmem:[%s3033_s1 + $0xf7] sm:$0x2] %vm11_vm0, %v844_v60  }
 0x12c   :  { %v852_v61 = vpop.permute.xlu0 %851   ;;  %v860_v62 = vpop.permute.xlu1 %859  }
 0x12d   :  { %1404 = vst.msk [vmem:[%s3033_s1 + $0x59] sm:$0x1] %vm11_vm0, %v852_v61   ;;  %1405 = vst.msk [vmem:[%s3033_s1 + $0xf8] sm:$0x2] %vm11_vm0, %v852_v61  }
 0x12e   :  { %1406 = vst.msk [vmem:[%s3033_s1 + $0x5a] sm:$0x1] %vm11_vm0, %v860_v62   ;;  %1407 = vst.msk [vmem:[%s3033_s1 + $0xf9] sm:$0x2] %vm11_vm0, %v860_v62  }
 0x130   :  { %v868_v63 = vpop.permute.xlu0 %867   ;;  %v876_v0 = vpop.permute.xlu1 %875  }
 0x131   :  { %1408 = vst.msk [vmem:[%s3033_s1 + $0x5b] sm:$0x1] %vm11_vm0, %v868_v63   ;;  %1409 = vst.msk [vmem:[%s3033_s1 + $0xfa] sm:$0x2] %vm11_vm0, %v868_v63  }
 0x132   :  { %1410 = vst.msk [vmem:[%s3033_s1 + $0x5c] sm:$0x1] %vm11_vm0, %v876_v0   ;;  %1411 = vst.msk [vmem:[%s3033_s1 + $0xfb] sm:$0x2] %vm11_vm0, %v876_v0  }
 0x134   :  { %v884_v1 = vpop.permute.xlu0 %883   ;;  %v892_v2 = vpop.permute.xlu1 %891  }
 0x135   :  { %1412 = vst.msk [vmem:[%s3033_s1 + $0x5d] sm:$0x1] %vm11_vm0, %v884_v1   ;;  %1413 = vst.msk [vmem:[%s3033_s1 + $0xfc] sm:$0x2] %vm11_vm0, %v884_v1  }
 0x136   :  { %1414 = vst.msk [vmem:[%s3033_s1 + $0x5e] sm:$0x1] %vm11_vm0, %v892_v2   ;;  %1415 = vst.msk [vmem:[%s3033_s1 + $0xfd] sm:$0x2] %vm11_vm0, %v892_v2  }
 0x138   :  { %v900_v3 = vpop.permute.xlu0 %899   ;;  %v908_v4 = vpop.permute.xlu1 %907  }
 0x139   :  { %1416 = vst.msk [vmem:[%s3033_s1 + $0x5f] sm:$0x1] %vm11_vm0, %v900_v3   ;;  %1417 = vst.msk [vmem:[%s3033_s1 + $0xfe] sm:$0x2] %vm11_vm0, %v900_v3  }
 0x13a   :  { %1418 = vst.msk [vmem:[%s3033_s1 + $0x60] sm:$0x1] %vm11_vm0, %v908_v4   ;;  %1419 = vst.msk [vmem:[%s3033_s1 + $0xff] sm:$0x2] %vm11_vm0, %v908_v4  }
 0x13c   :  { %v916_v5 = vpop.permute.xlu0 %915   ;;  %v924_v6 = vpop.permute.xlu1 %923  }
 0x13d   :  { %1420 = vst.msk [vmem:[%s3033_s1 + $0x61] sm:$0x1] %vm11_vm0, %v916_v5   ;;  %1421 = vst.msk [vmem:[%s3033_s1 + $0x100] sm:$0x2] %vm11_vm0, %v916_v5  }
 0x13e   :  { %1422 = vst.msk [vmem:[%s3033_s1 + $0x62] sm:$0x1] %vm11_vm0, %v924_v6   ;;  %1423 = vst.msk [vmem:[%s3033_s1 + $0x101] sm:$0x2] %vm11_vm0, %v924_v6  }
 0x140   :  { %v932_v7 = vpop.permute.xlu0 %931   ;;  %v940_v8 = vpop.permute.xlu1 %939  }
 0x141   :  { %1424 = vst.msk [vmem:[%s3033_s1 + $0x63] sm:$0x1] %vm11_vm0, %v932_v7   ;;  %1425 = vst.msk [vmem:[%s3033_s1 + $0x102] sm:$0x2] %vm11_vm0, %v932_v7  }
 0x142   :  { %1426 = vst.msk [vmem:[%s3033_s1 + $0x64] sm:$0x1] %vm11_vm0, %v940_v8   ;;  %1427 = vst.msk [vmem:[%s3033_s1 + $0x103] sm:$0x2] %vm11_vm0, %v940_v8  }
 0x144   :  { %v948_v9 = vpop.permute.xlu0 %947   ;;  %v956_v10 = vpop.permute.xlu1 %955  }
 0x145   :  { %1428 = vst.msk [vmem:[%s3033_s1 + $0x65] sm:$0x1] %vm11_vm0, %v948_v9   ;;  %1429 = vst.msk [vmem:[%s3033_s1 + $0x104] sm:$0x2] %vm11_vm0, %v948_v9  }
 0x146   :  { %1430 = vst.msk [vmem:[%s3033_s1 + $0x66] sm:$0x1] %vm11_vm0, %v956_v10   ;;  %1431 = vst.msk [vmem:[%s3033_s1 + $0x105] sm:$0x2] %vm11_vm0, %v956_v10  }
 0x148   :  { %v964_v11 = vpop.permute.xlu0 %963   ;;  %v972_v12 = vpop.permute.xlu1 %971  }
 0x149   :  { %1432 = vst.msk [vmem:[%s3033_s1 + $0x67] sm:$0x1] %vm11_vm0, %v964_v11   ;;  %1433 = vst.msk [vmem:[%s3033_s1 + $0x106] sm:$0x2] %vm11_vm0, %v964_v11  }
 0x14a   :  { %1434 = vst.msk [vmem:[%s3033_s1 + $0x68] sm:$0x1] %vm11_vm0, %v972_v12   ;;  %1435 = vst.msk [vmem:[%s3033_s1 + $0x107] sm:$0x2] %vm11_vm0, %v972_v12  }
 0x14c   :  { %v980_v13 = vpop.permute.xlu0 %979   ;;  %v988_v14 = vpop.permute.xlu1 %987  }
 0x14d   :  { %1436 = vst.msk [vmem:[%s3033_s1 + $0x69] sm:$0x1] %vm11_vm0, %v980_v13   ;;  %1437 = vst.msk [vmem:[%s3033_s1 + $0x108] sm:$0x2] %vm11_vm0, %v980_v13  }
 0x14e   :  { %1438 = vst.msk [vmem:[%s3033_s1 + $0x6a] sm:$0x1] %vm11_vm0, %v988_v14   ;;  %1439 = vst.msk [vmem:[%s3033_s1 + $0x109] sm:$0x2] %vm11_vm0, %v988_v14  }
 0x150   :  { %v996_v15 = vpop.permute.xlu0 %995   ;;  %v1004_v16 = vpop.permute.xlu1 %1003  }
 0x151   :  { %1440 = vst.msk [vmem:[%s3033_s1 + $0x6b] sm:$0x1] %vm11_vm0, %v996_v15   ;;  %1441 = vst.msk [vmem:[%s3033_s1 + $0x10a] sm:$0x2] %vm11_vm0, %v996_v15  }
 0x152   :  { %1442 = vst.msk [vmem:[%s3033_s1 + $0x6c] sm:$0x1] %vm11_vm0, %v1004_v16   ;;  %1443 = vst.msk [vmem:[%s3033_s1 + $0x10b] sm:$0x2] %vm11_vm0, %v1004_v16  }
 0x154   :  { %v1012_v17 = vpop.permute.xlu0 %1011   ;;  %v1020_v18 = vpop.permute.xlu1 %1019  }
 0x155   :  { %1444 = vst.msk [vmem:[%s3033_s1 + $0x6d] sm:$0x1] %vm11_vm0, %v1012_v17   ;;  %1445 = vst.msk [vmem:[%s3033_s1 + $0x10c] sm:$0x2] %vm11_vm0, %v1012_v17  }
 0x156   :  { %1446 = vst.msk [vmem:[%s3033_s1 + $0x6e] sm:$0x1] %vm11_vm0, %v1020_v18   ;;  %1447 = vst.msk [vmem:[%s3033_s1 + $0x10d] sm:$0x2] %vm11_vm0, %v1020_v18  }
 0x158   :  { %v1028_v19 = vpop.permute.xlu0 %1027   ;;  %v1036_v20 = vpop.permute.xlu1 %1035  }
 0x159   :  { %1448 = vst.msk [vmem:[%s3033_s1 + $0x6f] sm:$0x1] %vm11_vm0, %v1028_v19   ;;  %1449 = vst.msk [vmem:[%s3033_s1 + $0x10e] sm:$0x2] %vm11_vm0, %v1028_v19  }
 0x15a   :  { %1450 = vst.msk [vmem:[%s3033_s1 + $0x70] sm:$0x1] %vm11_vm0, %v1036_v20   ;;  %1451 = vst.msk [vmem:[%s3033_s1 + $0x10f] sm:$0x2] %vm11_vm0, %v1036_v20  }
 0x15c   :  { %v1044_v21 = vpop.permute.xlu0 %1043   ;;  %v1052_v22 = vpop.permute.xlu1 %1051  }
 0x15d   :  { %1452 = vst.msk [vmem:[%s3033_s1 + $0x71] sm:$0x1] %vm11_vm0, %v1044_v21   ;;  %1453 = vst.msk [vmem:[%s3033_s1 + $0x110] sm:$0x2] %vm11_vm0, %v1044_v21  }
 0x15e   :  { %1454 = vst.msk [vmem:[%s3033_s1 + $0x72] sm:$0x1] %vm11_vm0, %v1052_v22   ;;  %1455 = vst.msk [vmem:[%s3033_s1 + $0x111] sm:$0x2] %vm11_vm0, %v1052_v22  }
 0x160   :  { %v1060_v23 = vpop.permute.xlu0 %1059   ;;  %v1068_v24 = vpop.permute.xlu1 %1067  }
 0x161   :  { %1456 = vst.msk [vmem:[%s3033_s1 + $0x73] sm:$0x1] %vm11_vm0, %v1060_v23   ;;  %1457 = vst.msk [vmem:[%s3033_s1 + $0x112] sm:$0x2] %vm11_vm0, %v1060_v23  }
 0x162   :  { %1458 = vst.msk [vmem:[%s3033_s1 + $0x74] sm:$0x1] %vm11_vm0, %v1068_v24   ;;  %1459 = vst.msk [vmem:[%s3033_s1 + $0x113] sm:$0x2] %vm11_vm0, %v1068_v24  }
 0x164   :  { %v1076_v25 = vpop.permute.xlu0 %1075   ;;  %v1084_v26 = vpop.permute.xlu1 %1083  }
 0x165   :  { %1460 = vst.msk [vmem:[%s3033_s1 + $0x75] sm:$0x1] %vm11_vm0, %v1076_v25   ;;  %1461 = vst.msk [vmem:[%s3033_s1 + $0x114] sm:$0x2] %vm11_vm0, %v1076_v25  }
 0x166   :  { %1462 = vst.msk [vmem:[%s3033_s1 + $0x76] sm:$0x1] %vm11_vm0, %v1084_v26   ;;  %1463 = vst.msk [vmem:[%s3033_s1 + $0x115] sm:$0x2] %vm11_vm0, %v1084_v26  }
 0x168   :  { %v1092_v27 = vpop.permute.xlu0 %1091   ;;  %v1100_v28 = vpop.permute.xlu1 %1099  }
 0x169   :  { %1464 = vst.msk [vmem:[%s3033_s1 + $0x77] sm:$0x1] %vm11_vm0, %v1092_v27   ;;  %1465 = vst.msk [vmem:[%s3033_s1 + $0x116] sm:$0x2] %vm11_vm0, %v1092_v27  }
 0x16a   :  { %1466 = vst.msk [vmem:[%s3033_s1 + $0x78] sm:$0x1] %vm11_vm0, %v1100_v28   ;;  %1467 = vst.msk [vmem:[%s3033_s1 + $0x117] sm:$0x2] %vm11_vm0, %v1100_v28  }
 0x16c   :  { %v1108_v29 = vpop.permute.xlu0 %1107   ;;  %v1116_v30 = vpop.permute.xlu1 %1115  }
 0x16d   :  { %1468 = vst.msk [vmem:[%s3033_s1 + $0x79] sm:$0x1] %vm11_vm0, %v1108_v29   ;;  %1469 = vst.msk [vmem:[%s3033_s1 + $0x118] sm:$0x2] %vm11_vm0, %v1108_v29  }
 0x16e   :  { %1470 = vst.msk [vmem:[%s3033_s1 + $0x7a] sm:$0x1] %vm11_vm0, %v1116_v30   ;;  %1471 = vst.msk [vmem:[%s3033_s1 + $0x119] sm:$0x2] %vm11_vm0, %v1116_v30  }
 0x170   :  { %v1124_v31 = vpop.permute.xlu0 %1123   ;;  %v1132_v32 = vpop.permute.xlu1 %1131  }
 0x171   :  { %1472 = vst.msk [vmem:[%s3033_s1 + $0x7b] sm:$0x1] %vm11_vm0, %v1124_v31   ;;  %1473 = vst.msk [vmem:[%s3033_s1 + $0x11a] sm:$0x2] %vm11_vm0, %v1124_v31  }
 0x172   :  { %1474 = vst.msk [vmem:[%s3033_s1 + $0x7c] sm:$0x1] %vm11_vm0, %v1132_v32   ;;  %1475 = vst.msk [vmem:[%s3033_s1 + $0x11b] sm:$0x2] %vm11_vm0, %v1132_v32  }
 0x174   :  { %v1140_v33 = vpop.permute.xlu0 %1139   ;;  %v1148_v34 = vpop.permute.xlu1 %1147  }
 0x175   :  { %1476 = vst.msk [vmem:[%s3033_s1 + $0x7d] sm:$0x1] %vm11_vm0, %v1140_v33   ;;  %1477 = vst.msk [vmem:[%s3033_s1 + $0x11c] sm:$0x2] %vm11_vm0, %v1140_v33  }
 0x176   :  { %1478 = vst.msk [vmem:[%s3033_s1 + $0x7e] sm:$0x1] %vm11_vm0, %v1148_v34   ;;  %1479 = vst.msk [vmem:[%s3033_s1 + $0x11d] sm:$0x2] %vm11_vm0, %v1148_v34  }
 0x178   :  { %v1156_v35 = vpop.permute.xlu0 %1155  }
 0x179   :  { %1480 = vst.msk [vmem:[%s3033_s1 + $0x7f] sm:$0x1] %vm11_vm0, %v1156_v35   ;;  %1481 = vst.msk [vmem:[%s3033_s1 + $0x11e] sm:$0x2] %vm11_vm0, %v1156_v35  }

// kernel: tile.23
= control target key start
LH: loop header
LB: loop body
LE: loop exit
PB: predicated region body
PF: predicated region fallthrough
CT: control target
= control target key end

     0   :  { %s22_s0 = inlined_call_operand.vmem [shape: f32[80], index: 0, kind: input, shape index: {}]   ;;  %s23_s1 = inlined_call_operand.vmem [shape: f32[2,80], index: 1, kind: output, shape index: {}]  }
   0x1   :  { %v4_v0 = vld [vmem:[%s22_s0] ss:$0 sm:$0xff] }
   0x2   :  { %5 = vst [vmem:[%s23_s1] sm:$0x3] %v4_v0 }

// kernel: tile.1
= control target key start
LH: loop header
LB: loop body
LE: loop exit
PB: predicated region body
PF: predicated region fallthrough
CT: control target
= control target key end

     0   :  { %s706_s8 = smov 125   ;;  %s707_s9 = smov 126   ;;  %vm7_vm0 = vcmask 7168   ;;  %s1117_s0 = inlined_call_operand.vmem [shape: f32[2,80], index: 0, kind: input, shape index: {}]   ;;  %s1118_s1 = inlined_call_operand.vmem [shape: f32[160,1], index: 1, kind: output, shape index: {}]  }
   0x1   :  { %v4_v0 = vld [vmem:[%s1117_s0] sm:$0x3]  ;;  %s705_s0 = smov 127   ;;  %s708_s10 = smov 124  }
   0x2   :  { %5 = vst [vmem:[#allocation0] sm:$0x3] %v4_v0  ;;  %s709_s11 = smov 123   ;;  %s710_s12 = smov 122  }
   0x3   :  { %s711_s13 = smov 121   ;;  %s712_s14 = smov 120  }
   0x4   :  { %s713_s15 = smov 119   ;;  %s714_s16 = smov 118  }
   0x5   :  { %s715_s17 = smov 117   ;;  %s716_s18 = smov 116  }
   0x6   :  { %s100_s19 = smov 3  ;;  %s717_s20 = smov 115  }
   0x7   :  { %s718_s21 = smov 114   ;;  %s108_s22 = smov 3 }
   0x8   :  { %s116_s23 = smov 3  ;;  %s719_s24 = smov 113  }
   0x9   :  { %v9_v1 = vld [vmem:[#allocation0] sm:$0x3]   ;;  %s720_s25 = smov 112   ;;  %s124_s26 = smov 3 }
   0xa   :  { %v21_v2 = vld [vmem:[#allocation0] sm:$0x3]   ;;  %10 = vrot.lane.b32.xlu0 %v9_v1, %s705_s0  ;;  %s132_s27 = smov 3  ;;  %s721_s28 = smov 111  }
   0xb   :  { %22 = vrot.lane.b32.xlu1 %v21_v2, %s706_s8  ;;  %v15_v3 = vld [vmem:[#allocation0] sm:$0x3]   ;;  %s722_s29 = smov 110   ;;  %s140_s30 = smov 3 }
   0xc   :  { %v27_v4 = vld [vmem:[#allocation0] sm:$0x3]   ;;  %s148_s2 = smov 3  ;;  %s723_s3 = smov 109  }
   0xd   :  { %v33_v5 = vld [vmem:[#allocation0] sm:$0x3]   ;;  %s724_s4 = smov 108   ;;  %s156_s5 = smov 3 }
   0xe   :  { %16 = vrot.lane.b32.xlu0 %v15_v3, %s707_s9  ;;  %v39_v6 = vld [vmem:[#allocation0] sm:$0x3]   ;;  %s164_s6 = smov 3  ;;  %s725_s7 = smov 107  }
   0xf   :  { %28 = vrot.lane.b32.xlu1 %v27_v4, %s708_s10  ;;  %v45_v7 = vld [vmem:[#allocation0] sm:$0x3]   ;;  %s726_s0 = smov 106   ;;  %s172_s8 = smov 3 }
  0x10   :  { %v51_v8 = vld [vmem:[#allocation0] sm:$0x3]   ;;  %s180_s9 = smov 3  ;;  %s727_s10 = smov 105  }
  0x11   :  { %v57_v9 = vld [vmem:[#allocation0] sm:$0x3]  }
  0x12   :  { %34 = vrot.lane.b32.xlu0 %v33_v5, %s709_s11  ;;  %v63_v10 = vld [vmem:[#allocation0] sm:$0x3]   ;;  %s728_s11 = smov 104  }
  0x13   :  { %40 = vrot.lane.b32.xlu1 %v39_v6, %s710_s12  ;;  %v69_v11 = vld [vmem:[#allocation0] sm:$0x3]   ;;  %s188_s12 = smov 3 }
  0x14   :  { %v75_v12 = vld [vmem:[#allocation0] sm:$0x3]  }
  0x15   :  { %v81_v13 = vld [vmem:[#allocation0] sm:$0x3]  }
  0x16   :  { %46 = vrot.lane.b32.xlu0 %v45_v7, %s711_s13  ;;  %v87_v14 = vld [vmem:[#allocation0] sm:$0x3]   ;;  %s196_s13 = smov 3 }
  0x17   :  { %52 = vrot.lane.b32.xlu1 %v51_v8, %s712_s14  ;;  %v93_v15 = vld [vmem:[#allocation0] sm:$0x3]   ;;  %s729_s14 = smov 103  }
  0x18   :  { %v101_v16 = vld [vmem:[#allocation0 + $0x1] ss:$-1 sm:%s100_s19]   ;;  %s732_s19 = smov 100  }
  0x19   :  { %v109_v17 = vld [vmem:[#allocation0 + $0x1] ss:$-1 sm:%s108_s22]   ;;  %s734_s22 = smov 98  }
  0x1a   :  { %58 = vrot.lane.b32.xlu0 %v57_v9, %s713_s15  ;;  %v117_v18 = vld [vmem:[#allocation0 + $0x1] ss:$-1 sm:%s116_s23]   ;;  %s730_s15 = smov 102   ;;  %s735_s23 = smov 97  }
  0x1b   :  { %64 = vrot.lane.b32.xlu1 %v63_v10, %s714_s16  ;;  %v125_v19 = vld [vmem:[#allocation0 + $0x1] ss:$-1 sm:%s124_s26]   ;;  %s204_s16 = smov 3  ;;  %s738_s26 = smov 94  }
  0x1c   :  { %v133_v20 = vld [vmem:[#allocation0 + $0x1] ss:$-1 sm:%s132_s27]   ;;  %s739_s27 = smov 93  }
  0x1d   :  { %v141_v21 = vld [vmem:[#allocation0 + $0x1] ss:$-1 sm:%s140_s30]   ;;  %s742_s30 = smov 90  }
  0x1e   :  { %70 = vrot.lane.b32.xlu0 %v69_v11, %s715_s17  ;;  %v149_v22 = vld [vmem:[#allocation0 + $0x1] ss:$-1 sm:%s148_s2]   ;;  %s212_s17 = smov 3  ;;  %s743_s2 = smov 89  }
  0x1f   :  { %76 = vrot.lane.b32.xlu1 %v75_v12, %s716_s18  ;;  %v157_v23 = vld [vmem:[#allocation0 + $0x1] ss:$-1 sm:%s156_s5]   ;;  %s731_s18 = smov 101   ;;  %s746_s5 = smov 86  }
  0x20   :  { %v165_v24 = vld [vmem:[#allocation0 + $0x1] ss:$-1 sm:%s164_s6]   ;;  %s747_s6 = smov 85  }
  0x21   :  { %v173_v25 = vld [vmem:[#allocation0 + $0x1] ss:$-1 sm:%s172_s8]   ;;  %s749_s8 = smov 83  }
  0x22   :  { %82 = vrot.lane.b32.xlu0 %v81_v13, %s717_s20  ;;  %v181_v26 = vld [vmem:[#allocation0 + $0x1] ss:$-1 sm:%s180_s9]   ;;  %s220_s20 = smov 3  ;;  %s750_s9 = smov 82  }
  0x23   :  { %88 = vrot.lane.b32.xlu1 %v87_v14, %s718_s21  ;;  %v189_v27 = vld [vmem:[#allocation0 + $0x1] ss:$-1 sm:%s188_s12]   ;;  %s733_s21 = smov 99   ;;  %s751_s12 = smov 81  }
  0x24   :  { %v197_v28 = vld [vmem:[#allocation0 + $0x1] ss:$-1 sm:%s196_s13]   ;;  %s752_s13 = smov 80  }
  0x25   :  { %v205_v29 = vld [vmem:[#allocation0 + $0x1] ss:$-1 sm:%s204_s16]   ;;  %s753_s16 = smov 79  }
  0x26   :  { %94 = vrot.lane.b32.xlu0 %v93_v15, %s719_s24  ;;  %v213_v30 = vld [vmem:[#allocation0 + $0x1] ss:$-1 sm:%s212_s17]   ;;  %s736_s24 = smov 96   ;;  %s754_s17 = smov 78  }
  0x27   :  { %102 = vrot.lane.b32.xlu1 %v101_v16, %s720_s25  ;;  %v221_v31 = vld [vmem:[#allocation0 + $0x1] ss:$-1 sm:%s220_s20]   ;;  %s737_s25 = smov 95   ;;  %s755_s20 = smov 77  }
  0x28   :  { %v227_v32 = vld [vmem:[#allocation0] sm:$0x3]  }
  0x29   :  { %v233_v33 = vld [vmem:[#allocation0] sm:$0x3]  }
  0x2a   :  { %110 = vrot.lane.b32.xlu0 %v109_v17, %s721_s28  ;;  %v239_v34 = vld [vmem:[#allocation0] sm:$0x3]   ;;  %s740_s28 = smov 92  }
  0x2b   :  { %118 = vrot.lane.b32.xlu1 %v117_v18, %s722_s29  ;;  %v245_v35 = vld [vmem:[#allocation0] sm:$0x3]   ;;  %s741_s29 = smov 91  }
  0x2c   :  { %v251_v36 = vld [vmem:[#allocation0] sm:$0x3]  }
  0x2d   :  { %v257_v37 = vld [vmem:[#allocation0] sm:$0x3]  }
  0x2e   :  { %126 = vrot.lane.b32.xlu0 %v125_v19, %s723_s3  ;;  %v263_v38 = vld [vmem:[#allocation0] sm:$0x3]   ;;  %s744_s3 = smov 88  }
  0x2f   :  { %134 = vrot.lane.b32.xlu1 %v133_v20, %s724_s4  ;;  %v269_v39 = vld [vmem:[#allocation0] sm:$0x3]   ;;  %s745_s4 = smov 87  }
  0x30   :  { %v275_v40 = vld [vmem:[#allocation0] sm:$0x3]  }
  0x31   :  { %v281_v41 = vld [vmem:[#allocation0] sm:$0x3]  }
  0x32   :  { %142 = vrot.lane.b32.xlu0 %v141_v21, %s725_s7  ;;  %v287_v42 = vld [vmem:[#allocation0] sm:$0x3]   ;;  %s748_s7 = smov 84  }
  0x33   :  { %150 = vrot.lane.b32.xlu1 %v149_v22, %s726_s0  ;;  %v293_v43 = vld [vmem:[#allocation0] sm:$0x3]   ;;  %s324_s0 = smov 3 }
  0x34   :  { %v299_v44 = vld [vmem:[#allocation0] sm:$0x3]  }
  0x35   :  { %v305_v45 = vld [vmem:[#allocation0] sm:$0x3]  }
  0x36   :  { %158 = vrot.lane.b32.xlu0 %v157_v23, %s727_s10  ;;  %v311_v46 = vld [vmem:[#allocation0] sm:$0x3]   ;;  %s332_s10 = smov 3 }
  0x37   :  { %166 = vrot.lane.b32.xlu1 %v165_v24, %s728_s11  ;;  %v317_v47 = vld [vmem:[#allocation0] sm:$0x3]   ;;  %s340_s11 = smov 3 }
  0x38   :  { %v325_v48 = vld [vmem:[#allocation0 + $0x1] ss:$-1 sm:%s324_s0]   ;;  %s781_s0 = smov 51  }
  0x39   :  { %v333_v49 = vld [vmem:[#allocation0 + $0x1] ss:$-1 sm:%s332_s10]   ;;  %s763_s10 = smov 69  }
  0x3a   :  { %174 = vrot.lane.b32.xlu0 %v173_v25, %s729_s14  ;;  %v341_v50 = vld [vmem:[#allocation0 + $0x1] ss:$-1 sm:%s340_s11]   ;;  %s348_s14 = smov 3  ;;  %s764_s11 = smov 68  }
  0x3b   :  { %182 = vrot.lane.b32.xlu1 %v181_v26, %s730_s15  ;;  %s356_s15 = smov 3  ;;  %v349_v51 = vld [vmem:[#allocation0 + $0x1] ss:$-1 sm:%s348_s14]  }
  0x3c   :  { %v357_v52 = vld [vmem:[#allocation0 + $0x1] ss:$-1 sm:%s356_s15]  }
  0x3d   :  { %v451_v4 = vld [vmem:[#allocation0] sm:$0x3]  }
  0x3e   :  { %190 = vrot.lane.b32.xlu0 %v189_v27, %s731_s18  ;;  %s364_s18 = smov 3  ;;  %v457_v7 = vld [vmem:[#allocation0] sm:$0x3]  }
  0x3f   :  { %198 = vrot.lane.b32.xlu1 %v197_v28, %s732_s19  ;;  %s372_s19 = smov 3  ;;  %v365_v53 = vld [vmem:[#allocation0 + $0x1] ss:$-1 sm:%s364_s18]   ;;  %s766_s18 = smov 66  }
  0x40   :  { %v373_v54 = vld [vmem:[#allocation0 + $0x1] ss:$-1 sm:%s372_s19]  }
  0x41   :  { %v463_v8 = vld [vmem:[#allocation0] sm:$0x3]  }
  0x42   :  { %206 = vrot.lane.b32.xlu0 %v205_v29, %s733_s21  ;;  %s756_s21 = smov 76   ;;  %v469_v11 = vld [vmem:[#allocation0] sm:$0x3]  }
  0x43   :  { %214 = vrot.lane.b32.xlu1 %v213_v30, %s734_s22  ;;  %s380_s22 = smov 3  ;;  %v475_v12 = vld [vmem:[#allocation0] sm:$0x3]  }
  0x44   :  { %v381_v55 = vld [vmem:[#allocation0 + $0x1] ss:$-1 sm:%s380_s22]  }
  0x45   :  { %v481_v15 = vld [vmem:[#allocation0] sm:$0x3]  }
  0x46   :  { %222 = vrot.lane.b32.xlu0 %v221_v31, %s735_s23  ;;  %s388_s23 = smov 3  ;;  %v487_v16 = vld [vmem:[#allocation0] sm:$0x3]  }
  0x47   :  { %228 = vrot.lane.b32.xlu1 %v227_v32, %s736_s24  ;;  %s757_s24 = smov 75   ;;  %v389_v56 = vld [vmem:[#allocation0 + $0x1] ss:$-1 sm:%s388_s23]   ;;  %s767_s23 = smov 65  }
  0x48   :  { %v493_v19 = vld [vmem:[#allocation0] sm:$0x3]  }
  0x49   :  { %v499_v20 = vld [vmem:[#allocation0] sm:$0x3]  }
  0x4a   :  { %234 = vrot.lane.b32.xlu0 %v233_v33, %s737_s25  ;;  %s758_s25 = smov 74   ;;  %v505_v23 = vld [vmem:[#allocation0] sm:$0x3]  }
  0x4b   :  { %240 = vrot.lane.b32.xlu1 %v239_v34, %s738_s26  ;;  %s396_s26 = smov 3  ;;  %v511_v24 = vld [vmem:[#allocation0] sm:$0x3]  }
  0x4c   :  { %v397_v57 = vld [vmem:[#allocation0 + $0x1] ss:$-1 sm:%s396_s26]   ;;  %s778_s26 = smov 54  }
  0x4d   :  { %v6_v27 = vld [vmem:[#allocation0] sm:$0x3]  }
  0x4e   :  { %246 = vrot.lane.b32.xlu0 %v245_v35, %s739_s27  ;;  %s404_s27 = smov 3  ;;  %8 = vst.msk [vmem:[%s1118_s1] ss:$80 sm:$0x3] %vm7_vm0, %v6_v27   ;;  %v517_v28 = vld [vmem:[#allocation0] sm:$0x3]  }
  0x4f   :  { %252 = vrot.lane.b32.xlu1 %v251_v36, %s740_s28  ;;  %s759_s28 = smov 73   ;;  %v405_v58 = vld [vmem:[#allocation0 + $0x1] ss:$-1 sm:%s404_s27]  }
  0x50   :  { %v523_v29 = vld [vmem:[#allocation0] sm:$0x3]  }
  0x51   :  { %v529_v32 = vld [vmem:[#allocation0] sm:$0x3]  }
  0x52   :  { %258 = vrot.lane.b32.xlu0 %v257_v37, %s741_s29  ;;  %s760_s29 = smov 72   ;;  %v535_v33 = vld [vmem:[#allocation0] sm:$0x3]  }
  0x53   :  { %264 = vrot.lane.b32.xlu1 %v263_v38, %s742_s30  ;;  %s412_s30 = smov 3  ;;  %v541_v36 = vld [vmem:[#allocation0] sm:$0x3]  }
  0x54   :  { %v413_v59 = vld [vmem:[#allocation0 + $0x1] ss:$-1 sm:%s412_s30]   ;;  %s770_s30 = smov 62  }
  0x56   :  { %270 = vrot.lane.b32.xlu0 %v269_v39, %s743_s2  ;;  %s420_s2 = smov 3 }
  0x57   :  { %276 = vrot.lane.b32.xlu1 %v275_v40, %s744_s3  ;;  %s761_s3 = smov 71   ;;  %v421_v60 = vld [vmem:[#allocation0 + $0x1] ss:$-1 sm:%s420_s2]   ;;  %s779_s2 = smov 53  }
  0x5a   :  { %282 = vrot.lane.b32.xlu0 %v281_v41, %s745_s4  ;;  %s762_s4 = smov 70  }
  0x5b   :  { %288 = vrot.lane.b32.xlu1 %v287_v42, %s746_s5  ;;  %s428_s5 = smov 3 }
  0x5c   :  { %v429_v63 = vld [vmem:[#allocation0 + $0x1] ss:$-1 sm:%s428_s5]  }
  0x5e   :  { %294 = vrot.lane.b32.xlu0 %v293_v43, %s747_s6  ;;  %s436_s6 = smov 3 }
  0x5f   :  { %300 = vrot.lane.b32.xlu1 %v299_v44, %s748_s7  ;;  %v437_v0 = vld [vmem:[#allocation0 + $0x1] ss:$-1 sm:%s436_s6]   ;;  %s771_s6 = smov 61   ;;  %s772_s7 = smov 60  }
  0x62   :  { %306 = vrot.lane.b32.xlu0 %v305_v45, %s749_s8  ;;  %s782_s8 = smov 50  }
  0x63   :  { %312 = vrot.lane.b32.xlu1 %v311_v46, %s750_s9 }
  0x66   :  { %318 = vrot.lane.b32.xlu0 %v317_v47, %s751_s12  ;;  %s444_s12 = smov 3 }
  0x67   :  { %326 = vrot.lane.b32.xlu1 %v325_v48, %s752_s13  ;;  %v445_v3 = vld [vmem:[#allocation0 + $0x1] ss:$-1 sm:%s444_s12]   ;;  %s774_s12 = smov 58   ;;  %s783_s13 = smov 49  }
  0x6a   :  { %334 = vrot.lane.b32.xlu0 %v333_v49, %s753_s16 }
  0x6b   :  { %342 = vrot.lane.b32.xlu1 %v341_v50, %s754_s17  ;;  %s765_s17 = smov 67  }
  0x6e   :  { %350 = vrot.lane.b32.xlu0 %v349_v51, %s755_s20 }
  0x6f   :  { %358 = vrot.lane.b32.xlu1 %v357_v52, %s756_s21 }
  0x72   :  { %366 = vrot.lane.b32.xlu0 %v365_v53, %s757_s24  ;;  %s768_s24 = smov 64  }
  0x73   :  { %374 = vrot.lane.b32.xlu1 %v373_v54, %s758_s25  ;;  %s777_s25 = smov 55  }
  0x76   :  { %382 = vrot.lane.b32.xlu0 %v381_v55, %s759_s28 }
  0x77   :  { %390 = vrot.lane.b32.xlu1 %v389_v56, %s760_s29  ;;  %s769_s29 = smov 63  }
  0x7a   :  { %398 = vrot.lane.b32.xlu0 %v397_v57, %s761_s3  ;;  %s780_s3 = smov 52  }
  0x7b   :  { %406 = vrot.lane.b32.xlu1 %v405_v58, %s762_s4 }
  0x7c   :  { %v11_v61 = vpop.permute.xlu0 %10  }
  0x7d   :  { %v23_v62 = vpop.permute.xlu1 %22   ;;  %547 = vst.msk [vmem:[%s1118_s1 + $0x1] ss:$80 sm:$0x3] %vm7_vm0, %v11_v61  }
  0x7e   :  { %549 = vst.msk [vmem:[%s1118_s1 + $0x3] ss:$80 sm:$0x3] %vm7_vm0, %v23_v62   ;;  %414 = vrot.lane.b32.xlu0 %v413_v59, %s763_s10 }
  0x7f   :  { %422 = vrot.lane.b32.xlu1 %v421_v60, %s764_s11  ;;  %s773_s11 = smov 59  }
  0x80   :  { %v17_v1 = vpop.permute.xlu0 %16  }
  0x81   :  { %v29_v2 = vpop.permute.xlu1 %28   ;;  %548 = vst.msk [vmem:[%s1118_s1 + $0x2] ss:$80 sm:$0x3] %vm7_vm0, %v17_v1  }
  0x82   :  { %550 = vst.msk [vmem:[%s1118_s1 + $0x4] ss:$80 sm:$0x3] %vm7_vm0, %v29_v2   ;;  %430 = vrot.lane.b32.xlu0 %v429_v63, %s765_s17  ;;  %s775_s17 = smov 57  }
  0x83   :  { %438 = vrot.lane.b32.xlu1 %v437_v0, %s766_s18  ;;  %s776_s18 = smov 56  }
  0x84   :  { %v35_v5 = vpop.permute.xlu0 %34  }
  0x85   :  { %v41_v6 = vpop.permute.xlu1 %40   ;;  %551 = vst.msk [vmem:[%s1118_s1 + $0x5] ss:$80 sm:$0x3] %vm7_vm0, %v35_v5  }
  0x86   :  { %552 = vst.msk [vmem:[%s1118_s1 + $0x6] ss:$80 sm:$0x3] %vm7_vm0, %v41_v6   ;;  %446 = vrot.lane.b32.xlu0 %v445_v3, %s767_s23 }
  0x87   :  { %452 = vrot.lane.b32.xlu1 %v451_v4, %s768_s24 }
  0x88   :  { %v47_v9 = vpop.permute.xlu0 %46  }
  0x89   :  { %v53_v10 = vpop.permute.xlu1 %52   ;;  %553 = vst.msk [vmem:[%s1118_s1 + $0x7] ss:$80 sm:$0x3] %vm7_vm0, %v47_v9  }
  0x8a   :  { %554 = vst.msk [vmem:[%s1118_s1 + $0x8] ss:$80 sm:$0x3] %vm7_vm0, %v53_v10   ;;  %458 = vrot.lane.b32.xlu0 %v457_v7, %s769_s29 }
  0x8b   :  { %464 = vrot.lane.b32.xlu1 %v463_v8, %s770_s30 }
  0x8c   :  { %v59_v13 = vpop.permute.xlu0 %58  }
  0x8d   :  { %v65_v14 = vpop.permute.xlu1 %64   ;;  %555 = vst.msk [vmem:[%s1118_s1 + $0x9] ss:$80 sm:$0x3] %vm7_vm0, %v59_v13  }
  0x8e   :  { %556 = vst.msk [vmem:[%s1118_s1 + $0xa] ss:$80 sm:$0x3] %vm7_vm0, %v65_v14   ;;  %470 = vrot.lane.b32.xlu0 %v469_v11, %s771_s6 }
  0x8f   :  { %476 = vrot.lane.b32.xlu1 %v475_v12, %s772_s7 }
  0x90   :  { %v71_v17 = vpop.permute.xlu0 %70  }
  0x91   :  { %v77_v18 = vpop.permute.xlu1 %76   ;;  %557 = vst.msk [vmem:[%s1118_s1 + $0xb] ss:$80 sm:$0x3] %vm7_vm0, %v71_v17  }
  0x92   :  { %558 = vst.msk [vmem:[%s1118_s1 + $0xc] ss:$80 sm:$0x3] %vm7_vm0, %v77_v18   ;;  %482 = vrot.lane.b32.xlu0 %v481_v15, %s773_s11 }
  0x93   :  { %488 = vrot.lane.b32.xlu1 %v487_v16, %s774_s12 }
  0x94   :  { %v83_v21 = vpop.permute.xlu0 %82  }
  0x95   :  { %v89_v22 = vpop.permute.xlu1 %88   ;;  %559 = vst.msk [vmem:[%s1118_s1 + $0xd] ss:$80 sm:$0x3] %vm7_vm0, %v83_v21  }
  0x96   :  { %560 = vst.msk [vmem:[%s1118_s1 + $0xe] ss:$80 sm:$0x3] %vm7_vm0, %v89_v22   ;;  %494 = vrot.lane.b32.xlu0 %v493_v19, %s775_s17 }
  0x97   :  { %500 = vrot.lane.b32.xlu1 %v499_v20, %s776_s18 }
  0x98   :  { %v95_v25 = vpop.permute.xlu0 %94  }
  0x99   :  { %v103_v26 = vpop.permute.xlu1 %102   ;;  %561 = vst.msk [vmem:[%s1118_s1 + $0xf] ss:$80 sm:$0x3] %vm7_vm0, %v95_v25  }
  0x9a   :  { %562 = vst.msk [vmem:[%s1118_s1 + $0x60] ss:$-80 sm:$0x3] %vm7_vm0, %v103_v26   ;;  %506 = vrot.lane.b32.xlu0 %v505_v23, %s777_s25 }
  0x9b   :  { %512 = vrot.lane.b32.xlu1 %v511_v24, %s778_s26 }
  0x9c   :  { %v111_v30 = vpop.permute.xlu0 %110  }
  0x9d   :  { %v119_v31 = vpop.permute.xlu1 %118   ;;  %563 = vst.msk [vmem:[%s1118_s1 + $0x61] ss:$-80 sm:$0x3] %vm7_vm0, %v111_v30  }
  0x9e   :  { %564 = vst.msk [vmem:[%s1118_s1 + $0x62] ss:$-80 sm:$0x3] %vm7_vm0, %v119_v31   ;;  %518 = vrot.lane.b32.xlu0 %v517_v28, %s779_s2 }
  0x9f   :  { %524 = vrot.lane.b32.xlu1 %v523_v29, %s780_s3 }
  0xa0   :  { %v127_v34 = vpop.permute.xlu0 %126  }
  0xa1   :  { %v135_v35 = vpop.permute.xlu1 %134   ;;  %565 = vst.msk [vmem:[%s1118_s1 + $0x63] ss:$-80 sm:$0x3] %vm7_vm0, %v127_v34  }
  0xa2   :  { %566 = vst.msk [vmem:[%s1118_s1 + $0x64] ss:$-80 sm:$0x3] %vm7_vm0, %v135_v35   ;;  %530 = vrot.lane.b32.xlu0 %v529_v32, %s781_s0 }
  0xa3   :  { %536 = vrot.lane.b32.xlu1 %v535_v33, %s782_s8 }
  0xa4   :  { %v143_v37 = vpop.permute.xlu0 %142  }
  0xa5   :  { %v151_v38 = vpop.permute.xlu1 %150   ;;  %567 = vst.msk [vmem:[%s1118_s1 + $0x65] ss:$-80 sm:$0x3] %vm7_vm0, %v143_v37  }
  0xa6   :  { %568 = vst.msk [vmem:[%s1118_s1 + $0x66] ss:$-80 sm:$0x3] %vm7_vm0, %v151_v38   ;;  %542 = vrot.lane.b32.xlu0 %v541_v36, %s783_s13 }
  0xa8   :  { %v159_v39 = vpop.permute.xlu0 %158  }
  0xa9   :  { %v167_v40 = vpop.permute.xlu1 %166   ;;  %569 = vst.msk [vmem:[%s1118_s1 + $0x67] ss:$-80 sm:$0x3] %vm7_vm0, %v159_v39  }
  0xaa   :  { %570 = vst.msk [vmem:[%s1118_s1 + $0x68] ss:$-80 sm:$0x3] %vm7_vm0, %v167_v40  }
  0xac   :  { %v175_v41 = vpop.permute.xlu0 %174  }
  0xad   :  { %v183_v42 = vpop.permute.xlu1 %182   ;;  %571 = vst.msk [vmem:[%s1118_s1 + $0x69] ss:$-80 sm:$0x3] %vm7_vm0, %v175_v41  }
  0xae   :  { %572 = vst.msk [vmem:[%s1118_s1 + $0x6a] ss:$-80 sm:$0x3] %vm7_vm0, %v183_v42  }
  0xb0   :  { %v191_v43 = vpop.permute.xlu0 %190  }
  0xb1   :  { %v199_v44 = vpop.permute.xlu1 %198   ;;  %573 = vst.msk [vmem:[%s1118_s1 + $0x6b] ss:$-80 sm:$0x3] %vm7_vm0, %v191_v43  }
  0xb2   :  { %574 = vst.msk [vmem:[%s1118_s1 + $0x6c] ss:$-80 sm:$0x3] %vm7_vm0, %v199_v44  }
  0xb4   :  { %v207_v45 = vpop.permute.xlu0 %206  }
  0xb5   :  { %v215_v46 = vpop.permute.xlu1 %214   ;;  %575 = vst.msk [vmem:[%s1118_s1 + $0x6d] ss:$-80 sm:$0x3] %vm7_vm0, %v207_v45  }
  0xb6   :  { %576 = vst.msk [vmem:[%s1118_s1 + $0x6e] ss:$-80 sm:$0x3] %vm7_vm0, %v215_v46  }
  0xb8   :  { %v223_v47 = vpop.permute.xlu0 %222  }
  0xb9   :  { %v229_v48 = vpop.permute.xlu1 %228   ;;  %577 = vst.msk [vmem:[%s1118_s1 + $0x6f] ss:$-80 sm:$0x3] %vm7_vm0, %v223_v47  }
  0xba   :  { %578 = vst.msk [vmem:[%s1118_s1 + $0x20] ss:$80 sm:$0x3] %vm7_vm0, %v229_v48  }
  0xbc   :  { %v235_v49 = vpop.permute.xlu0 %234  }
  0xbd   :  { %v241_v50 = vpop.permute.xlu1 %240   ;;  %579 = vst.msk [vmem:[%s1118_s1 + $0x21] ss:$80 sm:$0x3] %vm7_vm0, %v235_v49  }
  0xbe   :  { %580 = vst.msk [vmem:[%s1118_s1 + $0x22] ss:$80 sm:$0x3] %vm7_vm0, %v241_v50  }
  0xc0   :  { %v247_v51 = vpop.permute.xlu0 %246  }
  0xc1   :  { %v253_v52 = vpop.permute.xlu1 %252   ;;  %581 = vst.msk [vmem:[%s1118_s1 + $0x23] ss:$80 sm:$0x3] %vm7_vm0, %v247_v51  }
  0xc2   :  { %582 = vst.msk [vmem:[%s1118_s1 + $0x24] ss:$80 sm:$0x3] %vm7_vm0, %v253_v52  }
  0xc4   :  { %v259_v53 = vpop.permute.xlu0 %258  }
  0xc5   :  { %v265_v54 = vpop.permute.xlu1 %264   ;;  %583 = vst.msk [vmem:[%s1118_s1 + $0x25] ss:$80 sm:$0x3] %vm7_vm0, %v259_v53  }
  0xc6   :  { %584 = vst.msk [vmem:[%s1118_s1 + $0x26] ss:$80 sm:$0x3] %vm7_vm0, %v265_v54  }
  0xc8   :  { %v271_v55 = vpop.permute.xlu0 %270  }
  0xc9   :  { %v277_v56 = vpop.permute.xlu1 %276   ;;  %585 = vst.msk [vmem:[%s1118_s1 + $0x27] ss:$80 sm:$0x3] %vm7_vm0, %v271_v55  }
  0xca   :  { %586 = vst.msk [vmem:[%s1118_s1 + $0x28] ss:$80 sm:$0x3] %vm7_vm0, %v277_v56  }
  0xcc   :  { %v283_v57 = vpop.permute.xlu0 %282  }
  0xcd   :  { %v289_v58 = vpop.permute.xlu1 %288   ;;  %587 = vst.msk [vmem:[%s1118_s1 + $0x29] ss:$80 sm:$0x3] %vm7_vm0, %v283_v57  }
  0xce   :  { %588 = vst.msk [vmem:[%s1118_s1 + $0x2a] ss:$80 sm:$0x3] %vm7_vm0, %v289_v58  }
  0xd0   :  { %v295_v59 = vpop.permute.xlu0 %294  }
  0xd1   :  { %v301_v60 = vpop.permute.xlu1 %300   ;;  %589 = vst.msk [vmem:[%s1118_s1 + $0x2b] ss:$80 sm:$0x3] %vm7_vm0, %v295_v59  }
  0xd2   :  { %590 = vst.msk [vmem:[%s1118_s1 + $0x2c] ss:$80 sm:$0x3] %vm7_vm0, %v301_v60  }
  0xd4   :  { %v307_v61 = vpop.permute.xlu0 %306  }
  0xd5   :  { %v313_v62 = vpop.permute.xlu1 %312   ;;  %591 = vst.msk [vmem:[%s1118_s1 + $0x2d] ss:$80 sm:$0x3] %vm7_vm0, %v307_v61  }
  0xd6   :  { %592 = vst.msk [vmem:[%s1118_s1 + $0x2e] ss:$80 sm:$0x3] %vm7_vm0, %v313_v62  }
  0xd8   :  { %v319_v63 = vpop.permute.xlu0 %318  }
  0xd9   :  { %v327_v0 = vpop.permute.xlu1 %326   ;;  %593 = vst.msk [vmem:[%s1118_s1 + $0x2f] ss:$80 sm:$0x3] %vm7_vm0, %v319_v63  }
  0xda   :  { %594 = vst.msk [vmem:[%s1118_s1 + $0x80] ss:$-80 sm:$0x3] %vm7_vm0, %v327_v0  }
  0xdc   :  { %v335_v1 = vpop.permute.xlu0 %334  }
  0xdd   :  { %v343_v2 = vpop.permute.xlu1 %342   ;;  %595 = vst.msk [vmem:[%s1118_s1 + $0x81] ss:$-80 sm:$0x3] %vm7_vm0, %v335_v1  }
  0xde   :  { %596 = vst.msk [vmem:[%s1118_s1 + $0x82] ss:$-80 sm:$0x3] %vm7_vm0, %v343_v2  }
  0xe0   :  { %v351_v3 = vpop.permute.xlu0 %350  }
  0xe1   :  { %v359_v4 = vpop.permute.xlu1 %358   ;;  %597 = vst.msk [vmem:[%s1118_s1 + $0x83] ss:$-80 sm:$0x3] %vm7_vm0, %v351_v3  }
  0xe2   :  { %598 = vst.msk [vmem:[%s1118_s1 + $0x84] ss:$-80 sm:$0x3] %vm7_vm0, %v359_v4  }
  0xe4   :  { %v367_v5 = vpop.permute.xlu0 %366  }
  0xe5   :  { %v375_v6 = vpop.permute.xlu1 %374   ;;  %599 = vst.msk [vmem:[%s1118_s1 + $0x85] ss:$-80 sm:$0x3] %vm7_vm0, %v367_v5  }
  0xe6   :  { %600 = vst.msk [vmem:[%s1118_s1 + $0x86] ss:$-80 sm:$0x3] %vm7_vm0, %v375_v6  }
  0xe8   :  { %v383_v7 = vpop.permute.xlu0 %382  }
  0xe9   :  { %v391_v8 = vpop.permute.xlu1 %390   ;;  %601 = vst.msk [vmem:[%s1118_s1 + $0x87] ss:$-80 sm:$0x3] %vm7_vm0, %v383_v7  }
  0xea   :  { %602 = vst.msk [vmem:[%s1118_s1 + $0x88] ss:$-80 sm:$0x3] %vm7_vm0, %v391_v8  }
  0xec   :  { %v399_v9 = vpop.permute.xlu0 %398  }
  0xed   :  { %v407_v10 = vpop.permute.xlu1 %406   ;;  %603 = vst.msk [vmem:[%s1118_s1 + $0x89] ss:$-80 sm:$0x3] %vm7_vm0, %v399_v9  }
  0xee   :  { %604 = vst.msk [vmem:[%s1118_s1 + $0x8a] ss:$-80 sm:$0x3] %vm7_vm0, %v407_v10  }
  0xf0   :  { %v415_v11 = vpop.permute.xlu0 %414  }
  0xf1   :  { %v423_v12 = vpop.permute.xlu1 %422   ;;  %605 = vst.msk [vmem:[%s1118_s1 + $0x8b] ss:$-80 sm:$0x3] %vm7_vm0, %v415_v11  }
  0xf2   :  { %606 = vst.msk [vmem:[%s1118_s1 + $0x8c] ss:$-80 sm:$0x3] %vm7_vm0, %v423_v12  }
  0xf4   :  { %v431_v13 = vpop.permute.xlu0 %430  }
  0xf5   :  { %v439_v14 = vpop.permute.xlu1 %438   ;;  %607 = vst.msk [vmem:[%s1118_s1 + $0x8d] ss:$-80 sm:$0x3] %vm7_vm0, %v431_v13  }
  0xf6   :  { %608 = vst.msk [vmem:[%s1118_s1 + $0x8e] ss:$-80 sm:$0x3] %vm7_vm0, %v439_v14  }
  0xf8   :  { %v447_v15 = vpop.permute.xlu0 %446  }
  0xf9   :  { %v453_v16 = vpop.permute.xlu1 %452   ;;  %609 = vst.msk [vmem:[%s1118_s1 + $0x8f] ss:$-80 sm:$0x3] %vm7_vm0, %v447_v15  }
  0xfa   :  { %610 = vst.msk [vmem:[%s1118_s1 + $0x40] ss:$80 sm:$0x3] %vm7_vm0, %v453_v16  }
  0xfc   :  { %v459_v17 = vpop.permute.xlu0 %458  }
  0xfd   :  { %v465_v18 = vpop.permute.xlu1 %464   ;;  %611 = vst.msk [vmem:[%s1118_s1 + $0x41] ss:$80 sm:$0x3] %vm7_vm0, %v459_v17  }
  0xfe   :  { %612 = vst.msk [vmem:[%s1118_s1 + $0x42] ss:$80 sm:$0x3] %vm7_vm0, %v465_v18  }
 0x100   :  { %v471_v19 = vpop.permute.xlu0 %470  }
 0x101   :  { %v477_v20 = vpop.permute.xlu1 %476   ;;  %613 = vst.msk [vmem:[%s1118_s1 + $0x43] ss:$80 sm:$0x3] %vm7_vm0, %v471_v19  }
 0x102   :  { %614 = vst.msk [vmem:[%s1118_s1 + $0x44] ss:$80 sm:$0x3] %vm7_vm0, %v477_v20  }
 0x104   :  { %v483_v21 = vpop.permute.xlu0 %482  }
 0x105   :  { %v489_v22 = vpop.permute.xlu1 %488   ;;  %615 = vst.msk [vmem:[%s1118_s1 + $0x45] ss:$80 sm:$0x3] %vm7_vm0, %v483_v21  }
 0x106   :  { %616 = vst.msk [vmem:[%s1118_s1 + $0x46] ss:$80 sm:$0x3] %vm7_vm0, %v489_v22  }
 0x108   :  { %v495_v23 = vpop.permute.xlu0 %494  }
 0x109   :  { %v501_v24 = vpop.permute.xlu1 %500   ;;  %617 = vst.msk [vmem:[%s1118_s1 + $0x47] ss:$80 sm:$0x3] %vm7_vm0, %v495_v23  }
 0x10a   :  { %618 = vst.msk [vmem:[%s1118_s1 + $0x48] ss:$80 sm:$0x3] %vm7_vm0, %v501_v24  }
 0x10c   :  { %v507_v25 = vpop.permute.xlu0 %506  }
 0x10d   :  { %v513_v26 = vpop.permute.xlu1 %512   ;;  %619 = vst.msk [vmem:[%s1118_s1 + $0x49] ss:$80 sm:$0x3] %vm7_vm0, %v507_v25  }
 0x10e   :  { %620 = vst.msk [vmem:[%s1118_s1 + $0x4a] ss:$80 sm:$0x3] %vm7_vm0, %v513_v26  }
 0x110   :  { %v519_v27 = vpop.permute.xlu0 %518  }
 0x111   :  { %v525_v28 = vpop.permute.xlu1 %524   ;;  %621 = vst.msk [vmem:[%s1118_s1 + $0x4b] ss:$80 sm:$0x3] %vm7_vm0, %v519_v27  }
 0x112   :  { %622 = vst.msk [vmem:[%s1118_s1 + $0x4c] ss:$80 sm:$0x3] %vm7_vm0, %v525_v28  }
 0x114   :  { %v531_v29 = vpop.permute.xlu0 %530  }
 0x115   :  { %v537_v30 = vpop.permute.xlu1 %536   ;;  %623 = vst.msk [vmem:[%s1118_s1 + $0x4d] ss:$80 sm:$0x3] %vm7_vm0, %v531_v29  }
 0x116   :  { %624 = vst.msk [vmem:[%s1118_s1 + $0x4e] ss:$80 sm:$0x3] %vm7_vm0, %v537_v30  }
 0x118   :  { %v543_v31 = vpop.permute.xlu0 %542  }
 0x119   :  { %625 = vst.msk [vmem:[%s1118_s1 + $0x4f] ss:$80 sm:$0x3] %vm7_vm0, %v543_v31  }

// kernel: tile.28
= control target key start
LH: loop header
LB: loop body
LE: loop exit
PB: predicated region body
PF: predicated region fallthrough
CT: control target
= control target key end

     0   :  { %s22_s0 = inlined_call_operand.vmem [shape: f32[40], index: 0, kind: input, shape index: {}]   ;;  %s23_s1 = inlined_call_operand.vmem [shape: f32[2,40], index: 1, kind: output, shape index: {}]  }
   0x1   :  { %v4_v0 = vld [vmem:[%s22_s0] ss:$0 sm:$0xff] }
   0x2   :  { %5 = vst [vmem:[%s23_s1] sm:$0x3] %v4_v0 }

// kernel: tile.2
= control target key start
LH: loop header
LB: loop body
LE: loop exit
PB: predicated region body
PF: predicated region fallthrough
CT: control target
= control target key end

     0   :  { %s338_s8 = smov 125   ;;  %s339_s9 = smov 126   ;;  %vm7_vm0 = vcmask 7168   ;;  %s549_s0 = inlined_call_operand.vmem [shape: f32[2,40], index: 0, kind: input, shape index: {}]   ;;  %s550_s1 = inlined_call_operand.vmem [shape: f32[80,1], index: 1, kind: output, shape index: {}]  }
   0x1   :  { %v4_v0 = vld [vmem:[%s549_s0] sm:$0x3]  ;;  %s337_s0 = smov 127   ;;  %s340_s10 = smov 124  }
   0x2   :  { %5 = vst [vmem:[#allocation0] sm:$0x3] %v4_v0  ;;  %s341_s11 = smov 123   ;;  %s342_s12 = smov 122  }
   0x3   :  { %s343_s13 = smov 121   ;;  %s344_s14 = smov 120  }
   0x4   :  { %s345_s15 = smov 119   ;;  %s346_s16 = smov 118  }
   0x5   :  { %s347_s17 = smov 117   ;;  %s348_s18 = smov 116  }
   0x6   :  { %s349_s19 = smov 115   ;;  %s350_s20 = smov 114  }
   0x7   :  { %s351_s21 = smov 113   ;;  %s352_s22 = smov 112  }
   0x8   :  { %s353_s23 = smov 111   ;;  %s354_s24 = smov 110  }
   0x9   :  { %v9_v1 = vld [vmem:[#allocation0] sm:$0x3]   ;;  %s355_s25 = smov 109   ;;  %s356_s26 = smov 108  }
   0xa   :  { %v21_v2 = vld [vmem:[#allocation0] sm:$0x3]   ;;  %10 = vrot.lane.b32.xlu0 %v9_v1, %s337_s0  ;;  %s148_s27 = smov 3  ;;  %s357_s28 = smov 107  }
   0xb   :  { %22 = vrot.lane.b32.xlu1 %v21_v2, %s338_s8  ;;  %v15_v3 = vld [vmem:[#allocation0] sm:$0x3]   ;;  %s358_s29 = smov 106   ;;  %s156_s30 = smov 3 }
   0xc   :  { %v27_v4 = vld [vmem:[#allocation0] sm:$0x3]   ;;  %s164_s2 = smov 3  ;;  %s359_s3 = smov 105  }
   0xd   :  { %v33_v5 = vld [vmem:[#allocation0] sm:$0x3]   ;;  %s360_s4 = smov 104   ;;  %s172_s5 = smov 3 }
   0xe   :  { %16 = vrot.lane.b32.xlu0 %v15_v3, %s339_s9  ;;  %v39_v6 = vld [vmem:[#allocation0] sm:$0x3]   ;;  %s180_s6 = smov 3  ;;  %s361_s7 = smov 103  }
   0xf   :  { %28 = vrot.lane.b32.xlu1 %v27_v4, %s340_s10  ;;  %v45_v7 = vld [vmem:[#allocation0] sm:$0x3]   ;;  %s362_s0 = smov 102   ;;  %s188_s8 = smov 3 }
  0x10   :  { %v51_v8 = vld [vmem:[#allocation0] sm:$0x3]   ;;  %s196_s9 = smov 3  ;;  %s363_s10 = smov 101  }
  0x11   :  { %v57_v9 = vld [vmem:[#allocation0] sm:$0x3]  }
  0x12   :  { %34 = vrot.lane.b32.xlu0 %v33_v5, %s341_s11  ;;  %v63_v10 = vld [vmem:[#allocation0] sm:$0x3]   ;;  %s364_s11 = smov 100  }
  0x13   :  { %40 = vrot.lane.b32.xlu1 %v39_v6, %s342_s12  ;;  %v69_v11 = vld [vmem:[#allocation0] sm:$0x3]   ;;  %s204_s12 = smov 3 }
  0x14   :  { %v75_v12 = vld [vmem:[#allocation0] sm:$0x3]  }
  0x15   :  { %v81_v13 = vld [vmem:[#allocation0] sm:$0x3]  }
  0x16   :  { %46 = vrot.lane.b32.xlu0 %v45_v7, %s343_s13  ;;  %v87_v14 = vld [vmem:[#allocation0] sm:$0x3]   ;;  %s365_s13 = smov 99  }
  0x17   :  { %52 = vrot.lane.b32.xlu1 %v51_v8, %s344_s14  ;;  %v93_v15 = vld [vmem:[#allocation0] sm:$0x3]   ;;  %s366_s14 = smov 98  }
  0x18   :  { %v99_v16 = vld [vmem:[#allocation0] sm:$0x3]  }
  0x19   :  { %v105_v17 = vld [vmem:[#allocation0] sm:$0x3]  }
  0x1a   :  { %58 = vrot.lane.b32.xlu0 %v57_v9, %s345_s15  ;;  %v111_v18 = vld [vmem:[#allocation0] sm:$0x3]   ;;  %s367_s15 = smov 97  }
  0x1b   :  { %64 = vrot.lane.b32.xlu1 %v63_v10, %s346_s16  ;;  %v117_v19 = vld [vmem:[#allocation0] sm:$0x3]   ;;  %s368_s16 = smov 96  }
  0x1c   :  { %v123_v20 = vld [vmem:[#allocation0] sm:$0x3]  }
  0x1d   :  { %v129_v21 = vld [vmem:[#allocation0] sm:$0x3]  }
  0x1e   :  { %70 = vrot.lane.b32.xlu0 %v69_v11, %s347_s17  ;;  %v135_v22 = vld [vmem:[#allocation0] sm:$0x3]  }
  0x1f   :  { %76 = vrot.lane.b32.xlu1 %v75_v12, %s348_s18  ;;  %v141_v23 = vld [vmem:[#allocation0] sm:$0x3]  }
  0x20   :  { %v149_v24 = vld [vmem:[#allocation0 + $0x1] ss:$-1 sm:%s148_s27]  }
  0x21   :  { %v157_v25 = vld [vmem:[#allocation0 + $0x1] ss:$-1 sm:%s156_s30]  }
  0x22   :  { %82 = vrot.lane.b32.xlu0 %v81_v13, %s349_s19  ;;  %v165_v26 = vld [vmem:[#allocation0 + $0x1] ss:$-1 sm:%s164_s2]   ;;  %s369_s19 = smov 95  }
  0x23   :  { %88 = vrot.lane.b32.xlu1 %v87_v14, %s350_s20  ;;  %v173_v27 = vld [vmem:[#allocation0 + $0x1] ss:$-1 sm:%s172_s5]   ;;  %s370_s20 = smov 94  }
  0x24   :  { %v181_v28 = vld [vmem:[#allocation0 + $0x1] ss:$-1 sm:%s180_s6]  }
  0x25   :  { %v189_v29 = vld [vmem:[#allocation0 + $0x1] ss:$-1 sm:%s188_s8]  }
  0x26   :  { %94 = vrot.lane.b32.xlu0 %v93_v15, %s351_s21  ;;  %v197_v30 = vld [vmem:[#allocation0 + $0x1] ss:$-1 sm:%s196_s9]   ;;  %s371_s21 = smov 93  }
  0x27   :  { %100 = vrot.lane.b32.xlu1 %v99_v16, %s352_s22  ;;  %v205_v31 = vld [vmem:[#allocation0 + $0x1] ss:$-1 sm:%s204_s12]   ;;  %s372_s22 = smov 92  }
  0x28   :  { %v211_v32 = vld [vmem:[#allocation0] sm:$0x3]  }
  0x29   :  { %v217_v33 = vld [vmem:[#allocation0] sm:$0x3]  }
  0x2a   :  { %106 = vrot.lane.b32.xlu0 %v105_v17, %s353_s23  ;;  %v223_v34 = vld [vmem:[#allocation0] sm:$0x3]   ;;  %s373_s23 = smov 91  }
  0x2b   :  { %112 = vrot.lane.b32.xlu1 %v111_v18, %s354_s24  ;;  %v6_v35 = vld [vmem:[#allocation0] sm:$0x3]   ;;  %s374_s24 = smov 90  }
  0x2c   :  { %8 = vst.msk [vmem:[%s550_s1] ss:$40 sm:$0x3] %vm7_vm0, %v6_v35   ;;  %v229_v36 = vld [vmem:[#allocation0] sm:$0x3]  }
  0x2d   :  { %v235_v37 = vld [vmem:[#allocation0] sm:$0x3]  }
  0x2e   :  { %118 = vrot.lane.b32.xlu0 %v117_v19, %s355_s25  ;;  %v241_v38 = vld [vmem:[#allocation0] sm:$0x3]   ;;  %s375_s25 = smov 89  }
  0x2f   :  { %124 = vrot.lane.b32.xlu1 %v123_v20, %s356_s26  ;;  %v247_v39 = vld [vmem:[#allocation0] sm:$0x3]  }
  0x30   :  { %v253_v40 = vld [vmem:[#allocation0] sm:$0x3]  }
  0x32   :  { %130 = vrot.lane.b32.xlu0 %v129_v21, %s357_s28 }
  0x33   :  { %136 = vrot.lane.b32.xlu1 %v135_v22, %s358_s29 }
  0x36   :  { %142 = vrot.lane.b32.xlu0 %v141_v23, %s359_s3 }
  0x37   :  { %150 = vrot.lane.b32.xlu1 %v149_v24, %s360_s4 }
  0x3a   :  { %158 = vrot.lane.b32.xlu0 %v157_v25, %s361_s7 }
  0x3b   :  { %166 = vrot.lane.b32.xlu1 %v165_v26, %s362_s0 }
  0x3e   :  { %174 = vrot.lane.b32.xlu0 %v173_v27, %s363_s10 }
  0x3f   :  { %182 = vrot.lane.b32.xlu1 %v181_v28, %s364_s11 }
  0x42   :  { %190 = vrot.lane.b32.xlu0 %v189_v29, %s365_s13 }
  0x43   :  { %198 = vrot.lane.b32.xlu1 %v197_v30, %s366_s14 }
  0x46   :  { %206 = vrot.lane.b32.xlu0 %v205_v31, %s367_s15 }
  0x47   :  { %212 = vrot.lane.b32.xlu1 %v211_v32, %s368_s16 }
  0x4a   :  { %218 = vrot.lane.b32.xlu0 %v217_v33, %s369_s19 }
  0x4b   :  { %224 = vrot.lane.b32.xlu1 %v223_v34, %s370_s20 }
  0x4e   :  { %230 = vrot.lane.b32.xlu0 %v229_v36, %s371_s21 }
  0x4f   :  { %236 = vrot.lane.b32.xlu1 %v235_v37, %s372_s22 }
  0x52   :  { %242 = vrot.lane.b32.xlu0 %v241_v38, %s373_s23 }
  0x53   :  { %248 = vrot.lane.b32.xlu1 %v247_v39, %s374_s24 }
  0x56   :  { %254 = vrot.lane.b32.xlu0 %v253_v40, %s375_s25 }
  0x7c   :  { %v11_v41 = vpop.permute.xlu0 %10  }
  0x7d   :  { %v23_v42 = vpop.permute.xlu1 %22   ;;  %259 = vst.msk [vmem:[%s550_s1 + $0x1] ss:$40 sm:$0x3] %vm7_vm0, %v11_v41  }
  0x7e   :  { %261 = vst.msk [vmem:[%s550_s1 + $0x3] ss:$40 sm:$0x3] %vm7_vm0, %v23_v42  }
  0x80   :  { %v17_v43 = vpop.permute.xlu0 %16  }
  0x81   :  { %v29_v44 = vpop.permute.xlu1 %28   ;;  %260 = vst.msk [vmem:[%s550_s1 + $0x2] ss:$40 sm:$0x3] %vm7_vm0, %v17_v43  }
  0x82   :  { %262 = vst.msk [vmem:[%s550_s1 + $0x4] ss:$40 sm:$0x3] %vm7_vm0, %v29_v44  }
  0x84   :  { %v35_v45 = vpop.permute.xlu0 %34  }
  0x85   :  { %v41_v46 = vpop.permute.xlu1 %40   ;;  %263 = vst.msk [vmem:[%s550_s1 + $0x5] ss:$40 sm:$0x3] %vm7_vm0, %v35_v45  }
  0x86   :  { %264 = vst.msk [vmem:[%s550_s1 + $0x6] ss:$40 sm:$0x3] %vm7_vm0, %v41_v46  }
  0x88   :  { %v47_v47 = vpop.permute.xlu0 %46  }
  0x89   :  { %v53_v48 = vpop.permute.xlu1 %52   ;;  %265 = vst.msk [vmem:[%s550_s1 + $0x7] ss:$40 sm:$0x3] %vm7_vm0, %v47_v47  }
  0x8a   :  { %266 = vst.msk [vmem:[%s550_s1 + $0x8] ss:$40 sm:$0x3] %vm7_vm0, %v53_v48  }
  0x8c   :  { %v59_v49 = vpop.permute.xlu0 %58  }
  0x8d   :  { %v65_v50 = vpop.permute.xlu1 %64   ;;  %267 = vst.msk [vmem:[%s550_s1 + $0x9] ss:$40 sm:$0x3] %vm7_vm0, %v59_v49  }
  0x8e   :  { %268 = vst.msk [vmem:[%s550_s1 + $0xa] ss:$40 sm:$0x3] %vm7_vm0, %v65_v50  }
  0x90   :  { %v71_v51 = vpop.permute.xlu0 %70  }
  0x91   :  { %v77_v52 = vpop.permute.xlu1 %76   ;;  %269 = vst.msk [vmem:[%s550_s1 + $0xb] ss:$40 sm:$0x3] %vm7_vm0, %v71_v51  }
  0x92   :  { %270 = vst.msk [vmem:[%s550_s1 + $0xc] ss:$40 sm:$0x3] %vm7_vm0, %v77_v52  }
  0x94   :  { %v83_v53 = vpop.permute.xlu0 %82  }
  0x95   :  { %v89_v54 = vpop.permute.xlu1 %88   ;;  %271 = vst.msk [vmem:[%s550_s1 + $0xd] ss:$40 sm:$0x3] %vm7_vm0, %v83_v53  }
  0x96   :  { %272 = vst.msk [vmem:[%s550_s1 + $0xe] ss:$40 sm:$0x3] %vm7_vm0, %v89_v54  }
  0x98   :  { %v95_v55 = vpop.permute.xlu0 %94  }
  0x99   :  { %v101_v56 = vpop.permute.xlu1 %100   ;;  %273 = vst.msk [vmem:[%s550_s1 + $0xf] ss:$40 sm:$0x3] %vm7_vm0, %v95_v55  }
  0x9a   :  { %274 = vst.msk [vmem:[%s550_s1 + $0x10] ss:$40 sm:$0x3] %vm7_vm0, %v101_v56  }
  0x9c   :  { %v107_v57 = vpop.permute.xlu0 %106  }
  0x9d   :  { %v113_v58 = vpop.permute.xlu1 %112   ;;  %275 = vst.msk [vmem:[%s550_s1 + $0x11] ss:$40 sm:$0x3] %vm7_vm0, %v107_v57  }
  0x9e   :  { %276 = vst.msk [vmem:[%s550_s1 + $0x12] ss:$40 sm:$0x3] %vm7_vm0, %v113_v58  }
  0xa0   :  { %v119_v59 = vpop.permute.xlu0 %118  }
  0xa1   :  { %v125_v60 = vpop.permute.xlu1 %124   ;;  %277 = vst.msk [vmem:[%s550_s1 + $0x13] ss:$40 sm:$0x3] %vm7_vm0, %v119_v59  }
  0xa2   :  { %278 = vst.msk [vmem:[%s550_s1 + $0x14] ss:$40 sm:$0x3] %vm7_vm0, %v125_v60  }
  0xa4   :  { %v131_v61 = vpop.permute.xlu0 %130  }
  0xa5   :  { %v137_v62 = vpop.permute.xlu1 %136   ;;  %279 = vst.msk [vmem:[%s550_s1 + $0x15] ss:$40 sm:$0x3] %vm7_vm0, %v131_v61  }
  0xa6   :  { %280 = vst.msk [vmem:[%s550_s1 + $0x16] ss:$40 sm:$0x3] %vm7_vm0, %v137_v62  }
  0xa8   :  { %v143_v63 = vpop.permute.xlu0 %142  }
  0xa9   :  { %v151_v0 = vpop.permute.xlu1 %150   ;;  %281 = vst.msk [vmem:[%s550_s1 + $0x17] ss:$40 sm:$0x3] %vm7_vm0, %v143_v63  }
  0xaa   :  { %282 = vst.msk [vmem:[%s550_s1 + $0x40] ss:$-40 sm:$0x3] %vm7_vm0, %v151_v0  }
  0xac   :  { %v159_v1 = vpop.permute.xlu0 %158  }
  0xad   :  { %v167_v2 = vpop.permute.xlu1 %166   ;;  %283 = vst.msk [vmem:[%s550_s1 + $0x41] ss:$-40 sm:$0x3] %vm7_vm0, %v159_v1  }
  0xae   :  { %284 = vst.msk [vmem:[%s550_s1 + $0x42] ss:$-40 sm:$0x3] %vm7_vm0, %v167_v2  }
  0xb0   :  { %v175_v3 = vpop.permute.xlu0 %174  }
  0xb1   :  { %v183_v4 = vpop.permute.xlu1 %182   ;;  %285 = vst.msk [vmem:[%s550_s1 + $0x43] ss:$-40 sm:$0x3] %vm7_vm0, %v175_v3  }
  0xb2   :  { %286 = vst.msk [vmem:[%s550_s1 + $0x44] ss:$-40 sm:$0x3] %vm7_vm0, %v183_v4  }
  0xb4   :  { %v191_v5 = vpop.permute.xlu0 %190  }
  0xb5   :  { %v199_v6 = vpop.permute.xlu1 %198   ;;  %287 = vst.msk [vmem:[%s550_s1 + $0x45] ss:$-40 sm:$0x3] %vm7_vm0, %v191_v5  }
  0xb6   :  { %288 = vst.msk [vmem:[%s550_s1 + $0x46] ss:$-40 sm:$0x3] %vm7_vm0, %v199_v6  }
  0xb8   :  { %v207_v7 = vpop.permute.xlu0 %206  }
  0xb9   :  { %v213_v8 = vpop.permute.xlu1 %212   ;;  %289 = vst.msk [vmem:[%s550_s1 + $0x47] ss:$-40 sm:$0x3] %vm7_vm0, %v207_v7  }
  0xba   :  { %290 = vst.msk [vmem:[%s550_s1 + $0x20] ss:$40 sm:$0x3] %vm7_vm0, %v213_v8  }
  0xbc   :  { %v219_v9 = vpop.permute.xlu0 %218  }
  0xbd   :  { %v225_v10 = vpop.permute.xlu1 %224   ;;  %291 = vst.msk [vmem:[%s550_s1 + $0x21] ss:$40 sm:$0x3] %vm7_vm0, %v219_v9  }
  0xbe   :  { %292 = vst.msk [vmem:[%s550_s1 + $0x22] ss:$40 sm:$0x3] %vm7_vm0, %v225_v10  }
  0xc0   :  { %v231_v11 = vpop.permute.xlu0 %230  }
  0xc1   :  { %v237_v12 = vpop.permute.xlu1 %236   ;;  %293 = vst.msk [vmem:[%s550_s1 + $0x23] ss:$40 sm:$0x3] %vm7_vm0, %v231_v11  }
  0xc2   :  { %294 = vst.msk [vmem:[%s550_s1 + $0x24] ss:$40 sm:$0x3] %vm7_vm0, %v237_v12  }
  0xc4   :  { %v243_v13 = vpop.permute.xlu0 %242  }
  0xc5   :  { %v249_v14 = vpop.permute.xlu1 %248   ;;  %295 = vst.msk [vmem:[%s550_s1 + $0x25] ss:$40 sm:$0x3] %vm7_vm0, %v243_v13  }
  0xc6   :  { %296 = vst.msk [vmem:[%s550_s1 + $0x26] ss:$40 sm:$0x3] %vm7_vm0, %v249_v14  }
  0xc8   :  { %v255_v15 = vpop.permute.xlu0 %254  }
  0xc9   :  { %297 = vst.msk [vmem:[%s550_s1 + $0x27] ss:$40 sm:$0x3] %vm7_vm0, %v255_v15  }

// kernel: cnn1d_forward.1
= control target key start
LH: loop header
LB: loop body
LE: loop exit
PB: predicated region body
PF: predicated region fallthrough
CT: control target
= control target key end

     0   :  { %v4710_v0 = vmov 0   ;;  %vm332_vm0 = vcmask 1044480   ;;  %vm271_vm1 = vcmask 80896   ;;  %vm771_vm2 = vcmask 523264   ;;  %s7210_s13 = inlined_call_operand.vmem [shape: f32[320,1], index: 13, kind: input, shape index: {}]   ;;  %s7211_s1 = inlined_call_operand.vmem [shape: bf16[10,64], index: 1, kind: input, shape index: {}]   ;;  %s7212_s0 = inlined_call_operand.vmem [shape: bf16[320,10], index: 0, kind: input, shape index: {}]   ;;  %s7213_s14 = inlined_call_operand.vmem [shape: f32[160,1], index: 14, kind: input, shape index: {}]   ;;  %s7214_s15 = inlined_call_operand.vmem [shape: f32[80,1], index: 15, kind: input, shape index: {}]   ;;  %s7215_s4 = inlined_call_operand.vmem [shape: bf16[3,64,64], index: 4, kind: input, shape index: {}]   ;;  %s7216_s2 = inlined_call_operand.vmem [shape: f32[1,64], index: 2, kind: input, shape index: {}]   ;;  %s7217_s3 = inlined_call_operand.vmem [shape: f32[1,64], index: 3, kind: input, shape index: {}]   ;;  %s7218_s7 = inlined_call_operand.vmem [shape: bf16[3,64,64], index: 7, kind: input, shape index: {}]   ;;  %s7219_s5 = inlined_call_operand.vmem [shape: f32[1,64], index: 5, kind: input, shape index: {}]   ;;  %s7220_s6 = inlined_call_operand.vmem [shape: f32[1,64], index: 6, kind: input, shape index: {}]   ;;  %s7221_s10 = inlined_call_operand.vmem [shape: bf16[3,64,32], index: 10, kind: input, shape index: {}]   ;;  %s7222_s8 = inlined_call_operand.vmem [shape: f32[1,64], index: 8, kind: input, shape index: {}]   ;;  %s7223_s9 = inlined_call_operand.vmem [shape: f32[1,64], index: 9, kind: input, shape index: {}]   ;;  %s7224_s11 = inlined_call_operand.vmem [shape: f32[1,32], index: 11, kind: input, shape index: {}]   ;;  %s7225_s12 = inlined_call_operand.vmem [shape: f32[1,32], index: 12, kind: input, shape index: {}]   ;;  %s7226_s16 = inlined_call_operand.vmem [shape: f32[50,32], index: 16, kind: output, shape index: {}]  }
   0x1   :  { %7321 = sst [smem:[#allocation58_spill]] %s7210_s13  ;;  %4644 = vset.pattern.permute.xlu1 %v4710_v0  ;;  %4643 = vset.pattern.permute.xlu0 %v4710_v0  ;;  %v4645_v3 = vld [vmem:[%s7211_s1] sm:$0x1f]   ;;  %v4647_v8 = vld [vmem:[%s7212_s0 + $0x8] sm:$0xff]   ;;  %v4648_v11 = vld [vmem:[%s7212_s0 + $0x10] sm:$0xff]   ;;  %vm1418_vm3 = vcmask 1046528  }
   0x2   :  { %s7322_s23 = sld [smem:[#allocation58_spill]]  ;;  %4639 = vmatprep.subr.msk.bf16.mxu0 %vm332_vm0, %v4645_v3  ;;  %v334_v6 = vsel %vm332_vm0, %v4645_v3, 0  ;;  %v4646_v7 = vld [vmem:[%s7212_s0] sm:$0xff]   ;;  %v4649_v14 = vld [vmem:[%s7212_s0 + $0x18] sm:$0xff]   ;;  %v4651_v20 = vld [vmem:[%s7212_s0 + $0x28] sm:$0xff]   ;;  %vm1832_vm4 = vcmask 1045504  }
   0x3   :  { %4218 = vmatpush3.bf16.msra.mxu0 %v334_v6  ;;  %4219 = vmatprep.mubr.msk.bf16.mxu0 %vm271_vm1, %v4646_v7  ;;  %v4650_v15 = vld [vmem:[%s7212_s0 + $0x20] sm:$0xff]   ;;  %v4652_v21 = vld [vmem:[%s7212_s0 + $0x30] sm:$0xff]   ;;  %v4653_v26 = vld [vmem:[%s7212_s0 + $0x38] sm:$0xff]   ;;  %vm4712_vm5 = vmmov 0   ;;  %vm2590_vm6 = vcmask 1040384   ;;  %vm3658_vm7 = vcmask 261120  }
   0x4   :  { %v4654_v27 = vld [vmem:[%s7212_s0 + $0x40] sm:$0xff]   ;;  %v4655_v32 = vld [vmem:[%s7212_s0 + $0x48] sm:$0xff]   ;;  %v4656_v33 = vld [vmem:[%s7212_s0 + $0x50] sm:$0xff]   ;;  %vm3876_vm8 = vcmask 257024   ;;  %vm3880_vm9 = vcmask 261126   ;;  %vm3882_vm10 = vcmask 253952  }
   0x5   :  { %v4657_v38 = vld [vmem:[%s7212_s0 + $0x58] sm:$0xff]   ;;  %v4658_v39 = vld [vmem:[%s7212_s0 + $0x60] sm:$0xff]   ;;  %v4659_v44 = vld [vmem:[%s7212_s0 + $0x68] sm:$0xff]   ;;  %vm3886_vm11 = vcmask 259075   ;;  %vm3890_vm12 = vcmask 256000   ;;  %vm3894_vm13 = vcmask 261125  }
   0x6   :  { %4220 = vmatmul.mubr.msk.bf16.vlgmr.msra.gmra.mrb[0].mxu0 %vm271_vm1, %v4647_v8  ;;  %v4660_v45 = vld [vmem:[%s7212_s0 + $0x70] sm:$0xff]   ;;  %v4661_v50 = vld [vmem:[%s7212_s0 + $0x78] sm:$0xff]   ;;  %v4662_v51 = vld [vmem:[%s7212_s0 + $0x80] sm:$0xff]   ;;  %vm3897_vm14 = vcmask 259074   ;;  %vm3878_vm15 = vcmask 258052   ;;  %vm3884_vm0 = vcmask 254977  }
   0x7   :  { %4223 = vmatprep.mubr.msk.bf16.mxu0 %vm271_vm1, %v4648_v11  ;;  %v4663_v56 = vld [vmem:[%s7212_s0 + $0x88] sm:$0xff]   ;;  %v4664_v57 = vld [vmem:[%s7212_s0 + $0x90] sm:$0xff]   ;;  %v4665_v62 = vld [vmem:[%s7212_s0 + $0x98] sm:$0xff]  }
   0x8   :  { %v56_v1 = vld [vmem:[%s7322_s23 + $0x10] sm:$0xff]  ;;  %v54_v2 = vld [vmem:[%s7322_s23] sm:$0xff]  ;;  %v57_v4 = vld [vmem:[%s7322_s23 + $0x18] sm:$0xff] }
   0x9   :  { %543 = vperm.xlu1 %4644, %v56_v1   ;;  %533 = vperm.xlu0 %4643, %v54_v2   ;;  %v55_v5 = vld [vmem:[%s7322_s23 + $0x8] sm:$0xff]  ;;  %v58_v10 = vld [vmem:[%s7322_s23 + $0x20] sm:$0xff]  ;;  %v61_v12 = vld [vmem:[%s7322_s23 + $0x38] sm:$0xff] }
   0xa   :  { %v59_v9 = vld [vmem:[%s7322_s23 + $0x28] sm:$0xff]  ;;  %v60_v13 = vld [vmem:[%s7322_s23 + $0x30] sm:$0xff]  ;;  %v62_v17 = vld [vmem:[%s7322_s23 + $0x40] sm:$0xff] }
   0xb   :  { %v63_v16 = vld [vmem:[%s7322_s23 + $0x48] sm:$0xff]  ;;  %v65_v18 = vld [vmem:[%s7322_s23 + $0x58] sm:$0xff]  ;;  %v64_v19 = vld [vmem:[%s7322_s23 + $0x50] sm:$0xff] }
   0xc   :  { %v67_v22 = vld [vmem:[%s7322_s23 + $0x68] sm:$0xff]  ;;  %v66_v23 = vld [vmem:[%s7322_s23 + $0x60] sm:$0xff]  ;;  %v69_v24 = vld [vmem:[%s7322_s23 + $0x78] sm:$0xff] }
   0xd   :  { %548 = vperm.xlu1 %4644, %v57_v4   ;;  %538 = vperm.xlu0 %4643, %v55_v5   ;;  %v68_v25 = vld [vmem:[%s7322_s23 + $0x70] sm:$0xff]  ;;  %v71_v28 = vld [vmem:[%s7322_s23 + $0x88] sm:$0xff]  ;;  %v70_v29 = vld [vmem:[%s7322_s23 + $0x80] sm:$0xff] }
   0xe   :  { %4224 = vmatmul.mubr.msk.bf16.gmra.mrb[4].mxu0 %vm271_vm1, %v4649_v14  ;;  %v73_v30 = vld [vmem:[%s7322_s23 + $0x98] sm:$0xff]  ;;  %v72_v31 = vld [vmem:[%s7322_s23 + $0x90] sm:$0xff]  ;;  %v75_v34 = vld [vmem:[%s7322_s23 + $0xa8] sm:$0xff] }
   0xf   :  { %4227 = vmatprep.mubr.msk.bf16.mxu0 %vm271_vm1, %v4650_v15  ;;  %v74_v35 = vld [vmem:[%s7322_s23 + $0xa0] sm:$0xff]  ;;  %v77_v36 = vld [vmem:[%s7322_s23 + $0xb8] sm:$0xff]  ;;  %v76_v37 = vld [vmem:[%s7322_s23 + $0xb0] sm:$0xff] }
  0x10   :  { %v79_v40 = vld [vmem:[%s7322_s23 + $0xc8] sm:$0xff]  ;;  %v78_v41 = vld [vmem:[%s7322_s23 + $0xc0] sm:$0xff]  ;;  %v81_v42 = vld [vmem:[%s7322_s23 + $0xd8] sm:$0xff] }
  0x11   :  { %558 = vperm.xlu1 %4644, %v59_v9   ;;  %553 = vperm.xlu0 %4643, %v58_v10   ;;  %v80_v43 = vld [vmem:[%s7322_s23 + $0xd0] sm:$0xff]  ;;  %v83_v46 = vld [vmem:[%s7322_s23 + $0xe8] sm:$0xff]  ;;  %v82_v47 = vld [vmem:[%s7322_s23 + $0xe0] sm:$0xff] }
  0x12   :  { %v85_v48 = vld [vmem:[%s7322_s23 + $0xf8] sm:$0xff]  ;;  %v84_v49 = vld [vmem:[%s7322_s23 + $0xf0] sm:$0xff]  ;;  %v87_v52 = vld [vmem:[%s7322_s23 + $0x108] sm:$0xff] }
  0x13   :  { %v86_v53 = vld [vmem:[%s7322_s23 + $0x100] sm:$0xff]  ;;  %v89_v54 = vld [vmem:[%s7322_s23 + $0x118] sm:$0xff]  ;;  %v88_v55 = vld [vmem:[%s7322_s23 + $0x110] sm:$0xff] }
  0x14   :  { %v91_v58 = vld [vmem:[%s7322_s23 + $0x128] sm:$0xff]  ;;  %v90_v59 = vld [vmem:[%s7322_s23 + $0x120] sm:$0xff]  ;;  %v93_v60 = vld [vmem:[%s7322_s23 + $0x138] sm:$0xff] }
  0x15   :  { %568 = vperm.xlu1 %4644, %v61_v12   ;;  %563 = vperm.xlu0 %4643, %v60_v13   ;;  %v92_v61 = vld [vmem:[%s7322_s23 + $0x130] sm:$0xff]  ;;  %v95_v63 = vld [vmem:[%s7213_s14 + $0x8] sm:$0xff]  ;;  %v94_v0 = vld [vmem:[%s7213_s14] sm:$0xff] }
  0x16   :  { %4228 = vmatmul.mubr.msk.bf16.gmra.mrb[8].mxu0 %vm271_vm1, %v4651_v20  ;;  %v97_v1 = vld [vmem:[%s7213_s14 + $0x18] sm:$0xff]  ;;  %v96_v2 = vld [vmem:[%s7213_s14 + $0x10] sm:$0xff]  ;;  %v99_v3 = vld [vmem:[%s7213_s14 + $0x28] sm:$0xff] }
  0x17   :  { %4231 = vmatprep.mubr.msk.bf16.mxu0 %vm271_vm1, %v4652_v21  ;;  %v98_v4 = vld [vmem:[%s7213_s14 + $0x20] sm:$0xff]  ;;  %v101_v5 = vld [vmem:[%s7213_s14 + $0x38] sm:$0xff]  ;;  %v100_v6 = vld [vmem:[%s7213_s14 + $0x30] sm:$0xff] }
  0x18   :  { %v103_v7 = vld [vmem:[%s7213_s14 + $0x48] sm:$0xff]  ;;  %v102_v8 = vld [vmem:[%s7213_s14 + $0x40] sm:$0xff]  ;;  %v105_v9 = vld [vmem:[%s7213_s14 + $0x58] sm:$0xff] }
  0x19   :  { %578 = vperm.xlu1 %4644, %v63_v16   ;;  %573 = vperm.xlu0 %4643, %v62_v17   ;;  %v104_v10 = vld [vmem:[%s7213_s14 + $0x50] sm:$0xff]  ;;  %v107_v11 = vld [vmem:[%s7213_s14 + $0x68] sm:$0xff]  ;;  %v106_v12 = vld [vmem:[%s7213_s14 + $0x60] sm:$0xff] }
  0x1a   :  { %v109_v13 = vld [vmem:[%s7213_s14 + $0x78] sm:$0xff]  ;;  %v108_v14 = vld [vmem:[%s7213_s14 + $0x70] sm:$0xff]  ;;  %v111_v15 = vld [vmem:[%s7213_s14 + $0x88] sm:$0xff] }
  0x1b   :  { %v110_v16 = vld [vmem:[%s7213_s14 + $0x80] sm:$0xff]  ;;  %v113_v17 = vld [vmem:[%s7213_s14 + $0x98] sm:$0xff] }
  0x1c   :  { %v114_v20 = vld [vmem:[%s7214_s15] sm:$0xff]  ;;  %v117_v21 = vld [vmem:[%s7214_s15 + $0x18] sm:$0xff] }
  0x1d   :  { %588 = vperm.xlu1 %4644, %v65_v18   ;;  %583 = vperm.xlu0 %4643, %v64_v19   ;;  %v112_v18 = vld [vmem:[%s7213_s14 + $0x90] sm:$0xff]  ;;  %v115_v19 = vld [vmem:[%s7214_s15 + $0x8] sm:$0xff] }
  0x1e   :  { %4232 = vmatmul.mubr.msk.bf16.gmra.mrb[12].mxu0 %vm271_vm1, %v4653_v26  ;;  %v120_v26 = vld [vmem:[%s7214_s15 + $0x30] sm:$0xff] }
  0x1f   :  { %4235 = vmatprep.mubr.msk.bf16.mxu0 %vm271_vm1, %v4654_v27  ;;  %v123_v27 = vld [vmem:[%s7214_s15 + $0x48] sm:$0xff] }
  0x21   :  { %598 = vperm.xlu1 %4644, %v67_v22   ;;  %593 = vperm.xlu0 %4643, %v66_v23   ;;  %v116_v22 = vld [vmem:[%s7214_s15 + $0x10] sm:$0xff]  ;;  %v119_v23 = vld [vmem:[%s7214_s15 + $0x28] sm:$0xff] }
  0x25   :  { %608 = vperm.xlu1 %4644, %v69_v24   ;;  %603 = vperm.xlu0 %4643, %v68_v25   ;;  %v118_v24 = vld [vmem:[%s7214_s15 + $0x20] sm:$0xff]  ;;  %v121_v25 = vld [vmem:[%s7214_s15 + $0x38] sm:$0xff] }
  0x26   :  { %4236 = vmatmul.mubr.msk.bf16.gmra.mrb[16].mxu0 %vm271_vm1, %v4655_v32 }
  0x27   :  { %4239 = vmatprep.mubr.msk.bf16.mxu0 %vm271_vm1, %v4656_v33 }
  0x29   :  { %618 = vperm.xlu1 %4644, %v71_v28   ;;  %613 = vperm.xlu0 %4643, %v70_v29   ;;  %v122_v28 = vld [vmem:[%s7214_s15 + $0x40] sm:$0xff] }
  0x2d   :  { %628 = vperm.xlu1 %4644, %v73_v30   ;;  %623 = vperm.xlu0 %4643, %v72_v31  }
  0x2e   :  { %4240 = vmatmul.mubr.msk.bf16.gmra.mrb[20].mxu0 %vm271_vm1, %v4657_v38 }
  0x2f   :  { %4243 = vmatprep.mubr.msk.bf16.mxu0 %vm271_vm1, %v4658_v39 }
  0x31   :  { %638 = vperm.xlu1 %4644, %v75_v34   ;;  %633 = vperm.xlu0 %4643, %v74_v35  }
  0x35   :  { %648 = vperm.xlu1 %4644, %v77_v36   ;;  %643 = vperm.xlu0 %4643, %v76_v37  }
  0x36   :  { %4244 = vmatmul.mubr.msk.bf16.gmra.mrb[24].mxu0 %vm271_vm1, %v4659_v44 }
  0x37   :  { %4247 = vmatprep.mubr.msk.bf16.mxu0 %vm271_vm1, %v4660_v45 }
  0x39   :  { %658 = vperm.xlu1 %4644, %v79_v40   ;;  %653 = vperm.xlu0 %4643, %v78_v41  }
  0x3d   :  { %668 = vperm.xlu1 %4644, %v81_v42   ;;  %663 = vperm.xlu0 %4643, %v80_v43  }
  0x3e   :  { %4248 = vmatmul.mubr.msk.bf16.gmra.mrb[28].mxu0 %vm271_vm1, %v4661_v50 }
  0x3f   :  { %4251 = vmatprep.mubr.msk.bf16.mxu0 %vm271_vm1, %v4662_v51 }
  0x41   :  { %678 = vperm.xlu1 %4644, %v83_v46   ;;  %673 = vperm.xlu0 %4643, %v82_v47  }
  0x45   :  { %688 = vperm.xlu1 %4644, %v85_v48   ;;  %683 = vperm.xlu0 %4643, %v84_v49  }
  0x46   :  { %4252 = vmatmul.mubr.msk.bf16.gmra.mrb[32].mxu0 %vm271_vm1, %v4663_v56 }
  0x47   :  { %4255 = vmatprep.mubr.msk.bf16.mxu0 %vm271_vm1, %v4664_v57 }
  0x49   :  { %698 = vperm.xlu1 %4644, %v87_v52   ;;  %693 = vperm.xlu0 %4643, %v86_v53  }
  0x4d   :  { %708 = vperm.xlu1 %4644, %v89_v54   ;;  %703 = vperm.xlu0 %4643, %v88_v55  }
  0x4e   :  { %4256 = vmatmul.mubr.msk.bf16.gmra.mrb[36].mxu0 %vm271_vm1, %v4665_v62  ;;  %vm3888_vm1 = vcmask 260102  }
  0x51   :  { %718 = vperm.xlu1 %4644, %v91_v58   ;;  %713 = vperm.xlu0 %4643, %v90_v59  }
  0x55   :  { %728 = vperm.xlu1 %4644, %v93_v60   ;;  %723 = vperm.xlu0 %4643, %v92_v61  }
  0x59   :  { %2108 = vperm.xlu1 %4644, %v95_v63   ;;  %2103 = vperm.xlu0 %4643, %v94_v0  }
  0x5d   :  { %2118 = vperm.xlu1 %4644, %v97_v1   ;;  %2113 = vperm.xlu0 %4643, %v96_v2  }
  0x61   :  { %2128 = vperm.xlu1 %4644, %v99_v3   ;;  %2123 = vperm.xlu0 %4643, %v98_v4  }
  0x65   :  { %2138 = vperm.xlu1 %4644, %v101_v5   ;;  %2133 = vperm.xlu0 %4643, %v100_v6  }
  0x69   :  { %2148 = vperm.xlu1 %4644, %v103_v7   ;;  %2143 = vperm.xlu0 %4643, %v102_v8  }
  0x6d   :  { %2158 = vperm.xlu1 %4644, %v105_v9   ;;  %2153 = vperm.xlu0 %4643, %v104_v10  }
  0x71   :  { %2168 = vperm.xlu1 %4644, %v107_v11   ;;  %2163 = vperm.xlu0 %4643, %v106_v12  }
  0x75   :  { %2178 = vperm.xlu1 %4644, %v109_v13   ;;  %2173 = vperm.xlu0 %4643, %v108_v14  }
  0x79   :  { %2188 = vperm.xlu1 %4644, %v111_v15   ;;  %2183 = vperm.xlu0 %4643, %v110_v16  }
  0x7d   :  { %2198 = vperm.xlu1 %4644, %v113_v17   ;;  %2193 = vperm.xlu0 %4643, %v112_v18  }
  0x81   :  { %2527 = vperm.xlu1 %4644, %v115_v19   ;;  %2522 = vperm.xlu0 %4643, %v114_v20  }
  0x85   :  { %2537 = vperm.xlu1 %4644, %v117_v21   ;;  %2532 = vperm.xlu0 %4643, %v116_v22  }
  0x88   :  { %v5091_v29 = vpop.permute.xlu0 %533  ;;  %v5093_v30 = vpop.permute.xlu1 %543 }
  0x89   :  { %2547 = vperm.xlu1 %4644, %v119_v23   ;;  %2542 = vperm.xlu0 %4643, %v118_v24   ;;  %7323 = vst [vmem:[#allocation3_spill] sm:$0xff] %v5091_v29  ;;  %7324 = vst [vmem:[#allocation4_spill] sm:$0xff] %v5093_v30 }
  0x8c   :  { %v5095_v31 = vpop.permute.xlu0 %538  ;;  %v5097_v32 = vpop.permute.xlu1 %548 }
  0x8d   :  { %2557 = vperm.xlu1 %4644, %v121_v25   ;;  %2552 = vperm.xlu0 %4643, %v120_v26   ;;  %7325 = vst [vmem:[#allocation5_spill] sm:$0xff] %v5095_v31  ;;  %7326 = vst [vmem:[#allocation6_spill] sm:$0xff] %v5097_v32 }
  0x90   :  { %v5099_v33 = vpop.permute.xlu0 %553  ;;  %v5101_v34 = vpop.permute.xlu1 %558 }
  0x91   :  { %2567 = vperm.xlu1 %4644, %v123_v27   ;;  %2562 = vperm.xlu0 %4643, %v122_v28   ;;  %7327 = vst [vmem:[#allocation7_spill] sm:$0xff] %v5099_v33  ;;  %7328 = vst [vmem:[#allocation8_spill] sm:$0xff] %v5101_v34 }
  0x94   :  { %v5103_v35 = vpop.permute.xlu0 %563  ;;  %v5105_v36 = vpop.permute.xlu1 %568 }
  0x95   :  { %7329 = vst [vmem:[#allocation9_spill] sm:$0xff] %v5103_v35  ;;  %7330 = vst [vmem:[#allocation10_spill] sm:$0xff] %v5105_v36 }
  0x98   :  { %v5107_v37 = vpop.permute.xlu0 %573  ;;  %v5109_v38 = vpop.permute.xlu1 %578 }
  0x99   :  { %7331 = vst [vmem:[#allocation11_spill] sm:$0xff] %v5107_v37  ;;  %7332 = vst [vmem:[#allocation12_spill] sm:$0xff] %v5109_v38 }
  0x9c   :  { %v5111_v39 = vpop.permute.xlu0 %583  ;;  %v5113_v40 = vpop.permute.xlu1 %588 }
  0x9d   :  { %7333 = vst [vmem:[#allocation13_spill] sm:$0xff] %v5111_v39  ;;  %7334 = vst [vmem:[#allocation14_spill] sm:$0xff] %v5113_v40 }
  0xa0   :  { %v5115_v41 = vpop.permute.xlu0 %593  ;;  %v5117_v42 = vpop.permute.xlu1 %598 }
  0xa1   :  { %7335 = vst [vmem:[#allocation15_spill] sm:$0xff] %v5115_v41  ;;  %7336 = vst [vmem:[#allocation16_spill] sm:$0xff] %v5117_v42 }
  0xa4   :  { %v5127_v47 = vpop.permute.xlu0 %603  ;;  %v5135_v51 = vpop.permute.xlu1 %608 }
  0xa5   :  { %7337 = vst [vmem:[#allocation17_spill] sm:$0xff] %v5127_v47  ;;  %7338 = vst [vmem:[#allocation18_spill] sm:$0xff] %v5135_v51 }
  0xa8   :  { %v5146_v59 = vpop.permute.xlu0 %613  ;;  %v5153_v0 = vpop.permute.xlu1 %618 }
  0xa9   :  { %7339 = vst [vmem:[#allocation19_spill] sm:$0xff] %v5146_v59  ;;  %7340 = vst [vmem:[#allocation20_spill] sm:$0xff] %v5153_v0 }
  0xac   :  { %v5165_v9 = vpop.permute.xlu0 %623  ;;  %v5172_v14 = vpop.permute.xlu1 %628 }
  0xad   :  { %7341 = vst [vmem:[#allocation21_spill] sm:$0xff] %v5165_v9  ;;  %7342 = vst [vmem:[#allocation22_spill] sm:$0xff] %v5172_v14 }
  0xb0   :  { %v5186_v24 = vpop.permute.xlu0 %633  ;;  %v5191_v28 = vpop.permute.xlu1 %638 }
  0xb1   :  { %7343 = vst [vmem:[#allocation23_spill] sm:$0xff] %v5186_v24  ;;  %7344 = vst [vmem:[#allocation24_spill] sm:$0xff] %v5191_v28 }
  0xd9   :  { %v5119_v43 = vpop.f32.mrb[0].mxu0 }
  0xda   :  { %v5121_v44 = vpop.f32.mrb[1].mxu0  ;;  %v733_v49 = vmul.f32 %v5119_v43, %v5093_v30 }
  0xdb   :  { %v731_v45 = vmul.f32 %v5091_v29, %v5121_v44  ;;  %v5125_v46 = vpop.f32.mrb[2].mxu0 }
  0xdc   :  { %v5129_v48 = vpop.f32.mrb[3].mxu0  ;;  %v734_v53 = vmul.f32 %v5125_v46, %v5097_v32  ;;  %v775_v57 = vsel %vm771_vm2, %v733_v49, 0.0 }
  0xdd   :  { %v732_v50 = vmul.f32 %v5095_v31, %v5129_v48  ;;  %v772_v52 = vsel %vm771_vm2, %v731_v45, 0.0 }
  0xde   :  { %v777_v62 = vsel %vm771_vm2, %v734_v53, 0.0 }
  0xdf   :  { %v773_v54 = vsel %vm771_vm2, %v732_v50, 0.0 }
  0xe0   :  { %v774_v55 = vadd.f32 %v773_v54, %v772_v52 }
  0xe1   :  { %v5141_v56 = vpop.f32.mrb[4].mxu0 }
  0xe2   :  { %v5144_v58 = vpop.f32.mrb[5].mxu0  ;;  %v776_v60 = vadd.f32 %v775_v57, %v774_v55  ;;  %v737_v4 = vmul.f32 %v5141_v56, %v5103_v35 }
  0xe3   :  { %v735_v61 = vmul.f32 %v5099_v33, %v5144_v58  ;;  %v5151_v63 = vpop.f32.mrb[6].mxu0 }
  0xe4   :  { %v778_v1 = vadd.f32 %v777_v62, %v776_v60  ;;  %v5156_v3 = vpop.f32.mrb[7].mxu0  ;;  %v738_v7 = vmul.f32 %v5151_v63, %v5105_v36  ;;  %v783_v12 = vsel %vm771_vm2, %v737_v4, 0.0  ;;  %v5203_v60 = vpop.permute.xlu0 %643 }
  0xe5   :  { %v779_v2 = vsel %vm771_vm2, %v735_v61, 0.0  ;;  %v736_v5 = vmul.f32 %v5101_v34, %v5156_v3  ;;  %7345 = vst [vmem:[#allocation25_spill] sm:$0xff] %v5203_v60 }
  0xe6   :  { %v780_v6 = vadd.f32 %v779_v2, %v778_v1  ;;  %v785_v17 = vsel %vm771_vm2, %v738_v7, 0.0 }
  0xe7   :  { %v781_v8 = vsel %vm771_vm2, %v736_v5, 0.0  ;;  %v5212_v5 = vpop.permute.xlu1 %648 }
  0xe8   :  { %v782_v10 = vadd.f32 %v781_v8, %v780_v6  ;;  %7346 = vst [vmem:[#allocation26_spill] sm:$0xff] %v5212_v5 }
  0xe9   :  { %v5167_v11 = vpop.f32.mrb[8].mxu0 }
  0xea   :  { %v5170_v13 = vpop.f32.mrb[9].mxu0  ;;  %v784_v15 = vadd.f32 %v783_v12, %v782_v10  ;;  %v741_v22 = vmul.f32 %v5167_v11, %v5111_v39 }
  0xeb   :  { %v739_v16 = vmul.f32 %v5107_v37, %v5170_v13  ;;  %v5177_v18 = vpop.f32.mrb[10].mxu0 }
  0xec   :  { %v786_v19 = vadd.f32 %v785_v17, %v784_v15  ;;  %v5180_v21 = vpop.f32.mrb[11].mxu0  ;;  %v742_v26 = vmul.f32 %v5177_v18, %v5113_v40  ;;  %v791_v50 = vsel %vm771_vm2, %v741_v22, 0.0  ;;  %v5222_v17 = vpop.permute.xlu0 %653 }
  0xed   :  { %v787_v20 = vsel %vm771_vm2, %v739_v16, 0.0  ;;  %v740_v23 = vmul.f32 %v5109_v38, %v5180_v21  ;;  %7347 = vst [vmem:[#allocation27_spill] sm:$0xff] %v5222_v17 }
  0xee   :  { %v788_v25 = vadd.f32 %v787_v20, %v786_v19  ;;  %v793_v55 = vsel %vm771_vm2, %v742_v26, 0.0 }
  0xef   :  { %v789_v27 = vsel %vm771_vm2, %v740_v23, 0.0 }
  0xf0   :  { %v790_v45 = vadd.f32 %v789_v27, %v788_v25  ;;  %v5229_v25 = vpop.permute.xlu1 %658 }
  0xf1   :  { %v5193_v49 = vpop.f32.mrb[12].mxu0  ;;  %7348 = vst [vmem:[#allocation28_spill] sm:$0xff] %v5229_v25 }
  0xf2   :  { %v5196_v52 = vpop.f32.mrb[13].mxu0  ;;  %v792_v53 = vadd.f32 %v791_v50, %v790_v45  ;;  %v745_v2 = vmul.f32 %v5193_v49, %v5127_v47 }
  0xf3   :  { %v743_v54 = vmul.f32 %v5115_v41, %v5196_v52  ;;  %v5201_v57 = vpop.f32.mrb[14].mxu0 }
  0xf4   :  { %v794_v61 = vadd.f32 %v793_v55, %v792_v53  ;;  %v5206_v1 = vpop.f32.mrb[15].mxu0  ;;  %v746_v7 = vmul.f32 %v5201_v57, %v5135_v51  ;;  %v799_v15 = vsel %vm771_vm2, %v745_v2, 0.0 }
  0xf5   :  { %v795_v62 = vsel %vm771_vm2, %v743_v54, 0.0  ;;  %v744_v4 = vmul.f32 %v5117_v42, %v5206_v1 }
  0xf6   :  { %v796_v6 = vadd.f32 %v795_v62, %v794_v61  ;;  %v801_v22 = vsel %vm771_vm2, %v746_v7, 0.0  ;;  %v5241_v62 = vpop.permute.xlu0 %663 }
  0xf7   :  { %v797_v8 = vsel %vm771_vm2, %v744_v4, 0.0  ;;  %7349 = vst [vmem:[#allocation29_spill] sm:$0xff] %v5241_v62 }
  0xf8   :  { %v798_v10 = vadd.f32 %v797_v8, %v796_v6  ;;  %v5248_v8 = vpop.permute.xlu1 %668 }
  0xf9   :  { %v5217_v12 = vpop.f32.mrb[16].mxu0  ;;  %7351 = vst [vmem:[#allocation31_spill] sm:$0xff] %v5248_v8 }
  0xfa   :  { %v5220_v16 = vpop.f32.mrb[17].mxu0  ;;  %v800_v19 = vadd.f32 %v799_v15, %v798_v10  ;;  %v749_v50 = vmul.f32 %v5217_v12, %v5165_v9 }
  0xfb   :  { %v747_v20 = vmul.f32 %v5146_v59, %v5220_v16  ;;  %v5227_v23 = vpop.f32.mrb[18].mxu0 }
  0xfc   :  { %v802_v26 = vadd.f32 %v801_v22, %v800_v19  ;;  %v5232_v45 = vpop.f32.mrb[19].mxu0  ;;  %v750_v55 = vmul.f32 %v5227_v23, %v5172_v14  ;;  %v807_v6 = vsel %vm771_vm2, %v749_v50, 0.0 }
  0xfd   :  { %v803_v27 = vsel %vm771_vm2, %v747_v20, 0.0  ;;  %v748_v53 = vmul.f32 %v5153_v0, %v5232_v45 }
  0xfe   :  { %v804_v54 = vadd.f32 %v803_v27, %v802_v26  ;;  %v809_v19 = vsel %vm771_vm2, %v750_v55, 0.0 }
  0xff   :  { %v805_v61 = vsel %vm771_vm2, %v748_v53, 0.0 }
 0x100   :  { %v806_v2 = vadd.f32 %v805_v61, %v804_v54  ;;  %v5262_v54 = vpop.permute.xlu0 %673 }
 0x101   :  { %v5243_v4 = vpop.f32.mrb[20].mxu0  ;;  %7353 = vst [vmem:[#allocation33_spill] sm:$0xff] %v5262_v54 }
 0x102   :  { %7350 = vst [vmem:[#allocation30_spill] sm:$0xff] %v5243_v4  ;;  %v5246_v7 = vpop.f32.mrb[21].mxu0  ;;  %v808_v10 = vadd.f32 %v807_v6, %v806_v2  ;;  %v753_v50 = vmul.f32 %v5243_v4, %v5203_v60  ;;  %v5267_v6 = vpop.permute.xlu1 %678 }
 0x103   :  { %v751_v15 = vmul.f32 %v5186_v24, %v5246_v7  ;;  %v5253_v20 = vpop.f32.mrb[22].mxu0  ;;  %7354 = vst [vmem:[#allocation34_spill] sm:$0xff] %v5267_v6 }
 0x104   :  { %7352 = vst [vmem:[#allocation32_spill] sm:$0xff] %v5253_v20  ;;  %v810_v22 = vadd.f32 %v809_v19, %v808_v10  ;;  %v5256_v27 = vpop.f32.mrb[23].mxu0  ;;  %v754_v2 = vmul.f32 %v5253_v20, %v5212_v5  ;;  %v815_v19 = vsel %vm771_vm2, %v753_v50, 0.0 }
 0x105   :  { %v811_v26 = vsel %vm771_vm2, %v751_v15, 0.0  ;;  %v752_v53 = vmul.f32 %v5191_v28, %v5256_v27 }
 0x106   :  { %v812_v61 = vadd.f32 %v811_v26, %v810_v22  ;;  %v817_v22 = vsel %vm771_vm2, %v754_v2, 0.0 }
 0x107   :  { %v813_v55 = vsel %vm771_vm2, %v752_v53, 0.0  ;;  %v5281_v53 = vpop.permute.xlu0 %683 }
 0x108   :  { %v814_v10 = vadd.f32 %v813_v55, %v812_v61  ;;  %7358 = vst [vmem:[#allocation38_spill] sm:$0xff] %v5281_v53 }
 0x109   :  { %v5269_v15 = vpop.f32.mrb[24].mxu0 }
 0x10a   :  { %7355 = vst [vmem:[#allocation35_spill] sm:$0xff] %v5269_v15  ;;  %v5272_v24 = vpop.f32.mrb[25].mxu0  ;;  %v816_v60 = vadd.f32 %v815_v19, %v814_v10  ;;  %v757_v55 = vmul.f32 %v5269_v15, %v5241_v62  ;;  %v5288_v10 = vpop.permute.xlu1 %688 }
 0x10b   :  { %7356 = vst [vmem:[#allocation36_spill] sm:$0xff] %v5272_v24  ;;  %v755_v28 = vmul.f32 %v5222_v17, %v5272_v24  ;;  %v5276_v4 = vpop.f32.mrb[26].mxu0  ;;  %7359 = vst [vmem:[#allocation39_spill] sm:$0xff] %v5288_v10 }
 0x10c   :  { %7357 = vst [vmem:[#allocation37_spill] sm:$0xff] %v5276_v4  ;;  %v5279_v26 = vpop.f32.mrb[27].mxu0  ;;  %v818_v5 = vadd.f32 %v817_v22, %v816_v60  ;;  %v758_v2 = vmul.f32 %v5276_v4, %v5248_v8  ;;  %v823_v60 = vsel %vm771_vm2, %v757_v55, 0.0  ;;  %v5298_v22 = vpop.permute.xlu0 %693 }
 0x10d   :  { %v819_v61 = vsel %vm771_vm2, %v755_v28, 0.0  ;;  %v756_v50 = vmul.f32 %v5229_v25, %v5279_v26  ;;  %7362 = vst [vmem:[#allocation42_spill] sm:$0xff] %v5298_v22 }
 0x10e   :  { %v820_v19 = vadd.f32 %v819_v61, %v818_v5  ;;  %v825_v5 = vsel %vm771_vm2, %v758_v2, 0.0 }
 0x10f   :  { %v821_v17 = vsel %vm771_vm2, %v756_v50, 0.0  ;;  %v5307_v50 = vpop.permute.xlu1 %698 }
 0x110   :  { %v822_v24 = vadd.f32 %v821_v17, %v820_v19  ;;  %7365 = vst [vmem:[#allocation45_spill] sm:$0xff] %v5307_v50  ;;  %v5317_v2 = vpop.permute.xlu0 %703 }
 0x111   :  { %v5293_v20 = vpop.f32.mrb[28].mxu0  ;;  %7366 = vst [vmem:[#allocation46_spill] sm:$0xff] %v5317_v2 }
 0x112   :  { %7360 = vst [vmem:[#allocation40_spill] sm:$0xff] %v5293_v20  ;;  %v5296_v28 = vpop.f32.mrb[29].mxu0  ;;  %v824_v25 = vadd.f32 %v823_v60, %v822_v24  ;;  %v761_v24 = vmul.f32 %v5293_v20, %v5281_v53 }
 0x113   :  { %7361 = vst [vmem:[#allocation41_spill] sm:$0xff] %v5296_v28  ;;  %v759_v62 = vmul.f32 %v5262_v54, %v5296_v28  ;;  %v5302_v15 = vpop.f32.mrb[30].mxu0 }
 0x114   :  { %7363 = vst [vmem:[#allocation43_spill] sm:$0xff] %v5302_v15  ;;  %v5305_v61 = vpop.f32.mrb[31].mxu0  ;;  %v826_v17 = vadd.f32 %v825_v5, %v824_v25  ;;  %v762_v8 = vmul.f32 %v5302_v15, %v5288_v10  ;;  %v831_v25 = vsel %vm771_vm2, %v761_v24, 0.0  ;;  %v5324_v5 = vpop.permute.xlu1 %708 }
 0x115   :  { %7364 = vst [vmem:[#allocation44_spill] sm:$0xff] %v5305_v61  ;;  %v827_v19 = vsel %vm771_vm2, %v759_v62, 0.0  ;;  %v760_v55 = vmul.f32 %v5267_v6, %v5305_v61  ;;  %7369 = vst [vmem:[#allocation49_spill] sm:$0xff] %v5324_v5  ;;  %v5338_v15 = vpop.permute.xlu0 %713 }
 0x116   :  { %v828_v60 = vadd.f32 %v827_v19, %v826_v17  ;;  %7372 = vst [vmem:[#allocation52_spill] sm:$0xff] %v5338_v15 }
 0x117   :  { %v829_v54 = vsel %vm771_vm2, %v760_v55, 0.0  ;;  %v833_v55 = vsel %vm771_vm2, %v762_v8, 0.0 }
 0x118   :  { %v830_v28 = vadd.f32 %v829_v54, %v828_v60  ;;  %v5343_v8 = vpop.permute.xlu1 %718 }
 0x119   :  { %v5319_v4 = vpop.f32.mrb[32].mxu0  ;;  %7373 = vst [vmem:[#allocation53_spill] sm:$0xff] %v5343_v8 }
 0x11a   :  { %7367 = vst [vmem:[#allocation47_spill] sm:$0xff] %v5319_v4  ;;  %v5322_v62 = vpop.f32.mrb[33].mxu0  ;;  %v832_v6 = vadd.f32 %v831_v25, %v830_v28  ;;  %v765_v60 = vmul.f32 %v5319_v4, %v5317_v2 }
 0x11b   :  { %7368 = vst [vmem:[#allocation48_spill] sm:$0xff] %v5322_v62  ;;  %v763_v17 = vmul.f32 %v5298_v22, %v5322_v62  ;;  %v5328_v19 = vpop.f32.mrb[34].mxu0 }
 0x11c   :  { %7370 = vst [vmem:[#allocation50_spill] sm:$0xff] %v5328_v19  ;;  %v5331_v10 = vpop.f32.mrb[35].mxu0  ;;  %v834_v53 = vadd.f32 %v833_v55, %v832_v6  ;;  %v766_v22 = vmul.f32 %v5328_v19, %v5324_v5 }
 0x11d   :  { %7371 = vst [vmem:[#allocation51_spill] sm:$0xff] %v5331_v10  ;;  %v835_v54 = vsel %vm771_vm2, %v763_v17, 0.0  ;;  %v764_v24 = vmul.f32 %v5307_v50, %v5331_v10  ;;  %v839_v17 = vsel %vm771_vm2, %v765_v60, 0.0 }
 0x11e   :  { %v836_v28 = vadd.f32 %v835_v54, %v834_v53  ;;  %v841_v53 = vsel %vm771_vm2, %v766_v22, 0.0 }
 0x11f   :  { %v837_v25 = vsel %vm771_vm2, %v764_v24, 0.0  ;;  %v5357_v24 = vpop.permute.xlu0 %723 }
 0x120   :  { %v838_v62 = vadd.f32 %v837_v25, %v836_v28  ;;  %7377 = vst [vmem:[#allocation57_spill] sm:$0xff] %v5357_v24  ;;  %v5364_v25 = vpop.permute.xlu1 %728 }
 0x121   :  { %v5345_v6 = vpop.f32.mrb[36].mxu0 }
 0x122   :  { %7374 = vst [vmem:[#allocation54_spill] sm:$0xff] %v5345_v6  ;;  %v5348_v55 = vpop.f32.mrb[37].mxu0  ;;  %v840_v50 = vadd.f32 %v839_v17, %v838_v62  ;;  %v769_v62 = vmul.f32 %v5345_v6, %v5357_v24 }
 0x123   :  { %7375 = vst [vmem:[#allocation55_spill] sm:$0xff] %v5348_v55  ;;  %v767_v2 = vmul.f32 %v5338_v15, %v5348_v55  ;;  %v5352_v4 = vpop.f32.mrb[38].mxu0 }
 0x124   :  { %v5355_v54 = vpop.f32.mrb[39].mxu0  ;;  %v842_v5 = vadd.f32 %v841_v53, %v840_v50  ;;  %v770_v22 = vmul.f32 %v5352_v4, %v5364_v25  ;;  %v847_v19 = vsel %vm771_vm2, %v769_v62, 0.0 }
 0x125   :  { %7376 = vst [vmem:[#allocation56_spill] sm:$0xff] %v5355_v54  ;;  %v843_v28 = vsel %vm771_vm2, %v767_v2, 0.0  ;;  %v768_v60 = vmul.f32 %v5343_v8, %v5355_v54 }
 0x126   :  { %v844_v17 = vadd.f32 %v843_v28, %v842_v5  ;;  %v849_v2 = vsel %vm771_vm2, %v770_v22, 0.0 }
 0x127   :  { %v845_v15 = vsel %vm771_vm2, %v768_v60, 0.0 }
 0x128   :  { %v846_v55 = vadd.f32 %v845_v15, %v844_v17 }
 0x12a   :  { %v848_v50 = vadd.f32 %v847_v19, %v846_v55 }
 0x12c   :  { %v850_v53 = vadd.f32 %v849_v2, %v848_v50 }
 0x12e   :  { %v851_v10 = vrot.slane %v850_v53, 4 }
 0x130   :  { %v852_v8 = vadd.f32 %v851_v10, %v850_v53 }
 0x132   :  { %v853_v54 = vrot.slane %v852_v8, 2 }
 0x134   :  { %v854_v20 = vadd.f32 %v853_v54, %v852_v8 }
 0x136   :  { %v855_v24 = vrot.slane %v854_v20, 1 }
 0x138   :  { %v856_v6 = vadd.f32 %v855_v24, %v854_v20 }
 0x13a   :  { %v5371_v61 = vmul.f32 0.003816794, %v856_v6 }
 0x13c   :  { %v858_v5 = vsub.f32 %v5121_v44, %v5371_v61  ;;  %v859_v15 = vsub.f32 %v5129_v48, %v5371_v61  ;;  %v860_v19 = vsub.f32 %v5119_v43, %v5371_v61  ;;  %v861_v55 = vsub.f32 %v5125_v46, %v5371_v61 }
 0x13d   :  { %v862_v20 = vsub.f32 %v5144_v58, %v5371_v61  ;;  %v863_v54 = vsub.f32 %v5156_v3, %v5371_v61  ;;  %v864_v62 = vsub.f32 %v5141_v56, %v5371_v61  ;;  %v865_v50 = vsub.f32 %v5151_v63, %v5371_v61 }
 0x13e   :  { %v898_v10 = vmul.f32 %v858_v5, %v5091_v29  ;;  %v899_v8 = vmul.f32 %v859_v15, %v5095_v31  ;;  %v900_v6 = vmul.f32 %v860_v19, %v5093_v30  ;;  %v901_v24 = vmul.f32 %v861_v55, %v5097_v32 }
 0x13f   :  { %v902_v17 = vmul.f32 %v862_v20, %v5099_v33  ;;  %v903_v2 = vmul.f32 %v863_v54, %v5101_v34  ;;  %v866_v55 = vsub.f32 %v5170_v13, %v5371_v61  ;;  %v867_v33 = vsub.f32 %v5180_v21, %v5371_v61 }
 0x140   :  { %v938_v28 = vmul.f32 %v898_v10, %v898_v10  ;;  %v939_v60 = vmul.f32 %v899_v8, %v899_v8  ;;  %v940_v22 = vmul.f32 %v900_v6, %v900_v6  ;;  %v941_v53 = vmul.f32 %v901_v24, %v901_v24 }
 0x141   :  { %v904_v10 = vmul.f32 %v864_v62, %v5103_v35  ;;  %v942_v8 = vmul.f32 %v902_v17, %v902_v17  ;;  %v905_v54 = vmul.f32 %v865_v50, %v5105_v36  ;;  %v943_v24 = vmul.f32 %v903_v2, %v903_v2 }
 0x142   :  { %v978_v5 = vsel %vm771_vm2, %v938_v28, 0.0  ;;  %v979_v15 = vsel %vm771_vm2, %v939_v60, 0.0  ;;  %v981_v20 = vsel %vm771_vm2, %v940_v22, 0.0  ;;  %v983_v28 = vsel %vm771_vm2, %v941_v53, 0.0 }
 0x143   :  { %v980_v19 = vadd.f32 %v979_v15, %v978_v5  ;;  %v868_v60 = vsub.f32 %v5167_v11, %v5371_v61  ;;  %v906_v5 = vmul.f32 %v866_v55, %v5107_v37  ;;  %v944_v15 = vmul.f32 %v904_v10, %v904_v10 }
 0x144   :  { %v985_v62 = vsel %vm771_vm2, %v942_v8, 0.0  ;;  %v869_v22 = vsub.f32 %v5177_v18, %v5371_v61  ;;  %v987_v50 = vsel %vm771_vm2, %v943_v24, 0.0  ;;  %v870_v53 = vsub.f32 %v5196_v52, %v5371_v61 }
 0x145   :  { %v982_v6 = vadd.f32 %v981_v20, %v980_v19  ;;  %v907_v19 = vmul.f32 %v867_v33, %v5109_v38  ;;  %v945_v20 = vmul.f32 %v905_v54, %v905_v54  ;;  %v989_v55 = vsel %vm771_vm2, %v944_v15, 0.0 }
 0x146   :  { %v909_v8 = vmul.f32 %v869_v22, %v5113_v40  ;;  %v872_v24 = vsub.f32 %v5193_v49, %v5371_v61  ;;  %v873_v15 = vsub.f32 %v5201_v57, %v5371_v61 }
 0x147   :  { %v984_v34 = vadd.f32 %v983_v28, %v982_v6  ;;  %v908_v6 = vmul.f32 %v868_v60, %v5111_v39  ;;  %v946_v28 = vmul.f32 %v906_v5, %v906_v5  ;;  %v991_v33 = vsel %vm771_vm2, %v945_v20, 0.0 }
 0x148   :  { %v874_v20 = vsub.f32 %v5220_v16, %v5371_v61 }
 0x149   :  { %v986_v17 = vadd.f32 %v985_v62, %v984_v34  ;;  %v871_v34 = vsub.f32 %v5206_v1, %v5371_v61  ;;  %v947_v62 = vmul.f32 %v907_v19, %v907_v19  ;;  %v993_v60 = vsel %vm771_vm2, %v946_v28, 0.0 }
 0x14a   :  { %v875_v28 = vsub.f32 %v5232_v45, %v5371_v61 }
 0x14b   :  { %v988_v2 = vadd.f32 %v987_v50, %v986_v17  ;;  %v910_v17 = vmul.f32 %v870_v53, %v5115_v41  ;;  %v948_v50 = vmul.f32 %v908_v6, %v908_v6  ;;  %v995_v22 = vsel %vm771_vm2, %v947_v62, 0.0  ;;  %v7391_v41 = vld [vmem:[#allocation29_spill] sm:$0xff] }
 0x14c   :  { %v876_v62 = vsub.f32 %v5217_v12, %v5371_v61 }
 0x14d   :  { %v990_v10 = vadd.f32 %v989_v55, %v988_v2  ;;  %v911_v2 = vmul.f32 %v871_v34, %v5117_v42  ;;  %v949_v55 = vmul.f32 %v909_v8, %v909_v8  ;;  %v997_v53 = vsel %vm771_vm2, %v948_v50, 0.0 }
 0x14f   :  { %v992_v54 = vadd.f32 %v991_v33, %v990_v10  ;;  %v912_v10 = vmul.f32 %v872_v24, %v5127_v47  ;;  %v950_v33 = vmul.f32 %v910_v17, %v910_v17  ;;  %v999_v34 = vsel %vm771_vm2, %v949_v55, 0.0  ;;  %v4666_v17 = vld [vmem:[%s7215_s4 + $0x20] sm:$0xff]   ;;  %v7390_v47 = vld [vmem:[#allocation41_spill] sm:$0xff] }
 0x150   :  { %4259 = vmatprep.subr.bf16.mxu0 %v4666_v17  ;;  %4511 = vmatprep.subr.bf16.mxu1 %v4666_v17  ;;  %v886_v42 = vsub.f32 %v7390_v47, %v5371_v61 }
 0x151   :  { %v994_v5 = vadd.f32 %v993_v60, %v992_v54  ;;  %v913_v54 = vmul.f32 %v873_v15, %v5135_v51  ;;  %v951_v60 = vmul.f32 %v911_v2, %v911_v2  ;;  %v1001_v24 = vsel %vm771_vm2, %v950_v33, 0.0  ;;  %4260 = vmatpush3.bf16.msra.mxu0 %v4666_v17  ;;  %4515 = vmatpush3.bf16.msra.mxu1 %v4666_v17 }
 0x152   :  { %v877_v15 = vsub.f32 %v5227_v23, %v5371_v61  ;;  %v915_v2 = vmul.f32 %v875_v28, %v5153_v0  ;;  %v878_v33 = vsub.f32 %v5246_v7, %v5371_v61 }
 0x153   :  { %v996_v19 = vadd.f32 %v995_v22, %v994_v5  ;;  %v914_v5 = vmul.f32 %v874_v20, %v5146_v59  ;;  %v952_v22 = vmul.f32 %v912_v10, %v912_v10  ;;  %v953_v55 = vmul.f32 %v913_v54, %v913_v54  ;;  %v4667_v20 = vld [vmem:[%s7215_s4 + $0x28] sm:$0xff]   ;;  %v4668_v54 = vld [vmem:[%s7215_s4 + $0x30] sm:$0xff]  }
 0x154   :  { %4512 = vmatprep.subr.bf16.mxu1 %v4667_v20  ;;  %4261 = vmatprep.subr.bf16.mxu0 %v4667_v20 }
 0x155   :  { %v998_v6 = vadd.f32 %v997_v53, %v996_v19  ;;  %v1003_v19 = vsel %vm771_vm2, %v951_v60, 0.0  ;;  %v916_v53 = vmul.f32 %v876_v62, %v5165_v9  ;;  %v1005_v28 = vsel %vm771_vm2, %v952_v22, 0.0  ;;  %4516 = vmatpush3.bf16.msra.mxu1 %v4667_v20  ;;  %4262 = vmatpush3.bf16.msra.mxu0 %v4667_v20  ;;  %v7378_v62 = vld [vmem:[#allocation30_spill] sm:$0xff]  ;;  %v7379_v22 = vld [vmem:[#allocation23_spill] sm:$0xff] }
 0x156   :  { %v1007_v17 = vsel %vm771_vm2, %v953_v55, 0.0  ;;  %4513 = vmatprep.subr.bf16.mxu1 %v4668_v54  ;;  %4263 = vmatprep.subr.bf16.mxu0 %v4668_v54  ;;  %v7380_v55 = vld [vmem:[#allocation32_spill] sm:$0xff] }
 0x157   :  { %v1000_v8 = vadd.f32 %v999_v34, %v998_v6  ;;  %v954_v6 = vmul.f32 %v914_v5, %v914_v5  ;;  %v879_v34 = vsub.f32 %v5256_v27, %v5371_v61  ;;  %v880_v5 = vsub.f32 %v7378_v62, %v5371_v61 }
 0x158   :  { %v956_v9 = vmul.f32 %v916_v53, %v916_v53 }
 0x159   :  { %v1002_v50 = vadd.f32 %v1001_v24, %v1000_v8  ;;  %v917_v8 = vmul.f32 %v877_v15, %v5172_v14  ;;  %v955_v24 = vmul.f32 %v915_v2, %v915_v2  ;;  %v1009_v0 = vsel %vm771_vm2, %v954_v6, 0.0  ;;  %v4669_v15 = vld [vmem:[%s7215_s4 + $0x38] sm:$0xff]   ;;  %4517 = vmatpush3.bf16.msra.mxu1 %v4668_v54  ;;  %4264 = vmatpush3.bf16.msra.mxu0 %v4668_v54  ;;  %v7383_v6 = vld [vmem:[#allocation25_spill] sm:$0xff] }
 0x15a   :  { %v1013_v51 = vsel %vm771_vm2, %v956_v9, 0.0  ;;  %4514 = vmatprep.subr.bf16.mxu1 %v4669_v15  ;;  %4265 = vmatprep.subr.bf16.mxu0 %v4669_v15  ;;  %v7386_v9 = vld [vmem:[#allocation35_spill] sm:$0xff] }
 0x15b   :  { %v1004_v10 = vadd.f32 %v1003_v19, %v1002_v50  ;;  %v918_v19 = vmul.f32 %v878_v33, %v7379_v22  ;;  %v7382_v33 = vld [vmem:[#allocation36_spill] sm:$0xff]  ;;  %v920_v22 = vmul.f32 %v880_v5, %v7383_v6  ;;  %v5484_v5 = vld [vmem:[%s7215_s4] sm:$0xff]  }
 0x15c   :  { %v882_v53 = vsub.f32 %v7382_v33, %v5371_v61  ;;  %7385 = vst [vmem:[#allocation30_spill] sm:$0xff] %v5484_v5 }
 0x15d   :  { %v1006_v60 = vadd.f32 %v1005_v28, %v1004_v10  ;;  %v881_v10 = vsub.f32 %v7380_v55, %v5371_v61  ;;  %v7381_v28 = vld [vmem:[#allocation24_spill] sm:$0xff]  ;;  %v958_v59 = vmul.f32 %v918_v19, %v918_v19  ;;  %4518 = vmatpush3.bf16.msra.mxu1 %v4669_v15  ;;  %4266 = vmatpush3.bf16.msra.mxu0 %v4669_v15 }
 0x15e   :  { %v919_v20 = vmul.f32 %v879_v34, %v7381_v28  ;;  %v883_v34 = vsub.f32 %v5279_v26, %v5371_v61  ;;  %v884_v19 = vsub.f32 %v7386_v9, %v5371_v61  ;;  %4287 = vmatprep.subr.bf16.mxu1 %v5484_v5  ;;  %v7389_v15 = vld [vmem:[#allocation28_spill] sm:$0xff] }
 0x15f   :  { %v1008_v50 = vadd.f32 %v1007_v17, %v1006_v60  ;;  %v957_v60 = vmul.f32 %v917_v8, %v917_v8  ;;  %v1011_v17 = vsel %vm771_vm2, %v955_v24, 0.0  ;;  %v7384_v8 = vld [vmem:[#allocation26_spill] sm:$0xff]  ;;  %v1017_v6 = vsel %vm771_vm2, %v958_v59, 0.0 }
 0x160   :  { %v959_v24 = vmul.f32 %v919_v20, %v919_v20  ;;  %v7388_v20 = vld [vmem:[#allocation37_spill] sm:$0xff] }
 0x161   :  { %v1010_v2 = vadd.f32 %v1009_v0, %v1008_v50  ;;  %v921_v50 = vmul.f32 %v881_v10, %v7384_v8 }
 0x162   :  { %v1019_v8 = vsel %vm771_vm2, %v959_v24, 0.0 }
 0x163   :  { %v1012_v14 = vadd.f32 %v1011_v17, %v1010_v2  ;;  %v1015_v2 = vsel %vm771_vm2, %v957_v60, 0.0  ;;  %v960_v17 = vmul.f32 %v920_v22, %v920_v22  ;;  %v885_v60 = vsub.f32 %v7388_v20, %v5371_v61 }
 0x165   :  { %v1014_v0 = vadd.f32 %v1013_v51, %v1012_v14  ;;  %v7387_v51 = vld [vmem:[#allocation27_spill] sm:$0xff]  ;;  %v1021_v59 = vsel %vm771_vm2, %v960_v17, 0.0 }
 0x166   :  { %v922_v14 = vmul.f32 %v882_v53, %v7387_v51  ;;  %v924_v53 = vmul.f32 %v884_v19, %v7391_v41  ;;  %v7393_v51 = vld [vmem:[#allocation31_spill] sm:$0xff] }
 0x167   :  { %v1016_v54 = vadd.f32 %v1015_v2, %v1014_v0  ;;  %v923_v0 = vmul.f32 %v883_v34, %v7389_v15  ;;  %v961_v2 = vmul.f32 %v921_v50, %v921_v50  ;;  %v925_v40 = vmul.f32 %v885_v60, %v7393_v51 }
 0x168   :  { %v962_v22 = vmul.f32 %v922_v14, %v922_v14  ;;  %v964_v38 = vmul.f32 %v924_v53, %v924_v53 }
 0x169   :  { %v1018_v10 = vadd.f32 %v1017_v6, %v1016_v54  ;;  %v7392_v54 = vld [vmem:[#allocation44_spill] sm:$0xff]  ;;  %v963_v39 = vmul.f32 %v923_v0, %v923_v0  ;;  %v1023_v34 = vsel %vm771_vm2, %v961_v2, 0.0  ;;  %v965_v37 = vmul.f32 %v925_v40, %v925_v40 }
 0x16a   :  { %v887_v5 = vsub.f32 %v7392_v54, %v5371_v61  ;;  %v1025_v19 = vsel %vm771_vm2, %v962_v22, 0.0  ;;  %v7398_v2 = vld [vmem:[#allocation48_spill] sm:$0xff]  ;;  %v7400_v22 = vld [vmem:[#allocation51_spill] sm:$0xff] }
 0x16b   :  { %v1020_v28 = vadd.f32 %v1019_v8, %v1018_v10  ;;  %v7394_v8 = vld [vmem:[#allocation40_spill] sm:$0xff]  ;;  %v7395_v10 = vld [vmem:[#allocation33_spill] sm:$0xff]  ;;  %v1027_v60 = vsel %vm771_vm2, %v963_v39, 0.0  ;;  %v1031_v40 = vsel %vm771_vm2, %v965_v37, 0.0  ;;  %v7402_v39 = vld [vmem:[#allocation47_spill] sm:$0xff] }
 0x16c   :  { %v888_v24 = vsub.f32 %v7394_v8, %v5371_v61  ;;  %v926_v15 = vmul.f32 %v886_v42, %v7395_v10  ;;  %v1029_v42 = vsel %vm771_vm2, %v964_v38, 0.0  ;;  %v7404_v38 = vld [vmem:[#allocation50_spill] sm:$0xff]  ;;  %v7406_v37 = vld [vmem:[#allocation55_spill] sm:$0xff] }
 0x16d   :  { %v1022_v6 = vadd.f32 %v1021_v59, %v1020_v28  ;;  %v7396_v28 = vld [vmem:[#allocation43_spill] sm:$0xff]  ;;  %v7397_v59 = vld [vmem:[#allocation34_spill] sm:$0xff] }
 0x16e   :  { %v889_v17 = vsub.f32 %v7396_v28, %v5371_v61  ;;  %v927_v41 = vmul.f32 %v887_v5, %v7397_v59  ;;  %v966_v36 = vmul.f32 %v926_v15, %v926_v15 }
 0x16f   :  { %v1024_v50 = vadd.f32 %v1023_v34, %v1022_v6  ;;  %v890_v6 = vsub.f32 %v7398_v2, %v5371_v61  ;;  %v7399_v34 = vld [vmem:[#allocation38_spill] sm:$0xff] }
 0x170   :  { %v928_v51 = vmul.f32 %v888_v24, %v7399_v34  ;;  %v967_v35 = vmul.f32 %v927_v41, %v927_v41  ;;  %v1033_v15 = vsel %vm771_vm2, %v966_v36, 0.0  ;;  %v7408_v36 = vld [vmem:[#allocation56_spill] sm:$0xff] }
 0x171   :  { %v1026_v14 = vadd.f32 %v1025_v19, %v1024_v50  ;;  %v891_v50 = vsub.f32 %v7400_v22, %v5371_v61  ;;  %v7401_v19 = vld [vmem:[#allocation39_spill] sm:$0xff] }
 0x172   :  { %v929_v10 = vmul.f32 %v889_v17, %v7401_v19  ;;  %v968_v32 = vmul.f32 %v928_v51, %v928_v51  ;;  %v1035_v41 = vsel %vm771_vm2, %v967_v35, 0.0  ;;  %v7410_v35 = vld [vmem:[#allocation54_spill] sm:$0xff] }
 0x173   :  { %v1028_v0 = vadd.f32 %v1027_v60, %v1026_v14  ;;  %v892_v14 = vsub.f32 %v7402_v39, %v5371_v61  ;;  %v7403_v60 = vld [vmem:[#allocation42_spill] sm:$0xff] }
 0x174   :  { %v930_v59 = vmul.f32 %v890_v6, %v7403_v60  ;;  %v969_v30 = vmul.f32 %v929_v10, %v929_v10  ;;  %v1037_v51 = vsel %vm771_vm2, %v968_v32, 0.0  ;;  %v897_v32 = vsub.f32 %v5352_v4, %v5371_v61 }
 0x175   :  { %v1030_v53 = vadd.f32 %v1029_v42, %v1028_v0  ;;  %v893_v0 = vsub.f32 %v7404_v38, %v5371_v61  ;;  %v7405_v42 = vld [vmem:[#allocation45_spill] sm:$0xff] }
 0x176   :  { %v931_v34 = vmul.f32 %v891_v50, %v7405_v42  ;;  %v970_v31 = vmul.f32 %v930_v59, %v930_v59  ;;  %v1039_v10 = vsel %vm771_vm2, %v969_v30, 0.0  ;;  %v7413_v30 = vld [vmem:[#allocation57_spill] sm:$0xff] }
 0x177   :  { %v1032_v5 = vadd.f32 %v1031_v40, %v1030_v53  ;;  %v894_v53 = vsub.f32 %v7406_v37, %v5371_v61  ;;  %v7407_v40 = vld [vmem:[#allocation46_spill] sm:$0xff] }
 0x178   :  { %v932_v19 = vmul.f32 %v892_v14, %v7407_v40  ;;  %v971_v29 = vmul.f32 %v931_v34, %v931_v34  ;;  %v1041_v59 = vsel %vm771_vm2, %v970_v31, 0.0 }
 0x179   :  { %v1034_v24 = vadd.f32 %v1033_v15, %v1032_v5  ;;  %v895_v5 = vsub.f32 %v7408_v36, %v5371_v61  ;;  %v7409_v15 = vld [vmem:[#allocation49_spill] sm:$0xff] }
 0x17a   :  { %v933_v60 = vmul.f32 %v893_v0, %v7409_v15  ;;  %v972_v37 = vmul.f32 %v932_v19, %v932_v19  ;;  %v1043_v34 = vsel %vm771_vm2, %v971_v29, 0.0  ;;  %v937_v19 = vmul.f32 %v897_v32, %v5364_v25 }
 0x17b   :  { %v1036_v17 = vadd.f32 %v1035_v41, %v1034_v24  ;;  %v896_v24 = vsub.f32 %v7410_v35, %v5371_v61  ;;  %v7411_v41 = vld [vmem:[#allocation52_spill] sm:$0xff] }
 0x17c   :  { %v934_v42 = vmul.f32 %v894_v53, %v7411_v41  ;;  %v973_v40 = vmul.f32 %v933_v60, %v933_v60  ;;  %v1045_v15 = vsel %vm771_vm2, %v972_v37, 0.0  ;;  %v977_v60 = vmul.f32 %v937_v19, %v937_v19  ;;  %v529_v19 = vld [vmem:[%s7216_s2] sm:$0x1] }
 0x17d   :  { %v1038_v6 = vadd.f32 %v1037_v51, %v1036_v17  ;;  %v7412_v17 = vld [vmem:[#allocation53_spill] sm:$0xff] }
 0x17e   :  { %v935_v51 = vmul.f32 %v895_v5, %v7412_v17  ;;  %v1047_v31 = vsel %vm771_vm2, %v973_v40, 0.0  ;;  %v1055_v37 = vsel %vm771_vm2, %v977_v60, 0.0 }
 0x17f   :  { %v1040_v50 = vadd.f32 %v1039_v10, %v1038_v6  ;;  %v936_v6 = vmul.f32 %v896_v24, %v7413_v30  ;;  %v974_v10 = vmul.f32 %v934_v42, %v934_v42 }
 0x180   :  { %v975_v53 = vmul.f32 %v935_v51, %v935_v51 }
 0x181   :  { %v1042_v14 = vadd.f32 %v1041_v59, %v1040_v50  ;;  %v976_v59 = vmul.f32 %v936_v6, %v936_v6  ;;  %v1049_v41 = vsel %vm771_vm2, %v974_v10, 0.0 }
 0x182   :  { %v1051_v29 = vsel %vm771_vm2, %v975_v53, 0.0 }
 0x183   :  { %v1044_v0 = vadd.f32 %v1043_v34, %v1042_v14  ;;  %v1053_v24 = vsel %vm771_vm2, %v976_v59, 0.0 }
 0x185   :  { %v1046_v35 = vadd.f32 %v1045_v15, %v1044_v0 }
 0x187   :  { %v1048_v50 = vadd.f32 %v1047_v31, %v1046_v35 }
 0x189   :  { %v1050_v5 = vadd.f32 %v1049_v41, %v1048_v50  ;;  %v1070_v41 = vlaneseq }
 0x18b   :  { %v1052_v14 = vadd.f32 %v1051_v29, %v1050_v5  ;;  %v1071_v10 = vshrl.u32 %v1070_v41, 7  ;;  %v530_v5 = vld [vmem:[%s7217_s3] sm:$0x1]  ;;  %v7415_v41 = vld [vmem:[#allocation54_spill] sm:$0xff] }
 0x18d   :  { %v1054_v42 = vadd.f32 %v1053_v24, %v1052_v14  ;;  %v5554_v53 = vsub.s32 0, %v1071_v10 }
 0x18f   :  { %v1056_v15 = vadd.f32 %v1055_v37, %v1054_v42 }
 0x191   :  { %v1057_v34 = vrot.slane %v1056_v15, 4 }
 0x193   :  { %v1058_v32 = vadd.f32 %v1057_v34, %v1056_v15 }
 0x195   :  { %v1059_v51 = vrot.slane %v1058_v32, 2 }
 0x197   :  { %v1060_v0 = vadd.f32 %v1059_v51, %v1058_v32 }
 0x199   :  { %v1061_v40 = vrot.slane %v1060_v0, 1 }
 0x19b   :  { %v1062_v35 = vadd.f32 %v1061_v40, %v1060_v0 }
 0x19d   :  { %v1063_v6 = vmul.f32 0.003816794, %v1062_v35 }
 0x19f   :  { %v1064_v31 = vadd.f32 1e-05, %v1063_v6 }
 0x1a1   :  { %4702 = vrsqrt.f32 %v1064_v31 }
 0x1ab   :  { %v4703_v50 = vpop.eup %4702 }
 0x1ac   :  { %v1066_v59 = vmul.f32 %v4703_v50, %v529_v19 }
 0x1ae   :  { %v1067_v60 = vmul.f32 %v1066_v59, %v5371_v61  ;;  %v1073_v29 = vrot.slane %v1066_v59, %v5554_v53 }
 0x1b0   :  { %v1068_v14 = vsub.f32 %v530_v5, %v1067_v60  ;;  %v1112_v24 = vmul.f32 %v1073_v29, %v7408_v36  ;;  %v1075_v42 = vmul.f32 %v1073_v29, %v5121_v44  ;;  %v1076_v37 = vmul.f32 %v1073_v29, %v5129_v48 }
 0x1b1   :  { %v1077_v15 = vmul.f32 %v5119_v43, %v1073_v29  ;;  %v1078_v34 = vmul.f32 %v5125_v46, %v1073_v29  ;;  %v1079_v32 = vmul.f32 %v1073_v29, %v5144_v58  ;;  %v1080_v51 = vmul.f32 %v1073_v29, %v5156_v3 }
 0x1b2   :  { %v5569_v0 = vrot.slane %v1068_v14, %v5554_v53  ;;  %v1081_v61 = vmul.f32 %v5141_v56, %v1073_v29  ;;  %v1082_v40 = vmul.f32 %v5151_v63, %v1073_v29  ;;  %v1083_v36 = vmul.f32 %v1073_v29, %v5170_v13 }
 0x1b3   :  { %v1084_v44 = vmul.f32 %v1073_v29, %v5180_v21  ;;  %v1085_v48 = vmul.f32 %v5167_v11, %v1073_v29  ;;  %v1086_v43 = vmul.f32 %v5177_v18, %v1073_v29  ;;  %v1087_v46 = vmul.f32 %v1073_v29, %v5196_v52 }
 0x1b4   :  { %v1158_v58 = vadd.f32 %v5569_v0, %v1112_v24  ;;  %v1088_v3 = vmul.f32 %v1073_v29, %v5206_v1  ;;  %v1089_v35 = vmul.f32 %v5193_v49, %v1073_v29  ;;  %v1090_v56 = vmul.f32 %v5201_v57, %v1073_v29 }
 0x1b5   :  { %v1091_v63 = vmul.f32 %v1073_v29, %v5220_v16  ;;  %v1092_v13 = vmul.f32 %v1073_v29, %v5232_v45  ;;  %v1093_v21 = vmul.f32 %v5217_v12, %v1073_v29  ;;  %v1094_v11 = vmul.f32 %v5227_v23, %v1073_v29 }
 0x1b6   :  { %v1198_v6 = vmax.f32 %v1158_v58, 0.0  ;;  %v1095_v18 = vmul.f32 %v1073_v29, %v5246_v7  ;;  %v1096_v52 = vmul.f32 %v1073_v29, %v5256_v27  ;;  %v1097_v31 = vmul.f32 %v7378_v62, %v1073_v29 }
 0x1b7   :  { %v1098_v1 = vmul.f32 %v7380_v55, %v1073_v29  ;;  %v1099_v49 = vmul.f32 %v1073_v29, %v7382_v33  ;;  %v1100_v57 = vmul.f32 %v1073_v29, %v5279_v26  ;;  %v1101_v16 = vmul.f32 %v7386_v9, %v1073_v29 }
 0x1b8   :  { %v1238_v45 = vmul.f32 %v1198_v6, %v7412_v17  ;;  %v1102_v12 = vmul.f32 %v7388_v20, %v1073_v29  ;;  %v1103_v23 = vmul.f32 %v1073_v29, %v7390_v47  ;;  %v1104_v7 = vmul.f32 %v1073_v29, %v7392_v54  ;;  %v7414_v17 = vld [vmem:[#allocation55_spill] sm:$0xff] }
 0x1b9   :  { %v1105_v27 = vmul.f32 %v7394_v8, %v1073_v29  ;;  %v1106_v62 = vmul.f32 %v7396_v28, %v1073_v29  ;;  %v1107_v55 = vmul.f32 %v1073_v29, %v7398_v2  ;;  %v1108_v33 = vmul.f32 %v1073_v29, %v7400_v22 }
 0x1ba   :  { %1278 = vst.msk [vmem:[#allocation2 + $0x128] sm:$0xff] %vm771_vm2, %v1238_v45  ;;  %v1109_v26 = vmul.f32 %v7402_v39, %v1073_v29  ;;  %v1110_v9 = vmul.f32 %v7404_v38, %v1073_v29  ;;  %v1111_v20 = vmul.f32 %v1073_v29, %v7414_v17  ;;  %v1113_v47 = vmul.f32 %v7415_v41, %v1073_v29 }
 0x1bb   :  { %v1114_v54 = vmul.f32 %v5352_v4, %v1073_v29  ;;  %v5608_v8 = vadd.f32 %v5569_v0, %v1075_v42  ;;  %v5611_v28 = vadd.f32 %v5569_v0, %v1076_v37  ;;  %v5614_v2 = vadd.f32 %v5569_v0, %v1077_v15 }
 0x1bc   :  { %v5617_v22 = vadd.f32 %v5569_v0, %v1078_v34  ;;  %v5620_v39 = vadd.f32 %v5569_v0, %v1079_v32  ;;  %v5623_v38 = vadd.f32 %v5569_v0, %v1080_v51  ;;  %v5626_v4 = vadd.f32 %v5569_v0, %v1081_v61 }
 0x1bd   :  { %v5629_v10 = vadd.f32 %v5569_v0, %v1082_v40  ;;  %v5632_v19 = vadd.f32 %v5569_v0, %v1083_v36  ;;  %v5635_v50 = vadd.f32 %v5569_v0, %v1084_v44  ;;  %v5638_v59 = vadd.f32 %v5569_v0, %v1085_v48 }
 0x1be   :  { %v5641_v5 = vadd.f32 %v5569_v0, %v1086_v43  ;;  %v5644_v60 = vadd.f32 %v5569_v0, %v1087_v46  ;;  %v5647_v29 = vadd.f32 %v5569_v0, %v1088_v3  ;;  %v5650_v14 = vadd.f32 %v5569_v0, %v1089_v35 }
 0x1bf   :  { %v5653_v24 = vadd.f32 %v5569_v0, %v1090_v56  ;;  %v5656_v42 = vadd.f32 %v5569_v0, %v1091_v63  ;;  %v5659_v37 = vadd.f32 %v5569_v0, %v1092_v13  ;;  %v5662_v15 = vadd.f32 %v5569_v0, %v1093_v21 }
 0x1c0   :  { %v5665_v34 = vadd.f32 %v5569_v0, %v1094_v11  ;;  %v5668_v32 = vadd.f32 %v5569_v0, %v1095_v18  ;;  %v5671_v51 = vadd.f32 %v5569_v0, %v1096_v52  ;;  %v5674_v61 = vadd.f32 %v5569_v0, %v1097_v31 }
 0x1c1   :  { %v5677_v40 = vadd.f32 %v5569_v0, %v1098_v1  ;;  %v5680_v36 = vadd.f32 %v5569_v0, %v1099_v49  ;;  %v5683_v44 = vadd.f32 %v5569_v0, %v1100_v57  ;;  %v5686_v48 = vadd.f32 %v5569_v0, %v1101_v16 }
 0x1c2   :  { %v5689_v43 = vadd.f32 %v5569_v0, %v1102_v12  ;;  %v5692_v46 = vadd.f32 %v5569_v0, %v1103_v23  ;;  %v5695_v58 = vadd.f32 %v5569_v0, %v1104_v7  ;;  %v5698_v3 = vadd.f32 %v5569_v0, %v1105_v27 }
 0x1c3   :  { %v5701_v35 = vadd.f32 %v5569_v0, %v1106_v62  ;;  %v5704_v56 = vadd.f32 %v5569_v0, %v1107_v55  ;;  %v5707_v63 = vadd.f32 %v5569_v0, %v1108_v33  ;;  %v5710_v13 = vadd.f32 %v5569_v0, %v1109_v26 }
 0x1c4   :  { %v5713_v21 = vadd.f32 %v5569_v0, %v1110_v9  ;;  %v5716_v11 = vadd.f32 %v5569_v0, %v1111_v20  ;;  %v5719_v6 = vadd.f32 %v5569_v0, %v1113_v47  ;;  %v5722_v18 = vadd.f32 %v5569_v0, %v1114_v54 }
 0x1c5   :  { %v1161_v52 = vmax.f32 %v5608_v8, 0.0  ;;  %v1162_v31 = vmax.f32 %v5611_v28, 0.0  ;;  %v1163_v1 = vmax.f32 %v5614_v2, 0.0  ;;  %v1164_v49 = vmax.f32 %v5617_v22, 0.0 }
 0x1c6   :  { %v1165_v57 = vmax.f32 %v5620_v39, 0.0  ;;  %v1166_v16 = vmax.f32 %v5623_v38, 0.0  ;;  %v1167_v45 = vmax.f32 %v5626_v4, 0.0  ;;  %v1168_v12 = vmax.f32 %v5629_v10, 0.0 }
 0x1c7   :  { %v1169_v23 = vmax.f32 %v5632_v19, 0.0  ;;  %v1170_v0 = vmax.f32 %v5635_v50, 0.0  ;;  %v1171_v7 = vmax.f32 %v5638_v59, 0.0  ;;  %v1172_v27 = vmax.f32 %v5641_v5, 0.0 }
 0x1c8   :  { %v1173_v62 = vmax.f32 %v5644_v60, 0.0  ;;  %v1174_v55 = vmax.f32 %v5647_v29, 0.0  ;;  %v1175_v33 = vmax.f32 %v5650_v14, 0.0  ;;  %v1176_v26 = vmax.f32 %v5653_v24, 0.0  ;;  %v7424_v14 = vld [vmem:[#allocation11_spill] sm:$0xff] }
 0x1c9   :  { %v1177_v9 = vmax.f32 %v5656_v42, 0.0  ;;  %v1178_v17 = vmax.f32 %v5659_v37, 0.0  ;;  %v1179_v20 = vmax.f32 %v5662_v15, 0.0  ;;  %v1180_v41 = vmax.f32 %v5665_v34, 0.0  ;;  %v7416_v37 = vld [vmem:[#allocation3_spill] sm:$0xff]  ;;  %v7417_v34 = vld [vmem:[#allocation5_spill] sm:$0xff] }
 0x1ca   :  { %v1181_v47 = vmax.f32 %v5668_v32, 0.0  ;;  %v1182_v54 = vmax.f32 %v5671_v51, 0.0  ;;  %v1183_v8 = vmax.f32 %v5674_v61, 0.0  ;;  %v1184_v28 = vmax.f32 %v5677_v40, 0.0  ;;  %v7418_v51 = vld [vmem:[#allocation4_spill] sm:$0xff]  ;;  %v7419_v40 = vld [vmem:[#allocation6_spill] sm:$0xff] }
 0x1cb   :  { %v1185_v2 = vmax.f32 %v5680_v36, 0.0  ;;  %v1186_v22 = vmax.f32 %v5683_v44, 0.0  ;;  %v1187_v39 = vmax.f32 %v5686_v48, 0.0  ;;  %v1188_v38 = vmax.f32 %v5689_v43, 0.0  ;;  %v7420_v44 = vld [vmem:[#allocation7_spill] sm:$0xff]  ;;  %v7421_v43 = vld [vmem:[#allocation8_spill] sm:$0xff] }
 0x1cc   :  { %v1189_v4 = vmax.f32 %v5692_v46, 0.0  ;;  %v1190_v10 = vmax.f32 %v5695_v58, 0.0  ;;  %v1191_v19 = vmax.f32 %v5698_v3, 0.0  ;;  %v1192_v50 = vmax.f32 %v5701_v35, 0.0  ;;  %v7422_v58 = vld [vmem:[#allocation9_spill] sm:$0xff]  ;;  %v7423_v35 = vld [vmem:[#allocation10_spill] sm:$0xff] }
 0x1cd   :  { %v1193_v59 = vmax.f32 %v5704_v56, 0.0  ;;  %v1194_v5 = vmax.f32 %v5707_v63, 0.0  ;;  %v1195_v60 = vmax.f32 %v5710_v13, 0.0  ;;  %v1196_v29 = vmax.f32 %v5713_v21, 0.0  ;;  %v7425_v42 = vld [vmem:[#allocation12_spill] sm:$0xff] }
 0x1ce   :  { %v1201_v15 = vmul.f32 %v1161_v52, %v7416_v37  ;;  %v1202_v32 = vmul.f32 %v1162_v31, %v7417_v34  ;;  %v1203_v61 = vmul.f32 %v1163_v1, %v7418_v51  ;;  %v1204_v36 = vmul.f32 %v1164_v49, %v7419_v40  ;;  %v7426_v37 = vld [vmem:[#allocation13_spill] sm:$0xff]  ;;  %v7427_v34 = vld [vmem:[#allocation14_spill] sm:$0xff]  ;;  %v7428_v51 = vld [vmem:[#allocation15_spill] sm:$0xff] }
 0x1cf   :  { %v1205_v48 = vmul.f32 %v1165_v57, %v7420_v44  ;;  %v1206_v46 = vmul.f32 %v1166_v16, %v7421_v43  ;;  %v1207_v3 = vmul.f32 %v1167_v45, %v7422_v58  ;;  %v1208_v56 = vmul.f32 %v1168_v12, %v7423_v35  ;;  %v7429_v57 = vld [vmem:[#allocation16_spill] sm:$0xff]  ;;  %v7430_v45 = vld [vmem:[#allocation17_spill] sm:$0xff]  ;;  %v7440_v44 = vld [vmem:[#allocation27_spill] sm:$0xff] }
 0x1d0   :  { %v1209_v24 = vmul.f32 %v1169_v23, %v7424_v14  ;;  %1241 = vst.msk [vmem:[#allocation2] sm:$0xff] %vm771_vm2, %v1201_v15  ;;  %v1210_v52 = vmul.f32 %v1170_v0, %v7425_v42  ;;  %v1211_v31 = vmul.f32 %v1171_v7, %v7426_v37  ;;  %v1212_v1 = vmul.f32 %v1172_v27, %v7427_v34  ;;  %v7431_v23 = vld [vmem:[#allocation18_spill] sm:$0xff]  ;;  %v7432_v14 = vld [vmem:[#allocation19_spill] sm:$0xff]  ;;  %v7433_v27 = vld [vmem:[#allocation20_spill] sm:$0xff] }
 0x1d1   :  { %v1213_v49 = vmul.f32 %v1173_v62, %v7428_v51  ;;  %1242 = vst.msk [vmem:[#allocation2 + $0x8] sm:$0xff] %vm771_vm2, %v1202_v32  ;;  %1243 = vst.msk [vmem:[#allocation2 + $0x10] sm:$0xff] %vm771_vm2, %v1203_v61  ;;  %v1214_v16 = vmul.f32 %v1174_v55, %v7429_v57  ;;  %v1215_v12 = vmul.f32 %v1175_v33, %v7430_v45  ;;  %v7434_v42 = vld [vmem:[#allocation21_spill] sm:$0xff]  ;;  %v7435_v32 = vld [vmem:[#allocation22_spill] sm:$0xff]  ;;  %v7454_v63 = vmax.f32 %v5719_v6, 0.0 }
 0x1d2   :  { %1244 = vst.msk [vmem:[#allocation2 + $0x18] sm:$0xff] %vm771_vm2, %v1204_v36  ;;  %1245 = vst.msk [vmem:[#allocation2 + $0x20] sm:$0xff] %vm771_vm2, %v1205_v48  ;;  %v1216_v0 = vmul.f32 %v1176_v26, %v7431_v23  ;;  %v1217_v7 = vmul.f32 %v1177_v9, %v7432_v14  ;;  %v1218_v62 = vmul.f32 %v1178_v17, %v7433_v27  ;;  %v7436_v61 = vld [vmem:[#allocation23_spill] sm:$0xff]  ;;  %v7437_v26 = vld [vmem:[#allocation24_spill] sm:$0xff]  ;;  %v7455_v21 = vmax.f32 %v5722_v18, 0.0 }
 0x1d3   :  { %1246 = vst.msk [vmem:[#allocation2 + $0x28] sm:$0xff] %vm771_vm2, %v1206_v46  ;;  %1247 = vst.msk [vmem:[#allocation2 + $0x30] sm:$0xff] %vm771_vm2, %v1207_v3  ;;  %v1219_v15 = vmul.f32 %v1179_v20, %v7434_v42  ;;  %v1220_v55 = vmul.f32 %v1180_v41, %v7435_v32  ;;  %v1221_v33 = vmul.f32 %v1181_v47, %v7436_v61  ;;  %v7438_v40 = vld [vmem:[#allocation25_spill] sm:$0xff]  ;;  %v7439_v36 = vld [vmem:[#allocation26_spill] sm:$0xff] }
 0x1d4   :  { %1248 = vst.msk [vmem:[#allocation2 + $0x38] sm:$0xff] %vm771_vm2, %v1208_v56  ;;  %1249 = vst.msk [vmem:[#allocation2 + $0x40] sm:$0xff] %vm771_vm2, %v1209_v24  ;;  %v1222_v9 = vmul.f32 %v1182_v54, %v7437_v26  ;;  %v1223_v24 = vmul.f32 %v1183_v8, %v7438_v40  ;;  %v1224_v17 = vmul.f32 %v1184_v28, %v7439_v36  ;;  %v7441_v41 = vld [vmem:[#allocation28_spill] sm:$0xff]  ;;  %v7442_v48 = vld [vmem:[#allocation29_spill] sm:$0xff] }
 0x1d5   :  { %1250 = vst.msk [vmem:[#allocation2 + $0x48] sm:$0xff] %vm771_vm2, %v1210_v52  ;;  %1251 = vst.msk [vmem:[#allocation2 + $0x50] sm:$0xff] %vm771_vm2, %v1211_v31  ;;  %v1225_v20 = vmul.f32 %v1185_v2, %v7440_v44  ;;  %v1226_v47 = vmul.f32 %v1186_v22, %v7441_v41  ;;  %v1227_v43 = vmul.f32 %v1187_v39, %v7442_v48  ;;  %v7443_v46 = vld [vmem:[#allocation31_spill] sm:$0xff]  ;;  %v7444_v58 = vld [vmem:[#allocation33_spill] sm:$0xff]  ;;  %v7453_v31 = vmax.f32 %v5716_v11, 0.0 }
 0x1d6   :  { %1252 = vst.msk [vmem:[#allocation2 + $0x58] sm:$0xff] %vm771_vm2, %v1212_v1  ;;  %1253 = vst.msk [vmem:[#allocation2 + $0x60] sm:$0xff] %vm771_vm2, %v1213_v49  ;;  %v1228_v54 = vmul.f32 %v1188_v38, %v7443_v46  ;;  %v1229_v8 = vmul.f32 %v1189_v4, %v7444_v58  ;;  %v7445_v28 = vld [vmem:[#allocation34_spill] sm:$0xff]  ;;  %v7447_v56 = vld [vmem:[#allocation39_spill] sm:$0xff]  ;;  %v1239_v13 = vmul.f32 %v7454_v63, %v7413_v30 }
 0x1d7   :  { %1254 = vst.msk [vmem:[#allocation2 + $0x68] sm:$0xff] %vm771_vm2, %v1214_v16  ;;  %1255 = vst.msk [vmem:[#allocation2 + $0x70] sm:$0xff] %vm771_vm2, %v1215_v12  ;;  %v1230_v2 = vmul.f32 %v1190_v10, %v7445_v28  ;;  %v7446_v3 = vld [vmem:[#allocation38_spill] sm:$0xff]  ;;  %v1232_v22 = vmul.f32 %v1192_v50, %v7447_v56  ;;  %v7449_v38 = vld [vmem:[#allocation45_spill] sm:$0xff] }
 0x1d8   :  { %1256 = vst.msk [vmem:[#allocation2 + $0x78] sm:$0xff] %vm771_vm2, %v1216_v0  ;;  %1257 = vst.msk [vmem:[#allocation2 + $0x80] sm:$0xff] %vm771_vm2, %v1217_v7  ;;  %v1231_v35 = vmul.f32 %v1191_v19, %v7446_v3  ;;  %v7448_v52 = vld [vmem:[#allocation42_spill] sm:$0xff]  ;;  %v1234_v4 = vmul.f32 %v1194_v5, %v7449_v38  ;;  %v7451_v19 = vld [vmem:[#allocation49_spill] sm:$0xff]  ;;  %v1240_v5 = vmul.f32 %v7455_v21, %v5364_v25 }
 0x1d9   :  { %1258 = vst.msk [vmem:[#allocation2 + $0x88] sm:$0xff] %vm771_vm2, %v1218_v62  ;;  %1259 = vst.msk [vmem:[#allocation2 + $0x90] sm:$0xff] %vm771_vm2, %v1219_v15  ;;  %v1233_v39 = vmul.f32 %v1193_v59, %v7448_v52  ;;  %v7450_v37 = vld [vmem:[#allocation46_spill] sm:$0xff]  ;;  %v1236_v50 = vmul.f32 %v1196_v29, %v7451_v19  ;;  %v7452_v59 = vld [vmem:[#allocation52_spill] sm:$0xff] }
 0x1da   :  { %1260 = vst.msk [vmem:[#allocation2 + $0x98] sm:$0xff] %vm771_vm2, %v1220_v55  ;;  %1261 = vst.msk [vmem:[#allocation2 + $0xa0] sm:$0xff] %vm771_vm2, %v1221_v33  ;;  %v1235_v10 = vmul.f32 %v1195_v60, %v7450_v37  ;;  %v1237_v34 = vmul.f32 %v7453_v31, %v7452_v59  ;;  %v1281_v11 = vld [vmem:[#allocation2] ss:$2 sm:$0xff]  ;;  %v1283_v60 = vld [vmem:[#allocation2 + $0x10] ss:$2 sm:$0xff] }
 0x1db   :  { %1262 = vst.msk [vmem:[#allocation2 + $0xa8] sm:$0xff] %vm771_vm2, %v1222_v9  ;;  %1263 = vst.msk [vmem:[#allocation2 + $0xb0] sm:$0xff] %vm771_vm2, %v1223_v24  ;;  %v1321_v29 = vld [vmem:[#allocation2 + $0x1] ss:$2 sm:$0xff]  ;;  %v1285_v25 = vld [vmem:[#allocation2 + $0x20] ss:$2 sm:$0xff] }
 0x1dc   :  { %1264 = vst.msk [vmem:[#allocation2 + $0xb8] sm:$0xff] %vm771_vm2, %v1224_v17  ;;  %1265 = vst.msk [vmem:[#allocation2 + $0xc0] sm:$0xff] %vm771_vm2, %v1225_v20  ;;  %v1287_v30 = vld [vmem:[#allocation2 + $0x30] ss:$2 sm:$0xff]  ;;  %v1323_v6 = vld [vmem:[#allocation2 + $0x11] ss:$2 sm:$0xff]  ;;  %v5851_v18 = vmax.f32 %v1281_v11, %v1321_v29 }
 0x1dd   :  { %1266 = vst.msk [vmem:[#allocation2 + $0xc8] sm:$0xff] %vm771_vm2, %v1226_v47  ;;  %1267 = vst.msk [vmem:[#allocation2 + $0xd0] sm:$0xff] %vm771_vm2, %v1227_v43  ;;  %v1325_v1 = vld [vmem:[#allocation2 + $0x21] ss:$2 sm:$0xff]  ;;  %v1327_v51 = vld [vmem:[#allocation2 + $0x31] ss:$2 sm:$0xff]  ;;  %v5855_v49 = vmax.f32 %v1283_v60, %v1323_v6 }
 0x1de   :  { %1268 = vst.msk [vmem:[#allocation2 + $0xd8] sm:$0xff] %vm771_vm2, %v1228_v54  ;;  %1269 = vst.msk [vmem:[#allocation2 + $0xe0] sm:$0xff] %vm771_vm2, %v1229_v8  ;;  %v1289_v57 = vld [vmem:[#allocation2 + $0x40] ss:$2 sm:$0xff]  ;;  %v5857_v16 = vmax.f32 %v1285_v25, %v1325_v1  ;;  %v5859_v45 = vmax.f32 %v1287_v30, %v1327_v51  ;;  %v1419_v12 = vrot.slane %v5851_v18, 1 }
 0x1df   :  { %1270 = vst.msk [vmem:[#allocation2 + $0xe8] sm:$0xff] %vm771_vm2, %v1230_v2  ;;  %1271 = vst.msk [vmem:[#allocation2 + $0xf0] sm:$0xff] %vm771_vm2, %v1231_v35  ;;  %v1329_v23 = vld [vmem:[#allocation2 + $0x41] ss:$2 sm:$0xff]  ;;  %v1291_v0 = vld [vmem:[#allocation2 + $0x50] ss:$2 sm:$0xff] }
 0x1e0   :  { %1272 = vst.msk [vmem:[#allocation2 + $0xf8] sm:$0xff] %vm771_vm2, %v1232_v22  ;;  %1273 = vst.msk [vmem:[#allocation2 + $0x100] sm:$0xff] %vm771_vm2, %v1233_v39  ;;  %v1420_v14 = vrot.slane %v5855_v49, 1  ;;  %v5863_v7 = vmax.f32 %v1289_v57, %v1329_v23  ;;  %v1293_v27 = vld [vmem:[#allocation2 + $0x60] ss:$2 sm:$0xff]  ;;  %v1422_v42 = vrot.slane %v5857_v16, 1 }
 0x1e1   :  { %1274 = vst.msk [vmem:[#allocation2 + $0x108] sm:$0xff] %vm771_vm2, %v1234_v4  ;;  %1275 = vst.msk [vmem:[#allocation2 + $0x110] sm:$0xff] %vm771_vm2, %v1235_v10  ;;  %v1331_v62 = vld [vmem:[#allocation2 + $0x51] ss:$2 sm:$0xff]  ;;  %v1424_v15 = vrot.slane %v5859_v45, 1 }
 0x1e2   :  { %1276 = vst.msk [vmem:[#allocation2 + $0x118] sm:$0xff] %vm771_vm2, %v1236_v50  ;;  %1277 = vst.msk [vmem:[#allocation2 + $0x120] sm:$0xff] %vm771_vm2, %v1237_v34  ;;  %v1333_v32 = vld [vmem:[#allocation2 + $0x61] ss:$2 sm:$0xff]  ;;  %v5867_v55 = vmax.f32 %v1291_v0, %v1331_v62  ;;  %v1421_v61 = vsel %vm1418_vm3, %v1419_v12, %v1420_v14  ;;  %v1423_v40 = vsel %vm1418_vm3, %v1420_v14, %v1422_v42  ;;  %v1426_v46 = vrot.slane %v5863_v7, 1 }
 0x1e3   :  { %1279 = vst.msk [vmem:[#allocation2 + $0x130] sm:$0xff] %vm771_vm2, %v1239_v13  ;;  %1280 = vst.msk [vmem:[#allocation2 + $0x138] sm:$0xff] %vm771_vm2, %v1240_v5  ;;  %v1425_v24 = vsel %vm1418_vm3, %v1422_v42, %v1424_v15  ;;  %v5874_v41 = vmax.f32 %v1293_v27, %v1333_v32  ;;  %v1479_v47 = vpack.c.bf16 %v1423_v40, %v1421_v61  ;;  %v1295_v35 = vld [vmem:[#allocation2 + $0x70] ss:$2 sm:$0xff]  ;;  %v1297_v5 = vld [vmem:[#allocation2 + $0x80] ss:$2 sm:$0xff] }
 0x1e4   :  { %v1305_v33 = vld [vmem:[#allocation2 + $0xc0] ss:$2 sm:$0xff]  ;;  %v1345_v9 = vld [vmem:[#allocation2 + $0xc1] ss:$2 sm:$0xff]  ;;  %v1428_v3 = vrot.slane %v5867_v55, 1  ;;  %v1427_v52 = vsel %vm1418_vm3, %v1424_v15, %v1426_v46 }
 0x1e5   :  { %v1307_v26 = vld [vmem:[#allocation2 + $0xd0] ss:$2 sm:$0xff]  ;;  %v1347_v17 = vld [vmem:[#allocation2 + $0xd1] ss:$2 sm:$0xff]  ;;  %v5872_v20 = vmax.f32 %v1305_v33, %v1345_v9  ;;  %4267 = vmatprep.mubr.msk.bf16.mxu0 %vm771_vm2, %v1479_v47  ;;  %v1480_v37 = vpack.c.bf16 %v1427_v52, %v1425_v24  ;;  %v1430_v50 = vrot.slane %v5874_v41, 1  ;;  %v4671_v9 = vld [vmem:[%s7215_s4 + $0x8] sm:$0xff]  }
 0x1e6   :  { %v1309_v36 = vld [vmem:[#allocation2 + $0xe0] ss:$2 sm:$0xff]  ;;  %v1349_v44 = vld [vmem:[#allocation2 + $0xe1] ss:$2 sm:$0xff]  ;;  %v5876_v48 = vmax.f32 %v1307_v26, %v1347_v17  ;;  %v1429_v19 = vsel %vm1418_vm3, %v1426_v46, %v1428_v3  ;;  %v1335_v11 = vld [vmem:[#allocation2 + $0x71] ss:$2 sm:$0xff] }
 0x1e7   :  { %v5878_v43 = vmax.f32 %v1309_v36, %v1349_v44  ;;  %v1311_v54 = vld [vmem:[#allocation2 + $0xf0] ss:$2 sm:$0xff]  ;;  %v1442_v8 = vrot.slane %v5872_v20, 1  ;;  %v1351_v28 = vld [vmem:[#allocation2 + $0xf1] ss:$2 sm:$0xff]  ;;  %4268 = vmatmul.mubr.msk.bf16.vlgmr.msra.gmra.mrb[40].mxu0 %vm771_vm2, %v1480_v37  ;;  %v1431_v25 = vsel %vm1418_vm3, %v1428_v3, %v1430_v50  ;;  %v5907_v23 = vmax.f32 %v1295_v35, %v1335_v11 }
 0x1e8   :  { %v1313_v58 = vld [vmem:[#allocation2 + $0x100] ss:$2 sm:$0xff]  ;;  %v1353_v2 = vld [vmem:[#allocation2 + $0x101] ss:$2 sm:$0xff]  ;;  %v1444_v56 = vrot.slane %v5876_v48, 1  ;;  %v5887_v39 = vmax.f32 %v1311_v54, %v1351_v28  ;;  %v1481_v57 = vpack.c.bf16 %v1431_v25, %v1429_v19 }
 0x1e9   :  { %v1446_v22 = vrot.slane %v5878_v43, 1  ;;  %v1315_v38 = vld [vmem:[#allocation2 + $0x110] ss:$2 sm:$0xff]  ;;  %v1317_v4 = vld [vmem:[#allocation2 + $0x120] ss:$2 sm:$0xff]  ;;  %v5889_v10 = vmax.f32 %v1313_v58, %v1353_v2  ;;  %v1432_v40 = vrot.slane %v5907_v23, 1 }
 0x1ea   :  { %v1355_v59 = vld [vmem:[#allocation2 + $0x111] ss:$2 sm:$0xff]  ;;  %v1357_v31 = vld [vmem:[#allocation2 + $0x121] ss:$2 sm:$0xff]  ;;  %v1445_v34 = vsel %vm1418_vm3, %v1442_v8, %v1444_v56  ;;  %v1448_v13 = vrot.slane %v5887_v39, 1  ;;  %4271 = vmatprep.mubr.msk.bf16.mxu0 %vm771_vm2, %v1481_v57  ;;  %v1381_v57 = vpack.c.bf16 %v5859_v45, %v5857_v16 }
 0x1eb   :  { %v1447_v63 = vsel %vm1418_vm3, %v1444_v56, %v1446_v22  ;;  %v5898_v21 = vmax.f32 %v1315_v38, %v1355_v59  ;;  %v1450_v29 = vrot.slane %v5889_v10, 1  ;;  %v5903_v30 = vmax.f32 %v1317_v4, %v1357_v31  ;;  %v1337_v6 = vld [vmem:[#allocation2 + $0x81] ss:$2 sm:$0xff]  ;;  %v1319_v1 = vld [vmem:[#allocation2 + $0x130] ss:$2 sm:$0xff] }
 0x1ec   :  { %v1485_v60 = vpack.c.bf16 %v1447_v63, %v1445_v34  ;;  %v1449_v51 = vsel %vm1418_vm3, %v1446_v22, %v1448_v13  ;;  %v1359_v0 = vld [vmem:[#allocation2 + $0x131] ss:$2 sm:$0xff]  ;;  %v1299_v14 = vld [vmem:[#allocation2 + $0x90] ss:$2 sm:$0xff]  ;;  %v5912_v42 = vmax.f32 %v1297_v5, %v1337_v6  ;;  %v1301_v32 = vld [vmem:[#allocation2 + $0xa0] ss:$2 sm:$0xff]  ;;  %v1433_v2 = vsel %vm1418_vm3, %v1430_v50, %v1432_v40 }
 0x1ed   :  { %v1452_v12 = vrot.slane %v5898_v21, 1  ;;  %v1451_v27 = vsel %vm1418_vm3, %v1448_v13, %v1450_v29  ;;  %v1454_v62 = vrot.slane %v5903_v30, 1  ;;  %v5914_v15 = vmax.f32 %v1319_v1, %v1359_v0  ;;  %v1339_v61 = vld [vmem:[#allocation2 + $0x91] ss:$2 sm:$0xff]  ;;  %v1341_v24 = vld [vmem:[#allocation2 + $0xa1] ss:$2 sm:$0xff] }
 0x1ee   :  { %4279 = vmatprep.mubr.msk.bf16.mxu1 %vm771_vm2, %v1485_v60  ;;  %v1486_v33 = vpack.c.bf16 %v1451_v27, %v1449_v51  ;;  %v5922_v36 = vmax.f32 %v1299_v14, %v1339_v61  ;;  %v1303_v17 = vld [vmem:[#allocation2 + $0xb0] ss:$2 sm:$0xff]  ;;  %v1434_v47 = vrot.slane %v5912_v42, 1  ;;  %v5927_v54 = vmax.f32 %v1301_v32, %v1341_v24  ;;  %v1343_v58 = vld [vmem:[#allocation2 + $0xb1] ss:$2 sm:$0xff]  ;;  %v4675_v27 = vld [vmem:[%s7215_s4 + $0x48] sm:$0xff]  }
 0x1ef   :  { %v1453_v26 = vsel %vm1418_vm3, %v1450_v29, %v1452_v12  ;;  %v1455_v44 = vsel %vm1418_vm3, %v1452_v12, %v1454_v62  ;;  %v1456_v46 = vrot.slane %v5914_v15, 1  ;;  %v5932_v35 = vmax.f32 %v1303_v17, %v1343_v58  ;;  %v7456_v56 = vld [vmem:[#allocation30_spill] sm:$0xff]  ;;  %v4672_v38 = vld [vmem:[%s7215_s4 + $0x10] sm:$0xff]   ;;  %v4674_v29 = vld [vmem:[%s7215_s4 + $0x40] sm:$0xff]  }
 0x1f0   :  { %4280 = vmatmul.mubr.msk.bf16.vlgmr.msra.gmra.mrb[0].mxu1 %vm771_vm2, %v1486_v33  ;;  %v1487_v28 = vpack.c.bf16 %v1455_v44, %v1453_v26  ;;  %v1436_v3 = vrot.slane %v5922_v36, 1  ;;  %v1435_v22 = vsel %vm1418_vm3, %v1432_v40, %v1434_v47  ;;  %v1438_v52 = vrot.slane %v5927_v54, 1  ;;  %v4673_v13 = vld [vmem:[%s7215_s4 + $0x18] sm:$0xff]  }
 0x1f1   :  { %4288 = vmatpush3.bf16.msra.mxu1 %v7456_v56  ;;  %v1482_v4 = vpack.c.bf16 %v1435_v22, %v1433_v2  ;;  %v1457_v19 = vsel %vm1418_vm3, %v1454_v62, %v1456_v46  ;;  %v1478_v50 = vsel %vm1418_vm3, %v1456_v46, 0.0  ;;  %v1440_v31 = vrot.slane %v5932_v35, 1  ;;  %v4677_v56 = vld [vmem:[%s7215_s4 + $0x58] sm:$0xff]  }
 0x1f2   :  { %4283 = vmatprep.mubr.msk.bf16.mxu1 %vm771_vm2, %v1487_v28  ;;  %4289 = vmatprep.subr.bf16.mxu1 %v4671_v9  ;;  %v1437_v37 = vsel %vm1418_vm3, %v1434_v47, %v1436_v3  ;;  %v1439_v59 = vsel %vm1418_vm3, %v1436_v3, %v1438_v52  ;;  %v1488_v63 = vpack.c.bf16 %v1478_v50, %v1457_v19  ;;  %v1856_v6 = vrot.slane %v5872_v20, 2  ;;  %v4676_v47 = vld [vmem:[%s7215_s4 + $0x50] sm:$0xff]  }
 0x1f3   :  { %4272 = vmatmul.mubr.msk.bf16.gmra.mrb[44].mxu0 %vm771_vm2, %v1482_v4  ;;  %v1483_v34 = vpack.c.bf16 %v1439_v59, %v1437_v37  ;;  %v1380_v5 = vpack.c.bf16 %v5855_v49, %v5851_v18  ;;  %v1441_v11 = vsel %vm1418_vm3, %v1438_v52, %v1440_v31  ;;  %v1443_v60 = vsel %vm1418_vm3, %v1440_v31, %v1442_v8 }
 0x1f4   :  { %v1484_v25 = vpack.c.bf16 %v1443_v60, %v1441_v11  ;;  %v1858_v1 = vrot.slane %v5876_v48, 2  ;;  %v1860_v8 = vrot.slane %v5878_v43, 2  ;;  %v1862_v51 = vrot.slane %v5887_v39, 2 }
 0x1f5   :  { %4290 = vmatpush3.bf16.msra.mxu1 %v4671_v9  ;;  %4275 = vmatprep.mubr.msk.bf16.mxu0 %vm771_vm2, %v1483_v34  ;;  %v1864_v12 = vrot.slane %v5889_v10, 2  ;;  %v1866_v0 = vrot.slane %v5898_v21, 2  ;;  %v1382_v14 = vpack.c.bf16 %v5867_v55, %v5863_v7  ;;  %v1868_v40 = vrot.slane %v5903_v30, 2 }
 0x1f6   :  { %4291 = vmatprep.subr.bf16.mxu1 %v4672_v38  ;;  %v5979_v62 = vsel %vm1832_vm4, %v1856_v6, %v1858_v1  ;;  %v5982_v32 = vsel %vm1832_vm4, %v1858_v1, %v1860_v8  ;;  %v5985_v61 = vsel %vm1832_vm4, %v1860_v8, %v1862_v51  ;;  %v1870_v17 = vrot.slane %v5914_v15, 2 }
 0x1f7   :  { %v1899_v33 = vpack.c.bf16 %v5982_v32, %v5979_v62  ;;  %v5990_v26 = vsel %vm1832_vm4, %v1862_v51, %v1864_v12  ;;  %v5993_v9 = vsel %vm1832_vm4, %v1864_v12, %v1866_v0  ;;  %v6002_v44 = vsel %vm1832_vm4, %v1866_v0, %v1868_v40 }
 0x1f8   :  { %4284 = vmatmul.mubr.msk.bf16.gmra.mrb[4].mxu1 %vm771_vm2, %v1488_v63  ;;  %v1900_v24 = vpack.c.bf16 %v5990_v26, %v5985_v61  ;;  %v1901_v46 = vpack.c.bf16 %v6002_v44, %v5993_v9  ;;  %v6010_v58 = vsel %vm1832_vm4, %v1868_v40, %v1870_v17  ;;  %v1892_v28 = vsel %vm1832_vm4, %v1870_v17, 0.0  ;;  %v6082_v61 = vpop.permute.xlu1 %2108 }
 0x1f9   :  { %4292 = vmatpush3.bf16.msra.mxu1 %v4672_v38  ;;  %4295 = vmatprep.mubr.msk.bf16.mxu1 %vm771_vm2, %v1380_v5  ;;  %v1902_v2 = vpack.c.bf16 %v1892_v28, %v6010_v58  ;;  %v1383_v3 = vpack.c.bf16 %v5907_v23, %v5874_v41  ;;  %v1384_v22 = vpack.c.bf16 %v5922_v36, %v5912_v42  ;;  %v1833_v19 = vrot.slane %v5851_v18, 2 }
 0x1fa   :  { %4293 = vmatprep.subr.bf16.mxu1 %v4673_v13  ;;  %v1385_v52 = vpack.c.bf16 %v5932_v35, %v5927_v54  ;;  %v1386_v38 = vpack.c.bf16 %v5876_v48, %v5872_v20  ;;  %v1387_v4 = vpack.c.bf16 %v5887_v39, %v5878_v43  ;;  %v1388_v37 = vpack.c.bf16 %v5898_v21, %v5889_v10 }
 0x1fb   :  { %4276 = vmatmul.mubr.msk.bf16.gmra.mrb[48].mxu0 %vm771_vm2, %v1484_v25  ;;  %v1834_v50 = vrot.slane %v5855_v49, 2  ;;  %v1836_v59 = vrot.slane %v5857_v16, 2  ;;  %v1389_v43 = vpack.c.bf16 %v5914_v15, %v5903_v30  ;;  %v1838_v39 = vrot.slane %v5859_v45, 2 }
 0x1fc   :  { %v1840_v21 = vrot.slane %v5863_v7, 2  ;;  %v1842_v18 = vrot.slane %v5867_v55, 2  ;;  %v1844_v49 = vrot.slane %v5874_v41, 2  ;;  %v1846_v7 = vrot.slane %v5907_v23, 2  ;;  %v6086_v9 = vpop.permute.xlu1 %2118 }
 0x1fd   :  { %4294 = vmatpush3.bf16.msra.mxu1 %v4673_v13  ;;  %v1835_v48 = vsel %vm1832_vm4, %v1833_v19, %v1834_v50  ;;  %v1837_v31 = vsel %vm1832_vm4, %v1834_v50, %v1836_v59  ;;  %v1839_v16 = vsel %vm1832_vm4, %v1836_v59, %v1838_v39  ;;  %v1848_v13 = vrot.slane %v5912_v42, 2 }
 0x1fe   :  { %4315 = vmatprep.subr.bf16.mxu1 %v4674_v29  ;;  %v1893_v10 = vpack.c.bf16 %v1837_v31, %v1835_v48  ;;  %v1841_v34 = vsel %vm1832_vm4, %v1838_v39, %v1840_v21  ;;  %v1843_v63 = vsel %vm1832_vm4, %v1840_v21, %v1842_v18  ;;  %v1845_v30 = vsel %vm1832_vm4, %v1842_v18, %v1844_v49 }
 0x1ff   :  { %v1894_v45 = vpack.c.bf16 %v1841_v34, %v1839_v16  ;;  %v1895_v15 = vpack.c.bf16 %v1845_v30, %v1843_v63  ;;  %v1850_v55 = vrot.slane %v5922_v36, 2  ;;  %v1852_v41 = vrot.slane %v5927_v54, 2 }
 0x200   :  { %4296 = vmatmul.mubr.msk.bf16.vlgmr.msra.gmra.mrb[8].mxu1 %vm771_vm2, %v1381_v57  ;;  %v1847_v5 = vsel %vm1832_vm4, %v1844_v49, %v1846_v7  ;;  %v1849_v11 = vsel %vm1832_vm4, %v1846_v7, %v1848_v13  ;;  %v1854_v42 = vrot.slane %v5932_v35, 2 }
 0x201   :  { %4316 = vmatpush3.bf16.msra.mxu1 %v4674_v29  ;;  %4299 = vmatprep.mubr.msk.bf16.mxu1 %vm771_vm2, %v1382_v14  ;;  %v1851_v60 = vsel %vm1832_vm4, %v1848_v13, %v1850_v55  ;;  %v1853_v29 = vsel %vm1832_vm4, %v1850_v55, %v1852_v41  ;;  %v1896_v25 = vpack.c.bf16 %v1849_v11, %v1847_v5 }
 0x202   :  { %4317 = vmatprep.subr.bf16.mxu1 %v4675_v27  ;;  %v1897_v23 = vpack.c.bf16 %v1853_v29, %v1851_v60  ;;  %v1855_v36 = vsel %vm1832_vm4, %v1852_v41, %v1854_v42  ;;  %v1857_v54 = vsel %vm1832_vm4, %v1854_v42, %v1856_v6 }
 0x203   :  { %v1898_v1 = vpack.c.bf16 %v1857_v54, %v1855_v36 }
 0x205   :  { %4318 = vmatpush3.bf16.msra.mxu1 %v4675_v27 }
 0x206   :  { %4319 = vmatprep.subr.bf16.mxu1 %v4676_v47 }
 0x208   :  { %4300 = vmatmul.mubr.msk.bf16.gmra.mrb[12].mxu1 %vm771_vm2, %v1383_v3 }
 0x209   :  { %4303 = vmatprep.mubr.msk.bf16.mxu1 %vm771_vm2, %v1384_v22  ;;  %4320 = vmatpush3.bf16.msra.mxu1 %v4676_v47 }
 0x20a   :  { %4321 = vmatprep.subr.bf16.mxu1 %v4677_v56 }
 0x20d   :  { %4322 = vmatpush3.bf16.msra.mxu1 %v4677_v56 }
 0x210   :  { %4304 = vmatmul.mubr.msk.bf16.gmra.mrb[16].mxu1 %vm771_vm2, %v1385_v52 }
 0x211   :  { %4307 = vmatprep.mubr.msk.bf16.mxu1 %vm771_vm2, %v1386_v38 }
 0x218   :  { %4308 = vmatmul.mubr.msk.bf16.gmra.mrb[0].mxu1 %vm771_vm2, %v1387_v4 }
 0x219   :  { %4311 = vmatprep.mubr.msk.bf16.mxu1 %vm771_vm2, %v1388_v37 }
 0x220   :  { %4312 = vmatmul.mubr.msk.bf16.gmra.mrb[4].mxu1 %vm771_vm2, %v1389_v43 }
 0x221   :  { %4323 = vmatprep.mubr.msk.bf16.mxu1 %vm771_vm2, %v1893_v10 }
 0x228   :  { %4324 = vmatmul.mubr.msk.bf16.vlgmr.msra.gmra.mrb[8].mxu1 %vm771_vm2, %v1894_v45 }
 0x229   :  { %4327 = vmatprep.mubr.msk.bf16.mxu1 %vm771_vm2, %v1895_v15 }
 0x230   :  { %4328 = vmatmul.mubr.msk.bf16.gmra.mrb[12].mxu1 %vm771_vm2, %v1896_v25 }
 0x231   :  { %4331 = vmatprep.mubr.msk.bf16.mxu1 %vm771_vm2, %v1897_v23 }
 0x238   :  { %4332 = vmatmul.mubr.msk.bf16.gmra.mrb[16].mxu1 %vm771_vm2, %v1898_v1 }
 0x239   :  { %4335 = vmatprep.mubr.msk.bf16.mxu1 %vm771_vm2, %v1899_v33  ;;  %v6080_v33 = vpop.permute.xlu0 %2103 }
 0x23d   :  { %v6084_v26 = vpop.permute.xlu0 %2113 }
 0x240   :  { %4336 = vmatmul.mubr.msk.bf16.gmra.mrb[0].mxu1 %vm771_vm2, %v1900_v24  ;;  %v6090_v24 = vpop.permute.xlu1 %2128 }
 0x241   :  { %4339 = vmatprep.mubr.msk.bf16.mxu1 %vm771_vm2, %v1901_v46  ;;  %v6088_v40 = vpop.permute.xlu0 %2123 }
 0x245   :  { %v6092_v44 = vpop.permute.xlu0 %2133 }
 0x248   :  { %4340 = vmatmul.mubr.msk.bf16.gmra.mrb[4].mxu1 %vm771_vm2, %v1902_v2  ;;  %v6098_v2 = vpop.permute.xlu1 %2138 }
 0x249   :  { %v6110_v37 = vpop.permute.xlu0 %2143 }
 0x24c   :  { %v6116_v31 = vpop.permute.xlu1 %2148 }
 0x24d   :  { %v6130_v7 = vpop.permute.xlu0 %2153 }
 0x250   :  { %v6137_v11 = vpop.permute.xlu1 %2158 }
 0x2ba   :  { %v4269_v20 = vpop.f32.mrb[40].mxu0 }
 0x2bb   :  { %v1586_v35 = vpop.f32.mrb[41].mxu0 }
 0x2bc   :  { %v4270_v6 = vpop.f32.mrb[42].mxu0 }
 0x2bd   :  { %v1589_v8 = vpop.f32.mrb[43].mxu0 }
 0x2c6   :  { %v4273_v51 = vpop.f32.mrb[44].mxu0 }
 0x2c7   :  { %v1602_v57 = vpop.f32.mrb[45].mxu0 }
 0x2c8   :  { %v4274_v12 = vpop.f32.mrb[46].mxu0 }
 0x2c9   :  { %v1605_v0 = vpop.f32.mrb[47].mxu0 }
 0x2ce   :  { %v4277_v14 = vpop.f32.mrb[48].mxu0 }
 0x2cf   :  { %v1618_v27 = vpop.f32.mrb[49].mxu0 }
 0x2d0   :  { %v4278_v62 = vpop.f32.mrb[50].mxu0 }
 0x2d1   :  { %v1621_v32 = vpop.f32.mrb[51].mxu0 }
 0x2fb   :  { %v4325_v17 = vpop.f32.mrb[8].mxu1 }
 0x2fc   :  { %v6094_v47 = vadd.f32 %v4325_v17, %v4269_v20  ;;  %v2000_v46 = vpop.f32.mrb[9].mxu1 }
 0x2fd   :  { %v6096_v58 = vadd.f32 %v2000_v46, %v1586_v35  ;;  %v4326_v28 = vpop.f32.mrb[10].mxu1 }
 0x2fe   :  { %v6100_v3 = vadd.f32 %v4326_v28, %v4270_v6  ;;  %v2003_v56 = vpop.f32.mrb[11].mxu1  ;;  %v2203_v38 = vmul.f32 %v6094_v47, %v6084_v26  ;;  %v6147_v6 = vpop.permute.xlu0 %2163 }
 0x2ff   :  { %v2201_v22 = vmul.f32 %v6096_v58, %v6080_v33  ;;  %v6104_v52 = vadd.f32 %v2003_v56, %v1589_v8 }
 0x300   :  { %v2204_v50 = vmul.f32 %v6100_v3, %v6086_v9  ;;  %v2224_v21 = vsel %vm771_vm2, %v2203_v38, 0.0 }
 0x301   :  { %v2202_v4 = vmul.f32 %v6104_v52, %v6082_v61  ;;  %v2221_v19 = vsel %vm771_vm2, %v2201_v22, 0.0 }
 0x302   :  { %v2226_v30 = vsel %vm771_vm2, %v2204_v50, 0.0 }
 0x303   :  { %v2222_v59 = vsel %vm771_vm2, %v2202_v4, 0.0  ;;  %v4329_v48 = vpop.f32.mrb[12].mxu1 }
 0x304   :  { %v2223_v43 = vadd.f32 %v2222_v59, %v2221_v19  ;;  %v6118_v39 = vadd.f32 %v4329_v48, %v4273_v51  ;;  %v2016_v10 = vpop.f32.mrb[13].mxu1 }
 0x305   :  { %v6121_v18 = vadd.f32 %v2016_v10, %v1602_v57  ;;  %v4330_v49 = vpop.f32.mrb[14].mxu1 }
 0x306   :  { %v2225_v16 = vadd.f32 %v2224_v21, %v2223_v43  ;;  %v6123_v34 = vadd.f32 %v4330_v49, %v4274_v12  ;;  %v2019_v63 = vpop.f32.mrb[15].mxu1  ;;  %v2207_v55 = vmul.f32 %v6118_v39, %v6092_v44 }
 0x307   :  { %v2205_v45 = vmul.f32 %v6121_v18, %v6088_v40  ;;  %v6128_v15 = vadd.f32 %v2019_v63, %v1605_v0 }
 0x308   :  { %v2227_v13 = vadd.f32 %v2226_v30, %v2225_v16  ;;  %v2208_v29 = vmul.f32 %v6123_v34, %v6098_v2  ;;  %v2232_v1 = vsel %vm771_vm2, %v2207_v55, 0.0 }
 0x309   :  { %v2228_v41 = vsel %vm771_vm2, %v2205_v45, 0.0  ;;  %v2206_v5 = vmul.f32 %v6128_v15, %v6090_v24  ;;  %v7319_v45 = vmov 0.0  }
 0x30a   :  { %v2229_v60 = vadd.f32 %v2228_v41, %v2227_v13  ;;  %v2234_v12 = vsel %vm771_vm2, %v2208_v29, 0.0  ;;  %4343 = vmatprep.subr.bf16.mxu0 %v7319_v45  ;;  %v4678_v13 = vld [vmem:[%s7218_s7 + $0x20] sm:$0xff]   ;;  %4351 = vmatprep.mubr.msk.bf16.mxu0 %vm4712_vm5, %v7319_v45  ;;  %v4679_v29 = vld [vmem:[%s7218_s7 + $0x28] sm:$0xff]  }
 0x30b   :  { %v2230_v25 = vsel %vm771_vm2, %v2206_v5, 0.0  ;;  %v4333_v23 = vpop.f32.mrb[16].mxu1  ;;  %4427 = vmatprep.subr.bf16.mxu1 %v7319_v45  ;;  %4435 = vmatprep.mubr.msk.bf16.mxu1 %vm4712_vm5, %v7319_v45 }
 0x30c   :  { %v2231_v42 = vadd.f32 %v2230_v25, %v2229_v60  ;;  %v6142_v36 = vadd.f32 %v4333_v23, %v4277_v14  ;;  %v2032_v54 = vpop.f32.mrb[17].mxu1  ;;  %v6156_v14 = vpop.permute.xlu1 %2168  ;;  %4344 = vmatpush3.bf16.msra.mxu0 %v4678_v13 }
 0x30d   :  { %v6145_v20 = vadd.f32 %v2032_v54, %v1618_v27  ;;  %v4334_v35 = vpop.f32.mrb[18].mxu1  ;;  %4345 = vmatprep.subr.bf16.mxu0 %v7319_v45 }
 0x30e   :  { %v2233_v8 = vadd.f32 %v2232_v1, %v2231_v42  ;;  %v6149_v51 = vadd.f32 %v4334_v35, %v4278_v62  ;;  %v2035_v57 = vpop.f32.mrb[19].mxu1  ;;  %v2211_v27 = vmul.f32 %v6142_v36, %v6130_v7 }
 0x30f   :  { %v2209_v0 = vmul.f32 %v6145_v20, %v6110_v37  ;;  %v6154_v17 = vadd.f32 %v2035_v57, %v1621_v32  ;;  %v6168_v32 = vpop.permute.xlu0 %2173 }
 0x310   :  { %v2235_v46 = vadd.f32 %v2234_v12, %v2233_v8  ;;  %v2212_v22 = vmul.f32 %v6149_v51, %v6137_v11  ;;  %v2240_v59 = vsel %vm771_vm2, %v2211_v27, 0.0  ;;  %v6177_v10 = vpop.permute.xlu1 %2178  ;;  %4346 = vmatpush3.bf16.msra.mxu0 %v4679_v29  ;;  %v4680_v27 = vld [vmem:[%s7218_s7 + $0x30] sm:$0xff]  }
 0x311   :  { %v2236_v28 = vsel %vm771_vm2, %v2209_v0, 0.0  ;;  %v2210_v62 = vmul.f32 %v6154_v17, %v6116_v31  ;;  %4347 = vmatprep.subr.bf16.mxu0 %v7319_v45 }
 0x312   :  { %v2237_v56 = vadd.f32 %v2236_v28, %v2235_v46  ;;  %v2242_v16 = vsel %vm771_vm2, %v2212_v22, 0.0 }
 0x313   :  { %v2238_v38 = vsel %vm771_vm2, %v2210_v62, 0.0  ;;  %v6166_v4 = vpop.f32.mrb[0].mxu1  ;;  %v6196_v5 = vpop.permute.xlu0 %2183 }
 0x314   :  { %v2239_v19 = vadd.f32 %v2238_v38, %v2237_v56  ;;  %v6170_v50 = vpop.f32.mrb[1].mxu1  ;;  %v2215_v55 = vmul.f32 %v6166_v4, %v6168_v32  ;;  %v6207_v54 = vpop.permute.xlu1 %2188  ;;  %4348 = vmatpush3.bf16.msra.mxu0 %v4680_v27 }
 0x315   :  { %v2213_v48 = vmul.f32 %v6147_v6, %v6170_v50  ;;  %v6175_v43 = vpop.f32.mrb[2].mxu1  ;;  %4349 = vmatprep.subr.bf16.mxu0 %v7319_v45 }
 0x316   :  { %v2241_v21 = vadd.f32 %v2240_v59, %v2239_v19  ;;  %v6179_v49 = vpop.f32.mrb[3].mxu1  ;;  %v2216_v25 = vmul.f32 %v6175_v43, %v6177_v10  ;;  %v2248_v8 = vsel %vm771_vm2, %v2215_v55, 0.0  ;;  %v4681_v59 = vld [vmem:[%s7218_s7 + $0x38] sm:$0xff]  }
 0x317   :  { %v2214_v63 = vmul.f32 %v6156_v14, %v6179_v49  ;;  %v2244_v41 = vsel %vm771_vm2, %v2213_v48, 0.0  ;;  %v6225_v56 = vpop.permute.xlu0 %2193 }
 0x318   :  { %v2243_v30 = vadd.f32 %v2242_v16, %v2241_v21  ;;  %v2250_v28 = vsel %vm771_vm2, %v2216_v25, 0.0  ;;  %v6233_v48 = vpop.permute.xlu1 %2198  ;;  %4350 = vmatpush3.bf16.msra.mxu0 %v4681_v59 }
 0x319   :  { %v2246_v23 = vsel %vm771_vm2, %v2214_v63, 0.0  ;;  %4371 = vmatprep.subr.bf16.mxu0 %v7319_v45 }
 0x31a   :  { %v2245_v60 = vadd.f32 %v2244_v41, %v2243_v30 }
 0x31b   :  { %v6204_v42 = vpop.f32.mrb[4].mxu1 }
 0x31c   :  { %v2247_v1 = vadd.f32 %v2246_v23, %v2245_v60  ;;  %v6209_v35 = vpop.f32.mrb[5].mxu1  ;;  %v2219_v38 = vmul.f32 %v6204_v42, %v6225_v56 }
 0x31d   :  { %v2217_v57 = vmul.f32 %v6196_v5, %v6209_v35  ;;  %v6214_v12 = vpop.f32.mrb[6].mxu1 }
 0x31e   :  { %v2249_v0 = vadd.f32 %v2248_v8, %v2247_v1  ;;  %v6216_v46 = vpop.f32.mrb[7].mxu1  ;;  %v2220_v16 = vmul.f32 %v6214_v12, %v6233_v48  ;;  %v2256_v13 = vsel %vm771_vm2, %v2219_v38, 0.0 }
 0x31f   :  { %v2218_v62 = vmul.f32 %v6207_v54, %v6216_v46  ;;  %v2252_v19 = vsel %vm771_vm2, %v2217_v57, 0.0 }
 0x320   :  { %v2251_v22 = vadd.f32 %v2250_v28, %v2249_v0  ;;  %v2258_v41 = vsel %vm771_vm2, %v2220_v16, 0.0 }
 0x321   :  { %v2254_v63 = vsel %vm771_vm2, %v2218_v62, 0.0 }
 0x322   :  { %v2253_v21 = vadd.f32 %v2252_v19, %v2251_v22 }
 0x324   :  { %v2255_v30 = vadd.f32 %v2254_v63, %v2253_v21 }
 0x326   :  { %v2257_v55 = vadd.f32 %v2256_v13, %v2255_v30 }
 0x328   :  { %v2259_v60 = vadd.f32 %v2258_v41, %v2257_v55 }
 0x32a   :  { %v2260_v29 = vrot.slane %v2259_v60, 4 }
 0x32c   :  { %v2261_v25 = vadd.f32 %v2260_v29, %v2259_v60 }
 0x32e   :  { %v2262_v23 = vrot.slane %v2261_v25, 2 }
 0x330   :  { %v2263_v1 = vadd.f32 %v2262_v23, %v2261_v25 }
 0x332   :  { %v2264_v8 = vrot.slane %v2263_v1, 1 }
 0x334   :  { %v2265_v57 = vadd.f32 %v2264_v8, %v2263_v1 }
 0x336   :  { %v6242_v0 = vmul.f32 0.007936508, %v2265_v57 }
 0x338   :  { %v2267_v27 = vsub.f32 %v6096_v58, %v6242_v0  ;;  %v2268_v28 = vsub.f32 %v6104_v52, %v6242_v0  ;;  %v2269_v62 = vsub.f32 %v6094_v47, %v6242_v0  ;;  %v2270_v22 = vsub.f32 %v6100_v3, %v6242_v0 }
 0x339   :  { %v2271_v59 = vsub.f32 %v6121_v18, %v6242_v0  ;;  %v2272_v16 = vsub.f32 %v6128_v15, %v6242_v0  ;;  %v2273_v55 = vsub.f32 %v6118_v39, %v6242_v0  ;;  %v2274_v29 = vsub.f32 %v6123_v34, %v6242_v0 }
 0x33a   :  { %v2287_v38 = vmul.f32 %v2267_v27, %v6080_v33  ;;  %v2288_v19 = vmul.f32 %v2268_v28, %v6082_v61  ;;  %v2289_v21 = vmul.f32 %v2269_v62, %v6084_v26  ;;  %v2290_v63 = vmul.f32 %v2270_v22, %v6086_v9 }
 0x33b   :  { %v2291_v41 = vmul.f32 %v2271_v59, %v6088_v40  ;;  %v2292_v25 = vmul.f32 %v2272_v16, %v6090_v24  ;;  %v2275_v27 = vsub.f32 %v6145_v20, %v6242_v0  ;;  %v2293_v28 = vmul.f32 %v2273_v55, %v6092_v44 }
 0x33c   :  { %v2307_v30 = vmul.f32 %v2287_v38, %v2287_v38  ;;  %v2308_v13 = vmul.f32 %v2288_v19, %v2288_v19  ;;  %v2309_v60 = vmul.f32 %v2289_v21, %v2289_v21  ;;  %v2310_v23 = vmul.f32 %v2290_v63, %v2290_v63 }
 0x33d   :  { %v2311_v62 = vmul.f32 %v2291_v41, %v2291_v41  ;;  %v2276_v19 = vsub.f32 %v6154_v17, %v6242_v0  ;;  %v2294_v59 = vmul.f32 %v2274_v29, %v6098_v2  ;;  %v2312_v21 = vmul.f32 %v2292_v25, %v2292_v25 }
 0x33e   :  { %v2327_v1 = vsel %vm771_vm2, %v2307_v30, 0.0  ;;  %v2328_v8 = vsel %vm771_vm2, %v2308_v13, 0.0  ;;  %v2330_v22 = vsel %vm771_vm2, %v2309_v60, 0.0  ;;  %v2332_v16 = vsel %vm771_vm2, %v2310_v23, 0.0 }
 0x33f   :  { %v2329_v57 = vadd.f32 %v2328_v8, %v2327_v1  ;;  %v2277_v30 = vsub.f32 %v6142_v36, %v6242_v0  ;;  %v2295_v13 = vmul.f32 %v2275_v27, %v6110_v37  ;;  %v2313_v1 = vmul.f32 %v2293_v28, %v2293_v28 }
 0x340   :  { %v2334_v55 = vsel %vm771_vm2, %v2311_v62, 0.0  ;;  %v2278_v60 = vsub.f32 %v6149_v51, %v6242_v0  ;;  %v2296_v8 = vmul.f32 %v2276_v19, %v6116_v31  ;;  %v2336_v29 = vsel %vm771_vm2, %v2312_v21, 0.0 }
 0x341   :  { %v2331_v38 = vadd.f32 %v2330_v22, %v2329_v57  ;;  %v2314_v57 = vmul.f32 %v2294_v59, %v2294_v59  ;;  %v2279_v23 = vsub.f32 %v6170_v50, %v6242_v0  ;;  %v2297_v22 = vmul.f32 %v2277_v30, %v6130_v7 }
 0x342   :  { %v2338_v27 = vsel %vm771_vm2, %v2313_v1, 0.0  ;;  %v2280_v62 = vsub.f32 %v6179_v49, %v6242_v0  ;;  %v2281_v21 = vsub.f32 %v6166_v4, %v6242_v0  ;;  %v2282_v1 = vsub.f32 %v6175_v43, %v6242_v0 }
 0x343   :  { %v2333_v63 = vadd.f32 %v2332_v16, %v2331_v38  ;;  %v2315_v38 = vmul.f32 %v2295_v13, %v2295_v13  ;;  %v2298_v16 = vmul.f32 %v2278_v60, %v6137_v11  ;;  %v2340_v19 = vsel %vm771_vm2, %v2314_v57, 0.0 }
 0x344   :  { %v2283_v57 = vsub.f32 %v6209_v35, %v6242_v0 }
 0x345   :  { %v2335_v41 = vadd.f32 %v2334_v55, %v2333_v63  ;;  %v2316_v63 = vmul.f32 %v2296_v8, %v2296_v8  ;;  %v2299_v55 = vmul.f32 %v2279_v23, %v6147_v6  ;;  %v2342_v30 = vsel %vm771_vm2, %v2315_v38, 0.0 }
 0x346   :  { %v2284_v38 = vsub.f32 %v6216_v46, %v6242_v0 }
 0x347   :  { %v2337_v25 = vadd.f32 %v2336_v29, %v2335_v41  ;;  %v2317_v41 = vmul.f32 %v2297_v22, %v2297_v22  ;;  %v2300_v29 = vmul.f32 %v2280_v62, %v6156_v14  ;;  %v2344_v60 = vsel %vm771_vm2, %v2316_v63, 0.0 }
 0x348   :  { %v2285_v63 = vsub.f32 %v6204_v42, %v6242_v0 }
 0x349   :  { %v2339_v28 = vadd.f32 %v2338_v27, %v2337_v25  ;;  %v2318_v25 = vmul.f32 %v2298_v16, %v2298_v16  ;;  %v2301_v27 = vmul.f32 %v2281_v21, %v6168_v32  ;;  %v2346_v23 = vsel %vm771_vm2, %v2317_v41, 0.0 }
 0x34a   :  { %v2286_v41 = vsub.f32 %v6214_v12, %v6242_v0 }
 0x34b   :  { %v2341_v59 = vadd.f32 %v2340_v19, %v2339_v28  ;;  %v2319_v28 = vmul.f32 %v2299_v55, %v2299_v55  ;;  %v2302_v19 = vmul.f32 %v2282_v1, %v6177_v10  ;;  %v2348_v62 = vsel %vm771_vm2, %v2318_v25, 0.0 }
 0x34c   :  { %v2305_v25 = vmul.f32 %v2285_v63, %v6225_v56 }
 0x34d   :  { %v2343_v13 = vadd.f32 %v2342_v30, %v2341_v59  ;;  %v2320_v59 = vmul.f32 %v2300_v29, %v2300_v29  ;;  %v2303_v30 = vmul.f32 %v2283_v57, %v6196_v5  ;;  %v2350_v21 = vsel %vm771_vm2, %v2319_v28, 0.0 }
 0x34e   :  { %v2306_v57 = vmul.f32 %v2286_v41, %v6233_v48 }
 0x34f   :  { %v2345_v8 = vadd.f32 %v2344_v60, %v2343_v13  ;;  %v2321_v13 = vmul.f32 %v2301_v27, %v2301_v27  ;;  %v2304_v60 = vmul.f32 %v2284_v38, %v6207_v54  ;;  %v2352_v1 = vsel %vm771_vm2, %v2320_v59, 0.0 }
 0x351   :  { %v2347_v22 = vadd.f32 %v2346_v23, %v2345_v8  ;;  %v2322_v8 = vmul.f32 %v2302_v19, %v2302_v19  ;;  %v2323_v23 = vmul.f32 %v2303_v30, %v2303_v30  ;;  %v2324_v27 = vmul.f32 %v2304_v60, %v2304_v60 }
 0x352   :  { %v2326_v19 = vmul.f32 %v2306_v57, %v2306_v57 }
 0x353   :  { %v2349_v16 = vadd.f32 %v2348_v62, %v2347_v22  ;;  %v2354_v22 = vsel %vm771_vm2, %v2321_v13, 0.0  ;;  %v2356_v28 = vsel %vm771_vm2, %v2322_v8, 0.0  ;;  %v2358_v45 = vsel %vm771_vm2, %v2323_v23, 0.0 }
 0x354   :  { %v2360_v59 = vsel %vm771_vm2, %v2324_v27, 0.0  ;;  %v2364_v13 = vsel %vm771_vm2, %v2326_v19, 0.0  ;;  %v2100_v27 = vld [vmem:[%s7220_s6] sm:$0x1] }
 0x355   :  { %v2351_v55 = vadd.f32 %v2350_v21, %v2349_v16  ;;  %v2325_v21 = vmul.f32 %v2305_v25, %v2305_v25 }
 0x357   :  { %v2353_v29 = vadd.f32 %v2352_v1, %v2351_v55  ;;  %v2362_v63 = vsel %vm771_vm2, %v2325_v21, 0.0 }
 0x359   :  { %v2355_v62 = vadd.f32 %v2354_v22, %v2353_v29 }
 0x35b   :  { %v2357_v16 = vadd.f32 %v2356_v28, %v2355_v62 }
 0x35d   :  { %v2359_v38 = vadd.f32 %v2358_v45, %v2357_v16  ;;  %v2099_v45 = vld [vmem:[%s7219_s5] sm:$0x1] }
 0x35f   :  { %v2361_v55 = vadd.f32 %v2360_v59, %v2359_v38 }
 0x361   :  { %v2363_v30 = vadd.f32 %v2362_v63, %v2361_v55 }
 0x363   :  { %v2365_v1 = vadd.f32 %v2364_v13, %v2363_v30 }
 0x365   :  { %v2366_v29 = vrot.slane %v2365_v1, 4 }
 0x367   :  { %v2367_v41 = vadd.f32 %v2366_v29, %v2365_v1 }
 0x369   :  { %v2368_v60 = vrot.slane %v2367_v41, 2 }
 0x36b   :  { %v2369_v22 = vadd.f32 %v2368_v60, %v2367_v41 }
 0x36d   :  { %v2370_v8 = vrot.slane %v2369_v22, 1 }
 0x36f   :  { %v2371_v62 = vadd.f32 %v2370_v8, %v2369_v22 }
 0x371   :  { %v2372_v25 = vmul.f32 0.007936508, %v2371_v62 }
 0x373   :  { %v2373_v28 = vadd.f32 1e-05, %v2372_v25 }
 0x375   :  { %4704 = vrsqrt.f32 %v2373_v28 }
 0x37f   :  { %v4705_v23 = vpop.eup %4704 }
 0x380   :  { %v2375_v57 = vmul.f32 %v4705_v23, %v2099_v45 }
 0x382   :  { %v2376_v16 = vmul.f32 %v2375_v57, %v6242_v0  ;;  %v6332_v21 = vrot.slane %v2375_v57, %v5554_v53 }
 0x384   :  { %v2377_v38 = vsub.f32 %v2100_v27, %v2376_v16  ;;  %v2401_v19 = vmul.f32 %v6332_v21, %v6216_v46  ;;  %v2384_v59 = vmul.f32 %v6096_v58, %v6332_v21  ;;  %v2385_v55 = vmul.f32 %v6104_v52, %v6332_v21 }
 0x385   :  { %v2386_v63 = vmul.f32 %v6094_v47, %v6332_v21  ;;  %v2387_v30 = vmul.f32 %v6100_v3, %v6332_v21  ;;  %v2388_v0 = vmul.f32 %v6121_v18, %v6332_v21  ;;  %v2389_v13 = vmul.f32 %v6128_v15, %v6332_v21 }
 0x386   :  { %v6349_v46 = vrot.slane %v2377_v38, %v5554_v53  ;;  %v2390_v58 = vmul.f32 %v6118_v39, %v6332_v21  ;;  %v2391_v52 = vmul.f32 %v6123_v34, %v6332_v21  ;;  %v2392_v47 = vmul.f32 %v6145_v20, %v6332_v21  ;;  %v6378_v38 = vpop.permute.xlu0 %2522 }
 0x387   :  { %v2393_v3 = vmul.f32 %v6154_v17, %v6332_v21  ;;  %v2394_v18 = vmul.f32 %v6142_v36, %v6332_v21  ;;  %v2395_v15 = vmul.f32 %v6149_v51, %v6332_v21  ;;  %v2396_v1 = vmul.f32 %v6332_v21, %v6170_v50 }
 0x388   :  { %v2427_v39 = vadd.f32 %v6349_v46, %v2401_v19  ;;  %v2410_v29 = vadd.f32 %v6349_v46, %v2384_v59  ;;  %v2411_v34 = vadd.f32 %v6349_v46, %v2385_v55  ;;  %v2412_v20 = vadd.f32 %v6349_v46, %v2386_v63 }
 0x389   :  { %v2413_v41 = vadd.f32 %v6349_v46, %v2387_v30  ;;  %v2414_v17 = vadd.f32 %v6349_v46, %v2388_v0  ;;  %v2415_v36 = vadd.f32 %v6349_v46, %v2389_v13  ;;  %v2416_v60 = vadd.f32 %v6349_v46, %v2390_v58  ;;  %v6382_v30 = vpop.permute.xlu1 %2527 }
 0x38a   :  { %v2447_v51 = vmax.f32 %v2427_v39, 0.0  ;;  %v2430_v22 = vmax.f32 %v2410_v29, 0.0  ;;  %v2431_v8 = vmax.f32 %v2411_v34, 0.0  ;;  %v2432_v50 = vmax.f32 %v2412_v20, 0.0  ;;  %v6412_v29 = vpop.permute.xlu0 %2532 }
 0x38b   :  { %v2433_v62 = vmax.f32 %v2413_v41, 0.0  ;;  %v2417_v25 = vadd.f32 %v6349_v46, %v2391_v52  ;;  %v2434_v28 = vmax.f32 %v2414_v17, 0.0  ;;  %v2435_v45 = vmax.f32 %v2415_v36, 0.0 }
 0x38c   :  { %v2467_v23 = vmul.f32 %v2447_v51, %v6207_v54  ;;  %v2450_v57 = vmul.f32 %v2430_v22, %v6080_v33  ;;  %v2451_v27 = vmul.f32 %v2431_v8, %v6082_v61  ;;  %v2452_v16 = vmul.f32 %v2432_v50, %v6084_v26 }
 0x38d   :  { %v2453_v19 = vmul.f32 %v2433_v62, %v6086_v9  ;;  %v2436_v59 = vmax.f32 %v2416_v60, 0.0  ;;  %v2437_v55 = vmax.f32 %v2417_v25, 0.0  ;;  %v2454_v63 = vmul.f32 %v2434_v28, %v6088_v40  ;;  %v6416_v17 = vpop.permute.xlu1 %2537 }
 0x38e   :  { %2487 = vst.msk [vmem:[#allocation2 + $0x88] sm:$0xff] %vm771_vm2, %v2467_v23  ;;  %2470 = vst.msk [vmem:[#allocation2] sm:$0xff] %vm771_vm2, %v2450_v57  ;;  %v2455_v33 = vmul.f32 %v2435_v45, %v6090_v24  ;;  %v2418_v61 = vadd.f32 %v6349_v46, %v2392_v47  ;;  %v2419_v26 = vadd.f32 %v6349_v46, %v2393_v3 }
 0x38f   :  { %2471 = vst.msk [vmem:[#allocation2 + $0x8] sm:$0xff] %vm771_vm2, %v2451_v27  ;;  %2472 = vst.msk [vmem:[#allocation2 + $0x10] sm:$0xff] %vm771_vm2, %v2452_v16  ;;  %v2420_v9 = vadd.f32 %v6349_v46, %v2394_v18  ;;  %v2456_v40 = vmul.f32 %v2436_v59, %v6092_v44  ;;  %v2457_v54 = vmul.f32 %v2437_v55, %v6098_v2 }
 0x390   :  { %2473 = vst.msk [vmem:[#allocation2 + $0x18] sm:$0xff] %vm771_vm2, %v2453_v19  ;;  %2474 = vst.msk [vmem:[#allocation2 + $0x20] sm:$0xff] %vm771_vm2, %v2454_v63  ;;  %v2421_v0 = vadd.f32 %v6349_v46, %v2395_v15  ;;  %v2397_v13 = vmul.f32 %v6332_v21, %v6179_v49  ;;  %v2438_v24 = vmax.f32 %v2418_v61, 0.0  ;;  %v2439_v58 = vmax.f32 %v2419_v26, 0.0  ;;  %v6441_v19 = vpop.permute.xlu0 %2542  ;;  %v4682_v63 = vld [vmem:[%s7218_s7] sm:$0xff]  }
 0x391   :  { %2475 = vst.msk [vmem:[#allocation2 + $0x28] sm:$0xff] %vm771_vm2, %v2455_v33  ;;  %v2440_v52 = vmax.f32 %v2420_v9, 0.0  ;;  %v2398_v47 = vmul.f32 %v6166_v4, %v6332_v21  ;;  %2476 = vst.msk [vmem:[#allocation2 + $0x30] sm:$0xff] %vm771_vm2, %v2456_v40  ;;  %v2399_v2 = vmul.f32 %v6175_v43, %v6332_v21  ;;  %v2422_v3 = vadd.f32 %v6349_v46, %v2396_v1 }
 0x392   :  { %2477 = vst.msk [vmem:[#allocation2 + $0x38] sm:$0xff] %vm771_vm2, %v2457_v54  ;;  %v2441_v44 = vmax.f32 %v2421_v0, 0.0  ;;  %v2423_v49 = vadd.f32 %v6349_v46, %v2397_v13  ;;  %v2458_v18 = vmul.f32 %v2438_v24, %v6110_v37  ;;  %v2459_v15 = vmul.f32 %v2439_v58, %v6116_v31 }
 0x393   :  { %v2460_v39 = vmul.f32 %v2440_v52, %v6130_v7  ;;  %v2424_v4 = vadd.f32 %v6349_v46, %v2398_v47  ;;  %v2425_v20 = vadd.f32 %v6349_v46, %v2399_v2  ;;  %v2442_v41 = vmax.f32 %v2422_v3, 0.0 }
 0x394   :  { %v2461_v34 = vmul.f32 %v2441_v44, %v6137_v11  ;;  %v2443_v43 = vmax.f32 %v2423_v49, 0.0  ;;  %2478 = vst.msk [vmem:[#allocation2 + $0x40] sm:$0xff] %vm771_vm2, %v2458_v18  ;;  %2479 = vst.msk [vmem:[#allocation2 + $0x48] sm:$0xff] %vm771_vm2, %v2459_v15  ;;  %v2400_v31 = vmul.f32 %v6332_v21, %v6209_v35  ;;  %v2402_v7 = vmul.f32 %v6204_v42, %v6332_v21  ;;  %v6474_v49 = vpop.permute.xlu0 %2552 }
 0x395   :  { %2480 = vst.msk [vmem:[#allocation2 + $0x50] sm:$0xff] %vm771_vm2, %v2460_v39  ;;  %v2444_v37 = vmax.f32 %v2424_v4, 0.0  ;;  %v2403_v11 = vmul.f32 %v6214_v12, %v6332_v21  ;;  %v2445_v60 = vmax.f32 %v2425_v20, 0.0  ;;  %v2462_v51 = vmul.f32 %v2442_v41, %v6147_v6 }
 0x396   :  { %v2490_v1 = vld [vmem:[#allocation2] ss:$2 sm:$0xff]  ;;  %v2500_v36 = vld [vmem:[#allocation2 + $0x1] ss:$2 sm:$0xff]  ;;  %2481 = vst.msk [vmem:[#allocation2 + $0x58] sm:$0xff] %vm771_vm2, %v2461_v34  ;;  %v2463_v22 = vmul.f32 %v2443_v43, %v6156_v14  ;;  %v2426_v25 = vadd.f32 %v6349_v46, %v2400_v31  ;;  %v2428_v42 = vadd.f32 %v6349_v46, %v2402_v7  ;;  %v4684_v7 = vld [vmem:[%s7218_s7 + $0x10] sm:$0xff]  }
 0x397   :  { %v2491_v8 = vld [vmem:[#allocation2 + $0x10] ss:$2 sm:$0xff]  ;;  %v2501_v50 = vld [vmem:[#allocation2 + $0x11] ss:$2 sm:$0xff]  ;;  %v2510_v62 = vmax.f32 %v2490_v1, %v2500_v36  ;;  %v2464_v35 = vmul.f32 %v2444_v37, %v6168_v32  ;;  %v2465_v45 = vmul.f32 %v2445_v60, %v6177_v10  ;;  %2482 = vst.msk [vmem:[#allocation2 + $0x60] sm:$0xff] %vm771_vm2, %v2462_v51  ;;  %v2429_v6 = vadd.f32 %v6349_v46, %v2403_v11  ;;  %v6447_v46 = vpop.permute.xlu1 %2547 }
 0x398   :  { %v2511_v28 = vmax.f32 %v2491_v8, %v2501_v50  ;;  %v2492_v12 = vld [vmem:[#allocation2 + $0x20] ss:$2 sm:$0xff]  ;;  %v2502_v21 = vld [vmem:[#allocation2 + $0x21] ss:$2 sm:$0xff]  ;;  %2483 = vst.msk [vmem:[#allocation2 + $0x68] sm:$0xff] %vm771_vm2, %v2463_v22  ;;  %v2446_v27 = vmax.f32 %v2426_v25, 0.0 }
 0x399   :  { %v6438_v14 = vmul.f32 %v6378_v38, %v2510_v62  ;;  %v2493_v23 = vld [vmem:[#allocation2 + $0x30] ss:$2 sm:$0xff]  ;;  %v2503_v32 = vld [vmem:[#allocation2 + $0x31] ss:$2 sm:$0xff]  ;;  %v2512_v57 = vmax.f32 %v2492_v12, %v2502_v21  ;;  %2484 = vst.msk [vmem:[#allocation2 + $0x70] sm:$0xff] %vm771_vm2, %v2464_v35  ;;  %v2448_v16 = vmax.f32 %v2428_v42, 0.0  ;;  %v6512_v12 = vpop.permute.xlu0 %2562 }
 0x39a   :  { %v6444_v10 = vmul.f32 %v6382_v30, %v2511_v28  ;;  %v2513_v59 = vmax.f32 %v2493_v23, %v2503_v32  ;;  %2485 = vst.msk [vmem:[#allocation2 + $0x78] sm:$0xff] %vm771_vm2, %v2465_v45  ;;  %v2449_v55 = vmax.f32 %v2429_v6, 0.0  ;;  %v2466_v61 = vmul.f32 %v2446_v27, %v6196_v5  ;;  %v4683_v5 = vld [vmem:[%s7218_s7 + $0x8] sm:$0xff]   ;;  %v4685_v6 = vld [vmem:[%s7218_s7 + $0x18] sm:$0xff]  }
 0x39b   :  { %v6453_v33 = vmul.f32 %v6412_v29, %v2512_v57  ;;  %v2468_v26 = vmul.f32 %v2448_v16, %v6225_v56  ;;  %v2494_v40 = vld [vmem:[#allocation2 + $0x40] ss:$2 sm:$0xff]  ;;  %v2504_v54 = vld [vmem:[#allocation2 + $0x41] ss:$2 sm:$0xff]  ;;  %v2872_v3 = vrot.slane %v6438_v14, 1  ;;  %v6478_v39 = vpop.permute.xlu1 %2557 }
 0x39c   :  { %v2634_v9 = vpack.c.bf16 %v6444_v10, %v6438_v14  ;;  %v2469_v0 = vmul.f32 %v2449_v55, %v6233_v48  ;;  %v6461_v13 = vmul.f32 %v6416_v17, %v2513_v59  ;;  %v2514_v52 = vmax.f32 %v2494_v40, %v2504_v54  ;;  %2486 = vst.msk [vmem:[#allocation2 + $0x80] sm:$0xff] %vm771_vm2, %v2466_v61 }
 0x39d   :  { %v2495_v24 = vld [vmem:[#allocation2 + $0x50] ss:$2 sm:$0xff]  ;;  %v2505_v58 = vld [vmem:[#allocation2 + $0x51] ss:$2 sm:$0xff]  ;;  %2488 = vst.msk [vmem:[#allocation2 + $0x90] sm:$0xff] %vm771_vm2, %v2468_v26  ;;  %v7457_v48 = vmov 0.0  }
 0x39e   :  { %4352 = vmatmul.mubr.msk.bf16.vlgmr.msra.gmra.mrb[52].mxu0 %vm771_vm2, %v2634_v9  ;;  %v2515_v56 = vmax.f32 %v2495_v24, %v2505_v58  ;;  %2489 = vst.msk [vmem:[#allocation2 + $0x98] sm:$0xff] %vm771_vm2, %v2469_v0  ;;  %v2875_v47 = vrot.slane %v6453_v33, 1  ;;  %v2873_v15 = vrot.slane %v6444_v10, 1  ;;  %v6481_v4 = vmul.f32 %v6441_v19, %v2514_v52 }
 0x39f   :  { %4372 = vmatpush3.bf16.msra.mxu0 %v4682_v63  ;;  %4355 = vmatprep.mubr.msk.bf16.mxu0 %vm4712_vm5, %v7457_v48  ;;  %v2496_v44 = vld [vmem:[#allocation2 + $0x60] ss:$2 sm:$0xff]  ;;  %v2506_v2 = vld [vmem:[#allocation2 + $0x61] ss:$2 sm:$0xff]  ;;  %v2877_v43 = vrot.slane %v6461_v13, 1  ;;  %v2635_v31 = vpack.c.bf16 %v6461_v13, %v6453_v33  ;;  %v6515_v45 = vpop.permute.xlu1 %2567 }
 0x3a0   :  { %4373 = vmatprep.subr.bf16.mxu0 %v7457_v48  ;;  %v2516_v18 = vmax.f32 %v2496_v44, %v2506_v2  ;;  %v6484_v34 = vmul.f32 %v6447_v46, %v2515_v56  ;;  %v6493_v11 = vsel %vm1418_vm3, %v2872_v3, %v2873_v15  ;;  %v6496_v1 = vsel %vm1418_vm3, %v2873_v15, %v2875_v47  ;;  %v4686_v15 = vld [vmem:[%s7218_s7 + $0x40] sm:$0xff]  }
 0x3a1   :  { %v2497_v20 = vld [vmem:[#allocation2 + $0x70] ss:$2 sm:$0xff]  ;;  %v2507_v41 = vld [vmem:[#allocation2 + $0x71] ss:$2 sm:$0xff]  ;;  %v2902_v8 = vpack.c.bf16 %v6496_v1, %v6493_v11  ;;  %v6508_v50 = vsel %vm1418_vm3, %v2875_v47, %v2877_v43  ;;  %v2879_v42 = vrot.slane %v6481_v4, 1  ;;  %v2591_v44 = vrot.slane %v6438_v14, 7 }
 0x3a2   :  { %v2517_v37 = vmax.f32 %v2497_v20, %v2507_v41  ;;  %v6500_v36 = vmul.f32 %v6474_v49, %v2516_v18  ;;  %v2881_v28 = vrot.slane %v6484_v34, 1  ;;  %v2636_v54 = vpack.c.bf16 %v6484_v34, %v6481_v4  ;;  %v4690_v11 = vld [vmem:[%s7221_s10 + $0x20] sm:$0xff]   ;;  %v4691_v1 = vld [vmem:[%s7221_s10 + $0x28] sm:$0xff]  }
 0x3a3   :  { %4374 = vmatpush3.bf16.msra.mxu0 %v4683_v5  ;;  %v2498_v51 = vld [vmem:[#allocation2 + $0x80] ss:$2 sm:$0xff]  ;;  %v2508_v22 = vld [vmem:[#allocation2 + $0x81] ss:$2 sm:$0xff]  ;;  %v6526_v32 = vsel %vm1418_vm3, %v2877_v43, %v2879_v42  ;;  %v2592_v2 = vrot.slane %v6444_v10, 7  ;;  %v2620_v18 = vsel %vm2590_vm6, 0.0, %v2591_v44  ;;  %4428 = vmatpush3.bf16.msra.mxu1 %v4690_v11 }
 0x3a4   :  { %4375 = vmatprep.subr.bf16.mxu0 %v7457_v48  ;;  %v6503_v60 = vmul.f32 %v6478_v39, %v2517_v37  ;;  %v2518_v25 = vmax.f32 %v2498_v51, %v2508_v22  ;;  %v6529_v57 = vsel %vm1418_vm3, %v2879_v42, %v2881_v28  ;;  %v2903_v16 = vpack.c.bf16 %v6526_v32, %v6508_v50  ;;  %v4687_v10 = vld [vmem:[%s7218_s7 + $0x48] sm:$0xff]   ;;  %v4689_v51 = vld [vmem:[%s7218_s7 + $0x58] sm:$0xff]  }
 0x3a5   :  { %v2499_v62 = vld [vmem:[#allocation2 + $0x90] ss:$2 sm:$0xff]  ;;  %v2509_v35 = vld [vmem:[#allocation2 + $0x91] ss:$2 sm:$0xff]  ;;  %v2883_v59 = vrot.slane %v6500_v36, 1  ;;  %v2593_v3 = vsel %vm2590_vm6, %v2591_v44, %v2592_v2  ;;  %v2594_v41 = vrot.slane %v6453_v33, 7  ;;  %4429 = vmatprep.subr.bf16.mxu1 %v7457_v48 }
 0x3a6   :  { %4356 = vmatmul.mubr.msk.bf16.gmra.mrb[56].mxu0 %vm771_vm2, %v2635_v31  ;;  %v2519_v21 = vmax.f32 %v2499_v62, %v2509_v35  ;;  %v6523_v23 = vmul.f32 %v6512_v12, %v2518_v25  ;;  %v2885_v55 = vrot.slane %v6503_v60, 1  ;;  %v2637_v56 = vpack.c.bf16 %v6503_v60, %v6500_v36  ;;  %v4688_v33 = vld [vmem:[%s7218_s7 + $0x50] sm:$0xff]  }
 0x3a7   :  { %4359 = vmatprep.mubr.msk.bf16.mxu0 %vm4712_vm5, %v7457_v48  ;;  %4376 = vmatpush3.bf16.msra.mxu0 %v4684_v7  ;;  %v6541_v61 = vsel %vm1418_vm3, %v2881_v28, %v2883_v59  ;;  %v2621_v20 = vpack.c.bf16 %v2593_v3, %v2620_v18  ;;  %v2596_v14 = vrot.slane %v6461_v13, 7  ;;  %v2595_v43 = vsel %vm2590_vm6, %v2592_v2, %v2594_v41 }
 0x3a8   :  { %4377 = vmatprep.subr.bf16.mxu0 %v7457_v48  ;;  %v6533_v27 = vmul.f32 %v6515_v45, %v2519_v21  ;;  %v2887_v63 = vrot.slane %v6523_v23, 1  ;;  %v2904_v26 = vpack.c.bf16 %v6541_v61, %v6529_v57  ;;  %v6546_v9 = vsel %vm1418_vm3, %v2883_v59, %v2885_v55  ;;  %4430 = vmatpush3.bf16.msra.mxu1 %v4691_v1 }
 0x3a9   :  { %v2597_v37 = vsel %vm2590_vm6, %v2594_v41, %v2596_v14  ;;  %v2598_v31 = vrot.slane %v6481_v4, 7  ;;  %v2600_v7 = vrot.slane %v6484_v34, 7  ;;  %v2602_v34 = vrot.slane %v6500_v36, 7  ;;  %4431 = vmatprep.subr.bf16.mxu1 %v7457_v48 }
 0x3aa   :  { %v6549_v40 = vsel %vm1418_vm3, %v2885_v55, %v2887_v63  ;;  %v2889_v24 = vrot.slane %v6533_v27, 1  ;;  %v2638_v47 = vpack.c.bf16 %v6533_v27, %v6523_v23  ;;  %v2622_v13 = vpack.c.bf16 %v2597_v37, %v2595_v43  ;;  %v4693_v55 = vld [vmem:[%s7221_s10 + $0x38] sm:$0xff]  }
 0x3ab   :  { %4378 = vmatpush3.bf16.msra.mxu0 %v4685_v6  ;;  %v2905_v0 = vpack.c.bf16 %v6549_v40, %v6546_v9  ;;  %v2599_v22 = vsel %vm2590_vm6, %v2596_v14, %v2598_v31  ;;  %v2601_v62 = vsel %vm2590_vm6, %v2598_v31, %v2600_v7  ;;  %v2604_v35 = vrot.slane %v6503_v60, 7 }
 0x3ac   :  { %4399 = vmatprep.subr.bf16.mxu0 %v7457_v48  ;;  %v6559_v58 = vsel %vm1418_vm3, %v2887_v63, %v2889_v24  ;;  %v6562_v52 = vsel %vm1418_vm3, %v2889_v24, 0.0  ;;  %v2623_v4 = vpack.c.bf16 %v2601_v62, %v2599_v22  ;;  %v2603_v25 = vsel %vm2590_vm6, %v2600_v7, %v2602_v34 }
 0x3ad   :  { %v2906_v5 = vpack.c.bf16 %v6562_v52, %v6559_v58  ;;  %v2605_v42 = vsel %vm2590_vm6, %v2602_v34, %v2604_v35  ;;  %v2606_v21 = vrot.slane %v6523_v23, 7  ;;  %v2608_v6 = vrot.slane %v6533_v27, 7 }
 0x3ae   :  { %4360 = vmatmul.mubr.msk.bf16.gmra.mrb[60].mxu0 %vm771_vm2, %v2636_v54  ;;  %v2624_v28 = vpack.c.bf16 %v2605_v42, %v2603_v25 }
 0x3af   :  { %4363 = vmatprep.mubr.msk.bf16.mxu0 %vm4712_vm5, %v7457_v48  ;;  %v2607_v36 = vsel %vm2590_vm6, %v2604_v35, %v2606_v21  ;;  %v2609_v60 = vsel %vm2590_vm6, %v2606_v21, %v2608_v6 }
 0x3b0   :  { %v2625_v59 = vpack.c.bf16 %v2609_v60, %v2607_v36 }
 0x3b6   :  { %4364 = vmatmul.mubr.msk.bf16.gmra.mrb[64].mxu0 %vm771_vm2, %v2637_v56 }
 0x3b7   :  { %4367 = vmatprep.mubr.msk.bf16.mxu0 %vm4712_vm5, %v7457_v48 }
 0x3be   :  { %4368 = vmatmul.mubr.msk.bf16.gmra.mrb[68].mxu0 %vm771_vm2, %v2638_v47 }
 0x3bf   :  { %4379 = vmatprep.mubr.msk.bf16.mxu0 %vm4712_vm5, %v7457_v48 }
 0x3c6   :  { %4380 = vmatmul.mubr.msk.bf16.vlgmr.msra.gmra.mrb[52].mxu0 %vm771_vm2, %v2621_v20 }
 0x3c7   :  { %4400 = vmatpush3.bf16.msra.mxu0 %v4686_v15  ;;  %4383 = vmatprep.mubr.msk.bf16.mxu0 %vm4712_vm5, %v7457_v48 }
 0x3c8   :  { %4401 = vmatprep.subr.bf16.mxu0 %v7457_v48 }
 0x3cb   :  { %4402 = vmatpush3.bf16.msra.mxu0 %v4687_v10 }
 0x3cc   :  { %4403 = vmatprep.subr.bf16.mxu0 %v7457_v48 }
 0x3ce   :  { %4384 = vmatmul.mubr.msk.bf16.gmra.mrb[56].mxu0 %vm771_vm2, %v2622_v13 }
 0x3cf   :  { %4387 = vmatprep.mubr.msk.bf16.mxu0 %vm4712_vm5, %v7457_v48  ;;  %4404 = vmatpush3.bf16.msra.mxu0 %v4688_v33 }
 0x3d0   :  { %4405 = vmatprep.subr.bf16.mxu0 %v7457_v48 }
 0x3d3   :  { %4406 = vmatpush3.bf16.msra.mxu0 %v4689_v51 }
 0x3d6   :  { %4388 = vmatmul.mubr.msk.bf16.gmra.mrb[60].mxu0 %vm771_vm2, %v2623_v4 }
 0x3d7   :  { %4391 = vmatprep.mubr.msk.bf16.mxu0 %vm4712_vm5, %v7457_v48 }
 0x3de   :  { %4392 = vmatmul.mubr.msk.bf16.gmra.mrb[64].mxu0 %vm771_vm2, %v2624_v28 }
 0x3df   :  { %4395 = vmatprep.mubr.msk.bf16.mxu0 %vm4712_vm5, %v7457_v48 }
 0x3e6   :  { %4396 = vmatmul.mubr.msk.bf16.gmra.mrb[68].mxu0 %vm771_vm2, %v2625_v59 }
 0x3e7   :  { %4407 = vmatprep.mubr.msk.bf16.mxu0 %vm4712_vm5, %v7457_v48 }
 0x3ee   :  { %4408 = vmatmul.mubr.msk.bf16.vlgmr.msra.gmra.mrb[52].mxu0 %vm771_vm2, %v2902_v8  ;;  %v4692_v8 = vld [vmem:[%s7221_s10 + $0x30] sm:$0xff]  }
 0x3ef   :  { %4411 = vmatprep.mubr.msk.bf16.mxu0 %vm4712_vm5, %v7457_v48  ;;  %4432 = vmatpush3.bf16.msra.mxu1 %v4692_v8 }
 0x3f0   :  { %4433 = vmatprep.subr.bf16.mxu1 %v7457_v48 }
 0x3f3   :  { %4434 = vmatpush3.bf16.msra.mxu1 %v4693_v55 }
 0x3f4   :  { %4455 = vmatprep.subr.bf16.mxu1 %v7457_v48 }
 0x3f6   :  { %4412 = vmatmul.mubr.msk.bf16.gmra.mrb[56].mxu0 %vm771_vm2, %v2903_v16 }
 0x3f7   :  { %4415 = vmatprep.mubr.msk.bf16.mxu0 %vm4712_vm5, %v7457_v48 }
 0x3fe   :  { %4416 = vmatmul.mubr.msk.bf16.gmra.mrb[60].mxu0 %vm771_vm2, %v2904_v26 }
 0x3ff   :  { %4419 = vmatprep.mubr.msk.bf16.mxu0 %vm4712_vm5, %v7457_v48 }
 0x406   :  { %4420 = vmatmul.mubr.msk.bf16.gmra.mrb[64].mxu0 %vm771_vm2, %v2905_v0 }
 0x407   :  { %4423 = vmatprep.mubr.msk.bf16.mxu0 %vm4712_vm5, %v7457_v48 }
 0x40e   :  { %4424 = vmatmul.mubr.msk.bf16.gmra.mrb[68].mxu0 %vm771_vm2, %v2906_v5 }
 0x4c1   :  { %v6663_v50 = vpop.f32.mrb[52].mxu0 }
 0x4c2   :  { %v3040_v23 = vmul.f32 %v6663_v50, %v6378_v38  ;;  %v4409_v32 = vpop.f32.mrb[53].mxu0 }
 0x4c3   :  { %v6668_v57 = vpop.f32.mrb[54].mxu0 }
 0x4c4   :  { %v3041_v27 = vmul.f32 %v6668_v57, %v6382_v30  ;;  %v4410_v16 = vpop.f32.mrb[55].mxu0  ;;  %v3050_v63 = vsel %vm771_vm2, %v3040_v23, 0.0 }
 0x4c6   :  { %v3051_v61 = vsel %vm771_vm2, %v3041_v27, 0.0 }
 0x4c7   :  { %v3052_v26 = vadd.f32 %v3051_v61, %v3050_v63 }
 0x4c9   :  { %v6678_v9 = vpop.f32.mrb[56].mxu0 }
 0x4ca   :  { %v3042_v40 = vmul.f32 %v6678_v9, %v6412_v29  ;;  %v4413_v54 = vpop.f32.mrb[57].mxu0 }
 0x4cb   :  { %v6683_v0 = vpop.f32.mrb[58].mxu0 }
 0x4cc   :  { %v3053_v24 = vsel %vm771_vm2, %v3042_v40, 0.0  ;;  %v3043_v58 = vmul.f32 %v6683_v0, %v6416_v17  ;;  %v4414_v52 = vpop.f32.mrb[59].mxu0 }
 0x4cd   :  { %v3054_v5 = vadd.f32 %v3053_v24, %v3052_v26 }
 0x4ce   :  { %v3055_v56 = vsel %vm771_vm2, %v3043_v58, 0.0 }
 0x4cf   :  { %v3056_v47 = vadd.f32 %v3055_v56, %v3054_v5 }
 0x4d1   :  { %v6689_v44 = vpop.f32.mrb[60].mxu0 }
 0x4d2   :  { %v3044_v2 = vmul.f32 %v6689_v44, %v6441_v19  ;;  %v4417_v3 = vpop.f32.mrb[61].mxu0 }
 0x4d3   :  { %v6693_v18 = vpop.f32.mrb[62].mxu0 }
 0x4d4   :  { %v3057_v15 = vsel %vm771_vm2, %v3044_v2, 0.0  ;;  %v3045_v20 = vmul.f32 %v6693_v18, %v6447_v46  ;;  %v4418_v41 = vpop.f32.mrb[63].mxu0 }
 0x4d5   :  { %v3058_v14 = vadd.f32 %v3057_v15, %v3056_v47 }
 0x4d6   :  { %v3059_v10 = vsel %vm771_vm2, %v3045_v20, 0.0 }
 0x4d7   :  { %v3060_v43 = vadd.f32 %v3059_v10, %v3058_v14 }
 0x4d9   :  { %v6699_v37 = vpop.f32.mrb[64].mxu0 }
 0x4da   :  { %v3046_v33 = vmul.f32 %v6699_v37, %v6474_v49  ;;  %v4421_v13 = vpop.f32.mrb[65].mxu0 }
 0x4db   :  { %v6703_v31 = vpop.f32.mrb[66].mxu0 }
 0x4dc   :  { %v3061_v7 = vsel %vm771_vm2, %v3046_v33, 0.0  ;;  %v3047_v51 = vmul.f32 %v6703_v31, %v6478_v39  ;;  %v4422_v22 = vpop.f32.mrb[67].mxu0 }
 0x4dd   :  { %v3062_v62 = vadd.f32 %v3061_v7, %v3060_v43 }
 0x4de   :  { %v3063_v4 = vsel %vm771_vm2, %v3047_v51, 0.0 }
 0x4df   :  { %v3064_v34 = vadd.f32 %v3063_v4, %v3062_v62 }
 0x4e1   :  { %v6709_v35 = vpop.f32.mrb[68].mxu0 }
 0x4e2   :  { %v3048_v25 = vmul.f32 %v6709_v35, %v6512_v12  ;;  %v4425_v42 = vpop.f32.mrb[69].mxu0 }
 0x4e3   :  { %v6713_v28 = vpop.f32.mrb[70].mxu0 }
 0x4e4   :  { %v3065_v21 = vsel %vm771_vm2, %v3048_v25, 0.0  ;;  %v3049_v6 = vmul.f32 %v6713_v28, %v6515_v45  ;;  %v4426_v36 = vpop.f32.mrb[71].mxu0 }
 0x4e5   :  { %v3066_v60 = vadd.f32 %v3065_v21, %v3064_v34 }
 0x4e6   :  { %v3067_v59 = vsel %vm771_vm2, %v3049_v6, 0.0 }
 0x4e7   :  { %v3068_v11 = vadd.f32 %v3067_v59, %v3066_v60 }
 0x4e9   :  { %v3069_v1 = vrot.slane %v3068_v11, 4 }
 0x4eb   :  { %v3070_v8 = vadd.f32 %v3069_v1, %v3068_v11 }
 0x4ed   :  { %v3071_v23 = vrot.slane %v3070_v8, 2 }
 0x4ef   :  { %v3072_v32 = vadd.f32 %v3071_v23, %v3070_v8 }
 0x4f1   :  { %v3073_v27 = vrot.slane %v3072_v32, 1 }
 0x4f3   :  { %v3074_v16 = vadd.f32 %v3073_v27, %v3072_v32 }
 0x4f5   :  { %v6719_v55 = vmul.f32 0.016129032, %v3074_v16 }
 0x4f7   :  { %v3076_v63 = vsub.f32 %v6663_v50, %v6719_v55  ;;  %v3077_v61 = vsub.f32 %v6668_v57, %v6719_v55  ;;  %v3078_v26 = vsub.f32 %v6678_v9, %v6719_v55  ;;  %v3079_v40 = vsub.f32 %v6683_v0, %v6719_v55 }
 0x4f8   :  { %v3080_v54 = vsub.f32 %v6689_v44, %v6719_v55  ;;  %v3081_v24 = vsub.f32 %v6693_v18, %v6719_v55  ;;  %v3082_v58 = vsub.f32 %v6699_v37, %v6719_v55  ;;  %v3083_v52 = vsub.f32 %v6703_v31, %v6719_v55 }
 0x4f9   :  { %v3084_v5 = vsub.f32 %v6709_v35, %v6719_v55  ;;  %v3085_v56 = vsub.f32 %v6713_v28, %v6719_v55  ;;  %v3086_v47 = vmul.f32 %v3076_v63, %v6378_v38  ;;  %v3087_v2 = vmul.f32 %v3077_v61, %v6382_v30 }
 0x4fa   :  { %v3088_v3 = vmul.f32 %v3078_v26, %v6412_v29  ;;  %v3089_v15 = vmul.f32 %v3079_v40, %v6416_v17  ;;  %v3090_v20 = vmul.f32 %v3080_v54, %v6441_v19  ;;  %v3091_v43 = vmul.f32 %v3081_v24, %v6447_v46 }
 0x4fb   :  { %v3096_v41 = vmul.f32 %v3086_v47, %v3086_v47  ;;  %v3097_v14 = vmul.f32 %v3087_v2, %v3087_v2  ;;  %v3092_v22 = vmul.f32 %v3082_v58, %v6474_v49  ;;  %v3093_v25 = vmul.f32 %v3083_v52, %v6478_v39 }
 0x4fc   :  { %v3098_v10 = vmul.f32 %v3088_v3, %v3088_v3  ;;  %v3099_v33 = vmul.f32 %v3089_v15, %v3089_v15  ;;  %v3100_v62 = vmul.f32 %v3090_v20, %v3090_v20  ;;  %v3101_v42 = vmul.f32 %v3091_v43, %v3091_v43 }
 0x4fd   :  { %v3106_v13 = vsel %vm771_vm2, %v3096_v41, 0.0  ;;  %v3107_v7 = vsel %vm771_vm2, %v3097_v14, 0.0  ;;  %v3094_v36 = vmul.f32 %v3084_v5, %v6512_v12  ;;  %v3102_v60 = vmul.f32 %v3092_v22, %v3092_v22  ;;  %v3038_v14 = vld [vmem:[%s7222_s8] sm:$0x1] }
 0x4fe   :  { %v3108_v51 = vadd.f32 %v3107_v7, %v3106_v13  ;;  %v3109_v4 = vsel %vm771_vm2, %v3098_v10, 0.0  ;;  %v3111_v21 = vsel %vm771_vm2, %v3099_v33, 0.0  ;;  %v3113_v59 = vsel %vm771_vm2, %v3100_v62, 0.0  ;;  %v3039_v33 = vld [vmem:[%s7223_s9] sm:$0x1] }
 0x4ff   :  { %v3095_v1 = vmul.f32 %v3085_v56, %v6515_v45  ;;  %v3103_v8 = vmul.f32 %v3093_v25, %v3093_v25  ;;  %v3115_v23 = vsel %vm771_vm2, %v3101_v42, 0.0  ;;  %v3104_v27 = vmul.f32 %v3094_v36, %v3094_v36 }
 0x500   :  { %v3110_v34 = vadd.f32 %v3109_v4, %v3108_v51  ;;  %v3117_v16 = vsel %vm771_vm2, %v3102_v60, 0.0 }
 0x501   :  { %v3105_v61 = vmul.f32 %v3095_v1, %v3095_v1  ;;  %v3119_v26 = vsel %vm771_vm2, %v3103_v8, 0.0  ;;  %v3121_v54 = vsel %vm771_vm2, %v3104_v27, 0.0 }
 0x502   :  { %v3112_v6 = vadd.f32 %v3111_v21, %v3110_v34 }
 0x503   :  { %v3123_v58 = vsel %vm771_vm2, %v3105_v61, 0.0 }
 0x504   :  { %v3114_v11 = vadd.f32 %v3113_v59, %v3112_v6 }
 0x506   :  { %v3116_v32 = vadd.f32 %v3115_v23, %v3114_v11 }
 0x508   :  { %v3118_v63 = vadd.f32 %v3117_v16, %v3116_v32 }
 0x50a   :  { %v3120_v40 = vadd.f32 %v3119_v26, %v3118_v63  ;;  %v4694_v26 = vld [vmem:[%s7221_s10] sm:$0xff]  }
 0x50c   :  { %v3122_v24 = vadd.f32 %v3121_v54, %v3120_v40 }
 0x50e   :  { %v3124_v52 = vadd.f32 %v3123_v58, %v3122_v24 }
 0x510   :  { %v3125_v5 = vrot.slane %v3124_v52, 4 }
 0x512   :  { %v3126_v56 = vadd.f32 %v3125_v5, %v3124_v52 }
 0x514   :  { %v3127_v47 = vrot.slane %v3126_v56, 2 }
 0x516   :  { %v3128_v2 = vadd.f32 %v3127_v47, %v3126_v56 }
 0x518   :  { %v3129_v3 = vrot.slane %v3128_v2, 1 }
 0x51a   :  { %v3130_v15 = vadd.f32 %v3129_v3, %v3128_v2 }
 0x51c   :  { %v3131_v20 = vmul.f32 0.016129032, %v3130_v15 }
 0x51e   :  { %v3132_v41 = vadd.f32 1e-05, %v3131_v20 }
 0x520   :  { %4706 = vrsqrt.f32 %v3132_v41 }
 0x52a   :  { %v4707_v10 = vpop.eup %4706 }
 0x52b   :  { %v3134_v43 = vmul.f32 %v4707_v10, %v3038_v14 }
 0x52d   :  { %v3135_v13 = vmul.f32 %v3134_v43, %v6719_v55  ;;  %v3141_v7 = vrot.slane %v3134_v43, %v5554_v53 }
 0x52f   :  { %v3136_v51 = vsub.f32 %v3039_v33, %v3135_v13  ;;  %v3152_v22 = vmul.f32 %v3141_v7, %v6713_v28  ;;  %v3143_v62 = vmul.f32 %v3141_v7, %v6663_v50  ;;  %v3144_v4 = vmul.f32 %v3141_v7, %v6668_v57  ;;  %v4695_v33 = vld [vmem:[%s7221_s10 + $0x8] sm:$0xff]  }
 0x530   :  { %v3145_v34 = vmul.f32 %v3141_v7, %v6678_v9  ;;  %v3146_v25 = vmul.f32 %v3141_v7, %v6683_v0  ;;  %v3147_v42 = vmul.f32 %v3141_v7, %v6689_v44  ;;  %v3148_v21 = vmul.f32 %v3141_v7, %v6693_v18 }
 0x531   :  { %v3157_v6 = vrot.slane %v3136_v51, %v5554_v53  ;;  %v3149_v55 = vmul.f32 %v3141_v7, %v6699_v37  ;;  %v3150_v36 = vmul.f32 %v3141_v7, %v6703_v31  ;;  %v3151_v28 = vmul.f32 %v3141_v7, %v6709_v35 }
 0x533   :  { %v3168_v60 = vadd.f32 %v3157_v6, %v3152_v22  ;;  %v3159_v50 = vadd.f32 %v3157_v6, %v3143_v62  ;;  %v3160_v59 = vadd.f32 %v3157_v6, %v3144_v4  ;;  %v3161_v57 = vadd.f32 %v3157_v6, %v3145_v34 }
 0x534   :  { %v3162_v11 = vadd.f32 %v3157_v6, %v3146_v25  ;;  %v3163_v9 = vadd.f32 %v3157_v6, %v3147_v42  ;;  %v3164_v1 = vadd.f32 %v3157_v6, %v3148_v21  ;;  %v3165_v0 = vadd.f32 %v3157_v6, %v3149_v55 }
 0x535   :  { %v3178_v8 = vmax.f32 %v3168_v60, 0.0  ;;  %v3169_v44 = vmax.f32 %v3159_v50, 0.0  ;;  %v3170_v23 = vmax.f32 %v3160_v59, 0.0  ;;  %v3171_v18 = vmax.f32 %v3161_v57, 0.0  ;;  %v4696_v59 = vld [vmem:[%s7221_s10 + $0x10] sm:$0xff]  }
 0x536   :  { %v3172_v32 = vmax.f32 %v3162_v11, 0.0  ;;  %v3173_v27 = vmax.f32 %v3163_v9, 0.0  ;;  %v3174_v16 = vmax.f32 %v3164_v1, 0.0  ;;  %v3166_v37 = vadd.f32 %v3157_v6, %v3150_v36 }
 0x537   :  { %v6781_v31 = vmul.f32 %v3178_v8, %v6515_v45  ;;  %v3179_v35 = vmul.f32 %v3169_v44, %v6378_v38  ;;  %v3180_v63 = vmul.f32 %v3170_v23, %v6382_v30  ;;  %v3181_v61 = vmul.f32 %v3171_v18, %v6412_v29 }
 0x538   :  { %v6790_v40 = vmul.f32 %v3172_v32, %v6416_v17  ;;  %v6793_v54 = vmul.f32 %v3173_v27, %v6441_v19  ;;  %v6796_v24 = vmul.f32 %v3174_v16, %v6447_v46  ;;  %v3175_v58 = vmax.f32 %v3165_v0, 0.0 }
 0x539   :  { %v3216_v52 = vrot.slane %v6781_v31, 7  ;;  %v3242_v5 = vpack.c.bf16 %v3180_v63, %v3179_v35  ;;  %v3483_v56 = vrot.slane %v3181_v61, 1  ;;  %v3176_v47 = vmax.f32 %v3166_v37, 0.0 }
 0x53a   :  { %v3243_v2 = vpack.c.bf16 %v6790_v40, %v3181_v61  ;;  %v3244_v3 = vpack.c.bf16 %v6796_v24, %v6793_v54  ;;  %v6803_v15 = vmul.f32 %v3175_v58, %v6474_v49  ;;  %v3167_v20 = vadd.f32 %v3157_v6, %v3151_v28 }
 0x53b   :  { %4436 = vmatmul.mubr.msk.bf16.vlgmr.msra.gmra.mrb[20].mxu1 %vm771_vm2, %v3242_v5  ;;  %v6807_v41 = vmul.f32 %v3176_v47, %v6478_v39  ;;  %v3199_v14 = vrot.slane %v3179_v35, 7  ;;  %v3200_v10 = vrot.slane %v3180_v63, 7  ;;  %v3202_v43 = vrot.slane %v3181_v61, 7 }
 0x53c   :  { %4456 = vmatpush3.bf16.msra.mxu1 %v4694_v26  ;;  %4439 = vmatprep.mubr.msk.bf16.mxu1 %vm4712_vm5, %v7457_v48  ;;  %v3177_v13 = vmax.f32 %v3167_v20, 0.0  ;;  %v3204_v7 = vrot.slane %v6790_v40, 7  ;;  %v3206_v51 = vrot.slane %v6793_v54, 7  ;;  %v3208_v22 = vrot.slane %v6796_v24, 7 }
 0x53d   :  { %4457 = vmatprep.subr.bf16.mxu1 %v7457_v48  ;;  %v3245_v62 = vpack.c.bf16 %v6807_v41, %v6803_v15  ;;  %v3201_v4 = vsel %vm2590_vm6, %v3199_v14, %v3200_v10  ;;  %v3228_v34 = vsel %vm2590_vm6, 0.0, %v3199_v14  ;;  %v6823_v25 = vsel %vm2590_vm6, %v3200_v10, %v3202_v43 }
 0x53e   :  { %v3187_v42 = vmul.f32 %v3177_v13, %v6512_v12  ;;  %v3229_v21 = vpack.c.bf16 %v3201_v4, %v3228_v34  ;;  %v6827_v6 = vsel %vm2590_vm6, %v3202_v43, %v3204_v7  ;;  %v6830_v55 = vsel %vm2590_vm6, %v3204_v7, %v3206_v51 }
 0x53f   :  { %v3230_v36 = vpack.c.bf16 %v6827_v6, %v6823_v25  ;;  %v6835_v28 = vsel %vm2590_vm6, %v3206_v51, %v3208_v22  ;;  %v3210_v60 = vrot.slane %v6803_v15, 7  ;;  %v3212_v50 = vrot.slane %v6807_v41, 7 }
 0x540   :  { %4458 = vmatpush3.bf16.msra.mxu1 %v4695_v33  ;;  %v3246_v57 = vpack.c.bf16 %v6781_v31, %v3187_v42  ;;  %v3231_v11 = vpack.c.bf16 %v6835_v28, %v6830_v55  ;;  %v3214_v9 = vrot.slane %v3187_v42, 7  ;;  %v3480_v1 = vrot.slane %v3179_v35, 1 }
 0x541   :  { %4459 = vmatprep.subr.bf16.mxu1 %v7457_v48  ;;  %v3211_v0 = vsel %vm2590_vm6, %v3208_v22, %v3210_v60  ;;  %v3213_v8 = vsel %vm2590_vm6, %v3210_v60, %v3212_v50  ;;  %v3481_v44 = vrot.slane %v3180_v63, 1  ;;  %v3485_v23 = vrot.slane %v6790_v40, 1  ;;  %v4697_v63 = vld [vmem:[%s7221_s10 + $0x18] sm:$0xff]  }
 0x542   :  { %v3232_v18 = vpack.c.bf16 %v3213_v8, %v3211_v0  ;;  %v3215_v32 = vsel %vm2590_vm6, %v3212_v50, %v3214_v9  ;;  %v3217_v27 = vsel %vm2590_vm6, %v3214_v9, %v3216_v52  ;;  %v3487_v16 = vrot.slane %v6793_v54, 1  ;;  %v4699_v54 = vld [vmem:[%s7221_s10 + $0x48] sm:$0xff]  }
 0x543   :  { %4440 = vmatmul.mubr.msk.bf16.gmra.mrb[24].mxu1 %vm771_vm2, %v3243_v2  ;;  %v3233_v37 = vpack.c.bf16 %v3217_v27, %v3215_v32  ;;  %v3482_v35 = vsel %vm1418_vm3, %v3480_v1, %v3481_v44  ;;  %v3484_v61 = vsel %vm1418_vm3, %v3481_v44, %v3483_v56  ;;  %v3486_v26 = vsel %vm1418_vm3, %v3483_v56, %v3485_v23 }
 0x544   :  { %4443 = vmatprep.mubr.msk.bf16.mxu1 %vm4712_vm5, %v7457_v48  ;;  %4460 = vmatpush3.bf16.msra.mxu1 %v4696_v59  ;;  %v3510_v40 = vpack.c.bf16 %v3484_v61, %v3482_v35  ;;  %v3488_v58 = vsel %vm1418_vm3, %v3485_v23, %v3487_v16  ;;  %v3489_v52 = vrot.slane %v6796_v24, 1  ;;  %v3491_v5 = vrot.slane %v6803_v15, 1  ;;  %v4700_v24 = vld [vmem:[%s7221_s10 + $0x50] sm:$0xff]  }
 0x545   :  { %4461 = vmatprep.subr.bf16.mxu1 %v7457_v48  ;;  %v3511_v47 = vpack.c.bf16 %v3488_v58, %v3486_v26  ;;  %v3493_v56 = vrot.slane %v6807_v41, 1  ;;  %v3495_v2 = vrot.slane %v3187_v42, 1  ;;  %v3497_v20 = vrot.slane %v6781_v31, 1  ;;  %v4698_v31 = vld [vmem:[%s7221_s10 + $0x40] sm:$0xff]  }
 0x546   :  { %v3490_v14 = vsel %vm1418_vm3, %v3487_v16, %v3489_v52  ;;  %v3492_v10 = vsel %vm1418_vm3, %v3489_v52, %v3491_v5 }
 0x547   :  { %v3512_v43 = vpack.c.bf16 %v3492_v10, %v3490_v14  ;;  %v3494_v33 = vsel %vm1418_vm3, %v3491_v5, %v3493_v56  ;;  %v3496_v13 = vsel %vm1418_vm3, %v3493_v56, %v3495_v2  ;;  %v3498_v7 = vsel %vm1418_vm3, %v3495_v2, %v3497_v20 }
 0x548   :  { %4462 = vmatpush3.bf16.msra.mxu1 %v4697_v63  ;;  %v3513_v15 = vpack.c.bf16 %v3496_v13, %v3494_v33  ;;  %v3509_v51 = vsel %vm1418_vm3, %v3497_v20, 0.0 }
 0x549   :  { %4483 = vmatprep.subr.bf16.mxu1 %v7457_v48  ;;  %v3514_v41 = vpack.c.bf16 %v3509_v51, %v3498_v7 }
 0x54b   :  { %4444 = vmatmul.mubr.msk.bf16.gmra.mrb[28].mxu1 %vm771_vm2, %v3244_v3  ;;  %v4701_v3 = vld [vmem:[%s7221_s10 + $0x58] sm:$0xff]  }
 0x54c   :  { %4447 = vmatprep.mubr.msk.bf16.mxu1 %vm4712_vm5, %v7457_v48 }
 0x553   :  { %4448 = vmatmul.mubr.msk.bf16.gmra.mrb[32].mxu1 %vm771_vm2, %v3245_v62 }
 0x554   :  { %4451 = vmatprep.mubr.msk.bf16.mxu1 %vm4712_vm5, %v7457_v48 }
 0x55b   :  { %4452 = vmatmul.mubr.msk.bf16.gmra.mrb[36].mxu1 %vm771_vm2, %v3246_v57 }
 0x55c   :  { %4463 = vmatprep.mubr.msk.bf16.mxu1 %vm4712_vm5, %v7457_v48 }
 0x563   :  { %4464 = vmatmul.mubr.msk.bf16.vlgmr.msra.gmra.mrb[20].mxu1 %vm771_vm2, %v3229_v21 }
 0x564   :  { %4484 = vmatpush3.bf16.msra.mxu1 %v4698_v31  ;;  %4467 = vmatprep.mubr.msk.bf16.mxu1 %vm4712_vm5, %v7457_v48 }
 0x565   :  { %4485 = vmatprep.subr.bf16.mxu1 %v7457_v48 }
 0x568   :  { %4486 = vmatpush3.bf16.msra.mxu1 %v4699_v54 }
 0x569   :  { %4487 = vmatprep.subr.bf16.mxu1 %v7457_v48 }
 0x56b   :  { %4468 = vmatmul.mubr.msk.bf16.gmra.mrb[24].mxu1 %vm771_vm2, %v3230_v36 }
 0x56c   :  { %4471 = vmatprep.mubr.msk.bf16.mxu1 %vm4712_vm5, %v7457_v48  ;;  %4488 = vmatpush3.bf16.msra.mxu1 %v4700_v24 }
 0x56d   :  { %4489 = vmatprep.subr.bf16.mxu1 %v7457_v48 }
 0x570   :  { %4490 = vmatpush3.bf16.msra.mxu1 %v4701_v3 }
 0x573   :  { %4472 = vmatmul.mubr.msk.bf16.gmra.mrb[28].mxu1 %vm771_vm2, %v3231_v11 }
 0x574   :  { %4475 = vmatprep.mubr.msk.bf16.mxu1 %vm4712_vm5, %v7457_v48 }
 0x57b   :  { %4476 = vmatmul.mubr.msk.bf16.gmra.mrb[32].mxu1 %vm771_vm2, %v3232_v18 }
 0x57c   :  { %4479 = vmatprep.mubr.msk.bf16.mxu1 %vm4712_vm5, %v7457_v48 }
 0x583   :  { %4480 = vmatmul.mubr.msk.bf16.gmra.mrb[36].mxu1 %vm771_vm2, %v3233_v37 }
 0x584   :  { %4491 = vmatprep.mubr.msk.bf16.mxu1 %vm4712_vm5, %v7457_v48 }
 0x58b   :  { %4492 = vmatmul.mubr.msk.bf16.vlgmr.msra.gmra.mrb[20].mxu1 %vm771_vm2, %v3510_v40 }
 0x58c   :  { %4495 = vmatprep.mubr.msk.bf16.mxu1 %vm4712_vm5, %v7457_v48 }
 0x593   :  { %4496 = vmatmul.mubr.msk.bf16.gmra.mrb[24].mxu1 %vm771_vm2, %v3511_v47 }
 0x594   :  { %4499 = vmatprep.mubr.msk.bf16.mxu1 %vm4712_vm5, %v7457_v48 }
 0x59b   :  { %4500 = vmatmul.mubr.msk.bf16.gmra.mrb[28].mxu1 %vm771_vm2, %v3512_v43 }
 0x59c   :  { %4503 = vmatprep.mubr.msk.bf16.mxu1 %vm4712_vm5, %v7457_v48 }
 0x5a3   :  { %4504 = vmatmul.mubr.msk.bf16.gmra.mrb[32].mxu1 %vm771_vm2, %v3513_v15 }
 0x5a4   :  { %4507 = vmatprep.mubr.msk.bf16.mxu1 %vm4712_vm5, %v7457_v48 }
 0x5ab   :  { %4508 = vmatmul.mubr.msk.bf16.gmra.mrb[36].mxu1 %vm771_vm2, %v3514_v41  ;;  %vm3892_vm2 = vcmask 257027  }
 0x65e   :  { %v6929_v22 = vpop.f32.mrb[20].mxu1 }
 0x65f   :  { %v3648_v62 = vmul.f32 %v6929_v22, %v6378_v38  ;;  %v4493_v4 = vpop.f32.mrb[21].mxu1 }
 0x660   :  { %v6933_v34 = vpop.f32.mrb[22].mxu1 }
 0x661   :  { %v3649_v25 = vmul.f32 %v6933_v34, %v6382_v30  ;;  %v4494_v42 = vpop.f32.mrb[23].mxu1  ;;  %v3659_v21 = vsel %vm3658_vm7, %v3648_v62, 0.0 }
 0x663   :  { %v3660_v6 = vsel %vm3658_vm7, %v3649_v25, 0.0 }
 0x664   :  { %v3661_v48 = vadd.f32 %v3660_v6, %v3659_v21 }
 0x666   :  { %v6939_v55 = vpop.f32.mrb[24].mxu1 }
 0x667   :  { %v3650_v36 = vmul.f32 %v6939_v55, %v6412_v29  ;;  %v4497_v28 = vpop.f32.mrb[25].mxu1 }
 0x668   :  { %v6943_v60 = vpop.f32.mrb[26].mxu1 }
 0x669   :  { %v3662_v50 = vsel %vm3658_vm7, %v3650_v36, 0.0  ;;  %v3651_v59 = vmul.f32 %v6943_v60, %v6416_v17  ;;  %v4498_v57 = vpop.f32.mrb[27].mxu1 }
 0x66a   :  { %v3663_v11 = vadd.f32 %v3662_v50, %v3661_v48 }
 0x66b   :  { %v3664_v9 = vsel %vm3658_vm7, %v3651_v59, 0.0 }
 0x66c   :  { %v3665_v1 = vadd.f32 %v3664_v9, %v3663_v11 }
 0x66e   :  { %v6949_v0 = vpop.f32.mrb[28].mxu1 }
 0x66f   :  { %v3652_v8 = vmul.f32 %v6949_v0, %v6441_v19  ;;  %v4501_v44 = vpop.f32.mrb[29].mxu1 }
 0x670   :  { %v6953_v23 = vpop.f32.mrb[30].mxu1 }
 0x671   :  { %v3666_v18 = vsel %vm3658_vm7, %v3652_v8, 0.0  ;;  %v3653_v32 = vmul.f32 %v6953_v23, %v6447_v46  ;;  %v4502_v27 = vpop.f32.mrb[31].mxu1 }
 0x672   :  { %v3667_v16 = vadd.f32 %v3666_v18, %v3665_v1 }
 0x673   :  { %v3668_v37 = vsel %vm3658_vm7, %v3653_v32, 0.0 }
 0x674   :  { %v3669_v35 = vadd.f32 %v3668_v37, %v3667_v16 }
 0x676   :  { %v6959_v61 = vpop.f32.mrb[32].mxu1 }
 0x677   :  { %v3654_v26 = vmul.f32 %v6959_v61, %v6474_v49  ;;  %v4505_v63 = vpop.f32.mrb[33].mxu1 }
 0x678   :  { %v6963_v40 = vpop.f32.mrb[34].mxu1 }
 0x679   :  { %v3670_v58 = vsel %vm3658_vm7, %v3654_v26, 0.0  ;;  %v3655_v52 = vmul.f32 %v6963_v40, %v6478_v39  ;;  %v4506_v5 = vpop.f32.mrb[35].mxu1 }
 0x67a   :  { %v3671_v47 = vadd.f32 %v3670_v58, %v3669_v35 }
 0x67b   :  { %v3672_v56 = vsel %vm3658_vm7, %v3655_v52, 0.0 }
 0x67c   :  { %v3673_v2 = vadd.f32 %v3672_v56, %v3671_v47 }
 0x67e   :  { %v6969_v20 = vpop.f32.mrb[36].mxu1 }
 0x67f   :  { %v3656_v14 = vmul.f32 %v6969_v20, %v6512_v12  ;;  %v4509_v10 = vpop.f32.mrb[37].mxu1 }
 0x680   :  { %v6973_v43 = vpop.f32.mrb[38].mxu1 }
 0x681   :  { %v3674_v33 = vsel %vm3658_vm7, %v3656_v14, 0.0  ;;  %v3657_v13 = vmul.f32 %v6973_v43, %v6515_v45  ;;  %v4510_v7 = vpop.f32.mrb[39].mxu1 }
 0x682   :  { %v3675_v15 = vadd.f32 %v3674_v33, %v3673_v2 }
 0x683   :  { %v3676_v51 = vsel %vm3658_vm7, %v3657_v13, 0.0 }
 0x684   :  { %v3677_v41 = vadd.f32 %v3676_v51, %v3675_v15 }
 0x686   :  { %v3678_v31 = vrot.slane %v3677_v41, 4 }
 0x688   :  { %v3679_v54 = vadd.f32 %v3678_v31, %v3677_v41 }
 0x68a   :  { %v3680_v24 = vrot.slane %v3679_v54, 2 }
 0x68c   :  { %v3681_v3 = vadd.f32 %v3680_v24, %v3679_v54 }
 0x68e   :  { %v3682_v62 = vrot.slane %v3681_v3, 1 }
 0x690   :  { %v3683_v4 = vadd.f32 %v3682_v62, %v3681_v3 }
 0x692   :  { %v6979_v25 = vmul.f32 0.016129032, %v3683_v4 }
 0x694   :  { %v3685_v42 = vsub.f32 %v6929_v22, %v6979_v25  ;;  %v3686_v21 = vsub.f32 %v6933_v34, %v6979_v25  ;;  %v3687_v6 = vsub.f32 %v6939_v55, %v6979_v25  ;;  %v3688_v48 = vsub.f32 %v6943_v60, %v6979_v25 }
 0x695   :  { %v3689_v36 = vsub.f32 %v6949_v0, %v6979_v25  ;;  %v3690_v28 = vsub.f32 %v6953_v23, %v6979_v25  ;;  %v3691_v50 = vsub.f32 %v6959_v61, %v6979_v25  ;;  %v3692_v59 = vsub.f32 %v6963_v40, %v6979_v25 }
 0x696   :  { %v3693_v57 = vsub.f32 %v6969_v20, %v6979_v25  ;;  %v3694_v11 = vsub.f32 %v6973_v43, %v6979_v25  ;;  %v3695_v9 = vmul.f32 %v3685_v42, %v6378_v38  ;;  %v3696_v1 = vmul.f32 %v3686_v21, %v6382_v30 }
 0x697   :  { %v3697_v8 = vmul.f32 %v3687_v6, %v6412_v29  ;;  %v3698_v44 = vmul.f32 %v3688_v48, %v6416_v17  ;;  %v3699_v18 = vmul.f32 %v3689_v36, %v6441_v19  ;;  %v3700_v37 = vmul.f32 %v3690_v28, %v6447_v46 }
 0x698   :  { %v3705_v32 = vmul.f32 %v3695_v9, %v3695_v9  ;;  %v3706_v27 = vmul.f32 %v3696_v1, %v3696_v1  ;;  %v3701_v52 = vmul.f32 %v3691_v50, %v6474_v49  ;;  %v3702_v2 = vmul.f32 %v3692_v59, %v6478_v39 }
 0x699   :  { %v3707_v16 = vmul.f32 %v3697_v8, %v3697_v8  ;;  %v3708_v35 = vmul.f32 %v3698_v44, %v3698_v44  ;;  %v3709_v5 = vmul.f32 %v3699_v18, %v3699_v18  ;;  %v3710_v14 = vmul.f32 %v3700_v37, %v3700_v37  ;;  %v3647_v37 = vld [vmem:[%s7225_s12] sm:$0x1] }
 0x69a   :  { %v3715_v26 = vsel %vm3658_vm7, %v3705_v32, 0.0  ;;  %v3716_v63 = vsel %vm3658_vm7, %v3706_v27, 0.0  ;;  %v3703_v13 = vmul.f32 %v3693_v57, %v6512_v12  ;;  %v3711_v7 = vmul.f32 %v3701_v52, %v3701_v52  ;;  %v3646_v32 = vld [vmem:[%s7224_s11] sm:$0x1] }
 0x69b   :  { %v3717_v58 = vadd.f32 %v3716_v63, %v3715_v26  ;;  %v3718_v47 = vsel %vm3658_vm7, %v3707_v16, 0.0  ;;  %v3720_v10 = vsel %vm3658_vm7, %v3708_v35, 0.0  ;;  %v3722_v15 = vsel %vm3658_vm7, %v3709_v5, 0.0 }
 0x69c   :  { %v3704_v41 = vmul.f32 %v3694_v11, %v6515_v45  ;;  %v3712_v31 = vmul.f32 %v3702_v2, %v3702_v2  ;;  %v3724_v54 = vsel %vm3658_vm7, %v3710_v14, 0.0  ;;  %v3713_v3 = vmul.f32 %v3703_v13, %v3703_v13 }
 0x69d   :  { %v3719_v56 = vadd.f32 %v3718_v47, %v3717_v58  ;;  %v3726_v62 = vsel %vm3658_vm7, %v3711_v7, 0.0 }
 0x69e   :  { %v3714_v42 = vmul.f32 %v3704_v41, %v3704_v41  ;;  %v3728_v21 = vsel %vm3658_vm7, %v3712_v31, 0.0  ;;  %v3730_v48 = vsel %vm3658_vm7, %v3713_v3, 0.0 }
 0x69f   :  { %v3721_v33 = vadd.f32 %v3720_v10, %v3719_v56 }
 0x6a0   :  { %v3732_v28 = vsel %vm3658_vm7, %v3714_v42, 0.0 }
 0x6a1   :  { %v3723_v51 = vadd.f32 %v3722_v15, %v3721_v33 }
 0x6a3   :  { %v3725_v24 = vadd.f32 %v3724_v54, %v3723_v51 }
 0x6a5   :  { %v3727_v4 = vadd.f32 %v3726_v62, %v3725_v24 }
 0x6a7   :  { %v3729_v6 = vadd.f32 %v3728_v21, %v3727_v4 }
 0x6a9   :  { %v3731_v36 = vadd.f32 %v3730_v48, %v3729_v6 }
 0x6ab   :  { %v3733_v50 = vadd.f32 %v3732_v28, %v3731_v36 }
 0x6ad   :  { %v3734_v59 = vrot.slane %v3733_v50, 4 }
 0x6af   :  { %v3735_v57 = vadd.f32 %v3734_v59, %v3733_v50 }
 0x6b1   :  { %v3736_v11 = vrot.slane %v3735_v57, 2 }
 0x6b3   :  { %v3737_v9 = vadd.f32 %v3736_v11, %v3735_v57 }
 0x6b5   :  { %v3738_v1 = vrot.slane %v3737_v9, 1 }
 0x6b7   :  { %v3739_v8 = vadd.f32 %v3738_v1, %v3737_v9 }
 0x6b9   :  { %v3740_v44 = vmul.f32 0.016129032, %v3739_v8 }
 0x6bb   :  { %v3741_v18 = vadd.f32 1e-05, %v3740_v44 }
 0x6bd   :  { %4708 = vrsqrt.f32 %v3741_v18 }
 0x6c7   :  { %v4709_v27 = vpop.eup %4708 }
 0x6c8   :  { %v3743_v16 = vmul.f32 %v4709_v27, %v3646_v32 }
 0x6ca   :  { %v3744_v35 = vmul.f32 %v3743_v16, %v6979_v25  ;;  %v3750_v26 = vrot.slane %v3743_v16, %v5554_v53 }
 0x6cc   :  { %v3745_v63 = vsub.f32 %v3647_v37, %v3744_v35  ;;  %v3752_v58 = vmul.f32 %v3750_v26, %v6929_v22  ;;  %v3753_v52 = vmul.f32 %v3750_v26, %v6933_v34  ;;  %v3754_v5 = vmul.f32 %v3750_v26, %v6939_v55 }
 0x6cd   :  { %v3755_v47 = vmul.f32 %v3750_v26, %v6943_v60  ;;  %v3756_v56 = vmul.f32 %v3750_v26, %v6949_v0  ;;  %v3757_v2 = vmul.f32 %v3750_v26, %v6953_v23  ;;  %v3758_v14 = vmul.f32 %v3750_v26, %v6959_v61 }
 0x6ce   :  { %v3759_v10 = vmul.f32 %v3750_v26, %v6963_v40  ;;  %v3760_v25 = vmul.f32 %v3750_v26, %v6969_v20  ;;  %v3761_v33 = vmul.f32 %v3750_v26, %v6973_v43  ;;  %v3766_v22 = vrot.slane %v3745_v63, %v5554_v53 }
 0x6d0   :  { %v3768_v13 = vadd.f32 %v3766_v22, %v3752_v58  ;;  %v3769_v34 = vadd.f32 %v3766_v22, %v3753_v52  ;;  %v3770_v7 = vadd.f32 %v3766_v22, %v3754_v5  ;;  %v3771_v55 = vadd.f32 %v3766_v22, %v3755_v47 }
 0x6d1   :  { %v3772_v15 = vadd.f32 %v3766_v22, %v3756_v56  ;;  %v3773_v60 = vadd.f32 %v3766_v22, %v3757_v2  ;;  %v3774_v51 = vadd.f32 %v3766_v22, %v3758_v14  ;;  %v3775_v0 = vadd.f32 %v3766_v22, %v3759_v10 }
 0x6d2   :  { %v3776_v41 = vadd.f32 %v3766_v22, %v3760_v25  ;;  %v3777_v23 = vadd.f32 %v3766_v22, %v3761_v33  ;;  %v3778_v31 = vmax.f32 %v3768_v13, 0.0  ;;  %v3779_v61 = vmax.f32 %v3769_v34, 0.0 }
 0x6d3   :  { %v3780_v40 = vmax.f32 %v3770_v7, 0.0  ;;  %v3781_v20 = vmax.f32 %v3771_v55, 0.0  ;;  %v3782_v54 = vmax.f32 %v3772_v15, 0.0  ;;  %v3783_v43 = vmax.f32 %v3773_v60, 0.0 }
 0x6d4   :  { %v3784_v53 = vmax.f32 %v3774_v51, 0.0  ;;  %v3785_v24 = vmax.f32 %v3775_v0, 0.0  ;;  %v3786_v3 = vmax.f32 %v3776_v41, 0.0  ;;  %v3787_v62 = vmax.f32 %v3777_v23, 0.0 }
 0x6d5   :  { %v7041_v4 = vmul.f32 %v3778_v31, %v6378_v38  ;;  %v7044_v42 = vmul.f32 %v3779_v61, %v6382_v30  ;;  %v7047_v21 = vmul.f32 %v3780_v40, %v6412_v29  ;;  %v7050_v6 = vmul.f32 %v3781_v20, %v6416_v17 }
 0x6d6   :  { %v7053_v48 = vmul.f32 %v3782_v54, %v6441_v19  ;;  %v7056_v36 = vmul.f32 %v3783_v43, %v6447_v46  ;;  %v7059_v28 = vmul.f32 %v3784_v53, %v6474_v49  ;;  %v7062_v38 = vmul.f32 %v3785_v24, %v6478_v39 }
 0x6d7   :  { %v7065_v30 = vmul.f32 %v3786_v3, %v6512_v12  ;;  %v7068_v29 = vmul.f32 %v3787_v62, %v6515_v45  ;;  %v3808_v17 = vrot.slane %v7041_v4, 1  ;;  %v3809_v19 = vrot.slane %v7044_v42, 1 }
 0x6d8   :  { %v3811_v50 = vrot.slane %v7047_v21, 1  ;;  %v3813_v46 = vrot.slane %v7050_v6, 1  ;;  %v3815_v49 = vrot.slane %v7053_v48, 1  ;;  %v3817_v59 = vrot.slane %v7056_v36, 1 }
 0x6d9   :  { %v3810_v39 = vsel %vm1418_vm3, %v3808_v17, %v3809_v19  ;;  %v3818_v12 = vrot.slane %v7059_v28, 1  ;;  %v3820_v57 = vrot.slane %v7062_v38, 1  ;;  %v3822_v45 = vrot.slane %v7065_v30, 1 }
 0x6da   :  { %v3812_v11 = vsel %vm1418_vm3, %v3809_v19, %v3811_v50  ;;  %v3814_v9 = vsel %vm1418_vm3, %v3811_v50, %v3813_v46  ;;  %v3816_v1 = vsel %vm1418_vm3, %v3813_v46, %v3815_v49  ;;  %v3824_v8 = vrot.slane %v7068_v29, 1 }
 0x6db   :  { %v3819_v44 = vsel %vm1418_vm3, %v3817_v59, %v3818_v12  ;;  %v3821_v18 = vsel %vm1418_vm3, %v3818_v12, %v3820_v57  ;;  %v3823_v32 = vsel %vm1418_vm3, %v3820_v57, %v3822_v45  ;;  %v3834_v27 = vmax.f32 %v7041_v4, %v3810_v39 }
 0x6dc   :  { %v3825_v16 = vsel %vm1418_vm3, %v3822_v45, %v3824_v8  ;;  %v3835_v37 = vmax.f32 %v7044_v42, %v3812_v11  ;;  %v3836_v35 = vmax.f32 %v7047_v21, %v3814_v9  ;;  %v3837_v26 = vmax.f32 %v7050_v6, %v3816_v1 }
 0x6dd   :  { %v3838_v63 = vmax.f32 %v7056_v36, %v3819_v44  ;;  %v3839_v58 = vmax.f32 %v7059_v28, %v3821_v18  ;;  %v3840_v52 = vmax.f32 %v7062_v38, %v3823_v32  ;;  %v3841_v5 = vmax.f32 %v7065_v30, %v3825_v16  ;;  %3877 = vst.msk [vmem:[%s7226_s16] sm:$0xf] %vm3876_vm8, %v3834_v27 }
 0x6de   :  { %3881 = vst.msk [vmem:[%s7226_s16 - $0x1] sm:$0xc0] %vm3880_vm9, %v3834_v27  ;;  %v3842_v47 = vrot.slane %v7041_v4, 2  ;;  %v3843_v56 = vrot.slane %v7044_v42, 2  ;;  %v3845_v2 = vrot.slane %v7047_v21, 2  ;;  %v3847_v14 = vrot.slane %v7050_v6, 2 }
 0x6df   :  { %3883 = vst.msk [vmem:[%s7226_s16 + $0x7] sm:$0x1] %vm3882_vm10, %v3835_v37  ;;  %v3849_v10 = vrot.slane %v7053_v48, 2  ;;  %v3851_v25 = vrot.slane %v7056_v36, 2  ;;  %v3852_v33 = vrot.slane %v7059_v28, 2  ;;  %v3854_v22 = vrot.slane %v7062_v38, 2 }
 0x6e0   :  { %3887 = vst.msk [vmem:[%s7226_s16 + $0x6] sm:$0x38] %vm3886_vm11, %v3835_v37  ;;  %3904 = vst.msk [vmem:[%s7226_s16 + $0x1f] sm:$0x38] %vm3886_vm11, %v3839_v58  ;;  %v3844_v13 = vsel %vm1832_vm4, %v3842_v47, %v3843_v56  ;;  %v3846_v34 = vsel %vm1832_vm4, %v3843_v56, %v3845_v2  ;;  %v3848_v7 = vsel %vm1832_vm4, %v3845_v2, %v3847_v14  ;;  %v3856_v55 = vrot.slane %v7065_v30, 2 }
 0x6e1   :  { %3891 = vst.msk [vmem:[%s7226_s16 + $0xd] sm:$0x7] %vm3890_vm12, %v3836_v35  ;;  %3906 = vst.msk [vmem:[%s7226_s16 + $0x26] sm:$0x7] %vm3890_vm12, %v3840_v52  ;;  %v3850_v15 = vsel %vm1832_vm4, %v3847_v14, %v3849_v10  ;;  %v3853_v60 = vsel %vm1832_vm4, %v3851_v25, %v3852_v33  ;;  %v3855_v51 = vsel %vm1832_vm4, %v3852_v33, %v3854_v22  ;;  %v3858_v0 = vrot.slane %v7068_v29, 2 }
 0x6e2   :  { %3895 = vst.msk [vmem:[%s7226_s16 + $0xc] sm:$0xe0] %vm3894_vm13, %v3836_v35  ;;  %3908 = vst.msk [vmem:[%s7226_s16 + $0x25] sm:$0xe0] %vm3894_vm13, %v3840_v52  ;;  %v3857_v41 = vsel %vm1832_vm4, %v3854_v22, %v3856_v55  ;;  %v3868_v23 = vmax.f32 %v3834_v27, %v3844_v13  ;;  %v3869_v31 = vmax.f32 %v3835_v37, %v3846_v34 }
 0x6e3   :  { %3898 = vst.msk [vmem:[%s7226_s16 + $0x13] sm:$0x3c] %vm3897_vm14, %v3837_v26  ;;  %3910 = vst.msk [vmem:[%s7226_s16 + $0x2c] sm:$0x3c] %vm3897_vm14, %v3841_v5  ;;  %v3870_v61 = vmax.f32 %v3836_v35, %v3848_v7  ;;  %v3859_v40 = vsel %vm1832_vm4, %v3856_v55, %v3858_v0  ;;  %v3871_v20 = vmax.f32 %v3837_v26, %v3850_v15 }
 0x6e4   :  { %3899 = vst.msk [vmem:[%s7226_s16 + $0x19] sm:$0xf] %vm3876_vm8, %v3838_v63  ;;  %v3872_v54 = vmax.f32 %v3838_v63, %v3853_v60  ;;  %v3873_v43 = vmax.f32 %v3839_v58, %v3855_v51  ;;  %v3874_v53 = vmax.f32 %v3840_v52, %v3857_v41  ;;  %v3875_v24 = vmax.f32 %v3841_v5, %v3859_v40 }
 0x6e5   :  { %3901 = vst.msk [vmem:[%s7226_s16 + $0x18] sm:$0xc0] %vm3880_vm9, %v3838_v63 }
 0x6e6   :  { %3902 = vst.msk [vmem:[%s7226_s16 + $0x20] sm:$0x1] %vm3882_vm10, %v3839_v58  ;;  %3896 = vst.msk [vmem:[%s7226_s16 + $0x14] sm:$0x1] %vm3882_vm10, %v3871_v20 }
 0x6e7   :  { %3879 = vst.msk [vmem:[%s7226_s16] sm:$0x10] %vm3878_vm15, %v3868_v23  ;;  %3900 = vst.msk [vmem:[%s7226_s16 + $0x19] sm:$0x10] %vm3878_vm15, %v3872_v54 }
 0x6e8   :  { %3885 = vst.msk [vmem:[%s7226_s16 + $0x7] sm:$0x2] %vm3884_vm0, %v3869_v31  ;;  %3903 = vst.msk [vmem:[%s7226_s16 + $0x20] sm:$0x2] %vm3884_vm0, %v3873_v43 }
 0x6e9   :  { %3889 = vst.msk [vmem:[%s7226_s16 + $0x6] sm:$0x40] %vm3888_vm1, %v3869_v31  ;;  %3905 = vst.msk [vmem:[%s7226_s16 + $0x1f] sm:$0x40] %vm3888_vm1, %v3873_v43 }
 0x6ea   :  { %3893 = vst.msk [vmem:[%s7226_s16 + $0xd] sm:$0x8] %vm3892_vm2, %v3870_v61  ;;  %3907 = vst.msk [vmem:[%s7226_s16 + $0x26] sm:$0x8] %vm3892_vm2, %v3874_v53 }
 0x6eb   :  { %3909 = vst.msk [vmem:[%s7226_s16 + $0x2d] sm:$0x1] %vm3882_vm10, %v3875_v24 }

</bundles_post_ra>
